<compile_context>
chip_gen: v7x
topology: tpu7x:2x2x1
jax: 0.10.0
libtpu: 0.0.40
codegen_flags: <defaults>
</compile_context>

<pallas_src>
import functools

import jax
import jax.numpy as jnp
import numpy as np
from jax.experimental import pallas as pl
from jax.experimental.pallas import tpu as pltpu

_PREC = jax.lax.Precision.HIGHEST


# ------------------------------ fused kernel ------------------------------- #
def _fused_decoder_kernel(x_ref, p4_ref, p3_ref,
                          w7_ref, b7_ref, w1_ref, b1_ref,
                          w23a_ref, w23b_ref, w3b_ref, b23_ref,
                          out_ref, act1_ref):
    f32 = jnp.float32
    M0 = x_ref.shape[0]               # H*W rows of this image
    M1, C1 = act1_ref.shape           # K1*H*W rows, 128 channels
    K1 = M1 // M0

    # conv_7_table (1x1 conv): plain channel matmul on the MXU.
    y0 = (jnp.dot(x_ref[...], w7_ref[...], precision=_PREC,
                  preferred_element_type=f32) + b7_ref[...])

    # upsample_1_table: all K1 kernel offsets fused into one wide matmul; each
    # 128-wide column chunk is the contiguous row block of one kernel offset.
    y1 = (jnp.dot(y0, w1_ref[...], precision=_PREC,
                  preferred_element_type=f32) + b1_ref[...])
    for q in range(K1):
        act1_ref[q * M0:(q + 1) * M0, :] = y1[:, q * C1:(q + 1) * C1]

    # upsample_2_table folded with upsample_3_table, split-K over both channel
    # concats:
    #   out[r1, (q2, j3)] = act1[r1] @ (w2a[q2] @ w3a)
    #                     + p4[r1]   @ (w2b[q2] @ w3a)
    #                     + p3[r1, (q2, :)] @ w3b          (block-diagonal)
    #                     + (b2 @ w3a + b3)
    out = (jnp.dot(act1_ref[...], w23a_ref[...], precision=_PREC,
                   preferred_element_type=f32)
           + jnp.dot(p4_ref[...], w23b_ref[...], precision=_PREC,
                     preferred_element_type=f32)
           + jnp.dot(p3_ref[...], w3b_ref[...], precision=_PREC,
                     preferred_element_type=f32)
           + b23_ref[...])
    out_ref[...] = out.astype(out_ref.dtype)


def _fused_decoder_call(x_flat, p4, p3, params, *, n_batch):
    M0 = x_flat.shape[0] // n_batch
    M1 = p4.shape[0] // n_batch
    Cx = x_flat.shape[1]
    Cp4 = p4.shape[1]
    Cp3K2 = p3.shape[1]
    C1 = params["w23a"].shape[0]
    n_out = params["w23a"].shape[1]

    weights = (params["w7"], params["b7"], params["w1"], params["b1"],
               params["w23a"], params["w23b"], params["w3b"], params["b23"])
    operands = (x_flat, p4, p3) + weights

    def batch_spec(shape):
        return pl.BlockSpec(shape, lambda n: (n, 0))

    def const_spec(shape):
        # Constant index_map: the same weight block is revisited every grid
        # step, so its copy is not re-issued across steps.
        return pl.BlockSpec(shape, lambda n: (0, 0))

    in_specs = ([batch_spec((M0, Cx)), batch_spec((M1, Cp4)),
                 batch_spec((M1, Cp3K2))]
                + [const_spec(w.shape) for w in weights])

    # Per-step VMEM budget: double-buffered per-image blocks + resident weights
    # + scratch, clamped to [32 MiB, 64 MiB] (v7x physical VMEM is 64 MiB).
    blk = 4 * (M0 * Cx + M1 * Cp4 + M1 * Cp3K2 + M1 * n_out)
    wgt = 4 * sum(int(np.prod(w.shape)) for w in weights)
    vmem = 2 * blk + 2 * wgt + 4 * M1 * C1 + (4 << 20)
    vmem = int(min(max(vmem, 32 << 20), 64 << 20))

    return pl.pallas_call(
        _fused_decoder_kernel,
        out_shape=jax.ShapeDtypeStruct((n_batch * M1, n_out), jnp.float32),
        grid_spec=pltpu.PrefetchScalarGridSpec(
            num_scalar_prefetch=0,
            grid=(n_batch,),                       # one image per grid step
            in_specs=in_specs,
            out_specs=batch_spec((M1, n_out)),
            scratch_shapes=[pltpu.VMEM((M1, C1), jnp.float32)]),
        compiler_params=pltpu.CompilerParams(
            dimension_semantics=("parallel",),     # megacore-shard over batch
            vmem_limit_bytes=vmem),
    )(*operands)


# ------------------------- jitted end-to-end forward ------------------------ #
@functools.partial(jax.jit, static_argnums=(0,))
def _decoder_forward(kernels, params, x, pool_3_out, pool_4_out):
    (kh1, kw1), (kh2, kw2), (kh3, kw3) = kernels[1], kernels[2], kernels[3]
    N, Cx, H, W = x.shape
    Cp4 = pool_4_out.shape[1]
    Cp3 = pool_3_out.shape[1]

    # NCHW -> rows=(n, h, w), cols=channels; batch outermost so each grid step
    # owns a contiguous row slab of every per-image operand.
    x_flat = jnp.transpose(x, (0, 2, 3, 1)).reshape(N * H * W, Cx)

    # pool_4 rows -> (n, a1, b1, h, w): matches upsample_1's row-block order.
    p4 = jnp.transpose(pool_4_out, (0, 2, 3, 1)).reshape(N, H, kh1, W, kw1, Cp4)
    p4 = jnp.transpose(p4, (0, 2, 4, 1, 3, 5)).reshape(N * kh1 * kw1 * H * W, Cp4)

    # pool_3 rows -> (n, a1, b1, h, w), cols -> (a2, b2, c): one wide matmul
    # against the block-diagonal folded w3b inside the kernel.
    p3 = jnp.transpose(pool_3_out, (0, 2, 3, 1)).reshape(
        N, H, kh1, kh2, W, kw1, kw2, Cp3)
    p3 = jnp.transpose(p3, (0, 2, 5, 1, 4, 3, 6, 7)).reshape(
        N * kh1 * kw1 * H * W, kh2 * kw2 * Cp3)

    out = _fused_decoder_call(x_flat, p4, p3, params, n_batch=N)

    # rows=(n, a1, b1, h, w), cols=(a2, b2, a3, b3) -> NCHW output (one-time glue).
    y = out.reshape(N, kh1, kw1, H, W, kh2, kw2, kh3, kw3)
    y = jnp.transpose(y, (0, 3, 1, 5, 7, 4, 2, 6, 8))
    return y.reshape(N, 1, H * kh1 * kh2 * kh3, W * kw1 * kw2 * kw3)


# ------------------------------ TableDecoder ------------------------------- #
def _uniform(key, shape, fan_in):
    bound = 1.0 / np.sqrt(fan_in)
    return jax.random.uniform(key, shape, jnp.float32, -bound, bound)


class TableDecoderPallas:
    """Pallas port of TableDecoder. Requires kernel_size == stride per layer."""

    def __init__(self, channels, kernels, strides, key):
        for k, s in zip(kernels, strides):
            assert tuple(k) == tuple(s), "kernel must equal stride in this port"
        assert tuple(kernels[0]) == (1, 1), "conv_7_table expected as 1x1 here"
        # TODO(synk): overlapping ConvTranspose2d (stride < kernel) and a
        # patchifying conv_7 (kernel > 1) are not implemented in this port.
        self.kernels = tuple(tuple(k) for k in kernels)

        ks = jax.random.split(key, 8)
        k0, k1, k2, k3 = self.kernels
        # conv_7_table: Conv2d(256 -> 256)
        self.w7 = _uniform(ks[0], (256, 256, k0[0], k0[1]), 256 * k0[0] * k0[1])
        self.b7 = _uniform(ks[1], (256,), 256 * k0[0] * k0[1])
        # upsample_1_table: ConvTranspose2d(256 -> 128)
        self.w_up1 = _uniform(ks[2], (256, 128, k1[0], k1[1]), 128 * k1[0] * k1[1])
        self.b_up1 = _uniform(ks[3], (128,), 128 * k1[0] * k1[1])
        # upsample_2_table: ConvTranspose2d(128 + channels[0] -> 256)
        cin2 = 128 + channels[0]
        self.w_up2 = _uniform(ks[4], (cin2, 256, k2[0], k2[1]), 256 * k2[0] * k2[1])
        self.b_up2 = _uniform(ks[5], (256,), 256 * k2[0] * k2[1])
        # upsample_3_table: ConvTranspose2d(256 + channels[1] -> 1)
        cin3 = 256 + channels[1]
        self.w_up3 = _uniform(ks[6], (cin3, 1, k3[0], k3[1]), 1 * k3[0] * k3[1])
        self.b_up3 = _uniform(ks[7], (1,), 1 * k3[0] * k3[1])

        self.params = self._pack_params()

    def _pack_params(self):
        """Pack / split / fold weights once into kernel matmul layout (f32)."""
        _, k1, k2, k3 = self.kernels
        K1f, K2f, K3f = k1[0] * k1[1], k2[0] * k2[1], k3[0] * k3[1]
        cin1, C1 = self.w_up1.shape[0], self.w_up1.shape[1]     # 256, 128
        cin2, C2 = self.w_up2.shape[0], self.w_up2.shape[1]     # 128+Cp4, 256
        cin3 = self.w_up3.shape[0]                              # 256+Cp3
        Cp4, Cp3 = cin2 - C1, cin3 - C2

        # conv_7 (1x1): (Cout, Cin, 1, 1) -> (Cin, Cout)
        w7m = jnp.transpose(self.w7[:, :, 0, 0], (1, 0))

        # upsample_1: (Cin, Cout, KH, KW) -> (Cin, KH*KW*Cout); column block q1
        # holds the weights of kernel offset q1 = a1*KW1 + b1.
        w1w = jnp.transpose(self.w_up1, (0, 2, 3, 1)).reshape(cin1, K1f * C1)
        b1w = jnp.tile(self.b_up1, K1f).reshape(1, K1f * C1)

        # Split upsample_2 / upsample_3 at the channel-concat boundaries.
        w2a = self.w_up2[:C1]        # acts on upsample_1 output
        w2b = self.w_up2[C1:]        # acts on pool_4
        w3a = self.w_up3[:C2, 0].reshape(C2, K3f)    # acts on upsample_2 output
        w3b = self.w_up3[C2:, 0].reshape(Cp3, K3f)   # acts on pool_3

        # Fold upsample_3's dense path into upsample_2 (both linear, nothing in
        # between): w23[q2] = w2[q2] @ w3a, packed wide as (Cin, K2f*K3f).
        w2a_off = jnp.transpose(w2a, (2, 3, 0, 1)).reshape(K2f, C1, C2)
        w2b_off = jnp.transpose(w2b, (2, 3, 0, 1)).reshape(K2f, Cp4, C2)
        w23a = jnp.einsum("qcd,dk->cqk", w2a_off, w3a,
                          precision=_PREC).reshape(C1, K2f * K3f)
        w23b = jnp.einsum("qcd,dk->cqk", w2b_off, w3a,
                          precision=_PREC).reshape(Cp4, K2f * K3f)
        b23 = (jnp.tile(jnp.dot(self.b_up2, w3a, precision=_PREC), K2f)
               + self.b_up3[0]).reshape(1, K2f * K3f)

        # pool_3 path: block-diagonal weight so all K2f offsets are one matmul;
        # rows are (q2, c), cols are (q2, j3).
        w3b_blk = jnp.zeros((K2f * Cp3, K2f * K3f), jnp.float32)
        for q in range(K2f):
            w3b_blk = w3b_blk.at[q * Cp3:(q + 1) * Cp3,
                                 q * K3f:(q + 1) * K3f].set(w3b)

        return {"w7": w7m, "b7": self.b7.reshape(1, -1),
                "w1": w1w, "b1": b1w,
                "w23a": w23a, "w23b": w23b, "w3b": w3b_blk, "b23": b23}

    def __call__(self, x, pool_3_out, pool_4_out):
        return _decoder_forward(self.kernels, self.params, x, pool_3_out, pool_4_out)

    # plain-JAX f32 reference for correctness checking
    def reference(self, x, pool_3_out, pool_4_out):
        def conv1x1(x_, w, b):
            y = jnp.einsum("nchw,dc->ndhw", x_, w[:, :, 0, 0], precision=_PREC)
            return y + b[None, :, None, None]

        def deconv(x_, w, b):
            N, _, H, W = x_.shape
            _, Cout, KH, KW = w.shape
            y = jnp.einsum("nchw,cdab->ndhawb", x_, w, precision=_PREC)
            y = y.reshape(N, Cout, H * KH, W * KW)
            return y + b[None, :, None, None]

        h = conv1x1(x, self.w7, self.b7)
        out = deconv(h, self.w_up1, self.b_up1)
        out = jnp.concatenate((out, pool_4_out), axis=1)
        out = deconv(out, self.w_up2, self.b_up2)
        out = jnp.concatenate((out, pool_3_out), axis=1)
        out = deconv(out, self.w_up3, self.b_up3)
        return out


# ----------------------------------- main ---------------------------------- #
if __name__ == "__main__":
    key = jax.random.PRNGKey(0)
    k_x, k_p4, k_p3, k_params = jax.random.split(key, 4)

    # TableNet-style instantiation with kernel == stride everywhere.
    channels = [128, 128]                       # pool_4 / pool_3 channel counts
    kernels = [(1, 1), (2, 2), (2, 2), (2, 2)]
    strides = [(1, 1), (2, 2), (2, 2), (2, 2)]

    N, H, W = 2, 4, 4
    x = jax.random.normal(k_x, (N, 256, H, W), jnp.float32)
    pool_4_out = jax.random.normal(k_p4, (N, channels[0], H * 2, W * 2), jnp.float32)
    pool_3_out = jax.random.normal(k_p3, (N, channels[1], H * 4, W * 4), jnp.float32)

    decoder = TableDecoderPallas(channels, kernels, strides, k_params)

    out = jax.block_until_ready(decoder(x, pool_3_out, pool_4_out))
    assert out.shape == (N, 1, H * 8, W * 8), out.shape

    ref = decoder.reference(x, pool_3_out, pool_4_out)
    np.testing.assert_allclose(np.asarray(out), np.asarray(ref),
                               rtol=2e-2, atol=2e-2)
    print("KERNEL_OK")
</pallas_src>

<mosaic_0001>
module attributes {stable_mosaic.version = 11 : i64} {
  func.func @_fused_decoder_kernel(%arg0: i32, %arg1: memref<16x256xf32, #tpu.memory_space<vmem>>, %arg2: memref<64x128xf32, #tpu.memory_space<vmem>>, %arg3: memref<64x512xf32, #tpu.memory_space<vmem>>, %arg4: memref<256x256xf32, #tpu.memory_space<vmem>>, %arg5: memref<1x256xf32, #tpu.memory_space<vmem>>, %arg6: memref<256x512xf32, #tpu.memory_space<vmem>>, %arg7: memref<1x512xf32, #tpu.memory_space<vmem>>, %arg8: memref<128x16xf32, #tpu.memory_space<vmem>>, %arg9: memref<128x16xf32, #tpu.memory_space<vmem>>, %arg10: memref<512x16xf32, #tpu.memory_space<vmem>>, %arg11: memref<1x16xf32, #tpu.memory_space<vmem>>, %arg12: memref<64x16xf32, #tpu.memory_space<vmem>>, %arg13: memref<64x128xf32, #tpu.memory_space<vmem>>) attributes {dimension_semantics = [#tpu.dimension_semantics<parallel>], iteration_bounds = array<i64: 2>, scalar_prefetch = 0 : i64, scratch_operands = 1 : i64, tpu.core_type = #tpu.core_type<tc>, window_params = [{transform_indices = @transform_0, window_bounds = array<i64: 16, 256>}, {transform_indices = @transform_1, window_bounds = array<i64: 64, 128>}, {transform_indices = @transform_2, window_bounds = array<i64: 64, 512>}, {pipeline_mode = #tpu.pipeline_mode<synchronous>, transform_indices = @transform_3, window_bounds = array<i64: 256, 256>}, {pipeline_mode = #tpu.pipeline_mode<synchronous>, transform_indices = @transform_4, window_bounds = array<i64: 1, 256>}, {pipeline_mode = #tpu.pipeline_mode<synchronous>, transform_indices = @transform_5, window_bounds = array<i64: 256, 512>}, {pipeline_mode = #tpu.pipeline_mode<synchronous>, transform_indices = @transform_6, window_bounds = array<i64: 1, 512>}, {pipeline_mode = #tpu.pipeline_mode<synchronous>, transform_indices = @transform_7, window_bounds = array<i64: 128, 16>}, {pipeline_mode = #tpu.pipeline_mode<synchronous>, transform_indices = @transform_8, window_bounds = array<i64: 128, 16>}, {pipeline_mode = #tpu.pipeline_mode<synchronous>, transform_indices = @transform_9, window_bounds = array<i64: 512, 16>}, {pipeline_mode = #tpu.pipeline_mode<synchronous>, transform_indices = @transform_10, window_bounds = array<i64: 1, 16>}, {transform_indices = @transform_11, window_bounds = array<i64: 64, 16>}]} {
    %c0 = arith.constant 0 : index
    %c0_0 = arith.constant 0 : index
    %0 = vector.load %arg1[%c0, %c0_0] : memref<16x256xf32, #tpu.memory_space<vmem>>, vector<16x256xf32>
    %c0_1 = arith.constant 0 : index
    %c0_2 = arith.constant 0 : index
    %1 = vector.load %arg4[%c0_1, %c0_2] : memref<256x256xf32, #tpu.memory_space<vmem>>, vector<256x256xf32>
    %cst = arith.constant dense<0.000000e+00> : vector<16x256xf32>
    %2 = tpu.matmul %0, %1, %cst {dimension_numbers = #tpu.dot_dimension_numbers<[1], [0], [0], [1], [0, 0, 1, 1], [], []>, precision = #tpu.contract_precision<fp32>} : vector<16x256xf32>, vector<256x256xf32>, vector<16x256xf32> -> vector<16x256xf32>
    %c0_3 = arith.constant 0 : index
    %c0_4 = arith.constant 0 : index
    %3 = vector.load %arg5[%c0_3, %c0_4] : memref<1x256xf32, #tpu.memory_space<vmem>>, vector<1x256xf32>
    %4 = vector.broadcast %3 : vector<1x256xf32> to vector<16x256xf32>
    %5 = arith.addf %2, %4 : vector<16x256xf32>
    %c0_5 = arith.constant 0 : index
    %c0_6 = arith.constant 0 : index
    %6 = vector.load %arg6[%c0_5, %c0_6] : memref<256x512xf32, #tpu.memory_space<vmem>>, vector<256x512xf32>
    %cst_7 = arith.constant dense<0.000000e+00> : vector<16x512xf32>
    %7 = tpu.matmul %5, %6, %cst_7 {dimension_numbers = #tpu.dot_dimension_numbers<[1], [0], [0], [1], [0, 0, 1, 1], [], []>, precision = #tpu.contract_precision<fp32>} : vector<16x256xf32>, vector<256x512xf32>, vector<16x512xf32> -> vector<16x512xf32>
    %c0_8 = arith.constant 0 : index
    %c0_9 = arith.constant 0 : index
    %8 = vector.load %arg7[%c0_8, %c0_9] : memref<1x512xf32, #tpu.memory_space<vmem>>, vector<1x512xf32>
    %9 = vector.broadcast %8 : vector<1x512xf32> to vector<16x512xf32>
    %10 = arith.addf %7, %9 : vector<16x512xf32>
    %11 = vector.extract_strided_slice %10 {offsets = [0, 0], sizes = [16, 128], strides = [1, 1]} : vector<16x512xf32> to vector<16x128xf32>
    %c0_10 = arith.constant 0 : index
    %c0_11 = arith.constant 0 : index
    %12 = vector.load %arg13[%c0_10, %c0_11] : memref<64x128xf32, #tpu.memory_space<vmem>>, vector<16x128xf32>
    tpu.vector_store %arg13[%c0_10, %c0_11], %11 {strides = array<i32>} : memref<64x128xf32, #tpu.memory_space<vmem>>, vector<16x128xf32>,
    %13 = vector.extract_strided_slice %10 {offsets = [0, 128], sizes = [16, 128], strides = [1, 1]} : vector<16x512xf32> to vector<16x128xf32>
    %c16 = arith.constant 16 : index
    %c0_12 = arith.constant 0 : index
    %14 = vector.load %arg13[%c16, %c0_12] : memref<64x128xf32, #tpu.memory_space<vmem>>, vector<16x128xf32>
    tpu.vector_store %arg13[%c16, %c0_12], %13 {strides = array<i32>} : memref<64x128xf32, #tpu.memory_space<vmem>>, vector<16x128xf32>,
    %15 = vector.extract_strided_slice %10 {offsets = [0, 256], sizes = [16, 128], strides = [1, 1]} : vector<16x512xf32> to vector<16x128xf32>
    %c32 = arith.constant 32 : index
    %c0_13 = arith.constant 0 : index
    %16 = vector.load %arg13[%c32, %c0_13] : memref<64x128xf32, #tpu.memory_space<vmem>>, vector<16x128xf32>
    tpu.vector_store %arg13[%c32, %c0_13], %15 {strides = array<i32>} : memref<64x128xf32, #tpu.memory_space<vmem>>, vector<16x128xf32>,
    %17 = vector.extract_strided_slice %10 {offsets = [0, 384], sizes = [16, 128], strides = [1, 1]} : vector<16x512xf32> to vector<16x128xf32>
    %c48 = arith.constant 48 : index
    %c0_14 = arith.constant 0 : index
    %18 = vector.load %arg13[%c48, %c0_14] : memref<64x128xf32, #tpu.memory_space<vmem>>, vector<16x128xf32>
    tpu.vector_store %arg13[%c48, %c0_14], %17 {strides = array<i32>} : memref<64x128xf32, #tpu.memory_space<vmem>>, vector<16x128xf32>,
    %c0_15 = arith.constant 0 : index
    %c0_16 = arith.constant 0 : index
    %19 = vector.load %arg13[%c0_15, %c0_16] : memref<64x128xf32, #tpu.memory_space<vmem>>, vector<64x128xf32>
    %c0_17 = arith.constant 0 : index
    %c0_18 = arith.constant 0 : index
    %20 = vector.load %arg8[%c0_17, %c0_18] : memref<128x16xf32, #tpu.memory_space<vmem>>, vector<128x16xf32>
    %cst_19 = arith.constant dense<0.000000e+00> : vector<64x16xf32>
    %21 = tpu.matmul %19, %20, %cst_19 {dimension_numbers = #tpu.dot_dimension_numbers<[1], [0], [0], [1], [0, 0, 1, 1], [], []>, precision = #tpu.contract_precision<fp32>} : vector<64x128xf32>, vector<128x16xf32>, vector<64x16xf32> -> vector<64x16xf32>
    %c0_20 = arith.constant 0 : index
    %c0_21 = arith.constant 0 : index
    %22 = vector.load %arg2[%c0_20, %c0_21] : memref<64x128xf32, #tpu.memory_space<vmem>>, vector<64x128xf32>
    %c0_22 = arith.constant 0 : index
    %c0_23 = arith.constant 0 : index
    %23 = vector.load %arg9[%c0_22, %c0_23] : memref<128x16xf32, #tpu.memory_space<vmem>>, vector<128x16xf32>
    %cst_24 = arith.constant dense<0.000000e+00> : vector<64x16xf32>
    %24 = tpu.matmul %22, %23, %cst_24 {dimension_numbers = #tpu.dot_dimension_numbers<[1], [0], [0], [1], [0, 0, 1, 1], [], []>, precision = #tpu.contract_precision<fp32>} : vector<64x128xf32>, vector<128x16xf32>, vector<64x16xf32> -> vector<64x16xf32>
    %25 = arith.addf %21, %24 : vector<64x16xf32>
    %c0_25 = arith.constant 0 : index
    %c0_26 = arith.constant 0 : index
    %26 = vector.load %arg3[%c0_25, %c0_26] : memref<64x512xf32, #tpu.memory_space<vmem>>, vector<64x512xf32>
    %c0_27 = arith.constant 0 : index
    %c0_28 = arith.constant 0 : index
    %27 = vector.load %arg10[%c0_27, %c0_28] : memref<512x16xf32, #tpu.memory_space<vmem>>, vector<512x16xf32>
    %cst_29 = arith.constant dense<0.000000e+00> : vector<64x16xf32>
    %28 = tpu.matmul %26, %27, %cst_29 {dimension_numbers = #tpu.dot_dimension_numbers<[1], [0], [0], [1], [0, 0, 1, 1], [], []>, precision = #tpu.contract_precision<fp32>} : vector<64x512xf32>, vector<512x16xf32>, vector<64x16xf32> -> vector<64x16xf32>
    %29 = arith.addf %25, %28 : vector<64x16xf32>
    %c0_30 = arith.constant 0 : index
    %c0_31 = arith.constant 0 : index
    %30 = vector.load %arg11[%c0_30, %c0_31] : memref<1x16xf32, #tpu.memory_space<vmem>>, vector<1x16xf32>
    %31 = vector.broadcast %30 : vector<1x16xf32> to vector<64x16xf32>
    %32 = arith.addf %29, %31 : vector<64x16xf32>
    %c0_32 = arith.constant 0 : index
    %c0_33 = arith.constant 0 : index
    %33 = vector.load %arg12[%c0_32, %c0_33] : memref<64x16xf32, #tpu.memory_space<vmem>>, vector<64x16xf32>
    tpu.vector_store %arg12[%c0_32, %c0_33], %32 {strides = array<i32>} : memref<64x16xf32, #tpu.memory_space<vmem>>, vector<64x16xf32>,
    return
  }
  func.func @transform_0(%arg0: i32) -> (i32, i32) {
    %c0_i32 = arith.constant 0 : i32
    %c0_i32_0 = arith.constant 0 : i32
    return %arg0, %c0_i32 : i32, i32
  }
  func.func @transform_1(%arg0: i32) -> (i32, i32) {
    %c0_i32 = arith.constant 0 : i32
    %c0_i32_0 = arith.constant 0 : i32
    return %arg0, %c0_i32 : i32, i32
  }
  func.func @transform_2(%arg0: i32) -> (i32, i32) {
    %c0_i32 = arith.constant 0 : i32
    %c0_i32_0 = arith.constant 0 : i32
    return %arg0, %c0_i32 : i32, i32
  }
  func.func @transform_3(%arg0: i32) -> (i32, i32) {
    %c0_i32 = arith.constant 0 : i32
    %c0_i32_0 = arith.constant 0 : i32
    %c0_i32_1 = arith.constant 0 : i32
    return %c0_i32, %c0_i32_0 : i32, i32
  }
  func.func @transform_4(%arg0: i32) -> (i32, i32) {
    %c0_i32 = arith.constant 0 : i32
    %c0_i32_0 = arith.constant 0 : i32
    %c0_i32_1 = arith.constant 0 : i32
    return %c0_i32, %c0_i32_0 : i32, i32
  }
  func.func @transform_5(%arg0: i32) -> (i32, i32) {
    %c0_i32 = arith.constant 0 : i32
    %c0_i32_0 = arith.constant 0 : i32
    %c0_i32_1 = arith.constant 0 : i32
    return %c0_i32, %c0_i32_0 : i32, i32
  }
  func.func @transform_6(%arg0: i32) -> (i32, i32) {
    %c0_i32 = arith.constant 0 : i32
    %c0_i32_0 = arith.constant 0 : i32
    %c0_i32_1 = arith.constant 0 : i32
    return %c0_i32, %c0_i32_0 : i32, i32
  }
  func.func @transform_7(%arg0: i32) -> (i32, i32) {
    %c0_i32 = arith.constant 0 : i32
    %c0_i32_0 = arith.constant 0 : i32
    %c0_i32_1 = arith.constant 0 : i32
    return %c0_i32, %c0_i32_0 : i32, i32
  }
  func.func @transform_8(%arg0: i32) -> (i32, i32) {
    %c0_i32 = arith.constant 0 : i32
    %c0_i32_0 = arith.constant 0 : i32
    %c0_i32_1 = arith.constant 0 : i32
    return %c0_i32, %c0_i32_0 : i32, i32
  }
  func.func @transform_9(%arg0: i32) -> (i32, i32) {
    %c0_i32 = arith.constant 0 : i32
    %c0_i32_0 = arith.constant 0 : i32
    %c0_i32_1 = arith.constant 0 : i32
    return %c0_i32, %c0_i32_0 : i32, i32
  }
  func.func @transform_10(%arg0: i32) -> (i32, i32) {
    %c0_i32 = arith.constant 0 : i32
    %c0_i32_0 = arith.constant 0 : i32
    %c0_i32_1 = arith.constant 0 : i32
    return %c0_i32, %c0_i32_0 : i32, i32
  }
  func.func @transform_11(%arg0: i32) -> (i32, i32) {
    %c0_i32 = arith.constant 0 : i32
    %c0_i32_0 = arith.constant 0 : i32
    return %arg0, %c0_i32 : i32, i32
  }
}

</mosaic_0001>

<bundles_post_ra>
// kernel: _decoder_forward.1
= control target key start
LH: loop header
LB: loop body
LE: loop exit
PB: predicated region body
PF: predicated region fallthrough
CT: control target
= control target key end

     0   :  { %s13028_s17 = smov 0   ;;  %s19852_s0 = inlined_call_operand.vmem [shape: f32[32,256], index: 0, kind: input, shape index: {}]   ;;  %s19853_s1 = inlined_call_operand.vmem [shape: f32[128,128], index: 1, kind: input, shape index: {}]   ;;  %s19854_s2 = inlined_call_operand.vmem [shape: f32[128,512], index: 2, kind: input, shape index: {}]   ;;  %s19855_s3 = inlined_call_operand.vmem [shape: f32[256,256], index: 3, kind: input, shape index: {}]   ;;  %s19856_s4 = inlined_call_operand.vmem [shape: f32[1,256], index: 4, kind: input, shape index: {}]   ;;  %s19857_s5 = inlined_call_operand.vmem [shape: f32[256,512], index: 5, kind: input, shape index: {}]   ;;  %s19858_s6 = inlined_call_operand.vmem [shape: f32[1,512], index: 6, kind: input, shape index: {}]   ;;  %s19859_s7 = inlined_call_operand.vmem [shape: f32[128,16], index: 7, kind: input, shape index: {}]   ;;  %s19860_s8 = inlined_call_operand.vmem [shape: f32[128,16], index: 8, kind: input, shape index: {}]   ;;  %s19861_s9 = inlined_call_operand.vmem [shape: f32[512,16], index: 9, kind: input, shape index: {}]   ;;  %s19862_s10 = inlined_call_operand.vmem [shape: f32[1,16], index: 10, kind: input, shape index: {}]   ;;  %s19863_s11 = inlined_call_operand.vmem [shape: f32[128,16], index: 11, kind: output, shape index: {}]  }
   0x1 LB: > { %s9364_s18 = sadd.s32 4294967295, %s12966_s17   ;;  %p9368_p0 = scmp.ge.s32.totalorder %s12966_s17, 1  ;;  %s12966_s17 = sphi %s13028_s17, %s21_s17  }
   0x2   : > { %p362_p1 = scmp.lt.s32.totalorder %s12966_s17, 3 }
   0x4   : > { %p363_p2 = pnand %p9368_p0, %p362_p1 }
   0x6   : > { %366 = sbr.rel (%p363_p2) target bundleno = 1814 (0x716), region = 64 }
   0xd   : > { %v445_v0 = vld [vmem:[%s19855_s3 + $0x8] sm:$0xff]  ;;  %v13042_v1 = vld [vmem:[%s19855_s3 + $0x18] sm:$0xff]  ;;  %v13047_v2 = vld [vmem:[%s19855_s3] sm:$0xff]  ;;  %s13217_s28 = sshll.u32 %s9364_s18, 1  ;;  %s9372_s20 = sshll.u32 %s9364_s18, 3  ;;  %vm9275_vm0 = vcmask 130048  }
   0xe   : > { %v520_v3 = vand.u32 4294901760, %v445_v0  ;;  %v524_v4 = vand.u32 4294901760, %v13042_v1  ;;  %v446_v5 = vld [vmem:[%s19855_s3 + $0x10] sm:$0xff]  ;;  %v522_v6 = vand.u32 4294901760, %v13047_v2  ;;  %v449_v7 = vld [vmem:[%s19855_s3 + $0x28] sm:$0xff]  ;;  %v451_v8 = vld [vmem:[%s19855_s3 + $0x38] sm:$0xff] }
   0xf   : > { %v526_v9 = vand.u32 4294901760, %v446_v5  ;;  %v528_v10 = vand.u32 4294901760, %v449_v7  ;;  %v532_v11 = vand.u32 4294901760, %v451_v8  ;;  %v448_v12 = vld [vmem:[%s19855_s3 + $0x20] sm:$0xff]  ;;  %v13066_v13 = vld [vmem:[%s19855_s3 + $0x30] sm:$0xff]  ;;  %v13071_v14 = vld [vmem:[%s19855_s3 + $0x48] sm:$0xff] }
  0x10   : > { %v13073_v15 = vpack.c.bf16 %v524_v4, %v520_v3  ;;  %v13078_v16 = vld [vmem:[%s19855_s3 + $0x58] sm:$0xff]  ;;  %v13083_v17 = vld [vmem:[%s19855_s3 + $0x40] sm:$0xff]  ;;  %v13088_v18 = vld [vmem:[%s19855_s3 + $0x50] sm:$0xff]  ;;  %v530_v22 = vand.u32 4294901760, %v448_v12  ;;  %v534_v23 = vand.u32 4294901760, %v13066_v13  ;;  %v536_v24 = vand.u32 4294901760, %v13071_v14 }
  0x11   : > { %v13090_v19 = vpack.c.bf16 %v526_v9, %v522_v6  ;;  %v13092_v20 = vpack.c.bf16 %v532_v11, %v528_v10  ;;  %v13097_v21 = vld [vmem:[%s19855_s3 + $0x68] sm:$0xff]  ;;  %v540_v25 = vand.u32 4294901760, %v13078_v16  ;;  %v538_v26 = vand.u32 4294901760, %v13083_v17  ;;  %v459_v28 = vld [vmem:[%s19855_s3 + $0x78] sm:$0xff]  ;;  %v456_v31 = vld [vmem:[%s19855_s3 + $0x60] sm:$0xff]  ;;  %p415_p3 = scmp.lt.s32.totalorder %s13217_s28, 3 }
  0x12   : > { %20910 = vst [vmem:[#allocation3_spill] sm:$0xff] %v13073_v15  ;;  %10873 = vmatprep.subr.bf16.mxu0 %v13073_v15  ;;  %v542_v27 = vand.u32 4294901760, %v13088_v18  ;;  %v13110_v29 = vpack.c.bf16 %v534_v23, %v530_v22  ;;  %v544_v30 = vand.u32 4294901760, %v13097_v21  ;;  %v458_v32 = vld [vmem:[%s19855_s3 + $0x70] sm:$0xff]  ;;  %v461_v34 = vld [vmem:[%s19855_s3 + $0x88] sm:$0xff]  ;;  %v13127_v35 = vld [vmem:[%s19855_s3 + $0x98] sm:$0xff]  ;;  %v13160_v55 = vsub.f32 %v445_v0, %v520_v3 }
  0x13   : > { %20911 = vst [vmem:[#allocation4_spill] sm:$0xff] %v13090_v19  ;;  %20912 = vst [vmem:[#allocation5_spill] sm:$0xff] %v13092_v20  ;;  %10875 = vmatpush1.bf16.msra.mxu0 %v13090_v19  ;;  %v13119_v33 = vpack.c.bf16 %v540_v25, %v536_v24  ;;  %v548_v36 = vand.u32 4294901760, %v459_v28  ;;  %v546_v38 = vand.u32 4294901760, %v456_v31  ;;  %v550_v39 = vand.u32 4294901760, %v458_v32  ;;  %v460_v43 = vld [vmem:[%s19855_s3 + $0x80] sm:$0xff] }
  0x14   : > { %10877 = vmatprep.subr.bf16.mxu0 %v13092_v20  ;;  %20913 = vst [vmem:[#allocation6_spill] sm:$0xff] %v13110_v29  ;;  %v13130_v37 = vpack.c.bf16 %v542_v27, %v538_v26  ;;  %v552_v41 = vand.u32 4294901760, %v461_v34  ;;  %v556_v42 = vand.u32 4294901760, %v13127_v35  ;;  %v462_v44 = vld [vmem:[%s19855_s3 + $0x90] sm:$0xff]  ;;  %v465_v45 = vld [vmem:[%s19855_s3 + $0xa8] sm:$0xff]  ;;  %v467_v46 = vld [vmem:[%s19855_s3 + $0xb8] sm:$0xff]  ;;  %v13171_v58 = vsub.f32 %v13042_v1, %v524_v4 }
  0x15   : > { %20914 = vst [vmem:[#allocation7_spill] sm:$0xff] %v13119_v33  ;;  %v13133_v40 = vpack.c.bf16 %v548_v36, %v544_v30  ;;  %v13149_v47 = vpack.c.bf16 %v550_v39, %v546_v38  ;;  %v554_v48 = vand.u32 4294901760, %v460_v43  ;;  %v558_v49 = vand.u32 4294901760, %v462_v44  ;;  %v464_v53 = vld [vmem:[%s19855_s3 + $0xa0] sm:$0xff]  ;;  %v466_v54 = vld [vmem:[%s19855_s3 + $0xb0] sm:$0xff]  ;;  %v469_v56 = vld [vmem:[%s19855_s3 + $0xc8] sm:$0xff] }
  0x16   : > { %20915 = vst [vmem:[#allocation8_spill] sm:$0xff] %v13130_v37  ;;  %v13152_v50 = vpack.c.bf16 %v556_v42, %v552_v41  ;;  %v560_v51 = vand.u32 4294901760, %v465_v45  ;;  %v564_v52 = vand.u32 4294901760, %v467_v46  ;;  %v13168_v57 = vld [vmem:[%s19855_s3 + $0xd8] sm:$0xff]  ;;  %v13174_v59 = vsub.f32 %v13047_v2, %v522_v6  ;;  %v470_v6 = vld [vmem:[%s19855_s3 + $0xd0] sm:$0xff]  ;;  %s22961_s28 = smov (!%p415_p3, %s13217_s28), 3 }
  0x17   : > { %10879 = vmatpush1.bf16.msra.mxu0 %v13110_v29  ;;  %20916 = vst [vmem:[#allocation9_spill] sm:$0xff] %v13133_v40  ;;  %20917 = vst [vmem:[#allocation10_spill] sm:$0xff] %v13149_v47  ;;  %v13176_v60 = vsub.f32 %v446_v5, %v526_v9  ;;  %v13178_v61 = vsub.f32 %v449_v7, %v528_v10  ;;  %v13180_v62 = vsub.f32 %v451_v8, %v532_v11  ;;  %v468_v5 = vld [vmem:[%s19855_s3 + $0xc0] sm:$0xff]  ;;  %v473_v11 = vld [vmem:[%s19855_s3 + $0xe8] sm:$0xff]  ;;  %s9382_s29 = sshll.u32 %s22961_s28, 4  ;;  %p422_p4 = scmp.lt.s32.totalorder %s9372_s20, 15 }
  0x18   : > { %10881 = vmatprep.subr.bf16.mxu0 %v13119_v33  ;;  %20918 = vst [vmem:[#allocation11_spill] sm:$0xff] %v13152_v50  ;;  %v13183_v63 = vpack.c.bf16 %v558_v49, %v554_v48  ;;  %v562_v0 = vand.u32 4294901760, %v464_v53  ;;  %v566_v3 = vand.u32 4294901760, %v466_v54  ;;  %v13188_v1 = vpack.c.bf16 %v564_v52, %v560_v51  ;;  %v485_v20 = vld [vmem:[%s19855_s3 + $0x148] sm:$0xff]  ;;  %s13372_s22 = scalar_lea.vmem %s19852_s0, %s9382_s29 }
  0x19   : > { %v568_v2 = vand.u32 4294901760, %v469_v56  ;;  %v572_v4 = vand.u32 4294901760, %v13168_v57  ;;  %v13198_v7 = vsub.f32 %v13066_v13, %v534_v23  ;;  %v13201_v8 = vsub.f32 %v13071_v14, %v536_v24  ;;  %s22963_s20 = smov (!%p422_p4, %s9372_s20), 15 }
  0x1a   : > { %20919 = vst [vmem:[#allocation12_spill] sm:$0xff] %v13183_v63  ;;  %20920 = vst [vmem:[#allocation13_spill] sm:$0xff] %v13188_v1  ;;  %v13204_v9 = vsub.f32 %v13078_v16, %v540_v25  ;;  %v13207_v10 = vsub.f32 %v13083_v17, %v538_v26  ;;  %v13220_v13 = vsub.f32 %v13088_v18, %v542_v27  ;;  %v570_v24 = vand.u32 4294901760, %v468_v5  ;;  %v472_v18 = vld [vmem:[%s19855_s3 + $0xe0] sm:$0xff]  ;;  %s9373_s18 = sshll.u32 %s22963_s20, 3  ;;  %s9383_s16 = sshll.u32 %s22963_s20, 5 }
  0x1b   : > { %10883 = vmatpush1.bf16.msra.mxu0 %v13130_v37  ;;  %20921 = vst [vmem:[#allocation14_spill] sm:$0xff] %v13201_v8  ;;  %v13223_v14 = vsub.f32 %v13097_v21, %v544_v30  ;;  %v13225_v16 = vsub.f32 %v459_v28, %v548_v36  ;;  %v13227_v17 = vsub.f32 %v456_v31, %v546_v38  ;;  %v574_v25 = vand.u32 4294901760, %v470_v6  ;;  %v474_v21 = vld [vmem:[%s19855_s3 + $0xf0] sm:$0xff]  ;;  %v477_v31 = vld [vmem:[%s19855_s3 + $0x108] sm:$0xff]  ;;  %s16909_s24 = scalar_lea.vmem %s19853_s1, %s9373_s18  ;;  %s18009_s13 = scalar_lea.vmem %s19854_s2, %s9383_s16 }
  0x1c   : > { %10885 = vmatprep.subr.bf16.mxu0 %v13133_v40  ;;  %v13185_v40 = vsub.f32 %v448_v12, %v530_v22  ;;  %20922 = vst [vmem:[#allocation15_spill] sm:$0xff] %v13204_v9  ;;  %20923 = vst [vmem:[#allocation16_spill] sm:$0xff] %v13207_v10  ;;  %v475_v12 = vld [vmem:[%s19855_s3 + $0xf8] sm:$0xff]  ;;  %v13229_v22 = vsub.f32 %v458_v32, %v550_v39  ;;  %v13232_v23 = vpack.c.bf16 %v566_v3, %v562_v0  ;;  %s19824_s25 = scalar_lea.vmem %s19863_s11, %s9373_s18 }
  0x1d   : > { %20924 = vst [vmem:[#allocation17_spill] sm:$0xff] %v13220_v13  ;;  %20925 = vst [vmem:[#allocation18_spill] sm:$0xff] %v13223_v14  ;;  %v13240_v26 = vsub.f32 %v461_v34, %v552_v41  ;;  %v13243_v27 = vpack.c.bf16 %v572_v4, %v568_v2  ;;  %v576_v28 = vand.u32 4294901760, %v473_v11  ;;  %v580_v30 = vand.u32 4294901760, %v475_v12  ;;  %v479_v39 = vld [vmem:[%s19855_s3 + $0x118] sm:$0xff]  ;;  %v476_v41 = vld [vmem:[%s19855_s3 + $0x100] sm:$0xff] }
  0x1e   : > { %20926 = vst [vmem:[#allocation19_spill] sm:$0xff] %v13232_v23  ;;  %v13250_v32 = vsub.f32 %v13127_v35, %v556_v42  ;;  %v13252_v36 = vsub.f32 %v460_v43, %v554_v48  ;;  %v13254_v38 = vsub.f32 %v462_v44, %v558_v49  ;;  %v13256_v34 = vsub.f32 %v465_v45, %v560_v51 }
  0x1f   : > { %10887 = vmatpush1.bf16.msra.mxu0 %v13149_v47  ;;  %20927 = vst [vmem:[#allocation20_spill] sm:$0xff] %v13243_v27  ;;  %v13267_v35 = vsub.f32 %v467_v46, %v564_v52  ;;  %v13269_v42 = vsub.f32 %v464_v53, %v562_v0  ;;  %v578_v43 = vand.u32 4294901760, %v472_v18  ;;  %v582_v44 = vand.u32 4294901760, %v474_v21  ;;  %v481_v46 = vld [vmem:[%s19855_s3 + $0x128] sm:$0xff]  ;;  %v483_v52 = vld [vmem:[%s19855_s3 + $0x138] sm:$0xff] }
  0x20   : > { %10889 = vmatprep.subr.bf16.mxu0 %v13152_v50  ;;  %20928 = vst [vmem:[#allocation21_spill] sm:$0xff] %v13252_v36  ;;  %20929 = vst [vmem:[#allocation22_spill] sm:$0xff] %v13256_v34  ;;  %v13272_v45 = vsub.f32 %v466_v54, %v566_v3  ;;  %v13274_v48 = vsub.f32 %v469_v56, %v568_v2  ;;  %v13276_v49 = vpack.c.bf16 %v574_v25, %v570_v24  ;;  %v480_v56 = vld [vmem:[%s19855_s3 + $0x120] sm:$0xff]  ;;  %v482_v2 = vld [vmem:[%s19855_s3 + $0x130] sm:$0xff] }
  0x21   : > { %20930 = vst [vmem:[#allocation23_spill] sm:$0xff] %v13267_v35  ;;  %20931 = vst [vmem:[#allocation24_spill] sm:$0xff] %v13269_v42  ;;  %v584_v51 = vand.u32 4294901760, %v477_v31  ;;  %v13285_v53 = vpack.c.bf16 %v580_v30, %v576_v28  ;;  %v588_v0 = vand.u32 4294901760, %v479_v39  ;;  %v586_v54 = vand.u32 4294901760, %v476_v41 }
  0x22   : > { %20932 = vst [vmem:[#allocation25_spill] sm:$0xff] %v13274_v48  ;;  %20933 = vst [vmem:[#allocation26_spill] sm:$0xff] %v13276_v49  ;;  %v13305_v50 = vsub.f32 %v473_v11, %v576_v28  ;;  %v13307_v47 = vsub.f32 %v475_v12, %v580_v30  ;;  %v13309_v37 = vpack.c.bf16 %v582_v44, %v578_v43  ;;  %v592_v33 = vand.u32 4294901760, %v481_v46  ;;  %v484_v12 = vld [vmem:[%s19855_s3 + $0x140] sm:$0xff]  ;;  %v489_v30 = vld [vmem:[%s19855_s3 + $0x168] sm:$0xff] }
  0x23   : > { %10891 = vmatpush1.bf16.msra.mxu0 %v13183_v63  ;;  %20934 = vst [vmem:[#allocation27_spill] sm:$0xff] %v13285_v53  ;;  %v13303_v63 = vsub.f32 %v470_v6, %v574_v25  ;;  %v596_v29 = vand.u32 4294901760, %v483_v52  ;;  %v594_v6 = vand.u32 4294901760, %v480_v56  ;;  %v598_v11 = vand.u32 4294901760, %v482_v2 }
  0x24   : > { %10893 = vmatprep.subr.bf16.mxu0 %v13188_v1  ;;  %v478_v1 = vld [vmem:[%s19855_s3 + $0x110] sm:$0xff]  ;;  %20938 = vst [vmem:[#allocation31_spill] sm:$0xff] %v13305_v50  ;;  %20939 = vst [vmem:[#allocation32_spill] sm:$0xff] %v13307_v47  ;;  %v13329_v25 = vpack.c.bf16 %v588_v0, %v584_v51  ;;  %v13331_v28 = vsub.f32 %v477_v31, %v584_v51  ;;  %v13356_v19 = vsub.f32 %v481_v46, %v592_v33  ;;  %v13479_v47 = vld [vmem:[%s19855_s3 + $0x1e0] sm:$0xff] }
  0x25   : > { %v590_v3 = vand.u32 4294901760, %v478_v1  ;;  %20937 = vst [vmem:[#allocation30_spill] sm:$0xff] %v13303_v63  ;;  %20940 = vst [vmem:[#allocation33_spill] sm:$0xff] %v13309_v37  ;;  %v490_v51 = vld [vmem:[%s19855_s3 + $0x170] sm:$0xff]  ;;  %v602_v15 = vand.u32 4294901760, %v484_v12  ;;  %v13377_v46 = vsub.f32 %v482_v2, %v598_v11 }
  0x26   : > { %20943 = vst [vmem:[#allocation36_spill] sm:$0xff] %v13329_v25  ;;  %20944 = vst [vmem:[#allocation37_spill] sm:$0xff] %v13331_v28 }
  0x27   : > { %10895 = vmatpush1.bf16.msra.mxu0 %v13232_v23  ;;  %v13299_v23 = vsub.f32 %v13168_v57, %v572_v4  ;;  %v487_v57 = vld [vmem:[%s19855_s3 + $0x158] sm:$0xff]  ;;  %v13318_v4 = vsub.f32 %v472_v18, %v578_v43  ;;  %v13333_v18 = vsub.f32 %v479_v39, %v588_v0  ;;  %v488_v39 = vld [vmem:[%s19855_s3 + $0x160] sm:$0xff]  ;;  %v13354_v0 = vpack.c.bf16 %v596_v29, %v592_v33 }
  0x28   : > { %10897 = vmatprep.subr.bf16.mxu0 %v13243_v27  ;;  %v13301_v27 = vsub.f32 %v468_v5, %v570_v24  ;;  %v13320_v5 = vsub.f32 %v474_v21, %v582_v44  ;;  %v486_v24 = vld [vmem:[%s19855_s3 + $0x150] sm:$0xff]  ;;  %v13335_v21 = vpack.c.bf16 %v590_v3, %v586_v54  ;;  %v491_v43 = vld [vmem:[%s19855_s3 + $0x178] sm:$0xff]  ;;  %v13344_v44 = vsub.f32 %v476_v41, %v586_v54 }
  0x29   : > { %20935 = vst [vmem:[#allocation28_spill] sm:$0xff] %v13299_v23  ;;  %20941 = vst [vmem:[#allocation34_spill] sm:$0xff] %v13318_v4  ;;  %v604_v31 = vand.u32 4294901760, %v487_v57  ;;  %v495_v41 = vld [vmem:[%s19855_s3 + $0x198] sm:$0xff]  ;;  %v13365_v54 = vsub.f32 %v483_v52, %v596_v29  ;;  %v13375_v33 = vsub.f32 %v480_v56, %v594_v6  ;;  %v492_v29 = vld [vmem:[%s19855_s3 + $0x180] sm:$0xff] }
  0x2a   : > { %20936 = vst [vmem:[#allocation29_spill] sm:$0xff] %v13301_v27  ;;  %20942 = vst [vmem:[#allocation35_spill] sm:$0xff] %v13320_v5  ;;  %v494_v52 = vld [vmem:[%s19855_s3 + $0x190] sm:$0xff]  ;;  %v620_v56 = vand.u32 4294901760, %v495_v41  ;;  %v499_v5 = vld [vmem:[%s19855_s3 + $0x1b8] sm:$0xff] }
  0x2b   : > { %10899 = vmatpush1.bf16.msra.mxu0 %v13276_v49  ;;  %20945 = vst [vmem:[#allocation38_spill] sm:$0xff] %v13333_v18  ;;  %20946 = vst [vmem:[#allocation39_spill] sm:$0xff] %v13335_v21  ;;  %v600_v49 = vand.u32 4294901760, %v485_v20  ;;  %v606_v18 = vand.u32 4294901760, %v486_v24  ;;  %v505_v4 = vld [vmem:[%s19855_s3 + $0x1e8] sm:$0xff] }
  0x2c   : > { %10901 = vmatprep.subr.bf16.mxu0 %v13285_v53  ;;  %20947 = vst [vmem:[#allocation40_spill] sm:$0xff] %v13344_v44  ;;  %v13346_v53 = vsub.f32 %v478_v1, %v590_v3  ;;  %20949 = vst [vmem:[#allocation42_spill] sm:$0xff] %v13354_v0  ;;  %v493_v1 = vld [vmem:[%s19855_s3 + $0x188] sm:$0xff]  ;;  %v13367_v3 = vpack.c.bf16 %v598_v11, %v594_v6  ;;  %v612_v44 = vand.u32 4294901760, %v491_v43 }
  0x2d   : > { %20950 = vst [vmem:[#allocation43_spill] sm:$0xff] %v13356_v19  ;;  %20951 = vst [vmem:[#allocation44_spill] sm:$0xff] %v13365_v54  ;;  %v610_v19 = vand.u32 4294901760, %v488_v39  ;;  %v13385_v54 = vpack.c.bf16 %v604_v31, %v600_v49  ;;  %v13387_v28 = vsub.f32 %v485_v20, %v600_v49  ;;  %v13389_v6 = vsub.f32 %v487_v57, %v604_v31  ;;  %v441_v20 = vld [vmem:[%s13372_s22 + $0x8] sm:$0xff] }
  0x2e   : > { %20948 = vst [vmem:[#allocation41_spill] sm:$0xff] %v13346_v53  ;;  %20952 = vst [vmem:[#allocation45_spill] sm:$0xff] %v13367_v3  ;;  %v608_v53 = vand.u32 4294901760, %v489_v30  ;;  %v13391_v2 = vpack.c.bf16 %v606_v18, %v602_v15  ;;  %v13393_v11 = vsub.f32 %v484_v12, %v602_v15  ;;  %v618_v31 = vand.u32 4294901760, %v492_v29  ;;  %v496_v12 = vld [vmem:[%s19855_s3 + $0x1a0] sm:$0xff] }
  0x2f   : > { %10903 = vmatpush1.bf16.msra.mxu0 %v13309_v37  ;;  %20953 = vst [vmem:[#allocation46_spill] sm:$0xff] %v13375_v33  ;;  %20954 = vst [vmem:[#allocation47_spill] sm:$0xff] %v13377_v46  ;;  %v614_v37 = vand.u32 4294901760, %v490_v51  ;;  %v13395_v46 = vsub.f32 %v486_v24, %v606_v18  ;;  %v497_v33 = vld [vmem:[%s19855_s3 + $0x1a8] sm:$0xff]  ;;  %v622_v15 = vand.u32 4294901760, %v494_v52  ;;  %v498_v24 = vld [vmem:[%s19855_s3 + $0x1b0] sm:$0xff]  ;;  %v13416_v18 = vsub.f32 %v491_v43, %v612_v44 }
  0x30   : > { %10905 = vmatprep.subr.bf16.mxu0 %v13329_v25  ;;  %20955 = vst [vmem:[#allocation48_spill] sm:$0xff] %v13385_v54  ;;  %20956 = vst [vmem:[#allocation49_spill] sm:$0xff] %v13387_v28  ;;  %v616_v25 = vand.u32 4294901760, %v493_v1  ;;  %v13405_v49 = vpack.c.bf16 %v612_v44, %v608_v53  ;;  %v13407_v57 = vsub.f32 %v489_v30, %v608_v53  ;;  %v501_v30 = vld [vmem:[%s19855_s3 + $0x1c8] sm:$0xff]  ;;  %v500_v43 = vld [vmem:[%s19855_s3 + $0x1c0] sm:$0xff] }
  0x31   : > { %20957 = vst [vmem:[#allocation50_spill] sm:$0xff] %v13389_v6  ;;  %20958 = vst [vmem:[#allocation51_spill] sm:$0xff] %v13391_v2  ;;  %v13422_v53 = vsub.f32 %v490_v51, %v614_v37  ;;  %v628_v6 = vand.u32 4294901760, %v499_v5  ;;  %v626_v51 = vand.u32 4294901760, %v496_v12  ;;  %v13449_v28 = vsub.f32 %v494_v52, %v622_v15 }
  0x32   : > { %20959 = vst [vmem:[#allocation52_spill] sm:$0xff] %v13393_v11  ;;  %20960 = vst [vmem:[#allocation53_spill] sm:$0xff] %v13395_v46  ;;  %v13418_v46 = vpack.c.bf16 %v614_v37, %v610_v19  ;;  %v624_v11 = vand.u32 4294901760, %v497_v33  ;;  %v13438_v37 = vand.u32 4294901760, %v441_v20  ;;  %v13440_v44 = vsub.f32 %v493_v1, %v616_v25 }
  0x33   : > { %10907 = vmatpush1.bf16.msra.mxu0 %v13335_v21  ;;  %20961 = vst [vmem:[#allocation54_spill] sm:$0xff] %v13405_v49  ;;  %20962 = vst [vmem:[#allocation55_spill] sm:$0xff] %v13407_v57  ;;  %v13420_v21 = vsub.f32 %v488_v39, %v610_v19  ;;  %v13427_v57 = vpack.c.bf16 %v620_v56, %v616_v25  ;;  %v502_v19 = vld [vmem:[%s19855_s3 + $0x1d0] sm:$0xff]  ;;  %v13442_v39 = vsub.f32 %v495_v41, %v620_v56  ;;  %v507_v25 = vld [vmem:[%s19855_s3 + $0x1f8] sm:$0xff] }
  0x34   : > { %10909 = vmatprep.subr.bf16.mxu0 %v13354_v0  ;;  %20963 = vst [vmem:[#allocation56_spill] sm:$0xff] %v13416_v18  ;;  %20964 = vst [vmem:[#allocation57_spill] sm:$0xff] %v13418_v46  ;;  %v503_v0 = vld [vmem:[%s19855_s3 + $0x1d8] sm:$0xff]  ;;  %v13447_v18 = vsub.f32 %v492_v29, %v618_v31  ;;  %v13458_v1 = vsub.f32 %v441_v20, %v13438_v37  ;;  %v632_v41 = vand.u32 4294901760, %v501_v30  ;;  %v638_v29 = vand.u32 4294901760, %v502_v19 }
  0x35   : > { %20965 = vst [vmem:[#allocation58_spill] sm:$0xff] %v13420_v21  ;;  %20966 = vst [vmem:[#allocation59_spill] sm:$0xff] %v13422_v53  ;;  %v630_v53 = vand.u32 4294901760, %v498_v24  ;;  %v13445_v21 = vpack.c.bf16 %v622_v15, %v618_v31  ;;  %v636_v56 = vand.u32 4294901760, %v503_v0  ;;  %v440_v31 = vld [vmem:[%s13372_s22] sm:$0xff]  ;;  %v13462_v52 = vpack.c.bf16 %v628_v6, %v624_v11 }
  0x36   : > { %20967 = vst [vmem:[#allocation60_spill] sm:$0xff] %v13427_v57  ;;  %20968 = vst [vmem:[#allocation61_spill] sm:$0xff] %v13438_v37  ;;  %v13464_v15 = vsub.f32 %v497_v33, %v624_v11  ;;  %v640_v20 = vand.u32 4294901760, %v505_v4  ;;  %v644_v37 = vand.u32 4294901760, %v507_v25  ;;  %v13490_v11 = vand.u32 4294901760, %v440_v31 }
  0x37   : > { %20969 = vst [vmem:[#allocation62_spill] sm:$0xff] %v13440_v44  ;;  %20970 = vst [vmem:[#allocation63_spill] sm:$0xff] %v13442_v39  ;;  %10911 = vmatpush1.bf16.msra.mxu0 %v13367_v3  ;;  %v634_v3 = vand.u32 4294901760, %v500_v43  ;;  %v13469_v39 = vpack.c.bf16 %v630_v53, %v626_v51  ;;  %v13471_v44 = vsub.f32 %v496_v12, %v626_v51  ;;  %v19940_v51 = vand.u32 4294901760, %v13171_v58 }
  0x38   : > { %20971 = vst [vmem:[#allocation64_spill] sm:$0xff] %v13445_v21  ;;  %20972 = vst [vmem:[#allocation65_spill] sm:$0xff] %v13447_v18  ;;  %10913 = vmatprep.subr.bf16.mxu0 %v13385_v54  ;;  %v19935_v18 = vand.u32 4294901760, %v13458_v1  ;;  %v13474_v54 = vsub.f32 %v498_v24, %v630_v53  ;;  %v13493_v12 = vpack.c.bf16 %v636_v56, %v632_v41 }
  0x39   : > { %20973 = vst [vmem:[#allocation66_spill] sm:$0xff] %v13449_v28  ;;  %20974 = vst [vmem:[#allocation67_spill] sm:$0xff] %v13458_v1  ;;  %v13466_v28 = vsub.f32 %v499_v5, %v628_v6  ;;  %v13484_v5 = vld [vmem:[%s19855_s3 + $0x1f0] sm:$0xff]  ;;  %v13495_v24 = vsub.f32 %v501_v30, %v632_v41  ;;  %v13497_v53 = vsub.f32 %v503_v0, %v636_v56  ;;  %v20990_v41 = vand.u32 4294901760, %v13160_v55 }
  0x3a   : > { %20975 = vst [vmem:[#allocation68_spill] sm:$0xff] %v13462_v52  ;;  %20976 = vst [vmem:[#allocation69_spill] sm:$0xff] %v13464_v15  ;;  %v651_v33 = vsub.f32 %v13458_v1, %v19935_v18  ;;  %v13506_v6 = vpack.c.bf16 %v644_v37, %v640_v20  ;;  %v13508_v1 = vsub.f32 %v505_v4, %v640_v20  ;;  %v19941_v30 = vand.u32 4294901760, %v13484_v5 }
  0x3b   : > { %20977 = vst [vmem:[#allocation70_spill] sm:$0xff] %v13469_v39  ;;  %20978 = vst [vmem:[#allocation71_spill] sm:$0xff] %v13471_v44  ;;  %10915 = vmatpush1.bf16.msra.mxu0 %v13391_v2  ;;  %v13500_v2 = vpack.c.bf16 %v638_v29, %v634_v3  ;;  %v13504_v44 = vsub.f32 %v502_v19, %v638_v29  ;;  %v13513_v0 = vsub.f32 %v507_v25, %v644_v37 }
  0x3c   : > { %20979 = vst [vmem:[#allocation72_spill] sm:$0xff] %v13474_v54  ;;  %20980 = vst [vmem:[#allocation73_spill] sm:$0xff] %v13490_v11  ;;  %10917 = vmatprep.subr.bf16.mxu0 %v13405_v49  ;;  %v13502_v54 = vsub.f32 %v500_v43, %v634_v3  ;;  %v652_v18 = vand.u32 4294901760, %v651_v33  ;;  %v642_v49 = vand.u32 4294901760, %v13479_v47  ;;  %v684_v3 = vsub.f32 %v13160_v55, %v20990_v41 }
  0x3d   : > { %20981 = vst [vmem:[#allocation74_spill] sm:$0xff] %v13493_v12  ;;  %20982 = vst [vmem:[#allocation75_spill] sm:$0xff] %v13495_v24  ;;  %v13519_v43 = vsub.f32 %v440_v31, %v13490_v11  ;;  %v696_v4 = vsub.f32 %v13171_v58, %v19940_v51  ;;  %v19942_v19 = vand.u32 4294901760, %v13174_v59  ;;  %v19945_v56 = vand.u32 4294901760, %v13176_v60 }
  0x3e   : > { %20983 = vst [vmem:[#allocation76_spill] sm:$0xff] %v13497_v53  ;;  %20984 = vst [vmem:[#allocation77_spill] sm:$0xff] %v13500_v2  ;;  %653 = vmatprep.mubr.f32.mxu0 %v652_v18  ;;  %v13534_v20 = vpack.c.bf16 %v19941_v30, %v642_v49  ;;  %v685_v37 = vand.u32 4294901760, %v684_v3  ;;  %v20993_v41 = vand.u32 4294901760, %v13178_v61  ;;  %v20994_v18 = vand.u32 4294901760, %v13180_v62 }
  0x3f   : > { %20985 = vst [vmem:[#allocation78_spill] sm:$0xff] %v13502_v54  ;;  %20986 = vst [vmem:[#allocation79_spill] sm:$0xff] %v13504_v44  ;;  %10919 = vmatpush1.bf16.msra.mxu0 %v13418_v46  ;;  %v697_v31 = vand.u32 4294901760, %v696_v4  ;;  %v690_v30 = vsub.f32 %v13174_v59, %v19942_v19  ;;  %v702_v51 = vsub.f32 %v13176_v60, %v19945_v56  ;;  %v20995_v29 = vand.u32 4294901760, %v13185_v40 }
  0x40   : > { %20987 = vst [vmem:[#allocation80_spill] sm:$0xff] %v13506_v6  ;;  %20988 = vst [vmem:[#allocation81_spill] sm:$0xff] %v13508_v1  ;;  %10921 = vmatprep.subr.bf16.mxu0 %v13427_v57  ;;  %v708_v3 = vsub.f32 %v13178_v61, %v20993_v41  ;;  %v720_v25 = vsub.f32 %v13180_v62, %v20994_v18  ;;  %v20996_v33 = vand.u32 4294901760, %v13198_v7  ;;  %v20999_v57 = vand.u32 4294901760, %v13207_v10 }
  0x41   : > { %20989 = vst [vmem:[#allocation82_spill] sm:$0xff] %v13513_v0  ;;  %20991 = vst [vmem:[#allocation83_spill] sm:$0xff] %v13519_v43  ;;  %v714_v4 = vsub.f32 %v13185_v40, %v20995_v29  ;;  %v21000_v46 = vand.u32 4294901760, %v13220_v13  ;;  %v21002_v0 = vand.u32 4294901760, %v13223_v14  ;;  %v21003_v1 = vand.u32 4294901760, %v13225_v16 }
  0x42   : > { %20992 = vst [vmem:[#allocation84_spill] sm:$0xff] %v13534_v20  ;;  %v726_v19 = vsub.f32 %v13198_v7, %v20996_v33  ;;  %v738_v18 = vsub.f32 %v13207_v10, %v20999_v57  ;;  %v21001_v33 = vand.u32 4294901760, %v13519_v43  ;;  %v703_v11 = vand.u32 4294901760, %v702_v51 }
  0x43   : > { %10923 = vmatpush1.bf16.msra.mxu0 %v13445_v21  ;;  %v20998_v21 = vand.u32 4294901760, %v13204_v9  ;;  %v750_v29 = vsub.f32 %v13220_v13, %v21000_v46  ;;  %v768_v57 = vsub.f32 %v13225_v16, %v21003_v1  ;;  %v691_v46 = vand.u32 4294901760, %v690_v30 }
  0x44   : > { %10925 = vmatprep.subr.bf16.mxu0 %v13462_v52  ;;  %v20997_v52 = vand.u32 4294901760, %v13201_v8  ;;  %v709_v54 = vand.u32 4294901760, %v708_v3  ;;  %v721_v13 = vand.u32 4294901760, %v720_v25  ;;  %v715_v10 = vand.u32 4294901760, %v714_v4 }
  0x45   : > { %v744_v41 = vsub.f32 %v13204_v9, %v20998_v21  ;;  %v756_v21 = vsub.f32 %v13223_v14, %v21002_v0  ;;  %v751_v0 = vand.u32 4294901760, %v750_v29  ;;  %v21004_v14 = vand.u32 4294901760, %v13227_v17 }
  0x46   : > { %v732_v56 = vsub.f32 %v13201_v8, %v20997_v52  ;;  %v657_v52 = vsub.f32 %v13519_v43, %v21001_v33  ;;  %v727_v33 = vand.u32 4294901760, %v726_v19  ;;  %v739_v8 = vand.u32 4294901760, %v738_v18 }
  0x47   : > { %10927 = vmatpush1.bf16.msra.mxu0 %v13469_v39  ;;  %v19974_v39 = vand.u32 4294901760, %v13240_v26  ;;  %v745_v9 = vand.u32 4294901760, %v744_v41  ;;  %v762_v1 = vsub.f32 %v13227_v17, %v21004_v14  ;;  %v757_v44 = vand.u32 4294901760, %v756_v21 }
  0x48   : > { %10929 = vmatprep.subr.bf16.mxu0 %v13493_v12  ;;  %v733_v43 = vand.u32 4294901760, %v732_v56  ;;  %v769_v12 = vand.u32 4294901760, %v768_v57  ;;  %v21005_v51 = vand.u32 4294901760, %v13229_v22  ;;  %v13598_v19 = vsub.f32 %v13479_v47, %v642_v49 }
  0x49   : > { %v10936_v56 = vpack.c.bf16 %v697_v31, %v685_v37  ;;  %v13603_v14 = vsub.f32 %v13240_v26, %v19974_v39  ;;  %v19975_v3 = vand.u32 4294901760, %v13252_v36  ;;  %v658_v4 = vand.u32 4294901760, %v657_v52 }
  0x4a   : > { %v774_v30 = vsub.f32 %v13229_v22, %v21005_v51  ;;  %21006 = vst [vmem:[#allocation85_spill] sm:$0xff] %v13598_v19  ;;  %v10938_v41 = vpack.c.bf16 %v703_v11, %v691_v46  ;;  %v10940_v18 = vpack.c.bf16 %v721_v13, %v709_v54  ;;  %v10942_v29 = vpack.c.bf16 %v727_v33, %v715_v10  ;;  %v21008_v33 = vld [vmem:[#allocation32_spill] sm:$0xff] }
  0x4b   : > { %10931 = vmatpush1.bf16.msra.mxu0 %v13500_v2  ;;  %v10944_v21 = vpack.c.bf16 %v745_v9, %v733_v43  ;;  %v10946_v57 = vpack.c.bf16 %v751_v0, %v739_v8  ;;  %v763_v51 = vand.u32 4294901760, %v762_v1  ;;  %v19976_v25 = vand.u32 4294901760, %v13254_v38 }
  0x4c   : > { %10933 = vmatprep.subr.bf16.mxu0 %v13506_v6  ;;  %v10948_v47 = vpack.c.bf16 %v769_v12, %v757_v44  ;;  %v775_v49 = vand.u32 4294901760, %v774_v30  ;;  %v21007_v37 = vand.u32 4294901760, %v13250_v32  ;;  %v19981_v39 = vand.u32 4294901760, %v13256_v34 }
  0x4d   : > { %v781_v11 = vand.u32 4294901760, %v13603_v14  ;;  %v786_v8 = vsub.f32 %v13252_v36, %v19975_v3  ;;  %v19980_v9 = vand.u32 4294901760, %v13267_v35  ;;  %v19977_v10 = vand.u32 4294901760, %v13269_v42 }
  0x4e   : > { %v792_v31 = vsub.f32 %v13250_v32, %v21007_v37  ;;  %v19978_v13 = vand.u32 4294901760, %v13272_v45  ;;  %v19979_v54 = vand.u32 4294901760, %v13274_v48  ;;  %v19982_v44 = vand.u32 4294901760, %v13299_v23  ;;  %v21010_v37 = vld [vmem:[#allocation35_spill] sm:$0xff] }
  0x4f   : > { %10935 = vmatpush1.bf16.msra.mxu0 %v13534_v20  ;;  %v798_v43 = vsub.f32 %v13254_v38, %v19976_v25  ;;  %v19983_v52 = vand.u32 4294901760, %v13303_v63  ;;  %v19988_v46 = vand.u32 4294901760, %v13305_v50  ;;  %v19994_v0 = vand.u32 4294901760, %v21008_v33  ;;  %v21013_v20 = vld [vmem:[#allocation38_spill] sm:$0xff] }
  0x50   : > { %10937 = vmatprep.subr.bf16.mxu0 %v10936_v56  ;;  %v10950_v1 = vpack.c.bf16 %v775_v49, %v763_v51  ;;  %v804_v30 = vsub.f32 %v13256_v34, %v19981_v39  ;;  %v21009_v56 = vld [vmem:[#allocation34_spill] sm:$0xff]  ;;  %v793_v3 = vand.u32 4294901760, %v792_v31  ;;  %v787_v12 = vand.u32 4294901760, %v786_v8 }
  0x51   : > { %v20002_v14 = vand.u32 4294901760, %v21009_v56  ;;  %v816_v25 = vsub.f32 %v13267_v35, %v19980_v9  ;;  %v822_v51 = vsub.f32 %v13272_v45, %v19978_v13  ;;  %v828_v49 = vsub.f32 %v13274_v48, %v19979_v54  ;;  %v21012_v9 = vld [vmem:[#allocation37_spill] sm:$0xff]  ;;  %v21071_v48 = vld [vmem:[#allocation44_spill] sm:$0xff] }
  0x52   : > { %659 = vmatmul.mubr.f32.vlgmr.msra.gmra.mrb[0].mxu0 %v658_v4  ;;  %v20004_v4 = vand.u32 4294901760, %v21010_v37  ;;  %v21011_v31 = vand.u32 4294901760, %v13301_v27  ;;  %v852_v13 = vsub.f32 %v13305_v50, %v19988_v46  ;;  %v864_v54 = vsub.f32 %v21008_v33, %v19994_v0  ;;  %v21014_v50 = vld [vmem:[#allocation40_spill] sm:$0xff] }
  0x53   : > { %10939 = vmatpush1.bf16.msra.mxu0 %v10938_v41  ;;  %v810_v41 = vsub.f32 %v13269_v42, %v19977_v10  ;;  %v846_v10 = vsub.f32 %v13303_v63, %v19983_v52  ;;  %v805_v46 = vand.u32 4294901760, %v804_v30  ;;  %v817_v2 = vand.u32 4294901760, %v816_v25  ;;  %v21017_v30 = vld [vmem:[#allocation41_spill] sm:$0xff]  ;;  %v21080_v35 = vld [vmem:[#allocation56_spill] sm:$0xff]  ;;  %v21082_v42 = vld [vmem:[#allocation59_spill] sm:$0xff] }
  0x54   : > { %10941 = vmatprep.subr.bf16.mxu0 %v10940_v18  ;;  %v840_v18 = vsub.f32 %v13299_v23, %v19982_v44  ;;  %v834_v8 = vsub.f32 %v13301_v27, %v21011_v31  ;;  %v799_v44 = vand.u32 4294901760, %v798_v43  ;;  %v858_v31 = vsub.f32 %v21009_v56, %v20002_v14 }
  0x55   : > { %v870_v52 = vsub.f32 %v21010_v37, %v20004_v4  ;;  %v811_v19 = vand.u32 4294901760, %v810_v41  ;;  %v20006_v0 = vand.u32 4294901760, %v21014_v50  ;;  %v823_v33 = vand.u32 4294901760, %v822_v51 }
  0x56   : > { %v829_v39 = vand.u32 4294901760, %v828_v49  ;;  %v835_v43 = vand.u32 4294901760, %v834_v8  ;;  %v847_v63 = vand.u32 4294901760, %v846_v10  ;;  %v853_v27 = vand.u32 4294901760, %v852_v13 }
  0x57   : > { %10943 = vmatpush1.bf16.msra.mxu0 %v10942_v29  ;;  %v841_v29 = vand.u32 4294901760, %v840_v18  ;;  %v865_v23 = vand.u32 4294901760, %v864_v54  ;;  %v21015_v14 = vand.u32 4294901760, %v21012_v9  ;;  %v859_v4 = vand.u32 4294901760, %v858_v31  ;;  %v21020_v18 = vld [vmem:[#allocation43_spill] sm:$0xff] }
  0x58   : > { %10945 = vmatprep.subr.bf16.mxu0 %v10944_v21  ;;  %v871_v6 = vand.u32 4294901760, %v870_v52  ;;  %v21016_v21 = vand.u32 4294901760, %v21013_v20  ;;  %v21018_v51 = vand.u32 4294901760, %v13484_v5  ;;  %v10952_v10 = vpack.c.bf16 %v793_v3, %v781_v11 }
  0x59   : > { %v876_v56 = vsub.f32 %v21012_v9, %v21015_v14  ;;  %v10954_v13 = vpack.c.bf16 %v799_v44, %v787_v12  ;;  %v10956_v54 = vpack.c.bf16 %v817_v2, %v805_v46  ;;  %v10958_v52 = vpack.c.bf16 %v823_v33, %v811_v19  ;;  %v21023_v12 = vld [vmem:[#allocation46_spill] sm:$0xff]  ;;  %v21024_v19 = vld [vmem:[#allocation47_spill] sm:$0xff] }
  0x5a   : > { %v888_v25 = vsub.f32 %v21013_v20, %v21016_v21  ;;  %v13679_v49 = vsub.f32 %v13484_v5, %v21018_v51  ;;  %v10960_v14 = vpack.c.bf16 %v841_v29, %v829_v39  ;;  %v20007_v8 = vand.u32 4294901760, %v21020_v18  ;;  %v21021_v20 = vld [vmem:[#allocation44_spill] sm:$0xff]  ;;  %v21026_v46 = vld [vmem:[#allocation50_spill] sm:$0xff] }
  0x5b   : > { %10947 = vmatpush1.bf16.msra.mxu0 %v10946_v57  ;;  %v13684_v57 = vsub.f32 %v21014_v50, %v20006_v0  ;;  %v10962_v31 = vpack.c.bf16 %v847_v63, %v835_v43  ;;  %v13687_v21 = vpack.c.bf16 %v865_v23, %v853_v27  ;;  %v877_v41 = vand.u32 4294901760, %v876_v56  ;;  %v21025_v23 = vld [vmem:[#allocation49_spill] sm:$0xff]  ;;  %v21029_v43 = vld [vmem:[#allocation55_spill] sm:$0xff]  ;;  %v21033_v56 = vld [vmem:[#allocation62_spill] sm:$0xff] }
  0x5c   : > { %21019 = vst [vmem:[#allocation35_spill] sm:$0xff] %v13679_v49  ;;  %10949 = vmatprep.subr.bf16.mxu0 %v10948_v47  ;;  %v20010_v5 = vand.u32 4294901760, %v21021_v20  ;;  %v13690_v47 = vpack.c.bf16 %v871_v6, %v859_v4  ;;  %v889_v3 = vand.u32 4294901760, %v888_v25  ;;  %v21022_v11 = vand.u32 4294901760, %v21017_v30  ;;  %v21028_v4 = vld [vmem:[#allocation53_spill] sm:$0xff]  ;;  %v21032_v27 = vld [vmem:[#allocation59_spill] sm:$0xff] }
  0x5d   : > { %v20011_v2 = vand.u32 4294901760, %v21023_v12  ;;  %v883_v39 = vand.u32 4294901760, %v13684_v57  ;;  %v900_v6 = vsub.f32 %v21020_v18, %v20007_v8  ;;  %v21034_v49 = vld [vmem:[#allocation63_spill] sm:$0xff]  ;;  %v21036_v0 = vand.u32 4294901760, %v21025_v23 }
  0x5e   : > { %v894_v44 = vsub.f32 %v21017_v30, %v21022_v11  ;;  %v912_v51 = vsub.f32 %v21021_v20, %v20010_v5  ;;  %v21031_v11 = vld [vmem:[#allocation58_spill] sm:$0xff]  ;;  %v10968_v63 = vpack.c.bf16 %v889_v3, %v877_v41  ;;  %v21035_v5 = vand.u32 4294901760, %v21024_v19 }
  0x5f   : > { %10951 = vmatpush1.bf16.msra.mxu0 %v10950_v1  ;;  %v21027_v1 = vld [vmem:[#allocation52_spill] sm:$0xff]  ;;  %v906_v8 = vsub.f32 %v21023_v12, %v20011_v2  ;;  %v924_v33 = vsub.f32 %v21025_v23, %v21036_v0  ;;  %v21037_v41 = vand.u32 4294901760, %v21026_v46  ;;  %v901_v3 = vand.u32 4294901760, %v900_v6 }
  0x60   : > { %10953 = vmatprep.subr.bf16.mxu0 %v10952_v10  ;;  %v21030_v10 = vld [vmem:[#allocation56_spill] sm:$0xff]  ;;  %v895_v18 = vand.u32 4294901760, %v894_v44  ;;  %v918_v57 = vsub.f32 %v21024_v19, %v21035_v5  ;;  %v21038_v2 = vand.u32 4294901760, %v21027_v1  ;;  %v21040_v25 = vand.u32 4294901760, %v21029_v43 }
  0x61   : > { %v913_v19 = vand.u32 4294901760, %v912_v51  ;;  %v21041_v0 = vand.u32 4294901760, %v21030_v10  ;;  %v21042_v6 = vand.u32 4294901760, %v21031_v11  ;;  %v925_v12 = vand.u32 4294901760, %v924_v33 }
  0x62   : > { %v930_v29 = vsub.f32 %v21027_v1, %v21038_v2  ;;  %v948_v5 = vsub.f32 %v21029_v43, %v21040_v25  ;;  %v21043_v2 = vand.u32 4294901760, %v21032_v27  ;;  %v21045_v25 = vand.u32 4294901760, %v21034_v49  ;;  %v21046_v43 = vld [vmem:[#allocation65_spill] sm:$0xff] }
  0x63   : > { %10955 = vmatpush1.bf16.msra.mxu0 %v10954_v13  ;;  %v936_v13 = vsub.f32 %v21026_v46, %v21037_v41  ;;  %v960_v23 = vsub.f32 %v21030_v10, %v21041_v0  ;;  %v954_v41 = vsub.f32 %v21031_v11, %v21042_v6  ;;  %v919_v10 = vand.u32 4294901760, %v918_v57  ;;  %v21047_v11 = vld [vmem:[#allocation66_spill] sm:$0xff] }
  0x64   : > { %10957 = vmatprep.subr.bf16.mxu0 %v10956_v54  ;;  %v21039_v54 = vand.u32 4294901760, %v21028_v4  ;;  %v966_v1 = vsub.f32 %v21032_v27, %v21043_v2  ;;  %v984_v51 = vsub.f32 %v21034_v49, %v21045_v25  ;;  %v20029_v20 = vand.u32 4294901760, %v21047_v11  ;;  %v443_v2 = vld [vmem:[%s13372_s22 + $0x18] sm:$0xff]  ;;  %v21087_v49 = vld [vmem:[#allocation85_spill] sm:$0xff] }
  0x65   : > { %v937_v6 = vand.u32 4294901760, %v936_v13  ;;  %v949_v27 = vand.u32 4294901760, %v948_v5  ;;  %v20028_v30 = vand.u32 4294901760, %v13464_v15  ;;  %v20027_v25 = vand.u32 4294901760, %v13466_v28 }
  0x66   : > { %v942_v44 = vsub.f32 %v21028_v4, %v21039_v54  ;;  %v907_v54 = vand.u32 4294901760, %v906_v8  ;;  %v21044_v4 = vand.u32 4294901760, %v21033_v56  ;;  %v967_v50 = vand.u32 4294901760, %v966_v1 }
  0x67   : > { %10959 = vmatpush1.bf16.msra.mxu0 %v10958_v52  ;;  %v931_v52 = vand.u32 4294901760, %v930_v29  ;;  %v21048_v33 = vand.u32 4294901760, %v21046_v43  ;;  %v13760_v13 = vand.u32 4294901760, %v443_v2  ;;  %v442_v29 = vld [vmem:[%s13372_s22 + $0x10] sm:$0xff]  ;;  %v10972_v5 = vpack.c.bf16 %v913_v19, %v901_v3  ;;  %v21070_v3 = vld [vmem:[#allocation43_spill] sm:$0xff] }
  0x68   : > { %v972_v46 = vsub.f32 %v21033_v56, %v21044_v4  ;;  %10961 = vmatprep.subr.bf16.mxu0 %v10960_v14  ;;  %v943_v8 = vand.u32 4294901760, %v942_v44  ;;  %v961_v4 = vand.u32 4294901760, %v960_v23  ;;  %v955_v56 = vand.u32 4294901760, %v954_v41 }
  0x69   : > { %v985_v14 = vand.u32 4294901760, %v984_v51  ;;  %v13758_v57 = vsub.f32 %v21046_v43, %v21048_v33  ;;  %21049 = vst [vmem:[#allocation86_spill] sm:$0xff] %v13760_v13  ;;  %v10970_v44 = vpack.c.bf16 %v895_v18, %v883_v39  ;;  %v13767_v23 = vsub.f32 %v21047_v11, %v20029_v20 }
  0x6a   : > { %v973_v0 = vand.u32 4294901760, %v972_v46  ;;  %v10974_v1 = vpack.c.bf16 %v919_v10, %v907_v54  ;;  %v10976_v41 = vpack.c.bf16 %v937_v6, %v925_v12  ;;  %v13773_v51 = vsub.f32 %v13464_v15, %v20028_v30  ;;  %v21056_v30 = vld [vmem:[#allocation15_spill] sm:$0xff] }
  0x6b   : > { %10963 = vmatpush1.bf16.msra.mxu0 %v10962_v31  ;;  %v21050_v31 = vld [vmem:[#allocation71_spill] sm:$0xff]  ;;  %v13776_v33 = vsub.f32 %v443_v2, %v13760_v13  ;;  %v13778_v18 = vpack.c.bf16 %v961_v4, %v949_v27  ;;  %v13783_v39 = vsub.f32 %v13466_v28, %v20027_v25  ;;  %v13785_v19 = vand.u32 4294901760, %v442_v29  ;;  %v21055_v25 = vld [vmem:[#allocation14_spill] sm:$0xff] }
  0x6c   : > { %10965 = vmatprep.subr.bf16.mxu0 %v13687_v21  ;;  %v20026_v46 = vand.u32 4294901760, %v21050_v31  ;;  %v10978_v21 = vpack.c.bf16 %v943_v8, %v931_v52  ;;  %v13788_v12 = vpack.c.bf16 %v967_v50, %v955_v56  ;;  %v13790_v10 = vpack.c.bf16 %v985_v14, %v973_v0  ;;  %v21054_v56 = vld [vmem:[#allocation72_spill] sm:$0xff]  ;;  %v21058_v52 = vld [vmem:[#allocation17_spill] sm:$0xff]  ;;  %v21059_v50 = vld [vmem:[#allocation18_spill] sm:$0xff] }
  0x6d   : > { %21051 = vst [vmem:[#allocation87_spill] sm:$0xff] %v13776_v33  ;;  %21052 = vst [vmem:[#allocation88_spill] sm:$0xff] %v13785_v19  ;;  %v20030_v54 = vand.u32 4294901760, %v13776_v33  ;;  %v991_v27 = vand.u32 4294901760, %v13767_v23  ;;  %v13801_v2 = vsub.f32 %v442_v29, %v13785_v19  ;;  %v20032_v0 = vand.u32 4294901760, %v21054_v56  ;;  %v21069_v29 = vld [vmem:[#allocation78_spill] sm:$0xff] }
  0x6e   : > { %v13798_v6 = vsub.f32 %v21050_v31, %v20026_v46  ;;  %v1009_v8 = vand.u32 4294901760, %v13783_v39  ;;  %v21078_v14 = vld [vmem:[#allocation53_spill] sm:$0xff]  ;;  %v21088_v23 = vld [vmem:[#allocation35_spill] sm:$0xff]  ;;  %v21090_v9 = vand.u32 4294901760, %v13497_v53  ;;  %v21091_v31 = vand.u32 4294901760, %v13758_v57 }
  0x6f   : > { %10967 = vmatpush1.bf16.msra.mxu0 %v13690_v47  ;;  %21053 = vst [vmem:[#allocation89_spill] sm:$0xff] %v13801_v2  ;;  %v997_v47 = vand.u32 4294901760, %v13773_v51  ;;  %v20031_v4 = vand.u32 4294901760, %v13801_v2  ;;  %v21073_v51 = vld [vmem:[#allocation47_spill] sm:$0xff]  ;;  %v20059_v36 = vand.u32 4294901760, %v21087_v49 }
  0x70   : > { %10969 = vmatprep.subr.bf16.mxu0 %v10968_v63  ;;  %v667_v63 = vsub.f32 %v13776_v33, %v20030_v54  ;;  %v21057_v54 = vld [vmem:[#allocation16_spill] sm:$0xff]  ;;  %v10986_v34 = vpack.c.bf16 %v991_v27, %v21091_v31  ;;  %v1003_v43 = vand.u32 4294901760, %v13798_v6 }
  0x71   : > { %v673_v39 = vsub.f32 %v13801_v2, %v20031_v4  ;;  %v21076_v4 = vld [vmem:[#allocation61_spill] sm:$0xff]  ;;  %v21077_v33 = vld [vmem:[#allocation52_spill] sm:$0xff]  ;;  %v21089_v2 = vand.u32 4294901760, %v13495_v24 }
  0x72   : > { %v668_v46 = vand.u32 4294901760, %v667_v63  ;;  %v1014_v63 = vsub.f32 %v21054_v56, %v20032_v0  ;;  %v21086_v0 = vld [vmem:[#allocation82_spill] sm:$0xff]  ;;  %v10988_v56 = vpack.c.bf16 %v1009_v8, %v997_v47 }
  0x73   : > { %10971 = vmatpush1.bf16.msra.mxu0 %v10970_v44  ;;  %v674_v20 = vand.u32 4294901760, %v673_v39  ;;  %v21060_v44 = vld [vmem:[#allocation28_spill] sm:$0xff]  ;;  %v21085_v39 = vld [vmem:[#allocation81_spill] sm:$0xff]  ;;  %v21095_v6 = vand.u32 4294901760, %v21086_v0 }
  0x74   : > { %10973 = vmatprep.subr.bf16.mxu0 %v10972_v5  ;;  %669 = vmatprep.mubr.f32.mxu0 %v668_v46  ;;  %v21074_v5 = vld [vmem:[#allocation49_spill] sm:$0xff]  ;;  %v21075_v46 = vld [vmem:[#allocation50_spill] sm:$0xff]  ;;  %v1015_v15 = vand.u32 4294901760, %v1014_v63  ;;  %v21094_v27 = vand.u32 4294901760, %v21085_v39 }
  0x75   : > { %675 = vmatmul.mubr.f32.gmra.mrb[2].mxu0 %v674_v20  ;;  %v20058_v20 = vand.u32 4294901760, %v21088_v23  ;;  %v1056_v47 = vsub.f32 %v21086_v0, %v21095_v6 }
  0x76   : > { %1066 = vmatprep.mubr.f32.mxu0 %v21076_v4  ;;  %v1020_v4 = vsub.f32 %v13495_v24, %v21089_v2  ;;  %v10990_v8 = vpack.c.bf16 %v1015_v15, %v1003_v43  ;;  %v21096_v43 = vpack.c.bf16 %v13171_v58, %v13160_v55 }
  0x77   : > { %10975 = vmatpush1.bf16.msra.mxu0 %v10974_v1  ;;  %v21072_v1 = vld [vmem:[#allocation46_spill] sm:$0xff] }
  0x78   : > { %10977 = vmatprep.subr.bf16.mxu0 %v10976_v41  ;;  %v21084_v41 = vld [vmem:[#allocation79_spill] sm:$0xff]  ;;  %v1021_v57 = vand.u32 4294901760, %v1020_v4 }
  0x79   : > { %v21093_v24 = vand.u32 4294901760, %v21084_v41 }
  0x7b   : > { %10979 = vmatpush1.bf16.msra.mxu0 %v10978_v21  ;;  %v1032_v21 = vsub.f32 %v13497_v53, %v21090_v9  ;;  %v1038_v9 = vsub.f32 %v21084_v41, %v21093_v24 }
  0x7c   : > { %10981 = vmatprep.subr.bf16.mxu0 %v13778_v18  ;;  %v21092_v18 = vand.u32 4294901760, %v21069_v29 }
  0x7d   : > { %v1033_v31 = vand.u32 4294901760, %v1032_v21  ;;  %v1039_v24 = vand.u32 4294901760, %v1038_v9  ;;  %v21099_v9 = vpack.c.bf16 %v13180_v62, %v13178_v61 }
  0x7e   : > { %v1026_v2 = vsub.f32 %v21069_v29, %v21092_v18  ;;  %v1050_v18 = vsub.f32 %v21087_v49, %v20059_v36 }
  0x7f   : > { %10983 = vmatpush1.bf16.msra.mxu0 %v13788_v12  ;;  %v1044_v12 = vsub.f32 %v21085_v39, %v21094_v27  ;;  %v10992_v4 = vpack.c.bf16 %v1033_v31, %v1021_v57  ;;  %v1057_v27 = vand.u32 4294901760, %v1056_v47  ;;  %v21102_v57 = vpack.c.bf16 %v21056_v30, %v21055_v25 }
  0x80   : > { %10985 = vmatprep.subr.bf16.mxu0 %v13790_v10  ;;  %v1027_v63 = vand.u32 4294901760, %v1026_v2  ;;  %v1062_v10 = vsub.f32 %v21088_v23, %v20058_v20  ;;  %v1051_v29 = vand.u32 4294901760, %v1050_v18  ;;  %v21097_v2 = vld [vmem:[#allocation73_spill] sm:$0xff]  ;;  %v21103_v31 = vpack.c.bf16 %v21058_v52, %v21057_v54  ;;  %v21109_v18 = vld [vmem:[#allocation23_spill] sm:$0xff] }
  0x81   : > { %v1045_v21 = vand.u32 4294901760, %v1044_v12  ;;  %v21104_v12 = vpack.c.bf16 %v13225_v16, %v21059_v50  ;;  %v21105_v47 = vpack.c.bf16 %v13229_v22, %v13227_v17 }
  0x82   : > { %v10994_v39 = vpack.c.bf16 %v1039_v24, %v1027_v63  ;;  %v1063_v6 = vand.u32 4294901760, %v1062_v10  ;;  %v21107_v63 = vld [vmem:[#allocation21_spill] sm:$0xff]  ;;  %v21110_v10 = vld [vmem:[#allocation22_spill] sm:$0xff] }
  0x83   : > { %10987 = vmatpush1.bf16.msra.mxu0 %v10986_v34  ;;  %v10996_v34 = vpack.c.bf16 %v1057_v27, %v1045_v21  ;;  %v21108_v24 = vpack.c.bf16 %v13254_v38, %v21107_v63  ;;  %v21112_v21 = vld [vmem:[#allocation24_spill] sm:$0xff] }
  0x84   : > { %10989 = vmatprep.subr.bf16.mxu0 %v10988_v56  ;;  %v10998_v15 = vpack.c.bf16 %v1063_v6, %v1051_v29  ;;  %v21098_v56 = vpack.c.bf16 %v13176_v60, %v13174_v59  ;;  %v21100_v29 = vpack.c.bf16 %v13198_v7, %v13185_v40  ;;  %v21113_v27 = vpack.c.bf16 %v13272_v45, %v21112_v21  ;;  %v21114_v6 = vld [vmem:[#allocation25_spill] sm:$0xff] }
  0x87   : > { %10991 = vmatpush1.bf16.msra.mxu0 %v10990_v8  ;;  %v21106_v8 = vpack.c.bf16 %v13250_v32, %v13240_v26 }
  0x88   : > { %10993 = vmatprep.subr.bf16.mxu0 %v10992_v4  ;;  %v21111_v4 = vpack.c.bf16 %v21109_v18, %v21110_v10 }
  0x8b   : > { %10995 = vmatpush1.bf16.msra.mxu0 %v10994_v39  ;;  %v21101_v39 = vld [vmem:[#allocation67_spill] sm:$0xff] }
  0x8c   : > { %10997 = vmatprep.subr.bf16.mxu0 %v10996_v34  ;;  %v21115_v34 = vpack.c.bf16 %v21060_v44, %v21114_v6 }
  0x8f   : > { %10999 = vmatpush1.bf16.msra.mxu0 %v10998_v15  ;;  %v21116_v15 = vld [vmem:[#allocation30_spill] sm:$0xff] }
  0x90   : > { %11001 = vmatprep.subr.bf16.mxu0 %v21096_v43  ;;  %v21117_v43 = vld [vmem:[#allocation29_spill] sm:$0xff] }
  0x92   : > { %1068 = vmatmul.mubr.f32.vlgmr.msra.gmra.mrb[0].mxu0 %v21097_v2 }
  0x93   : > { %11003 = vmatpush1.bf16.msra.mxu0 %v21098_v56  ;;  %1074 = vmatprep.mubr.f32.mxu0 %v13760_v13  ;;  %v21118_v56 = vpack.c.bf16 %v21116_v15, %v21117_v43  ;;  %v21139_v13 = vld [vmem:[#allocation62_spill] sm:$0xff] }
  0x94   : > { %11005 = vmatprep.subr.bf16.mxu0 %v21099_v9  ;;  %v21119_v9 = vld [vmem:[#allocation32_spill] sm:$0xff] }
  0x96   : > { %1076 = vmatmul.mubr.f32.gmra.mrb[2].mxu0 %v13785_v19 }
  0x97   : > { %11007 = vmatpush1.bf16.msra.mxu0 %v21100_v29  ;;  %1276 = vmatprep.mubr.f32.mxu0 %v21101_v39  ;;  %v21120_v29 = vld [vmem:[#allocation31_spill] sm:$0xff] }
  0x98   : > { %11009 = vmatprep.subr.bf16.mxu0 %v21102_v57  ;;  %v21121_v57 = vpack.c.bf16 %v21119_v9, %v21120_v29 }
  0x9b   : > { %11011 = vmatpush1.bf16.msra.mxu0 %v21103_v31  ;;  %v21122_v31 = vld [vmem:[#allocation34_spill] sm:$0xff] }
  0x9c   : > { %11013 = vmatprep.subr.bf16.mxu0 %v21104_v12  ;;  %v21123_v12 = vpack.c.bf16 %v21010_v37, %v21122_v31 }
  0x9f   : > { %11015 = vmatpush1.bf16.msra.mxu0 %v21105_v47  ;;  %v21124_v47 = vld [vmem:[#allocation38_spill] sm:$0xff] }
  0xa0   : > { %11017 = vmatprep.subr.bf16.mxu0 %v21106_v8  ;;  %v21125_v8 = vld [vmem:[#allocation37_spill] sm:$0xff] }
  0xa3   : > { %11019 = vmatpush1.bf16.msra.mxu0 %v21108_v24  ;;  %v21126_v24 = vpack.c.bf16 %v21124_v47, %v21125_v8 }
  0xa4   : > { %11021 = vmatprep.subr.bf16.mxu0 %v21111_v4  ;;  %v21127_v4 = vld [vmem:[#allocation41_spill] sm:$0xff] }
  0xa7   : > { %11023 = vmatpush1.bf16.msra.mxu0 %v21113_v27  ;;  %v21128_v27 = vld [vmem:[#allocation40_spill] sm:$0xff] }
  0xa8   : > { %11025 = vmatprep.subr.bf16.mxu0 %v21115_v34  ;;  %v21129_v20 = vpack.c.bf16 %v21127_v4, %v21128_v27  ;;  %v21130_v34 = vpack.c.bf16 %v21071_v48, %v21070_v3 }
  0xab   : > { %11027 = vmatpush1.bf16.msra.mxu0 %v21118_v56  ;;  %v21131_v56 = vpack.c.bf16 %v21073_v51, %v21072_v1 }
  0xac   : > { %11029 = vmatprep.subr.bf16.mxu0 %v21121_v57  ;;  %v21132_v57 = vpack.c.bf16 %v21075_v46, %v21074_v5 }
  0xaf   : > { %11031 = vmatpush1.bf16.msra.mxu0 %v21123_v12  ;;  %v21133_v12 = vpack.c.bf16 %v21078_v14, %v21077_v33  ;;  %v21146_v33 = vld [vmem:[#allocation71_spill] sm:$0xff] }
  0xb0   : > { %11033 = vmatprep.subr.bf16.mxu0 %v21126_v24  ;;  %v21134_v24 = vld [vmem:[#allocation55_spill] sm:$0xff] }
  0xb1   : > { %v21135_v36 = vpack.c.bf16 %v21080_v35, %v21134_v24 }
  0xb3   : > { %11035 = vmatpush1.bf16.msra.mxu0 %v21129_v20  ;;  %v21136_v20 = vld [vmem:[#allocation58_spill] sm:$0xff] }
  0xb4   : > { %11037 = vmatprep.subr.bf16.mxu0 %v21130_v34  ;;  %v21137_v19 = vpack.c.bf16 %v21082_v42, %v21136_v20  ;;  %v21138_v34 = vld [vmem:[#allocation63_spill] sm:$0xff] }
  0xb5   : > { %v21140_v2 = vpack.c.bf16 %v21138_v34, %v21139_v13 }
  0xb7   : > { %11039 = vmatpush1.bf16.msra.mxu0 %v21131_v56  ;;  %v21141_v56 = vld [vmem:[#allocation65_spill] sm:$0xff] }
  0xb8   : > { %11041 = vmatprep.subr.bf16.mxu0 %v21132_v57  ;;  %v21142_v46 = vpack.c.bf16 %v21047_v11, %v21141_v56  ;;  %v21143_v57 = vld [vmem:[#allocation69_spill] sm:$0xff] }
  0xb9   : > { %v21144_v14 = vpack.c.bf16 %v13466_v28, %v21143_v57 }
  0xbb   : > { %11043 = vmatpush1.bf16.msra.mxu0 %v21133_v12  ;;  %v21145_v12 = vld [vmem:[#allocation72_spill] sm:$0xff] }
  0xbc   : > { %11045 = vmatprep.subr.bf16.mxu0 %v21135_v36  ;;  %v21147_v35 = vpack.c.bf16 %v21145_v12, %v21146_v33  ;;  %v21148_v36 = vld [vmem:[#allocation75_spill] sm:$0xff] }
  0xbd   : > { %v21149_v42 = vpack.c.bf16 %v13497_v53, %v21148_v36  ;;  %v21156_v12 = vld [vmem:[#allocation83_spill] sm:$0xff] }
  0xbe   : > { %v21158_v53 = vld [vmem:[#allocation87_spill] sm:$0xff] }
  0xbf   : > { %11047 = vmatpush1.bf16.msra.mxu0 %v21137_v19  ;;  %v21150_v19 = vld [vmem:[#allocation78_spill] sm:$0xff] }
  0xc0   : > { %11049 = vmatprep.subr.bf16.mxu0 %v21140_v2  ;;  %v21151_v34 = vpack.c.bf16 %v21084_v41, %v21150_v19  ;;  %v21152_v2 = vld [vmem:[#allocation81_spill] sm:$0xff] }
  0xc1   : > { %v21153_v11 = vpack.c.bf16 %v21086_v0, %v21152_v2  ;;  %v21160_v41 = vld [vmem:[#allocation89_spill] sm:$0xff]  ;;  %v21163_v0 = vld [vmem:[#allocation7_spill] sm:$0xff] }
  0xc2   : > { %v21170_v2 = vld [vmem:[#allocation19_spill] sm:$0xff] }
  0xc3   : > { %11051 = vmatpush1.bf16.msra.mxu0 %v21142_v46  ;;  %v21154_v46 = vpack.c.bf16 %v21088_v23, %v21087_v49  ;;  %v21166_v23 = vld [vmem:[#allocation10_spill] sm:$0xff]  ;;  %v21168_v49 = vld [vmem:[#allocation12_spill] sm:$0xff] }
  0xc4   : > { %11053 = vmatprep.subr.bf16.mxu0 %v21144_v14  ;;  %v21155_v14 = vld [vmem:[#allocation3_spill] sm:$0xff] }
  0xc7   : > { %11055 = vmatpush1.bf16.msra.mxu0 %v21147_v35  ;;  %v21157_v35 = vld [vmem:[#allocation4_spill] sm:$0xff] }
  0xc8   : > { %11057 = vmatprep.subr.bf16.mxu0 %v21149_v42  ;;  %v21159_v42 = vld [vmem:[#allocation5_spill] sm:$0xff] }
  0xcb   : > { %11059 = vmatpush1.bf16.msra.mxu0 %v21151_v34  ;;  %v21161_v34 = vld [vmem:[#allocation6_spill] sm:$0xff] }
  0xcc   : > { %11061 = vmatprep.subr.bf16.mxu0 %v21153_v11  ;;  %v21162_v11 = vand.u32 4294901760, %v21101_v39  ;;  %v21172_v39 = vld [vmem:[#allocation26_spill] sm:$0xff] }
  0xcf   : > { %11063 = vmatpush1.bf16.msra.mxu0 %v21154_v46  ;;  %v21164_v46 = vld [vmem:[#allocation8_spill] sm:$0xff] }
  0xd0   : > { %11065 = vmatprep.subr.bf16.mxu0 %v21155_v14  ;;  %v21165_v14 = vld [vmem:[#allocation9_spill] sm:$0xff] }
  0xd2   : > { %1279 = vmatmul.mubr.f32.vlgmr.msra.gmra.mrb[0].mxu0 %v21156_v12 }
  0xd3   : > { %11067 = vmatpush1.bf16.msra.mxu0 %v21157_v35  ;;  %1286 = vmatprep.mubr.f32.mxu0 %v21158_v53  ;;  %v21167_v35 = vld [vmem:[#allocation11_spill] sm:$0xff] }
  0xd4   : > { %11069 = vmatprep.subr.bf16.mxu0 %v21159_v42  ;;  %v21169_v42 = vld [vmem:[#allocation13_spill] sm:$0xff] }
  0xd6   : > { %1289 = vmatmul.mubr.f32.gmra.mrb[2].mxu0 %v21160_v41 }
  0xd7   : > { %11071 = vmatpush1.bf16.msra.mxu0 %v21161_v34  ;;  %1426 = vmatprep.mubr.f32.mxu0 %v21162_v11  ;;  %v21171_v34 = vld [vmem:[#allocation20_spill] sm:$0xff]  ;;  %v21173_v11 = vld [vmem:[#allocation27_spill] sm:$0xff] }
  0xd8   : > { %11073 = vmatprep.subr.bf16.mxu0 %v21163_v0  ;;  %v21174_v0 = vld [vmem:[#allocation33_spill] sm:$0xff] }
  0xdb   : > { %11075 = vmatpush1.bf16.msra.mxu0 %v21164_v46  ;;  %v21175_v46 = vld [vmem:[#allocation36_spill] sm:$0xff] }
  0xdc   : > { %11077 = vmatprep.subr.bf16.mxu0 %v21165_v14  ;;  %v21176_v14 = vld [vmem:[#allocation39_spill] sm:$0xff] }
  0xdf   : > { %11079 = vmatpush1.bf16.msra.mxu0 %v21166_v23  ;;  %v21177_v23 = vld [vmem:[#allocation42_spill] sm:$0xff] }
  0xe0   : > { %11081 = vmatprep.subr.bf16.mxu0 %v21167_v35  ;;  %v21178_v35 = vld [vmem:[#allocation45_spill] sm:$0xff] }
  0xe3   : > { %11083 = vmatpush1.bf16.msra.mxu0 %v21168_v49  ;;  %v21179_v49 = vld [vmem:[#allocation48_spill] sm:$0xff] }
  0xe4   : > { %11085 = vmatprep.subr.bf16.mxu0 %v21169_v42  ;;  %v21180_v42 = vld [vmem:[#allocation51_spill] sm:$0xff] }
  0xe7   : > { %11087 = vmatpush1.bf16.msra.mxu0 %v21170_v2  ;;  %v21181_v2 = vld [vmem:[#allocation54_spill] sm:$0xff] }
  0xe8   : > { %11089 = vmatprep.subr.bf16.mxu0 %v21171_v34  ;;  %v21182_v34 = vld [vmem:[#allocation57_spill] sm:$0xff] }
  0xeb   : > { %11091 = vmatpush1.bf16.msra.mxu0 %v21172_v39  ;;  %v21183_v39 = vld [vmem:[#allocation60_spill] sm:$0xff] }
  0xec   : > { %11093 = vmatprep.subr.bf16.mxu0 %v21173_v11  ;;  %v21184_v11 = vld [vmem:[#allocation64_spill] sm:$0xff] }
  0xef   : > { %11095 = vmatpush1.bf16.msra.mxu0 %v21174_v0  ;;  %v21185_v0 = vld [vmem:[#allocation68_spill] sm:$0xff] }
  0xf0   : > { %11097 = vmatprep.subr.bf16.mxu0 %v21175_v46  ;;  %v21186_v46 = vld [vmem:[#allocation70_spill] sm:$0xff] }
  0xf3   : > { %11099 = vmatpush1.bf16.msra.mxu0 %v21176_v14  ;;  %v21187_v14 = vld [vmem:[#allocation74_spill] sm:$0xff] }
  0xf4   : > { %11101 = vmatprep.subr.bf16.mxu0 %v21177_v23  ;;  %v21188_v23 = vld [vmem:[#allocation77_spill] sm:$0xff] }
  0xf7   : > { %11103 = vmatpush1.bf16.msra.mxu0 %v21178_v35  ;;  %v21189_v35 = vld [vmem:[#allocation80_spill] sm:$0xff] }
  0xf8   : > { %11105 = vmatprep.subr.bf16.mxu0 %v21179_v49 }
  0xfb   : > { %11107 = vmatpush1.bf16.msra.mxu0 %v21180_v42  ;;  %v21190_v42 = vand.u32 4294901760, %v13160_v55  ;;  %v21198_v55 = vand.u32 4294901760, %v13185_v40  ;;  %v21206_v40 = vand.u32 4294901760, %v13225_v16  ;;  %v21213_v16 = vand.u32 4294901760, %v21160_v41  ;;  %v21216_v41 = vld [vmem:[#allocation61_spill] sm:$0xff] }
  0xfc   : > { %11109 = vmatprep.subr.bf16.mxu0 %v21181_v2  ;;  %v21191_v2 = vand.u32 4294901760, %v13171_v58  ;;  %v21199_v58 = vand.u32 4294901760, %v13198_v7 }
  0xfe   : > { %v11128_v49 = vpack.c.bf16 %v21191_v2, %v21190_v42  ;;  %v11134_v2 = vpack.c.bf16 %v21199_v58, %v21198_v55  ;;  %v1866_v58 = vld [vmem:[%s19857_s5] sm:$0xff] }
  0xff   : > { %11111 = vmatpush1.bf16.msra.mxu0 %v21182_v34  ;;  %v21192_v34 = vld [vmem:[#allocation84_spill] sm:$0xff] }
 0x100   : > { %11113 = vmatprep.subr.bf16.mxu0 %v21183_v39  ;;  %v21193_v39 = vand.u32 4294901760, %v13174_v59  ;;  %v21200_v59 = vand.u32 4294901760, %v21158_v53  ;;  %v21208_v53 = vand.u32 4294901760, %v13229_v22  ;;  %v1871_v22 = vld [vmem:[%s19857_s5 + $0x28] sm:$0xff] }
 0x103   : > { %11115 = vmatpush1.bf16.msra.mxu0 %v21184_v11  ;;  %v21194_v11 = vand.u32 4294901760, %v13176_v60  ;;  %v21201_v60 = vand.u32 4294901760, %v21055_v25  ;;  %v21209_v25 = vand.u32 4294901760, %v13240_v26  ;;  %v14115_v26 = vld [vmem:[%s19857_s5 + $0x18] sm:$0xff] }
 0x104   : > { %11117 = vmatprep.subr.bf16.mxu0 %v21185_v0  ;;  %v20078_v55 = vand.u32 4294901760, %v14115_v26 }
 0x105   : > { %v11130_v0 = vpack.c.bf16 %v21194_v11, %v21193_v39  ;;  %v2020_v39 = vand.u32 4294901760, %v1871_v22  ;;  %v14127_v11 = vld [vmem:[%s19857_s5 + $0x38] sm:$0xff] }
 0x107   : > { %11119 = vmatpush1.bf16.msra.mxu0 %v21186_v46  ;;  %v21195_v46 = vand.u32 4294901760, %v13178_v61  ;;  %v21202_v61 = vand.u32 4294901760, %v21056_v30  ;;  %v21210_v30 = vand.u32 4294901760, %v13250_v32  ;;  %v21214_v32 = vand.u32 4294901760, %v21110_v10 }
 0x108   : > { %11121 = vmatprep.subr.bf16.mxu0 %v21187_v14  ;;  %v21196_v14 = vand.u32 4294901760, %v13180_v62  ;;  %v21203_v62 = vand.u32 4294901760, %v21057_v54  ;;  %v21211_v54 = vand.u32 4294901760, %v21107_v63  ;;  %v21217_v10 = vand.u32 4294901760, %v21112_v21 }
 0x109   : > { %v14096_v42 = vpack.c.bf16 %v21210_v30, %v21209_v25  ;;  %v14173_v25 = vld [vmem:[%s19857_s5 + $0x58] sm:$0xff] }
 0x10a   : > { %v14178_v30 = vld [vmem:[%s19857_s5 + $0x78] sm:$0xff] }
 0x10b   : > { %11123 = vmatpush1.bf16.msra.mxu0 %v21188_v23  ;;  %v11132_v23 = vpack.c.bf16 %v21196_v14, %v21195_v46 }
 0x10c   : > { %11125 = vmatprep.subr.bf16.mxu0 %v21189_v35  ;;  %v21197_v35 = vand.u32 4294901760, %v21156_v12  ;;  %v21204_v12 = vand.u32 4294901760, %v21058_v52  ;;  %v21212_v52 = vand.u32 4294901760, %v13254_v38  ;;  %v21215_v38 = vand.u32 4294901760, %v21109_v18  ;;  %v1870_v18 = vld [vmem:[%s19857_s5 + $0x20] sm:$0xff] }
 0x10e   : > { %v11138_v14 = vpack.c.bf16 %v21204_v12, %v21203_v62  ;;  %v14102_v46 = vpack.c.bf16 %v21212_v52, %v21211_v54  ;;  %v2022_v62 = vand.u32 4294901760, %v1870_v18  ;;  %v14146_v12 = vld [vmem:[%s19857_s5 + $0x10] sm:$0xff]  ;;  %v21223_v54 = vand.u32 4294901760, %v21114_v6 }
 0x10f   : > { %11127 = vmatpush1.bf16.msra.mxu0 %v21192_v34  ;;  %v21224_v52 = vand.u32 4294901760, %v21060_v44  ;;  %v20075_v44 = vand.u32 4294901760, %v14146_v12 }
 0x110   : > { %11129 = vmatprep.subr.bf16.mxu0 %v11128_v49  ;;  %v11136_v49 = vpack.c.bf16 %v21202_v61, %v21201_v60  ;;  %v20076_v60 = vand.u32 4294901760, %v14127_v11  ;;  %v2018_v61 = vand.u32 4294901760, %v1866_v58  ;;  %v14199_v6 = vsub.f32 %v1870_v18, %v2022_v62 }
 0x112   : > { %1430 = vmatmul.mubr.f32.vlgmr.msra.gmra.mrb[0].mxu0 %v21197_v35  ;;  %v21207_v35 = vand.u32 4294901760, %v13227_v17  ;;  %v1867_v17 = vld [vmem:[%s19857_s5 + $0x8] sm:$0xff]  ;;  %21228 = vst [vmem:[#allocation44_spill] sm:$0xff] %v14199_v6 }
 0x113   : > { %11131 = vmatpush1.bf16.msra.mxu0 %v11130_v0  ;;  %1438 = vmatprep.mubr.f32.mxu0 %v21200_v59  ;;  %v21205_v0 = vand.u32 4294901760, %v21059_v50  ;;  %v14121_v50 = vpack.c.bf16 %v21215_v38, %v21214_v32  ;;  %v2016_v63 = vand.u32 4294901760, %v1867_v17  ;;  %v14193_v32 = vsub.f32 %v1866_v58, %v2018_v61  ;;  %v1874_v38 = vld [vmem:[%s19857_s5 + $0x40] sm:$0xff] }
 0x114   : > { %11133 = vmatprep.subr.bf16.mxu0 %v11132_v23  ;;  %v11142_v23 = vpack.c.bf16 %v21208_v53, %v21207_v35  ;;  %v14165_v35 = vsub.f32 %v14115_v26, %v20078_v55  ;;  %v1879_v53 = vld [vmem:[%s19857_s5 + $0x68] sm:$0xff]  ;;  %v21230_v58 = vand.u32 4294901760, %v21116_v15  ;;  %v14223_v15 = vsub.f32 %v14146_v12, %v20075_v44 }
 0x115   : > { %v11140_v7 = vpack.c.bf16 %v21206_v40, %v21205_v0  ;;  %v14151_v0 = vld [vmem:[%s19857_s5 + $0x30] sm:$0xff]  ;;  %v14156_v21 = vpack.c.bf16 %v2020_v39, %v2016_v63  ;;  %v14160_v40 = vsub.f32 %v1871_v22, %v2020_v39  ;;  %v14191_v22 = vpack.c.bf16 %v2022_v62, %v2018_v61  ;;  %21227 = vst [vmem:[#allocation43_spill] sm:$0xff] %v14193_v32  ;;  %v1878_v62 = vld [vmem:[%s19857_s5 + $0x60] sm:$0xff]  ;;  %v1887_v44 = vld [vmem:[%s19857_s5 + $0xa8] sm:$0xff] }
 0x116   : > { %1442 = vmatmul.mubr.f32.gmra.mrb[2].mxu0 %v21213_v16  ;;  %21222 = vst [vmem:[#allocation17_spill] sm:$0xff] %v14165_v35  ;;  %v14184_v16 = vpack.c.bf16 %v21224_v52, %v21223_v54  ;;  %v2028_v61 = vand.u32 4294901760, %v1879_v53  ;;  %21231 = vst [vmem:[#allocation46_spill] sm:$0xff] %v14223_v15  ;;  %v2026_v52 = vand.u32 4294901760, %v1874_v38  ;;  %v14726_v35 = vld [vmem:[%s19857_s5 + $0x1f0] sm:$0xff] }
 0x117   : > { %11135 = vmatpush1.bf16.msra.mxu0 %v11134_v2  ;;  %1705 = vmatprep.mubr.f32.mxu0 %v21216_v41  ;;  %v21218_v2 = vand.u32 4294901760, %v13272_v45  ;;  %v1875_v45 = vld [vmem:[%s19857_s5 + $0x48] sm:$0xff]  ;;  %21219 = vst [vmem:[#allocation14_spill] sm:$0xff] %v14156_v21  ;;  %21221 = vst [vmem:[#allocation16_spill] sm:$0xff] %v14160_v40 }
 0x118   : > { %11137 = vmatprep.subr.bf16.mxu0 %v11136_v49  ;;  %v14158_v49 = vsub.f32 %v1867_v17, %v2016_v63  ;;  %v14189_v17 = vsub.f32 %v14127_v11, %v20076_v60  ;;  %21226 = vst [vmem:[#allocation28_spill] sm:$0xff] %v14191_v22  ;;  %11257 = vmatprep.subr.bf16.mxu1 %v14156_v21  ;;  %v20077_v63 = vand.u32 4294901760, %v14151_v0  ;;  %v2024_v39 = vand.u32 4294901760, %v1875_v45  ;;  %v14261_v21 = vld [vmem:[%s19857_s5 + $0x98] sm:$0xff] }
 0x119   : > { %v14140_v59 = vpack.c.bf16 %v21218_v2, %v21217_v10  ;;  %v21229_v10 = vand.u32 4294901760, %v21117_v43  ;;  %11259 = vmatpush1.bf16.msra.mxu1 %v14191_v22  ;;  %v21234_v60 = vand.u32 4294901760, %v21120_v29  ;;  %v14251_v18 = vsub.f32 %v1879_v53, %v2028_v61  ;;  %v1882_v53 = vld [vmem:[%s19857_s5 + $0x80] sm:$0xff] }
 0x11a   : > { %21220 = vst [vmem:[#allocation15_spill] sm:$0xff] %v14158_v49  ;;  %21225 = vst [vmem:[#allocation18_spill] sm:$0xff] %v14189_v17  ;;  %v14228_v43 = vsub.f32 %v14151_v0, %v20077_v63  ;;  %v14230_v54 = vsub.f32 %v1875_v45, %v2024_v39  ;;  %v21235_v63 = vand.u32 4294901760, %v21119_v9  ;;  %v14249_v55 = vpack.c.bf16 %v2028_v61, %v2024_v39  ;;  %v14274_v39 = vld [vmem:[%s19857_s5 + $0xb8] sm:$0xff]  ;;  %v1946_v49 = vld [vmem:[%s19857_s5 + $0x280] sm:$0xff] }
 0x11b   : > { %11139 = vmatpush1.bf16.msra.mxu0 %v11138_v14  ;;  %v14207_v2 = vpack.c.bf16 %v21230_v58, %v21229_v10  ;;  %v20083_v14 = vand.u32 4294901760, %v14173_v25  ;;  %v14235_v10 = vld [vmem:[%s19857_s5 + $0x70] sm:$0xff]  ;;  %v1883_v58 = vld [vmem:[%s19857_s5 + $0x88] sm:$0xff]  ;;  %21237 = vst [vmem:[#allocation21_spill] sm:$0xff] %v14251_v18  ;;  %v21239_v29 = vand.u32 4294901760, %v14178_v30  ;;  %v21242_v61 = vand.u32 4294901760, %v21122_v31 }
 0x11c   : > { %11141 = vmatprep.subr.bf16.mxu0 %v11140_v7  ;;  %v14218_v7 = vld [vmem:[%s19857_s5 + $0x50] sm:$0xff]  ;;  %21232 = vst [vmem:[#allocation47_spill] sm:$0xff] %v14228_v43  ;;  %21233 = vst [vmem:[#allocation49_spill] sm:$0xff] %v14230_v54  ;;  %v14247_v45 = vpack.c.bf16 %v21235_v63, %v21234_v60  ;;  %v2030_v60 = vand.u32 4294901760, %v1878_v62  ;;  %v14268_v63 = vsub.f32 %v1874_v38, %v2026_v52  ;;  %11261 = vmatprep.subr.bf16.mxu1 %v14249_v55 }
 0x11d   : > { %21236 = vst [vmem:[#allocation67_spill] sm:$0xff] %v14249_v55  ;;  %v14256_v22 = vsub.f32 %v14173_v25, %v20083_v14  ;;  %v14266_v9 = vsub.f32 %v14178_v30, %v21239_v29  ;;  %v20089_v38 = vand.u32 4294901760, %v14235_v10  ;;  %v2032_v29 = vand.u32 4294901760, %v1883_v58  ;;  %v1891_v55 = vld [vmem:[%s19857_s5 + $0xc8] sm:$0xff] }
 0x11e   : > { %21241 = vst [vmem:[#allocation24_spill] sm:$0xff] %v14268_v63  ;;  %v2036_v63 = vand.u32 4294901760, %v1887_v44  ;;  %v21246_v31 = vand.u32 4294901760, %v14218_v7 }
 0x11f   : > { %21238 = vst [vmem:[#allocation23_spill] sm:$0xff] %v14256_v22  ;;  %11143 = vmatpush1.bf16.msra.mxu0 %v11142_v23  ;;  %21240 = vst [vmem:[#allocation22_spill] sm:$0xff] %v14266_v9  ;;  %v21243_v23 = vand.u32 4294901760, %v21010_v37  ;;  %v14288_v9 = vpack.c.bf16 %v2030_v60, %v2026_v52  ;;  %v14290_v22 = vsub.f32 %v1878_v62, %v2030_v60 }
 0x120   : > { %11145 = vmatprep.subr.bf16.mxu0 %v14096_v42  ;;  %v14295_v37 = vsub.f32 %v14218_v7, %v21246_v31  ;;  %v14309_v62 = vsub.f32 %v14235_v10, %v20089_v38  ;;  %v14311_v52 = vpack.c.bf16 %v2036_v63, %v2032_v29  ;;  %v14313_v60 = vsub.f32 %v1883_v58, %v2032_v29  ;;  %v14319_v42 = vld [vmem:[%s19857_s5 + $0xb0] sm:$0xff]  ;;  %v1895_v38 = vld [vmem:[%s19857_s5 + $0xe8] sm:$0xff] }
 0x121   : > { %v14281_v14 = vpack.c.bf16 %v21243_v23, %v21242_v61  ;;  %21244 = vst [vmem:[#allocation25_spill] sm:$0xff] %v14288_v9  ;;  %21245 = vst [vmem:[#allocation30_spill] sm:$0xff] %v14290_v22  ;;  %v1886_v61 = vld [vmem:[%s19857_s5 + $0xa0] sm:$0xff]  ;;  %v14304_v23 = vld [vmem:[%s19857_s5 + $0x90] sm:$0xff]  ;;  %v21251_v58 = vand.u32 4294901760, %v21125_v8  ;;  %v21252_v29 = vand.u32 4294901760, %v21124_v47  ;;  %11263 = vmatpush1.bf16.msra.mxu1 %v14288_v9 }
 0x122   : > { %21247 = vst [vmem:[#allocation29_spill] sm:$0xff] %v14295_v37  ;;  %21248 = vst [vmem:[#allocation32_spill] sm:$0xff] %v14309_v62  ;;  %v21254_v62 = vand.u32 4294901760, %v14261_v21  ;;  %v2034_v22 = vand.u32 4294901760, %v1882_v53  ;;  %v21256_v47 = vand.u32 4294901760, %v21128_v27  ;;  %v21257_v8 = vand.u32 4294901760, %v21127_v4  ;;  %11265 = vmatprep.subr.bf16.mxu1 %v14311_v52 }
 0x123   : > { %21249 = vst [vmem:[#allocation31_spill] sm:$0xff] %v14311_v52  ;;  %21250 = vst [vmem:[#allocation34_spill] sm:$0xff] %v14313_v60  ;;  %11147 = vmatpush1.bf16.msra.mxu0 %v14102_v46  ;;  %v14332_v31 = vpack.c.bf16 %v21252_v29, %v21251_v58  ;;  %v14335_v60 = vsub.f32 %v1887_v44, %v2036_v63  ;;  %v14345_v46 = vld [vmem:[%s19857_s5 + $0xd8] sm:$0xff]  ;;  %v21258_v44 = vand.u32 4294901760, %v14274_v39  ;;  %v1890_v52 = vld [vmem:[%s19857_s5 + $0xc0] sm:$0xff]  ;;  %v21263_v4 = vand.u32 4294901760, %v14304_v23 }
 0x124   : > { %v14340_v37 = vsub.f32 %v14261_v21, %v21254_v62  ;;  %11149 = vmatprep.subr.bf16.mxu0 %v14121_v50  ;;  %v14352_v58 = vpack.c.bf16 %v21257_v8, %v21256_v47  ;;  %v2038_v62 = vand.u32 4294901760, %v1886_v61  ;;  %v14364_v50 = vld [vmem:[%s19857_s5 + $0xf8] sm:$0xff]  ;;  %v14366_v27 = vsub.f32 %v1882_v53, %v2034_v22  ;;  %v14378_v29 = vld [vmem:[%s19857_s5 + $0xd0] sm:$0xff] }
 0x125   : > { %21253 = vst [vmem:[#allocation38_spill] sm:$0xff] %v14335_v60  ;;  %v14358_v63 = vsub.f32 %v14274_v39, %v21258_v44  ;;  %v2040_v47 = vand.u32 4294901760, %v1891_v55  ;;  %v2044_v8 = vand.u32 4294901760, %v1895_v38  ;;  %v1894_v44 = vld [vmem:[%s19857_s5 + $0xe0] sm:$0xff]  ;;  %v1899_v60 = vld [vmem:[%s19857_s5 + $0x108] sm:$0xff]  ;;  %v21270_v18 = vand.u32 4294901760, %v14345_v46 }
 0x126   : > { %21255 = vst [vmem:[#allocation37_spill] sm:$0xff] %v14340_v37  ;;  %21260 = vst [vmem:[#allocation40_spill] sm:$0xff] %v14366_v27  ;;  %v14380_v9 = vpack.c.bf16 %v2038_v62, %v2034_v22  ;;  %v14382_v53 = vsub.f32 %v1886_v61, %v2038_v62  ;;  %v14387_v27 = vsub.f32 %v14304_v23, %v21263_v4  ;;  %v14393_v37 = vld [vmem:[%s19857_s5 + $0xf0] sm:$0xff]  ;;  %v1903_v22 = vld [vmem:[%s19857_s5 + $0x128] sm:$0xff]  ;;  %v21265_v61 = vand.u32 4294901760, %v14319_v42 }
 0x127   : > { %21259 = vst [vmem:[#allocation41_spill] sm:$0xff] %v14358_v63  ;;  %11151 = vmatpush1.bf16.msra.mxu0 %v14140_v59  ;;  %v14407_v4 = vpack.c.bf16 %v2044_v8, %v2040_v47  ;;  %v14409_v63 = vsub.f32 %v1891_v55, %v2040_v47  ;;  %v14419_v59 = vsub.f32 %v14345_v46, %v21270_v18  ;;  %v2042_v54 = vand.u32 4294901760, %v1890_v52  ;;  %v14432_v18 = vld [vmem:[%s19857_s5 + $0x138] sm:$0xff] }
 0x128   : > { %21261 = vst [vmem:[#allocation55_spill] sm:$0xff] %v14380_v9  ;;  %21262 = vst [vmem:[#allocation58_spill] sm:$0xff] %v14382_v53  ;;  %v14405_v62 = vsub.f32 %v14319_v42, %v21265_v61  ;;  %11153 = vmatprep.subr.bf16.mxu0 %v14184_v16  ;;  %11267 = vmatpush1.bf16.msra.mxu1 %v14380_v9  ;;  %v2046_v61 = vand.u32 4294901760, %v1894_v44  ;;  %v2048_v47 = vand.u32 4294901760, %v1899_v60  ;;  %v14427_v16 = vld [vmem:[%s19857_s5 + $0x118] sm:$0xff]  ;;  %v21272_v53 = vand.u32 4294901760, %v21070_v3 }
 0x129   : > { %21264 = vst [vmem:[#allocation62_spill] sm:$0xff] %v14387_v27  ;;  %21267 = vst [vmem:[#allocation69_spill] sm:$0xff] %v14407_v4  ;;  %v14411_v27 = vsub.f32 %v1895_v38, %v2044_v8  ;;  %11269 = vmatprep.subr.bf16.mxu1 %v14407_v4  ;;  %v2052_v8 = vand.u32 4294901760, %v1903_v22  ;;  %v21273_v4 = vand.u32 4294901760, %v21071_v48  ;;  %v21274_v38 = vand.u32 4294901760, %v14364_v50  ;;  %v1902_v3 = vld [vmem:[%s19857_s5 + $0x120] sm:$0xff] }
 0x12a   : > { %21266 = vst [vmem:[#allocation65_spill] sm:$0xff] %v14405_v62  ;;  %21268 = vst [vmem:[#allocation71_spill] sm:$0xff] %v14409_v63  ;;  %v1898_v63 = vld [vmem:[%s19857_s5 + $0x100] sm:$0xff]  ;;  %v14458_v48 = vld [vmem:[%s19857_s5 + $0x110] sm:$0xff] }
 0x12b   : > { %21269 = vst [vmem:[#allocation75_spill] sm:$0xff] %v14411_v27  ;;  %21271 = vst [vmem:[#allocation78_spill] sm:$0xff] %v14419_v59  ;;  %v14438_v9 = vpack.c.bf16 %v21273_v4, %v21272_v53  ;;  %v14443_v55 = vsub.f32 %v14364_v50, %v21274_v38  ;;  %v14445_v59 = vpack.c.bf16 %v2046_v61, %v2042_v54  ;;  %11155 = vmatpush1.bf16.msra.mxu0 %v14207_v2  ;;  %v1911_v2 = vld [vmem:[%s19857_s5 + $0x168] sm:$0xff] }
 0x12c   : > { %v14447_v27 = vsub.f32 %v1890_v52, %v2042_v54  ;;  %v21278_v53 = vand.u32 4294901760, %v21072_v1  ;;  %v21279_v54 = vand.u32 4294901760, %v21073_v51  ;;  %v14467_v4 = vsub.f32 %v1894_v44, %v2046_v61  ;;  %v14482_v1 = vld [vmem:[%s19857_s5 + $0x130] sm:$0xff]  ;;  %v1907_v51 = vld [vmem:[%s19857_s5 + $0x148] sm:$0xff]  ;;  %11157 = vmatprep.subr.bf16.mxu0 %v14247_v45 }
 0x12d   : > { %21275 = vst [vmem:[#allocation83_spill] sm:$0xff] %v14443_v55  ;;  %21276 = vst [vmem:[#allocation87_spill] sm:$0xff] %v14445_v59  ;;  %v21281_v38 = vand.u32 4294901760, %v14378_v29  ;;  %v21283_v55 = vand.u32 4294901760, %v14393_v37  ;;  %11271 = vmatpush1.bf16.msra.mxu1 %v14445_v59  ;;  %v14492_v44 = vpack.c.bf16 %v2052_v8, %v2048_v47  ;;  %v14494_v61 = vsub.f32 %v1899_v60, %v2048_v47 }
 0x12e   : > { %21277 = vst [vmem:[#allocation89_spill] sm:$0xff] %v14447_v27  ;;  %v14465_v52 = vpack.c.bf16 %v21279_v54, %v21278_v53  ;;  %21280 = vst [vmem:[#allocation84_spill] sm:$0xff] %v14467_v4  ;;  %v20118_v53 = vand.u32 4294901760, %v14427_v16  ;;  %v2056_v47 = vand.u32 4294901760, %v1907_v51  ;;  %v21289_v54 = vand.u32 4294901760, %v21074_v5  ;;  %v1906_v4 = vld [vmem:[%s19857_s5 + $0x140] sm:$0xff] }
 0x12f   : > { %v14472_v27 = vsub.f32 %v14378_v29, %v21281_v38  ;;  %v14477_v62 = vsub.f32 %v14393_v37, %v21283_v55  ;;  %21285 = vst [vmem:[#allocation91_spill] sm:$0xff] %v14492_v44  ;;  %21286 = vst [vmem:[#allocation92_spill] sm:$0xff] %v14494_v61  ;;  %v14496_v55 = vsub.f32 %v1903_v22, %v2052_v8  ;;  %v2050_v38 = vand.u32 4294901760, %v1898_v63  ;;  %v14511_v8 = vld [vmem:[%s19857_s5 + $0x158] sm:$0xff]  ;;  %v1910_v5 = vld [vmem:[%s19857_s5 + $0x160] sm:$0xff] }
 0x130   : > { %11273 = vmatprep.subr.bf16.mxu1 %v14492_v44  ;;  %v14505_v45 = vsub.f32 %v14427_v16, %v20118_v53  ;;  %v2060_v22 = vand.u32 4294901760, %v1911_v2  ;;  %11159 = vmatpush1.bf16.msra.mxu0 %v14281_v14  ;;  %v21290_v53 = vld [vmem:[#allocation50_spill] sm:$0xff]  ;;  %v21292_v60 = vand.u32 4294901760, %v14432_v18  ;;  %v14541_v14 = vld [vmem:[%s19857_s5 + $0x150] sm:$0xff]  ;;  %v21303_v43 = vand.u32 4294901760, %v14482_v1 }
 0x131   : > { %21282 = vst [vmem:[#allocation61_spill] sm:$0xff] %v14472_v27  ;;  %21284 = vst [vmem:[#allocation90_spill] sm:$0xff] %v14477_v62  ;;  %v2054_v62 = vand.u32 4294901760, %v1902_v3  ;;  %v14516_v27 = vld [vmem:[%s19857_s5 + $0x178] sm:$0xff]  ;;  %v21291_v44 = vand.u32 4294901760, %v21290_v53  ;;  %v14530_v61 = vsub.f32 %v1898_v63, %v2050_v38  ;;  %11161 = vmatprep.subr.bf16.mxu0 %v14332_v31  ;;  %v14565_v31 = vld [vmem:[%s19857_s5 + $0x170] sm:$0xff] }
 0x132   : > { %21287 = vst [vmem:[#allocation93_spill] sm:$0xff] %v14496_v55  ;;  %21288 = vst [vmem:[#allocation94_spill] sm:$0xff] %v14505_v45  ;;  %v14526_v45 = vsub.f32 %v14432_v18, %v21292_v60  ;;  %v14560_v15 = vsub.f32 %v14482_v1, %v21303_v43  ;;  %v14578_v43 = vsub.f32 %v1911_v2, %v2060_v22 }
 0x133   : > { %v11168_v59 = vpack.c.bf16 %v21291_v44, %v21289_v54  ;;  %v14528_v55 = vpack.c.bf16 %v2054_v62, %v2050_v38  ;;  %21295 = vst [vmem:[#allocation96_spill] sm:$0xff] %v14530_v61  ;;  %v21296_v44 = vld [vmem:[#allocation52_spill] sm:$0xff]  ;;  %v21298_v54 = vld [vmem:[#allocation53_spill] sm:$0xff]  ;;  %v14550_v60 = vsub.f32 %v1902_v3, %v2054_v62  ;;  %v21301_v61 = vand.u32 4294901760, %v14458_v48 }
 0x134   : > { %21293 = vst [vmem:[#allocation50_spill] sm:$0xff] %v14526_v45  ;;  %v21297_v53 = vand.u32 4294901760, %v21296_v44  ;;  %v21299_v63 = vand.u32 4294901760, %v21298_v54  ;;  %21304 = vst [vmem:[#allocation97_spill] sm:$0xff] %v14560_v15  ;;  %v1915_v62 = vld [vmem:[%s19857_s5 + $0x188] sm:$0xff]  ;;  %v14576_v44 = vsub.f32 %v1907_v51, %v2056_v47  ;;  %v2062_v15 = vand.u32 4294901760, %v1910_v5  ;;  %11163 = vmatpush1.bf16.msra.mxu0 %v14352_v58 }
 0x135   : > { %21294 = vst [vmem:[#allocation95_spill] sm:$0xff] %v14528_v55  ;;  %21300 = vst [vmem:[#allocation52_spill] sm:$0xff] %v14550_v60  ;;  %v14555_v45 = vsub.f32 %v14458_v48, %v21301_v61  ;;  %v1919_v3 = vld [vmem:[%s19857_s5 + $0x1a8] sm:$0xff]  ;;  %11275 = vmatpush1.bf16.msra.mxu1 %v14528_v55  ;;  %v14574_v61 = vpack.c.bf16 %v2060_v22, %v2056_v47  ;;  %v2064_v2 = vand.u32 4294901760, %v1915_v62  ;;  %v14594_v22 = vld [vmem:[%s19857_s5 + $0x198] sm:$0xff]  ;;  %11165 = vmatprep.subr.bf16.mxu0 %v14438_v9 }
 0x136   : > { %v14548_v38 = vpack.c.bf16 %v21299_v63, %v21297_v53  ;;  %21306 = vst [vmem:[#allocation99_spill] sm:$0xff] %v14576_v44  ;;  %21307 = vst [vmem:[#allocation100_spill] sm:$0xff] %v14578_v43  ;;  %v20135_v53 = vand.u32 4294901760, %v14511_v8  ;;  %v2058_v63 = vand.u32 4294901760, %v1906_v4  ;;  %v2068_v47 = vand.u32 4294901760, %v1919_v3  ;;  %v14599_v58 = vld [vmem:[%s19857_s5 + $0x1b8] sm:$0xff] }
 0x137   : > { %21302 = vst [vmem:[#allocation53_spill] sm:$0xff] %v14555_v45  ;;  %21305 = vst [vmem:[#allocation98_spill] sm:$0xff] %v14574_v61  ;;  %11277 = vmatprep.subr.bf16.mxu1 %v14574_v61  ;;  %v21309_v45 = vand.u32 4294901760, %v21134_v24  ;;  %v21312_v51 = vand.u32 4294901760, %v14516_v27  ;;  %v1914_v60 = vld [vmem:[%s19857_s5 + $0x180] sm:$0xff]  ;;  %v14624_v9 = vld [vmem:[%s19857_s5 + $0x190] sm:$0xff] }
 0x138   : > { %v14588_v55 = vsub.f32 %v14511_v8, %v20135_v53  ;;  %v21310_v53 = vld [vmem:[#allocation56_spill] sm:$0xff]  ;;  %v14611_v43 = vpack.c.bf16 %v2062_v15, %v2058_v63  ;;  %v14613_v44 = vsub.f32 %v1906_v4, %v2058_v63  ;;  %v1918_v24 = vld [vmem:[%s19857_s5 + $0x1a0] sm:$0xff]  ;;  %v14632_v4 = vsub.f32 %v1910_v5, %v2062_v15  ;;  %11167 = vmatpush1.bf16.msra.mxu0 %v14465_v52  ;;  %v14676_v52 = vld [vmem:[%s19857_s5 + $0x1d8] sm:$0xff] }
 0x139   : > { %v21311_v54 = vand.u32 4294901760, %v21310_v53  ;;  %v21317_v53 = vld [vmem:[#allocation59_spill] sm:$0xff]  ;;  %v21320_v63 = vand.u32 4294901760, %v14541_v14  ;;  %v1923_v15 = vld [vmem:[%s19857_s5 + $0x1c8] sm:$0xff]  ;;  %11169 = vmatprep.subr.bf16.mxu0 %v11168_v59  ;;  %v14681_v59 = vld [vmem:[%s19857_s5 + $0x1f8] sm:$0xff] }
 0x13a   : > { %21308 = vst [vmem:[#allocation101_spill] sm:$0xff] %v14588_v55  ;;  %v14609_v55 = vsub.f32 %v14516_v27, %v21312_v51  ;;  %21314 = vst [vmem:[#allocation102_spill] sm:$0xff] %v14611_v43  ;;  %v1927_v5 = vld [vmem:[%s19857_s5 + $0x1e8] sm:$0xff]  ;;  %11279 = vmatpush1.bf16.msra.mxu1 %v14611_v43  ;;  %v21331_v43 = vand.u32 4294901760, %v14599_v58 }
 0x13b   : > { %v11172_v61 = vpack.c.bf16 %v21311_v54, %v21309_v45  ;;  %21315 = vst [vmem:[#allocation103_spill] sm:$0xff] %v14613_v44  ;;  %v21316_v45 = vand.u32 4294901760, %v21136_v20  ;;  %v21318_v54 = vand.u32 4294901760, %v21317_v53  ;;  %21319 = vst [vmem:[#allocation59_spill] sm:$0xff] %v14632_v4  ;;  %v14637_v44 = vsub.f32 %v14541_v14, %v21320_v63  ;;  %v14647_v20 = vld [vmem:[%s19857_s5 + $0x1b0] sm:$0xff]  ;;  %v21329_v63 = vld [vmem:[#allocation63_spill] sm:$0xff] }
 0x13c   : > { %21313 = vst [vmem:[#allocation56_spill] sm:$0xff] %v14609_v55  ;;  %v21322_v55 = vand.u32 4294901760, %v14565_v31  ;;  %v14658_v53 = vsub.f32 %v1915_v62, %v2064_v2  ;;  %v21328_v4 = vand.u32 4294901760, %v21139_v13  ;;  %v1926_v13 = vld [vmem:[%s19857_s5 + $0x1e0] sm:$0xff]  ;;  %v21341_v32 = vand.u32 4294901760, %v14647_v20  ;;  %11171 = vmatpush1.bf16.msra.mxu0 %v14548_v38 }
 0x13d   : > { %v14630_v51 = vpack.c.bf16 %v21318_v54, %v21316_v45  ;;  %21321 = vst [vmem:[#allocation104_spill] sm:$0xff] %v14637_v44  ;;  %v14656_v45 = vpack.c.bf16 %v2068_v47, %v2064_v2  ;;  %v20150_v54 = vand.u32 4294901760, %v14594_v22  ;;  %v2070_v44 = vand.u32 4294901760, %v1918_v24  ;;  %11173 = vmatprep.subr.bf16.mxu0 %v11172_v61  ;;  %v14755_v61 = vld [vmem:[%s19857_s5 + $0x218] sm:$0xff] }
 0x13e   : > { %v14642_v6 = vsub.f32 %v14565_v31, %v21322_v55  ;;  %21325 = vst [vmem:[#allocation107_spill] sm:$0xff] %v14658_v53  ;;  %v14660_v55 = vsub.f32 %v1919_v3, %v2068_v47  ;;  %v2072_v2 = vand.u32 4294901760, %v1923_v15  ;;  %v2076_v47 = vand.u32 4294901760, %v1927_v5  ;;  %v1922_v53 = vld [vmem:[%s19857_s5 + $0x1c0] sm:$0xff] }
 0x13f   : > { %21324 = vst [vmem:[#allocation106_spill] sm:$0xff] %v14656_v45  ;;  %11281 = vmatprep.subr.bf16.mxu1 %v14656_v45  ;;  %v14670_v62 = vsub.f32 %v14594_v22, %v20150_v54  ;;  %v21330_v45 = vand.u32 4294901760, %v21329_v63  ;;  %v14690_v3 = vsub.f32 %v14599_v58, %v21331_v43  ;;  %v21335_v43 = vand.u32 4294901760, %v21141_v56  ;;  %v1931_v56 = vld [vmem:[%s19857_s5 + $0x208] sm:$0xff] }
 0x140   : > { %21323 = vst [vmem:[#allocation105_spill] sm:$0xff] %v14642_v6  ;;  %21326 = vst [vmem:[#allocation108_spill] sm:$0xff] %v14660_v55  ;;  %v2066_v6 = vand.u32 4294901760, %v1914_v60  ;;  %v14721_v17 = vsub.f32 %v14647_v20, %v21341_v32  ;;  %v14738_v32 = vsub.f32 %v1923_v15, %v2072_v2  ;;  %11175 = vmatpush1.bf16.msra.mxu0 %v14630_v51  ;;  %v14806_v51 = vld [vmem:[%s19857_s5 + $0x230] sm:$0xff] }
 0x141   : > { %21327 = vst [vmem:[#allocation109_spill] sm:$0xff] %v14670_v62  ;;  %v11176_v54 = vpack.c.bf16 %v21330_v45, %v21328_v4  ;;  %21332 = vst [vmem:[#allocation63_spill] sm:$0xff] %v14690_v3  ;;  %v14705_v4 = vld [vmem:[%s19857_s5 + $0x1d0] sm:$0xff]  ;;  %v21336_v45 = vld [vmem:[#allocation66_spill] sm:$0xff] }
 0x142   : > { %v14692_v62 = vpack.c.bf16 %v2070_v44, %v2066_v6  ;;  %v14694_v55 = vsub.f32 %v1914_v60, %v2066_v6  ;;  %v21337_v63 = vand.u32 4294901760, %v21336_v45  ;;  %v14711_v6 = vsub.f32 %v1918_v24, %v2070_v44  ;;  %21342 = vst [vmem:[#allocation113_spill] sm:$0xff] %v14721_v17  ;;  %v1935_v44 = vld [vmem:[%s19857_s5 + $0x228] sm:$0xff]  ;;  %21344 = vst [vmem:[#allocation115_spill] sm:$0xff] %v14738_v32 }
 0x143   : > { %v21339_v60 = vand.u32 4294901760, %v14624_v9  ;;  %v14736_v24 = vpack.c.bf16 %v2076_v47, %v2072_v2  ;;  %v20163_v45 = vand.u32 4294901760, %v14676_v52  ;;  %v2078_v17 = vand.u32 4294901760, %v1926_v13  ;;  %21361 = vst [vmem:[#allocation123_spill] sm:$0xff] %v14806_v51  ;;  %11177 = vmatprep.subr.bf16.mxu0 %v11176_v54 }
 0x144   : > { %21333 = vst [vmem:[#allocation110_spill] sm:$0xff] %v14692_v62  ;;  %21334 = vst [vmem:[#allocation111_spill] sm:$0xff] %v14694_v55  ;;  %v11178_v3 = vpack.c.bf16 %v21337_v63, %v21335_v43  ;;  %11283 = vmatpush1.bf16.msra.mxu1 %v14692_v62  ;;  %v14740_v43 = vsub.f32 %v1927_v5, %v2076_v47  ;;  %v2080_v5 = vand.u32 4294901760, %v1931_v56  ;;  %v2084_v2 = vand.u32 4294901760, %v1935_v44  ;;  %v14760_v47 = vld [vmem:[%s19857_s5 + $0x238] sm:$0xff] }
 0x145   : > { %21338 = vst [vmem:[#allocation66_spill] sm:$0xff] %v14711_v6  ;;  %v14716_v55 = vsub.f32 %v14624_v9, %v21339_v60  ;;  %21343 = vst [vmem:[#allocation114_spill] sm:$0xff] %v14736_v24  ;;  %v2074_v60 = vand.u32 4294901760, %v1922_v53  ;;  %11285 = vmatprep.subr.bf16.mxu1 %v14736_v24  ;;  %v14749_v38 = vsub.f32 %v14676_v52, %v20163_v45  ;;  %v21348_v63 = vand.u32 4294901760, %v13466_v28  ;;  %v14784_v28 = vld [vmem:[%s19857_s5 + $0x210] sm:$0xff] }
 0x146   : > { %21345 = vst [vmem:[#allocation116_spill] sm:$0xff] %v14740_v43  ;;  %v21349_v24 = vand.u32 4294901760, %v14681_v59  ;;  %v1930_v43 = vld [vmem:[%s19857_s5 + $0x200] sm:$0xff]  ;;  %v21359_v32 = vand.u32 4294901760, %v14726_v35  ;;  %11179 = vmatpush1.bf16.msra.mxu0 %v11178_v3  ;;  %v14863_v3 = vld [vmem:[%s19857_s5 + $0x250] sm:$0xff] }
 0x147   : > { %21340 = vst [vmem:[#allocation112_spill] sm:$0xff] %v14716_v55  ;;  %21346 = vst [vmem:[#allocation117_spill] sm:$0xff] %v14749_v38  ;;  %v21347_v55 = vand.u32 4294901760, %v21143_v57  ;;  %v14771_v62 = vpack.c.bf16 %v2078_v17, %v2074_v60  ;;  %v14773_v38 = vsub.f32 %v1922_v53, %v2074_v60  ;;  %v1934_v57 = vld [vmem:[%s19857_s5 + $0x220] sm:$0xff]  ;;  %v14791_v60 = vsub.f32 %v1926_v13, %v2078_v17  ;;  %v1943_v17 = vld [vmem:[%s19857_s5 + $0x268] sm:$0xff] }
 0x148   : > { %v14769_v15 = vsub.f32 %v14681_v59, %v21349_v24  ;;  %v21354_v24 = vld [vmem:[#allocation72_spill] sm:$0xff]  ;;  %v14801_v6 = vsub.f32 %v14726_v35, %v21359_v32  ;;  %v14815_v13 = vpack.c.bf16 %v2084_v2, %v2080_v5  ;;  %v14817_v32 = vsub.f32 %v1931_v56, %v2080_v5 }
 0x149   : > { %v11180_v45 = vpack.c.bf16 %v21348_v63, %v21347_v55  ;;  %21351 = vst [vmem:[#allocation119_spill] sm:$0xff] %v14771_v62  ;;  %21352 = vst [vmem:[#allocation120_spill] sm:$0xff] %v14773_v38  ;;  %v21353_v55 = vand.u32 4294901760, %v21146_v33  ;;  %v21355_v53 = vand.u32 4294901760, %v21354_v24  ;;  %v21357_v38 = vand.u32 4294901760, %v14705_v4  ;;  %v1939_v33 = vld [vmem:[%s19857_s5 + $0x248] sm:$0xff]  ;;  %11287 = vmatpush1.bf16.msra.mxu1 %v14771_v62 }
 0x14a   : > { %21350 = vst [vmem:[#allocation118_spill] sm:$0xff] %v14769_v15  ;;  %21356 = vst [vmem:[#allocation72_spill] sm:$0xff] %v14791_v60  ;;  %11289 = vmatprep.subr.bf16.mxu1 %v14815_v13  ;;  %v2088_v5 = vand.u32 4294901760, %v1939_v33  ;;  %v21368_v24 = vand.u32 4294901760, %v21148_v36  ;;  %v21371_v56 = vand.u32 4294901760, %v14760_v47  ;;  %v1938_v60 = vld [vmem:[%s19857_s5 + $0x240] sm:$0xff] }
 0x14b   : > { %v11182_v63 = vpack.c.bf16 %v21355_v53, %v21353_v55  ;;  %v14796_v15 = vsub.f32 %v14705_v4, %v21357_v38  ;;  %21360 = vst [vmem:[#allocation122_spill] sm:$0xff] %v14801_v6  ;;  %21362 = vst [vmem:[#allocation124_spill] sm:$0xff] %v14815_v13  ;;  %v14819_v38 = vsub.f32 %v1935_v44, %v2084_v2  ;;  %v20178_v55 = vand.u32 4294901760, %v14755_v61  ;;  %v14834_v2 = vld [vmem:[%s19857_s5 + $0x258] sm:$0xff]  ;;  %v21369_v13 = vld [vmem:[#allocation76_spill] sm:$0xff] }
 0x14c   : > { %21363 = vst [vmem:[#allocation125_spill] sm:$0xff] %v14817_v32  ;;  %v2082_v53 = vand.u32 4294901760, %v1930_v43  ;;  %v2086_v6 = vand.u32 4294901760, %v1934_v57  ;;  %v2092_v44 = vand.u32 4294901760, %v1943_v17  ;;  %21366 = vst [vmem:[#allocation128_spill] sm:$0xff] %v14834_v2  ;;  %v1942_v36 = vld [vmem:[%s19857_s5 + $0x260] sm:$0xff]  ;;  %11181 = vmatprep.subr.bf16.mxu0 %v11180_v45 }
 0x14d   : > { %21358 = vst [vmem:[#allocation121_spill] sm:$0xff] %v14796_v15  ;;  %21364 = vst [vmem:[#allocation126_spill] sm:$0xff] %v14819_v38  ;;  %v14828_v54 = vsub.f32 %v14755_v61, %v20178_v55  ;;  %v14839_v15 = vld [vmem:[%s19857_s5 + $0x278] sm:$0xff]  ;;  %v21370_v55 = vand.u32 4294901760, %v21369_v13  ;;  %v21375_v13 = vand.u32 4294901760, %v21150_v19  ;;  %v14884_v45 = vld [vmem:[%s19857_s5 + $0x270] sm:$0xff]  ;;  %11183 = vmatpush1.bf16.msra.mxu0 %v11182_v63 }
 0x14e   : > { %21367 = vst [vmem:[#allocation129_spill] sm:$0xff] %v14839_v15  ;;  %v14850_v38 = vpack.c.bf16 %v2086_v6, %v2082_v53  ;;  %v14852_v32 = vsub.f32 %v1930_v43, %v2082_v53  ;;  %v14869_v53 = vsub.f32 %v1934_v57, %v2086_v6  ;;  %v1947_v19 = vld [vmem:[%s19857_s5 + $0x288] sm:$0xff]  ;;  %v14893_v57 = vpack.c.bf16 %v2092_v44, %v2088_v5  ;;  %v14917_v63 = vld [vmem:[%s19857_s5 + $0x2b8] sm:$0xff] }
 0x14f   : > { %21365 = vst [vmem:[#allocation127_spill] sm:$0xff] %v14828_v54  ;;  %v11184_v62 = vpack.c.bf16 %v21370_v55, %v21368_v24  ;;  %v14848_v54 = vsub.f32 %v14760_v47, %v21371_v56  ;;  %v21376_v55 = vld [vmem:[#allocation79_spill] sm:$0xff]  ;;  %v21379_v56 = vand.u32 4294901760, %v14784_v28  ;;  %v1951_v6 = vld [vmem:[%s19857_s5 + $0x2a8] sm:$0xff]  ;;  %21387 = vst [vmem:[#allocation138_spill] sm:$0xff] %v14917_v63 }
 0x150   : > { %21373 = vst [vmem:[#allocation130_spill] sm:$0xff] %v14850_v38  ;;  %21374 = vst [vmem:[#allocation131_spill] sm:$0xff] %v14852_v32  ;;  %v21377_v24 = vand.u32 4294901760, %v21376_v55  ;;  %11291 = vmatpush1.bf16.msra.mxu1 %v14850_v38  ;;  %v20194_v55 = vand.u32 4294901760, %v14834_v2 }
 0x151   : > { %21372 = vst [vmem:[#allocation76_spill] sm:$0xff] %v14848_v54  ;;  %21378 = vst [vmem:[#allocation79_spill] sm:$0xff] %v14869_v53  ;;  %v14874_v32 = vsub.f32 %v14784_v28, %v21379_v56  ;;  %v21381_v54 = vand.u32 4294901760, %v14806_v51  ;;  %v2090_v56 = vand.u32 4294901760, %v1938_v60  ;;  %11293 = vmatprep.subr.bf16.mxu1 %v14893_v57  ;;  %11185 = vmatprep.subr.bf16.mxu0 %v11184_v62  ;;  %v1950_v62 = vld [vmem:[%s19857_s5 + $0x2a0] sm:$0xff] }
 0x152   : > { %v11186_v43 = vpack.c.bf16 %v21377_v24, %v21375_v13  ;;  %21383 = vst [vmem:[#allocation134_spill] sm:$0xff] %v14893_v57  ;;  %v14895_v13 = vsub.f32 %v1939_v33, %v2088_v5  ;;  %v14906_v38 = vsub.f32 %v14834_v2, %v20194_v55  ;;  %v2100_v5 = vand.u32 4294901760, %v1951_v6  ;;  %v21390_v57 = vld [vmem:[#allocation82_spill] sm:$0xff] }
 0x153   : > { %21380 = vst [vmem:[#allocation132_spill] sm:$0xff] %v14874_v32  ;;  %v14879_v40 = vsub.f32 %v14806_v51, %v21381_v54  ;;  %v14897_v54 = vsub.f32 %v1943_v17, %v2092_v44  ;;  %v2096_v17 = vand.u32 4294901760, %v1947_v19  ;;  %v14912_v44 = vld [vmem:[%s19857_s5 + $0x298] sm:$0xff]  ;;  %v21388_v32 = vld [vmem:[#allocation81_spill] sm:$0xff]  ;;  %v21391_v55 = vand.u32 4294901760, %v21390_v57 }
 0x154   : > { %21384 = vst [vmem:[#allocation135_spill] sm:$0xff] %v14895_v13  ;;  %21386 = vst [vmem:[#allocation137_spill] sm:$0xff] %v14906_v38  ;;  %v21389_v24 = vand.u32 4294901760, %v21388_v32  ;;  %v21392_v33 = vand.u32 4294901760, %v14839_v15  ;;  %v14930_v38 = vsub.f32 %v1938_v60, %v2090_v56  ;;  %v14941_v32 = vld [vmem:[%s19857_s5 + $0x290] sm:$0xff]  ;;  %11187 = vmatpush1.bf16.msra.mxu0 %v11186_v43  ;;  %v14990_v43 = vld [vmem:[%s19857_s5 + $0x2d8] sm:$0xff] }
 0x155   : > { %21382 = vst [vmem:[#allocation133_spill] sm:$0xff] %v14879_v40  ;;  %21385 = vst [vmem:[#allocation136_spill] sm:$0xff] %v14897_v54  ;;  %v2094_v40 = vand.u32 4294901760, %v1942_v36  ;;  %v21397_v57 = vld [vmem:[#allocation85_spill] sm:$0xff] }
 0x156   : > { %v11188_v54 = vpack.c.bf16 %v21391_v55, %v21389_v24  ;;  %v14926_v13 = vsub.f32 %v14839_v15, %v21392_v33  ;;  %21395 = vst [vmem:[#allocation139_spill] sm:$0xff] %v14930_v38  ;;  %21396 = vst [vmem:[#allocation140_spill] sm:$0xff] %v14941_v32  ;;  %v21398_v55 = vand.u32 4294901760, %v21397_v57  ;;  %v21399_v24 = vld [vmem:[#allocation35_spill] sm:$0xff]  ;;  %v21404_v15 = vand.u32 4294901760, %v14884_v45  ;;  %v14962_v51 = vld [vmem:[%s19857_s5 + $0x2b0] sm:$0xff] }
 0x157   : > { %v14928_v53 = vpack.c.bf16 %v2094_v40, %v2090_v56  ;;  %v21400_v33 = vand.u32 4294901760, %v21399_v24  ;;  %v14947_v60 = vsub.f32 %v1942_v36, %v2094_v40  ;;  %v21402_v56 = vand.u32 4294901760, %v14863_v3  ;;  %21406 = vst [vmem:[#allocation142_spill] sm:$0xff] %v14962_v51  ;;  %v1955_v40 = vld [vmem:[%s19857_s5 + $0x2c8] sm:$0xff]  ;;  %21411 = vst [vmem:[#allocation147_spill] sm:$0xff] %v14990_v43 }
 0x158   : > { %21393 = vst [vmem:[#allocation81_spill] sm:$0xff] %v14926_v13  ;;  %v14957_v2 = vsub.f32 %v14884_v45, %v21404_v15  ;;  %v1959_v36 = vld [vmem:[%s19857_s5 + $0x2e8] sm:$0xff]  ;;  %v14971_v57 = vpack.c.bf16 %v2100_v5, %v2096_v17  ;;  %v14975_v15 = vsub.f32 %v1951_v6, %v2100_v5  ;;  %v20209_v24 = vand.u32 4294901760, %v14912_v44  ;;  %11189 = vmatprep.subr.bf16.mxu0 %v11188_v54 }
 0x159   : > { %21394 = vst [vmem:[#allocation82_spill] sm:$0xff] %v14928_v53  ;;  %v11190_v13 = vpack.c.bf16 %v21400_v33, %v21398_v55  ;;  %21401 = vst [vmem:[#allocation85_spill] sm:$0xff] %v14947_v60  ;;  %v14952_v38 = vsub.f32 %v14863_v3, %v21402_v56  ;;  %11295 = vmatpush1.bf16.msra.mxu1 %v14928_v53  ;;  %v14973_v55 = vsub.f32 %v1947_v19, %v2096_v17  ;;  %v1954_v19 = vld [vmem:[%s19857_s5 + $0x2c0] sm:$0xff] }
 0x15a   : > { %21405 = vst [vmem:[#allocation141_spill] sm:$0xff] %v14957_v2  ;;  %21407 = vst [vmem:[#allocation143_spill] sm:$0xff] %v14971_v57  ;;  %v20213_v33 = vand.u32 4294901760, %v14917_v63  ;;  %v2098_v56 = vand.u32 4294901760, %v1946_v49  ;;  %v2102_v2 = vand.u32 4294901760, %v1950_v62  ;;  %11297 = vmatprep.subr.bf16.mxu1 %v14971_v57  ;;  %v14984_v53 = vsub.f32 %v14912_v44, %v20209_v24  ;;  %v15004_v24 = vld [vmem:[%s19857_s5 + $0x2f8] sm:$0xff] }
 0x15b   : > { %21403 = vst [vmem:[#allocation35_spill] sm:$0xff] %v14952_v38  ;;  %21408 = vst [vmem:[#allocation144_spill] sm:$0xff] %v14973_v55  ;;  %v2104_v6 = vand.u32 4294901760, %v1955_v40  ;;  %v2108_v17 = vand.u32 4294901760, %v1959_v36  ;;  %v1958_v57 = vld [vmem:[%s19857_s5 + $0x2e0] sm:$0xff]  ;;  %11191 = vmatpush1.bf16.msra.mxu0 %v11190_v13  ;;  %v2106_v13 = vand.u32 4294901760, %v1954_v19 }
 0x15c   : > { %21409 = vst [vmem:[#allocation145_spill] sm:$0xff] %v14975_v15  ;;  %21410 = vst [vmem:[#allocation146_spill] sm:$0xff] %v14984_v53  ;;  %v14995_v54 = vsub.f32 %v14917_v63, %v20213_v33  ;;  %v14997_v5 = vpack.c.bf16 %v2102_v2, %v2098_v56  ;;  %v14999_v38 = vsub.f32 %v1946_v49, %v2098_v56  ;;  %v21417_v33 = vand.u32 4294901760, %v14941_v32  ;;  %v21425_v15 = vld [vmem:[#allocation3_spill] sm:$0xff]  ;;  %v15065_v55 = vld [vmem:[%s19857_s5 + $0x338] sm:$0xff] }
 0x15d   : > { %21415 = vst [vmem:[#allocation151_spill] sm:$0xff] %v15004_v24  ;;  %v15012_v53 = vsub.f32 %v1950_v62, %v2102_v2  ;;  %v21419_v56 = vand.u32 4294901760, %v14962_v51  ;;  %v1963_v2 = vld [vmem:[%s19857_s5 + $0x308] sm:$0xff]  ;;  %11193 = vmatprep.subr.bf16.mxu0 %v21425_v15  ;;  %v2110_v60 = vand.u32 4294901760, %v1958_v57 }
 0x15e   : > { %21412 = vst [vmem:[#allocation148_spill] sm:$0xff] %v14995_v54  ;;  %21413 = vst [vmem:[#allocation149_spill] sm:$0xff] %v14997_v5  ;;  %v15017_v49 = vsub.f32 %v14941_v32, %v21417_v33  ;;  %v15027_v54 = vld [vmem:[%s19857_s5 + $0x2d0] sm:$0xff]  ;;  %v1967_v62 = vld [vmem:[%s19857_s5 + $0x328] sm:$0xff]  ;;  %11299 = vmatpush1.bf16.msra.mxu1 %v14997_v5  ;;  %v15036_v33 = vpack.c.bf16 %v2108_v17, %v2104_v6 }
 0x15f   : > { %21414 = vst [vmem:[#allocation150_spill] sm:$0xff] %v14999_v38  ;;  %21416 = vst [vmem:[#allocation152_spill] sm:$0xff] %v15012_v53  ;;  %v15022_v38 = vsub.f32 %v14962_v51, %v21419_v56  ;;  %v15038_v56 = vsub.f32 %v1955_v40, %v2104_v6  ;;  %v15046_v53 = vld [vmem:[%s19857_s5 + $0x2f0] sm:$0xff]  ;;  %v15053_v40 = vld [vmem:[%s19857_s5 + $0x318] sm:$0xff]  ;;  %v2116_v15 = vand.u32 4294901760, %v1967_v62 }
 0x160   : > { %21418 = vst [vmem:[#allocation153_spill] sm:$0xff] %v15017_v49  ;;  %21421 = vst [vmem:[#allocation155_spill] sm:$0xff] %v15027_v54  ;;  %v20228_v49 = vand.u32 4294901760, %v14990_v43  ;;  %11301 = vmatprep.subr.bf16.mxu1 %v15036_v33  ;;  %v21427_v5 = vld [vmem:[#allocation73_spill] sm:$0xff]  ;;  %v21432_v51 = vld [vmem:[#allocation4_spill] sm:$0xff] }
 0x161   : > { %21420 = vst [vmem:[#allocation154_spill] sm:$0xff] %v15022_v38  ;;  %21422 = vst [vmem:[#allocation156_spill] sm:$0xff] %v15036_v33  ;;  %v15040_v38 = vsub.f32 %v1959_v36, %v2108_v17  ;;  %v2112_v17 = vand.u32 4294901760, %v1963_v2  ;;  %1707 = vmatmul.mubr.f32.vlgmr.msra.gmra.mrb[0].mxu0 %v21427_v5  ;;  %v21433_v32 = vld [vmem:[#allocation86_spill] sm:$0xff]  ;;  %v15097_v6 = vld [vmem:[%s19857_s5 + $0x310] sm:$0xff] }
 0x162   : > { %21423 = vst [vmem:[#allocation157_spill] sm:$0xff] %v15038_v56  ;;  %v15059_v36 = vsub.f32 %v14990_v43, %v20228_v49  ;;  %v15073_v56 = vpack.c.bf16 %v2110_v60, %v2106_v13  ;;  %v15075_v49 = vsub.f32 %v1954_v19, %v2106_v13  ;;  %v1966_v43 = vld [vmem:[%s19857_s5 + $0x320] sm:$0xff]  ;;  %11195 = vmatpush1.bf16.msra.mxu0 %v21432_v51  ;;  %v15102_v51 = vld [vmem:[%s19857_s5 + $0x330] sm:$0xff]  ;;  %v21445_v63 = vld [vmem:[#allocation88_spill] sm:$0xff] }
 0x163   : > { %21424 = vst [vmem:[#allocation158_spill] sm:$0xff] %v15040_v38  ;;  %v21428_v38 = vand.u32 4294901760, %v15004_v24  ;;  %1713 = vmatprep.mubr.f32.mxu0 %v21433_v32  ;;  %v15113_v13 = vsub.f32 %v1963_v2, %v2112_v17 }
 0x164   : > { %21426 = vst [vmem:[#allocation3_spill] sm:$0xff] %v15059_v36  ;;  %21430 = vst [vmem:[#allocation159_spill] sm:$0xff] %v15073_v56  ;;  %v1962_v36 = vld [vmem:[%s19857_s5 + $0x300] sm:$0xff]  ;;  %11303 = vmatpush1.bf16.msra.mxu1 %v15073_v56  ;;  %v2118_v56 = vand.u32 4294901760, %v1966_v43 }
 0x165   : > { %v15071_v33 = vsub.f32 %v15004_v24, %v21428_v38  ;;  %21431 = vst [vmem:[#allocation160_spill] sm:$0xff] %v15075_v49  ;;  %v15086_v38 = vsub.f32 %v1958_v57, %v2110_v60  ;;  %v21437_v49 = vld [vmem:[#allocation5_spill] sm:$0xff]  ;;  %v21438_v60 = vand.u32 4294901760, %v15046_v53  ;;  %21441 = vst [vmem:[#allocation162_spill] sm:$0xff] %v15113_v13  ;;  %1715 = vmatmul.mubr.f32.gmra.mrb[2].mxu0 %v21445_v63 }
 0x166   : > { %11197 = vmatprep.subr.bf16.mxu0 %v21437_v49  ;;  %v2114_v49 = vand.u32 4294901760, %v1962_v36  ;;  %1850 = vmatprep.mubr.f32.mxu0 %v21216_v41  ;;  %v21454_v41 = vld [vmem:[#allocation8_spill] sm:$0xff] }
 0x167   : > { %21429 = vst [vmem:[#allocation73_spill] sm:$0xff] %v15071_v33  ;;  %21434 = vst [vmem:[#allocation4_spill] sm:$0xff] %v15086_v38  ;;  %v21435_v33 = vand.u32 4294901760, %v15027_v54  ;;  %v15109_v57 = vsub.f32 %v15046_v53, %v21438_v60  ;;  %v15116_v38 = vsub.f32 %v1967_v62, %v2116_v15  ;;  %v20248_v62 = vand.u32 4294901760, %v15102_v51 }
 0x168   : > { %v15136_v60 = vsub.f32 %v1962_v36, %v2114_v49  ;;  %v21455_v36 = vld [vmem:[#allocation9_spill] sm:$0xff] }
 0x169   : > { %v15091_v19 = vsub.f32 %v15027_v54, %v21435_v33  ;;  %21439 = vst [vmem:[#allocation5_spill] sm:$0xff] %v15109_v57  ;;  %v15111_v33 = vpack.c.bf16 %v2116_v15, %v2112_v17  ;;  %21442 = vst [vmem:[#allocation163_spill] sm:$0xff] %v15116_v38  ;;  %v21443_v54 = vand.u32 4294901760, %v15053_v40  ;;  %v20247_v17 = vand.u32 4294901760, %v15097_v6  ;;  %v21447_v15 = vld [vmem:[#allocation6_spill] sm:$0xff] }
 0x16a   : > { %11199 = vmatpush1.bf16.msra.mxu0 %v21447_v15  ;;  %21449 = vst [vmem:[#allocation165_spill] sm:$0xff] %v15136_v60  ;;  %v21460_v15 = vld [vmem:[#allocation19_spill] sm:$0xff] }
 0x16b   : > { %21436 = vst [vmem:[#allocation86_spill] sm:$0xff] %v15091_v19  ;;  %21440 = vst [vmem:[#allocation161_spill] sm:$0xff] %v15111_v33  ;;  %v20245_v19 = vand.u32 4294901760, %v15065_v55  ;;  %v15121_v24 = vsub.f32 %v15053_v40, %v21443_v54  ;;  %11305 = vmatprep.subr.bf16.mxu1 %v15111_v33  ;;  %v15134_v54 = vpack.c.bf16 %v2118_v56, %v2114_v49  ;;  %v21451_v33 = vld [vmem:[#allocation7_spill] sm:$0xff]  ;;  %v21459_v49 = vld [vmem:[#allocation13_spill] sm:$0xff] }
 0x16c   : > { %11201 = vmatprep.subr.bf16.mxu0 %v21451_v33  ;;  %v21458_v33 = vld [vmem:[#allocation12_spill] sm:$0xff] }
 0x16d   : > { %21444 = vst [vmem:[#allocation164_spill] sm:$0xff] %v15121_v24  ;;  %v15128_v2 = vsub.f32 %v15065_v55, %v20245_v19  ;;  %21448 = vst [vmem:[#allocation6_spill] sm:$0xff] %v15134_v54  ;;  %v15138_v24 = vsub.f32 %v1966_v43, %v2118_v56  ;;  %v15144_v19 = vsub.f32 %v15097_v6, %v20247_v17  ;;  %11307 = vmatpush1.bf16.msra.mxu1 %v15134_v54  ;;  %v21456_v43 = vld [vmem:[#allocation10_spill] sm:$0xff]  ;;  %v21457_v56 = vld [vmem:[#allocation11_spill] sm:$0xff] }
 0x16e   : > { %11203 = vmatpush1.bf16.msra.mxu0 %v21454_v41  ;;  %v21461_v17 = vld [vmem:[#allocation20_spill] sm:$0xff]  ;;  %v21464_v54 = vld [vmem:[#allocation33_spill] sm:$0xff] }
 0x16f   : > { %21446 = vst [vmem:[#allocation88_spill] sm:$0xff] %v15128_v2  ;;  %21450 = vst [vmem:[#allocation166_spill] sm:$0xff] %v15138_v24  ;;  %v15149_v2 = vsub.f32 %v15102_v51, %v20248_v62  ;;  %11205 = vmatprep.subr.bf16.mxu0 %v21455_v36  ;;  %v21462_v62 = vld [vmem:[#allocation26_spill] sm:$0xff]  ;;  %v21465_v41 = vld [vmem:[#allocation36_spill] sm:$0xff] }
 0x170   : > { %21452 = vst [vmem:[#allocation7_spill] sm:$0xff] %v15144_v19  ;;  %v21466_v36 = vld [vmem:[#allocation39_spill] sm:$0xff] }
 0x171   : > { %21453 = vst [vmem:[#allocation167_spill] sm:$0xff] %v15149_v2  ;;  %v21463_v2 = vld [vmem:[#allocation27_spill] sm:$0xff] }
 0x172   : > { %11207 = vmatpush1.bf16.msra.mxu0 %v21456_v43  ;;  %v21467_v43 = vld [vmem:[#allocation42_spill] sm:$0xff] }
 0x173   : > { %11209 = vmatprep.subr.bf16.mxu0 %v21457_v56  ;;  %v21468_v56 = vld [vmem:[#allocation45_spill] sm:$0xff] }
 0x176   : > { %11211 = vmatpush1.bf16.msra.mxu0 %v21458_v33  ;;  %v21469_v33 = vld [vmem:[#allocation48_spill] sm:$0xff] }
 0x177   : > { %11213 = vmatprep.subr.bf16.mxu0 %v21459_v49  ;;  %v21470_v49 = vld [vmem:[#allocation51_spill] sm:$0xff] }
 0x17a   : > { %11215 = vmatpush1.bf16.msra.mxu0 %v21460_v15  ;;  %v21471_v15 = vld [vmem:[#allocation54_spill] sm:$0xff] }
 0x17b   : > { %11217 = vmatprep.subr.bf16.mxu0 %v21461_v17  ;;  %v21472_v17 = vld [vmem:[#allocation57_spill] sm:$0xff] }
 0x17e   : > { %11219 = vmatpush1.bf16.msra.mxu0 %v21462_v62  ;;  %v21473_v62 = vld [vmem:[#allocation60_spill] sm:$0xff] }
 0x17f   : > { %11221 = vmatprep.subr.bf16.mxu0 %v21463_v2  ;;  %v21474_v2 = vld [vmem:[#allocation64_spill] sm:$0xff] }
 0x182   : > { %11223 = vmatpush1.bf16.msra.mxu0 %v21464_v54  ;;  %v21475_v54 = vld [vmem:[#allocation68_spill] sm:$0xff] }
 0x183   : > { %11225 = vmatprep.subr.bf16.mxu0 %v21465_v41  ;;  %v21476_v41 = vld [vmem:[#allocation70_spill] sm:$0xff] }
 0x186   : > { %11227 = vmatpush1.bf16.msra.mxu0 %v21466_v36  ;;  %v21477_v36 = vld [vmem:[#allocation74_spill] sm:$0xff] }
 0x187   : > { %11229 = vmatprep.subr.bf16.mxu0 %v21467_v43  ;;  %v21478_v43 = vld [vmem:[#allocation77_spill] sm:$0xff] }
 0x18a   : > { %11231 = vmatpush1.bf16.msra.mxu0 %v21468_v56  ;;  %v21479_v56 = vld [vmem:[#allocation80_spill] sm:$0xff] }
 0x18b   : > { %11233 = vmatprep.subr.bf16.mxu0 %v21469_v33  ;;  %v21480_v33 = vand.u32 4294901760, %v14115_v26  ;;  %v21490_v26 = vand.u32 4294901760, %v14235_v10  ;;  %v21498_v10 = vand.u32 4294901760, %v14345_v46  ;;  %v21507_v46 = vand.u32 4294901760, %v14458_v48 }
 0x18c   : > { %v21516_v48 = vand.u32 4294901760, %v14594_v22  ;;  %v21525_v22 = vand.u32 4294901760, %v14705_v4 }
 0x18e   : > { %11235 = vmatpush1.bf16.msra.mxu0 %v21470_v49  ;;  %v21481_v49 = vand.u32 4294901760, %v14127_v11 }
 0x18f   : > { %11237 = vmatprep.subr.bf16.mxu0 %v21471_v15 }
 0x190   : > { %v15182_v15 = vpack.c.bf16 %v21481_v49, %v21480_v33 }
 0x192   : > { %11239 = vmatpush1.bf16.msra.mxu0 %v21472_v17  ;;  %21482 = vst [vmem:[#allocation8_spill] sm:$0xff] %v15182_v15  ;;  %v21483_v17 = vand.u32 4294901760, %v14146_v12  ;;  %v21492_v12 = vand.u32 4294901760, %v14261_v21  ;;  %v21499_v21 = vand.u32 4294901760, %v14364_v50  ;;  %v21508_v50 = vand.u32 4294901760, %v14482_v1 }
 0x193   : > { %11241 = vmatprep.subr.bf16.mxu0 %v21473_v62  ;;  %v21484_v62 = vand.u32 4294901760, %v14151_v0  ;;  %v21493_v0 = vand.u32 4294901760, %v14274_v39  ;;  %v21501_v39 = vand.u32 4294901760, %v14378_v29  ;;  %v21511_v29 = vand.u32 4294901760, %v14516_v27 }
 0x194   : > { %v15248_v33 = vpack.c.bf16 %v21508_v50, %v21507_v46  ;;  %v21517_v1 = vand.u32 4294901760, %v14599_v58  ;;  %v21519_v27 = vand.u32 4294901760, %v14624_v9  ;;  %v21526_v58 = vand.u32 4294901760, %v14726_v35  ;;  %v21535_v35 = vld [vmem:[#allocation128_spill] sm:$0xff]  ;;  %v21549_v50 = vld [vmem:[#allocation142_spill] sm:$0xff] }
 0x195   : > { %v21528_v9 = vand.u32 4294901760, %v14755_v61  ;;  %v21536_v4 = vand.u32 4294901760, %v21535_v35  ;;  %v21540_v61 = vand.u32 4294901760, %v14863_v3  ;;  %v21552_v3 = vld [vmem:[#allocation147_spill] sm:$0xff] }
 0x196   : > { %11243 = vmatpush1.bf16.msra.mxu0 %v21474_v2  ;;  %v15189_v2 = vpack.c.bf16 %v21484_v62, %v21483_v17  ;;  %21509 = vst [vmem:[#allocation27_spill] sm:$0xff] %v15248_v33  ;;  %v15269_v62 = vpack.c.bf16 %v21517_v1, %v21516_v48 }
 0x197   : > { %11245 = vmatprep.subr.bf16.mxu0 %v21475_v54  ;;  %v21486_v54 = vand.u32 4294901760, %v14173_v25  ;;  %v15212_v25 = vpack.c.bf16 %v21493_v0, %v21492_v12 }
 0x198   : > { %21485 = vst [vmem:[#allocation9_spill] sm:$0xff] %v15189_v2  ;;  %21518 = vst [vmem:[#allocation39_spill] sm:$0xff] %v15269_v62 }
 0x199   : > { %21494 = vst [vmem:[#allocation12_spill] sm:$0xff] %v15212_v25 }
 0x19a   : > { %11247 = vmatpush1.bf16.msra.mxu0 %v21476_v41  ;;  %v21487_v41 = vand.u32 4294901760, %v14178_v30  ;;  %v21495_v30 = vand.u32 4294901760, %v14304_v23  ;;  %v21505_v23 = vand.u32 4294901760, %v14432_v18  ;;  %v21514_v18 = vand.u32 4294901760, %v14565_v31 }
 0x19b   : > { %11249 = vmatprep.subr.bf16.mxu0 %v21477_v36  ;;  %v21523_v31 = vand.u32 4294901760, %v14681_v59  ;;  %v21532_v59 = vld [vmem:[#allocation123_spill] sm:$0xff] }
 0x19c   : > { %v15196_v36 = vpack.c.bf16 %v21487_v41, %v21486_v54  ;;  %v21533_v12 = vand.u32 4294901760, %v21532_v59 }
 0x19e   : > { %11251 = vmatpush1.bf16.msra.mxu0 %v21478_v43  ;;  %21488 = vst [vmem:[#allocation10_spill] sm:$0xff] %v15196_v36 }
 0x19f   : > { %11253 = vmatprep.subr.bf16.mxu0 %v21479_v56 }
 0x1a2   : > { %11255 = vmatpush1.bf16.msra.mxu0 %v21192_v34  ;;  %v21489_v34 = vand.u32 4294901760, %v14218_v7  ;;  %v21496_v7 = vand.u32 4294901760, %v14319_v42  ;;  %v21504_v42 = vand.u32 4294901760, %v14427_v16  ;;  %v21513_v16 = vand.u32 4294901760, %v14541_v14 }
 0x1a3   : > { %11641 = vmatprep.subr.bf16.mxu0 %v15182_v15  ;;  %v21522_v14 = vand.u32 4294901760, %v14676_v52  ;;  %v21531_v52 = vand.u32 4294901760, %v14784_v28  ;;  %v21543_v28 = vand.u32 4294901760, %v14912_v44  ;;  %v21557_v44 = vld [vmem:[#allocation155_spill] sm:$0xff] }
 0x1a4   : > { %v15205_v11 = vpack.c.bf16 %v21490_v26, %v21489_v34  ;;  %v15241_v56 = vpack.c.bf16 %v21505_v23, %v21504_v42  ;;  %v15262_v17 = vpack.c.bf16 %v21514_v18, %v21513_v16  ;;  %v15290_v34 = vpack.c.bf16 %v21526_v58, %v21525_v22  ;;  %v21547_v23 = vld [vmem:[#allocation140_spill] sm:$0xff]  ;;  %v21554_v16 = vld [vmem:[#allocation151_spill] sm:$0xff] }
 0x1a5   : > { %1852 = vmatmul.mubr.f32.vlgmr.msra.gmra.mrb[0].mxu0 %v21427_v5  ;;  %v15227_v5 = vpack.c.bf16 %v21499_v21, %v21498_v10  ;;  %v15283_v41 = vpack.c.bf16 %v21523_v31, %v21522_v14  ;;  %v15304_v0 = vpack.c.bf16 %v21533_v12, %v21531_v52  ;;  %v21548_v46 = vand.u32 4294901760, %v21547_v23  ;;  %v1977_v52 = vld [vmem:[%s19857_s5 + $0x378] sm:$0xff]  ;;  %v1970_v12 = vld [vmem:[%s19857_s5 + $0x340] sm:$0xff] }
 0x1a6   : > { %1858 = vmatprep.mubr.f32.mxu0 %v21433_v32  ;;  %11643 = vmatpush1.bf16.msra.mxu0 %v15189_v2  ;;  %21491 = vst [vmem:[#allocation11_spill] sm:$0xff] %v15205_v11  ;;  %v15220_v32 = vpack.c.bf16 %v21496_v7, %v21495_v30  ;;  %21506 = vst [vmem:[#allocation26_spill] sm:$0xff] %v15241_v56  ;;  %v21537_v30 = vld [vmem:[#allocation129_spill] sm:$0xff]  ;;  %v21555_v18 = vand.u32 4294901760, %v21554_v16  ;;  %v21558_v1 = vand.u32 4294901760, %v21557_v44  ;;  %v21561_v14 = vand.u32 4294901760, %v15053_v40 }
 0x1a7   : > { %11645 = vmatprep.subr.bf16.mxu0 %v15196_v36  ;;  %21500 = vst [vmem:[#allocation19_spill] sm:$0xff] %v15227_v5  ;;  %21515 = vst [vmem:[#allocation36_spill] sm:$0xff] %v15262_v17  ;;  %v21538_v7 = vand.u32 4294901760, %v21537_v30  ;;  %v21562_v31 = vand.u32 4294901760, %v15065_v55  ;;  %v21564_v58 = vand.u32 4294901760, %v15097_v6  ;;  %v1975_v55 = vld [vmem:[%s19857_s5 + $0x368] sm:$0xff] }
 0x1a8   : > { %21497 = vst [vmem:[#allocation13_spill] sm:$0xff] %v15220_v32  ;;  %21524 = vst [vmem:[#allocation45_spill] sm:$0xff] %v15283_v41  ;;  %v1973_v40 = vld [vmem:[%s19857_s5 + $0x358] sm:$0xff]  ;;  %v3470_v35 = vand.u32 4294901760, %v1977_v52  ;;  %v2122_v30 = vand.u32 4294901760, %v1970_v12 }
 0x1a9   : > { %1860 = vmatmul.mubr.f32.gmra.mrb[2].mxu0 %v21445_v63  ;;  %v21502_v63 = vand.u32 4294901760, %v14393_v37  ;;  %v21510_v37 = vand.u32 4294901760, %v14511_v8  ;;  %v21520_v8 = vand.u32 4294901760, %v14647_v20  ;;  %21527 = vst [vmem:[#allocation48_spill] sm:$0xff] %v15290_v34  ;;  %v21529_v20 = vand.u32 4294901760, %v14760_v47  ;;  %21534 = vst [vmem:[#allocation54_spill] sm:$0xff] %v15304_v0 }
 0x1aa   : > { %11647 = vmatpush1.bf16.msra.mxu0 %v15205_v11  ;;  %v15311_v10 = vpack.c.bf16 %v21538_v7, %v21536_v4  ;;  %v21541_v47 = vand.u32 4294901760, %v14884_v45  ;;  %v21553_v45 = vand.u32 4294901760, %v21552_v3  ;;  %v15353_v22 = vpack.c.bf16 %v21562_v31, %v21561_v14  ;;  %v1974_v4 = vld [vmem:[%s19857_s5 + $0x360] sm:$0xff]  ;;  %v1972_v7 = vld [vmem:[%s19857_s5 + $0x350] sm:$0xff] }
 0x1ab   : > { %11649 = vmatprep.subr.bf16.mxu0 %v15212_v25  ;;  %v15234_v43 = vpack.c.bf16 %v21502_v63, %v21501_v39  ;;  %v15255_v49 = vpack.c.bf16 %v21511_v29, %v21510_v37  ;;  %v15276_v54 = vpack.c.bf16 %v21520_v8, %v21519_v27  ;;  %v15297_v26 = vpack.c.bf16 %v21529_v20, %v21528_v9  ;;  %v21544_v39 = vld [vmem:[#allocation138_spill] sm:$0xff] }
 0x1ac   : > { %21539 = vst [vmem:[#allocation57_spill] sm:$0xff] %v15311_v10  ;;  %v15318_v21 = vpack.c.bf16 %v21541_v47, %v21540_v61  ;;  %v21545_v63 = vand.u32 4294901760, %v21544_v39  ;;  %v21550_v37 = vand.u32 4294901760, %v21549_v50  ;;  %v15339_v48 = vpack.c.bf16 %v21555_v18, %v21553_v45  ;;  %21563 = vst [vmem:[#allocation77_spill] sm:$0xff] %v15353_v22  ;;  %v1976_v61 = vld [vmem:[%s19857_s5 + $0x370] sm:$0xff]  ;;  %v1983_v50 = vld [vmem:[%s19857_s5 + $0x3a8] sm:$0xff] }
 0x1ad   : > { %21503 = vst [vmem:[#allocation20_spill] sm:$0xff] %v15234_v43  ;;  %21512 = vst [vmem:[#allocation33_spill] sm:$0xff] %v15255_v49  ;;  %v21559_v27 = vand.u32 4294901760, %v15046_v53  ;;  %v21565_v9 = vand.u32 4294901760, %v15102_v51  ;;  %v1971_v53 = vld [vmem:[%s19857_s5 + $0x348] sm:$0xff]  ;;  %v2124_v51 = vand.u32 4294901760, %v1975_v55 }
 0x1ae   : > { %11651 = vmatpush1.bf16.msra.mxu0 %v15220_v32  ;;  %21521 = vst [vmem:[#allocation42_spill] sm:$0xff] %v15276_v54  ;;  %21530 = vst [vmem:[#allocation51_spill] sm:$0xff] %v15297_v26  ;;  %v15325_v42 = vpack.c.bf16 %v21545_v63, %v21543_v28  ;;  %v15332_v29 = vpack.c.bf16 %v21550_v37, %v21548_v46  ;;  %v2120_v6 = vand.u32 4294901760, %v1971_v53  ;;  %v3466_v59 = vand.u32 4294901760, %v1973_v40  ;;  %v1979_v46 = vld [vmem:[%s19857_s5 + $0x388] sm:$0xff]  ;;  %v1981_v37 = vld [vmem:[%s19857_s5 + $0x398] sm:$0xff] }
 0x1af   : > { %11653 = vmatprep.subr.bf16.mxu0 %v15227_v5  ;;  %21542 = vst [vmem:[#allocation60_spill] sm:$0xff] %v15318_v21  ;;  %21556 = vst [vmem:[#allocation70_spill] sm:$0xff] %v15339_v48  ;;  %v15346_v8 = vpack.c.bf16 %v21559_v27, %v21558_v1  ;;  %v15360_v20 = vpack.c.bf16 %v21565_v9, %v21564_v58  ;;  %v2126_v28 = vand.u32 4294901760, %v1974_v4  ;;  %v3468_v39 = vand.u32 4294901760, %v1972_v7  ;;  %v1985_v18 = vld [vmem:[%s19857_s5 + $0x3b8] sm:$0xff]  ;;  %v1978_v1 = vld [vmem:[%s19857_s5 + $0x380] sm:$0xff] }
 0x1b0   : > { %21546 = vst [vmem:[#allocation64_spill] sm:$0xff] %v15325_v42  ;;  %21551 = vst [vmem:[#allocation68_spill] sm:$0xff] %v15332_v29  ;;  %v15388_v47 = vpack.c.bf16 %v2124_v51, %v2120_v6  ;;  %v15390_v63 = vpack.c.bf16 %v3470_v35, %v3466_v59  ;;  %v3472_v23 = vand.u32 4294901760, %v1976_v61  ;;  %v2128_v45 = vand.u32 4294901760, %v1979_v46  ;;  %v1982_v27 = vld [vmem:[%s19857_s5 + $0x3a0] sm:$0xff]  ;;  %v21620_v32 = vld [vmem:[#allocation34_spill] sm:$0xff] }
 0x1b1   : > { %21560 = vst [vmem:[#allocation74_spill] sm:$0xff] %v15346_v8  ;;  %21566 = vst [vmem:[#allocation80_spill] sm:$0xff] %v15360_v20  ;;  %v15402_v3 = vpack.c.bf16 %v2126_v28, %v2122_v30  ;;  %v2132_v16 = vand.u32 4294901760, %v1983_v50  ;;  %v3474_v44 = vand.u32 4294901760, %v1981_v37  ;;  %v3478_v31 = vand.u32 4294901760, %v1985_v18  ;;  %v21621_v25 = vld [vmem:[#allocation38_spill] sm:$0xff] }
 0x1b2   : > { %11655 = vmatpush1.bf16.msra.mxu0 %v15234_v43  ;;  %21567 = vst [vmem:[#allocation123_spill] sm:$0xff] %v15388_v47  ;;  %21568 = vst [vmem:[#allocation128_spill] sm:$0xff] %v15390_v63  ;;  %11309 = vmatprep.subr.bf16.mxu1 %v15388_v47  ;;  %v15414_v14 = vpack.c.bf16 %v3472_v23, %v3468_v39  ;;  %v2130_v58 = vand.u32 4294901760, %v1978_v1  ;;  %v2134_v9 = vand.u32 4294901760, %v1982_v27  ;;  %v1980_v47 = vld [vmem:[%s19857_s5 + $0x390] sm:$0xff]  ;;  %v21619_v43 = vld [vmem:[#allocation32_spill] sm:$0xff] }
 0x1b3   : > { %11657 = vmatprep.subr.bf16.mxu0 %v15241_v56  ;;  %21569 = vst [vmem:[#allocation129_spill] sm:$0xff] %v15402_v3  ;;  %11311 = vmatpush1.bf16.msra.mxu1 %v15402_v3  ;;  %v1989_v3 = vld [vmem:[%s19857_s5 + $0x3d8] sm:$0xff]  ;;  %v21618_v56 = vld [vmem:[#allocation29_spill] sm:$0xff] }
 0x1b4   : > { %21570 = vst [vmem:[#allocation138_spill] sm:$0xff] %v15414_v14 }
 0x1b6   : > { %11659 = vmatpush1.bf16.msra.mxu0 %v15248_v33  ;;  %v21617_v33 = vld [vmem:[#allocation30_spill] sm:$0xff] }
 0x1b7   : > { %11661 = vmatprep.subr.bf16.mxu0 %v15255_v49  ;;  %v21630_v15 = vand.u32 4294901760, %v21617_v33 }
 0x1ba   : > { %11663 = vmatpush1.bf16.msra.mxu0 %v15262_v17 }
 0x1bb   : > { %11665 = vmatprep.subr.bf16.mxu0 %v15269_v62 }
 0x1be   : > { %11667 = vmatpush1.bf16.msra.mxu0 %v15276_v54  ;;  %v15483_v54 = vsub.f32 %v1982_v27, %v2134_v9 }
 0x1bf   : > { %11669 = vmatprep.subr.bf16.mxu0 %v15283_v41  ;;  %v1986_v41 = vld [vmem:[%s19857_s5 + $0x3c0] sm:$0xff] }
 0x1c0   : > { %21588 = vst [vmem:[#allocation180_spill] sm:$0xff] %v15483_v54 }
 0x1c2   : > { %11671 = vmatpush1.bf16.msra.mxu0 %v15290_v34  ;;  %v1993_v34 = vld [vmem:[%s19857_s5 + $0x3f8] sm:$0xff] }
 0x1c3   : > { %11673 = vmatprep.subr.bf16.mxu0 %v15297_v26  ;;  %v15445_v26 = vsub.f32 %v1977_v52, %v3470_v35  ;;  %v1988_v52 = vld [vmem:[%s19857_s5 + $0x3d0] sm:$0xff] }
 0x1c5   : > { %21577 = vst [vmem:[#allocation169_spill] sm:$0xff] %v15445_v26 }
 0x1c6   : > { %11675 = vmatpush1.bf16.msra.mxu0 %v15304_v0  ;;  %v15441_v0 = vsub.f32 %v1975_v55, %v2124_v51  ;;  %v15457_v55 = vsub.f32 %v1970_v12, %v2122_v30  ;;  %v15463_v51 = vsub.f32 %v1976_v61, %v3472_v23  ;;  %v3482_v12 = vand.u32 4294901760, %v1989_v3 }
 0x1c7   : > { %11677 = vmatprep.subr.bf16.mxu0 %v15311_v10  ;;  %v15439_v10 = vsub.f32 %v1971_v53, %v2120_v6  ;;  %v1990_v53 = vld [vmem:[%s19857_s5 + $0x3e0] sm:$0xff]  ;;  %v15461_v6 = vsub.f32 %v1972_v7, %v3468_v39  ;;  %v3486_v30 = vand.u32 4294901760, %v1993_v34  ;;  %v3484_v7 = vand.u32 4294901760, %v1988_v52 }
 0x1c8   : > { %21575 = vst [vmem:[#allocation155_spill] sm:$0xff] %v15441_v0  ;;  %21578 = vst [vmem:[#allocation170_spill] sm:$0xff] %v15457_v55  ;;  %v15472_v39 = vsub.f32 %v1979_v46, %v2128_v45  ;;  %v15474_v61 = vsub.f32 %v1983_v50, %v2132_v16  ;;  %v15476_v23 = vsub.f32 %v1981_v37, %v3474_v44  ;;  %v1992_v46 = vld [vmem:[%s19857_s5 + $0x3f0] sm:$0xff] }
 0x1c9   : > { %21574 = vst [vmem:[#allocation151_spill] sm:$0xff] %v15439_v10  ;;  %21580 = vst [vmem:[#allocation172_spill] sm:$0xff] %v15461_v6 }
 0x1ca   : > { %11679 = vmatpush1.bf16.msra.mxu0 %v15318_v21  ;;  %v1991_v21 = vld [vmem:[%s19857_s5 + $0x3e8] sm:$0xff]  ;;  %21581 = vst [vmem:[#allocation173_spill] sm:$0xff] %v15463_v51  ;;  %21583 = vst [vmem:[#allocation175_spill] sm:$0xff] %v15472_v39 }
 0x1cb   : > { %11681 = vmatprep.subr.bf16.mxu0 %v15325_v42  ;;  %v1987_v42 = vld [vmem:[%s19857_s5 + $0x3c8] sm:$0xff]  ;;  %21584 = vst [vmem:[#allocation176_spill] sm:$0xff] %v15474_v61  ;;  %21585 = vst [vmem:[#allocation177_spill] sm:$0xff] %v15476_v23 }
 0x1cc   : > { %v2136_v35 = vand.u32 4294901760, %v1987_v42 }
 0x1ce   : > { %11683 = vmatpush1.bf16.msra.mxu0 %v15332_v29  ;;  %v15428_v29 = vpack.c.bf16 %v2134_v9, %v2130_v58  ;;  %v15494_v37 = vsub.f32 %v1987_v42, %v2136_v35  ;;  %v3488_v42 = vand.u32 4294901760, %v1992_v46 }
 0x1cf   : > { %11685 = vmatprep.subr.bf16.mxu0 %v15339_v48 }
 0x1d0   : > { %21573 = vst [vmem:[#allocation147_spill] sm:$0xff] %v15428_v29  ;;  %21592 = vst [vmem:[#allocation184_spill] sm:$0xff] %v15494_v37  ;;  %v15521_v9 = vsub.f32 %v1992_v46, %v3488_v42 }
 0x1d2   : > { %11687 = vmatpush1.bf16.msra.mxu0 %v15346_v8  ;;  %v3476_v8 = vand.u32 4294901760, %v1980_v47  ;;  %21606 = vst [vmem:[#allocation194_spill] sm:$0xff] %v15521_v9 }
 0x1d3   : > { %11689 = vmatprep.subr.bf16.mxu0 %v15353_v22  ;;  %v15423_v22 = vpack.c.bf16 %v2132_v16, %v2128_v45  ;;  %v15498_v16 = vpack.c.bf16 %v3486_v30, %v3482_v12 }
 0x1d4   : > { %v15485_v62 = vsub.f32 %v1980_v47, %v3476_v8  ;;  %v15512_v47 = vsub.f32 %v1988_v52, %v3484_v7 }
 0x1d5   : > { %21571 = vst [vmem:[#allocation140_spill] sm:$0xff] %v15423_v22  ;;  %11313 = vmatprep.subr.bf16.mxu1 %v15423_v22  ;;  %v2140_v22 = vand.u32 4294901760, %v1991_v21  ;;  %21594 = vst [vmem:[#allocation186_spill] sm:$0xff] %v15498_v16 }
 0x1d6   : > { %11691 = vmatpush1.bf16.msra.mxu0 %v15360_v20  ;;  %v1984_v20 = vld [vmem:[%s19857_s5 + $0x3b0] sm:$0xff]  ;;  %11315 = vmatpush1.bf16.msra.mxu1 %v15428_v29  ;;  %v15481_v29 = vsub.f32 %v1978_v1, %v2130_v58  ;;  %21589 = vst [vmem:[#allocation181_spill] sm:$0xff] %v15485_v62  ;;  %21600 = vst [vmem:[#allocation192_spill] sm:$0xff] %v15512_v47  ;;  %v15519_v58 = vpack.c.bf16 %v3488_v42, %v3484_v7 }
 0x1d7   : > { %11693 = vmatprep.subr.bf16.mxu0 %v15390_v63  ;;  %v3480_v48 = vand.u32 4294901760, %v1984_v20  ;;  %v15426_v63 = vpack.c.bf16 %v3478_v31, %v3474_v44  ;;  %v15492_v50 = vpack.c.bf16 %v2140_v22, %v2136_v35  ;;  %v15496_v45 = vsub.f32 %v1991_v21, %v2140_v22  ;;  %v21601_v21 = vld [vmem:[#allocation15_spill] sm:$0xff]  ;;  %v21603_v1 = vld [vmem:[#allocation17_spill] sm:$0xff] }
 0x1d8   : > { %21587 = vst [vmem:[#allocation179_spill] sm:$0xff] %v15481_v29  ;;  %v15502_v44 = vsub.f32 %v1993_v34, %v3486_v30  ;;  %v20296_v22 = vand.u32 4294901760, %v21601_v21  ;;  %v20302_v27 = vand.u32 4294901760, %v21603_v1  ;;  %21605 = vst [vmem:[#allocation193_spill] sm:$0xff] %v15519_v58 }
 0x1d9   : > { %21572 = vst [vmem:[#allocation142_spill] sm:$0xff] %v15426_v63  ;;  %v15487_v17 = vsub.f32 %v1984_v20, %v3480_v48  ;;  %21591 = vst [vmem:[#allocation183_spill] sm:$0xff] %v15492_v50  ;;  %11317 = vmatprep.subr.bf16.mxu1 %v15492_v50 }
 0x1da   : > { %11695 = vmatpush1.bf16.msra.mxu0 %v15414_v14  ;;  %v15443_v14 = vsub.f32 %v1973_v40, %v3466_v59  ;;  %v15459_v40 = vsub.f32 %v1974_v4, %v2126_v28  ;;  %v15470_v59 = vpack.c.bf16 %v3480_v48, %v3476_v8  ;;  %v2138_v4 = vand.u32 4294901760, %v1986_v41  ;;  %21593 = vst [vmem:[#allocation185_spill] sm:$0xff] %v15496_v45 }
 0x1db   : > { %11697 = vmatprep.subr.bf16.mxu0 %v15426_v63  ;;  %v2142_v28 = vand.u32 4294901760, %v1990_v53  ;;  %v15478_v63 = vsub.f32 %v1985_v18, %v3478_v31  ;;  %21590 = vst [vmem:[#allocation182_spill] sm:$0xff] %v15487_v17  ;;  %v15500_v18 = vsub.f32 %v1989_v3, %v3482_v12  ;;  %21596 = vst [vmem:[#allocation188_spill] sm:$0xff] %v15502_v44  ;;  %v21602_v3 = vld [vmem:[#allocation16_spill] sm:$0xff]  ;;  %v21604_v31 = vld [vmem:[#allocation18_spill] sm:$0xff] }
 0x1dc   : > { %21576 = vst [vmem:[#allocation168_spill] sm:$0xff] %v15443_v14  ;;  %21579 = vst [vmem:[#allocation171_spill] sm:$0xff] %v15459_v40  ;;  %v15506_v48 = vsub.f32 %v1986_v41, %v2138_v4  ;;  %v20297_v34 = vand.u32 4294901760, %v21602_v3  ;;  %v20309_v41 = vand.u32 4294901760, %v21604_v31  ;;  %v3526_v35 = vsub.f32 %v21603_v1, %v20302_v27  ;;  %v21609_v27 = vld [vmem:[#allocation44_spill] sm:$0xff] }
 0x1dd   : > { %21582 = vst [vmem:[#allocation174_spill] sm:$0xff] %v15470_v59  ;;  %21586 = vst [vmem:[#allocation178_spill] sm:$0xff] %v15478_v63  ;;  %v15504_v8 = vpack.c.bf16 %v2142_v28, %v2138_v4  ;;  %v15510_v20 = vsub.f32 %v1990_v53, %v2142_v28  ;;  %v2180_v53 = vsub.f32 %v21601_v21, %v20296_v22  ;;  %v510_v22 = vlaneseq }
 0x1de   : > { %11699 = vmatpush1.bf16.msra.mxu0 %v15470_v59  ;;  %21595 = vst [vmem:[#allocation187_spill] sm:$0xff] %v15500_v18  ;;  %21598 = vst [vmem:[#allocation190_spill] sm:$0xff] %v15506_v48  ;;  %v2192_v52 = vsub.f32 %v21602_v3, %v20297_v34  ;;  %v3538_v12 = vsub.f32 %v21604_v31, %v20309_v41  ;;  %v3527_v28 = vand.u32 4294901760, %v3526_v35  ;;  %v21607_v34 = vld [vmem:[#allocation43_spill] sm:$0xff]  ;;  %v21610_v59 = vld [vmem:[#allocation46_spill] sm:$0xff] }
 0x1df   : > { %21597 = vst [vmem:[#allocation189_spill] sm:$0xff] %v15504_v8  ;;  %11701 = vmatprep.subr.bf16.mxu0 %v15498_v16  ;;  %21599 = vst [vmem:[#allocation191_spill] sm:$0xff] %v15510_v20  ;;  %11319 = vmatpush1.bf16.msra.mxu1 %v15504_v8  ;;  %v2181_v30 = vand.u32 4294901760, %v2180_v53  ;;  %v20322_v8 = vand.u32 4294901760, %v21607_v34  ;;  %v15537_v16 = vshrl.u32 %v510_v22, 7  ;;  %v21616_v22 = vld [vmem:[#allocation24_spill] sm:$0xff] }
 0x1e0   : > { %v2193_v4 = vand.u32 4294901760, %v2192_v52  ;;  %v3539_v7 = vand.u32 4294901760, %v3538_v12  ;;  %v21611_v52 = vld [vmem:[#allocation47_spill] sm:$0xff]  ;;  %v21612_v12 = vld [vmem:[#allocation49_spill] sm:$0xff]  ;;  %v21637_v31 = vld [vmem:[#allocation40_spill] sm:$0xff] }
 0x1e1   : > { %21608 = vst [vmem:[#allocation195_spill] sm:$0xff] %v15537_v16  ;;  %v2186_v53 = vsub.f32 %v21607_v34, %v20322_v8  ;;  %v21624_v49 = vand.u32 4294901760, %v21611_v52  ;;  %v21625_v8 = vand.u32 4294901760, %v21612_v12  ;;  %v21639_v21 = vsub.s32 0, %v15537_v16 }
 0x1e2   : > { %11703 = vmatpush1.bf16.msra.mxu0 %v15519_v58  ;;  %v11320_v46 = vpack.c.bf16 %v2193_v4, %v2181_v30  ;;  %v11704_v42 = vpack.c.bf16 %v3539_v7, %v3527_v28  ;;  %v21613_v4 = vld [vmem:[#allocation21_spill] sm:$0xff]  ;;  %v21614_v7 = vld [vmem:[#allocation23_spill] sm:$0xff]  ;;  %v21623_v58 = vand.u32 4294901760, %v21610_v59 }
 0x1e3   : > { %v2187_v11 = vand.u32 4294901760, %v2186_v53  ;;  %v3544_v5 = vsub.f32 %v21611_v52, %v21624_v49  ;;  %v2204_v35 = vsub.f32 %v21612_v12, %v21625_v8  ;;  %v21626_v30 = vand.u32 4294901760, %v21613_v4 }
 0x1e4   : > { %11321 = vmatprep.subr.bf16.mxu1 %v11320_v46  ;;  %11705 = vmatprep.subr.bf16.mxu0 %v11704_v42  ;;  %v21615_v42 = vld [vmem:[#allocation22_spill] sm:$0xff]  ;;  %v21622_v46 = vand.u32 4294901760, %v21609_v27  ;;  %v3532_v50 = vsub.f32 %v21610_v59, %v21623_v58  ;;  %v21627_v36 = vand.u32 4294901760, %v21614_v7  ;;  %v21629_v53 = vand.u32 4294901760, %v21616_v22  ;;  %v21635_v59 = vld [vmem:[#allocation37_spill] sm:$0xff] }
 0x1e5   : > { %v2216_v28 = vsub.f32 %v21613_v4, %v21626_v30  ;;  %v21628_v2 = vand.u32 4294901760, %v21615_v42  ;;  %v2222_v8 = vsub.f32 %v21617_v33, %v21630_v15  ;;  %v21631_v12 = vand.u32 4294901760, %v21618_v56  ;;  %v21636_v33 = vld [vmem:[#allocation41_spill] sm:$0xff] }
 0x1e6   : > { %v2198_v41 = vsub.f32 %v21609_v27, %v21622_v46  ;;  %v3550_v46 = vsub.f32 %v21614_v7, %v21627_v36  ;;  %v2210_v49 = vsub.f32 %v21616_v22, %v21629_v53  ;;  %v21632_v4 = vand.u32 4294901760, %v21619_v43 }
 0x1e7   : > { %v3562_v58 = vsub.f32 %v21615_v42, %v21628_v2  ;;  %v3556_v30 = vsub.f32 %v21618_v56, %v21631_v12  ;;  %v21633_v7 = vand.u32 4294901760, %v21620_v32  ;;  %v21634_v42 = vand.u32 4294901760, %v21621_v25 }
 0x1e8   : > { %v3568_v36 = vsub.f32 %v21619_v43, %v21632_v4  ;;  %v2199_v22 = vand.u32 4294901760, %v2198_v41  ;;  %v3533_v52 = vand.u32 4294901760, %v3532_v50  ;;  %v20352_v15 = vand.u32 4294901760, %v21635_v59  ;;  %v508_v4 = vld [vmem:[%s19856_s4] sm:$0x3] }
 0x1e9   : > { %v2228_v2 = vsub.f32 %v21620_v32, %v21633_v7  ;;  %v2240_v53 = vsub.f32 %v21621_v25, %v21634_v42  ;;  %v20351_v27 = vand.u32 4294901760, %v21636_v33  ;;  %v3545_v34 = vand.u32 4294901760, %v3544_v5 }
 0x1ea   : > { %v2205_v12 = vand.u32 4294901760, %v2204_v35  ;;  %v2217_v56 = vand.u32 4294901760, %v2216_v28  ;;  %v3551_v7 = vand.u32 4294901760, %v3550_v46  ;;  %v3563_v32 = vand.u32 4294901760, %v3562_v58  ;;  %v21638_v28 = vld [vmem:[#allocation58_spill] sm:$0xff] }
 0x1eb   : > { %v2211_v43 = vand.u32 4294901760, %v2210_v49  ;;  %v2223_v3 = vand.u32 4294901760, %v2222_v8  ;;  %v3557_v42 = vand.u32 4294901760, %v3556_v30  ;;  %v3569_v41 = vand.u32 4294901760, %v3568_v36 }
 0x1ec   : > { %v2229_v50 = vand.u32 4294901760, %v2228_v2  ;;  %v2241_v25 = vand.u32 4294901760, %v2240_v53  ;;  %v3574_v5 = vsub.f32 %v21635_v59, %v20352_v15  ;;  %v3586_v35 = vsub.f32 %v21636_v33, %v20351_v27 }
 0x1ed   : > { %v15611_v46 = vrot.slane %v508_v4, %v21639_v21  ;;  %v21641_v58 = vsub.s32 1, %v15537_v16  ;;  %v15617_v8 = vpack.c.bf16 %v2199_v22, %v2187_v11  ;;  %v21644_v30 = vand.u32 4294901760, %v21637_v31  ;;  %v21652_v11 = vld [vmem:[#allocation65_spill] sm:$0xff] }
 0x1ee   : > { %v15622_v2 = vpack.c.bf16 %v3545_v34, %v3533_v52  ;;  %v15624_v53 = vpack.c.bf16 %v2217_v56, %v2205_v12  ;;  %v15626_v27 = vpack.c.bf16 %v3563_v32, %v3551_v7  ;;  %v15628_v15 = vpack.c.bf16 %v2223_v3, %v2211_v43  ;;  %v21654_v56 = vld [vmem:[#allocation71_spill] sm:$0xff]  ;;  %v21656_v3 = vld [vmem:[#allocation78_spill] sm:$0xff]  ;;  %v21660_v22 = vld [vmem:[#allocation61_spill] sm:$0xff] }
 0x1ef   : > { %21640 = vst [vmem:[#allocation196_spill] sm:$0xff] %v15611_v46  ;;  %v15615_v49 = vrot.slane %v508_v4, %v21641_v58  ;;  %21643 = vst [vmem:[#allocation198_spill] sm:$0xff] %v15617_v8  ;;  %v2234_v36 = vsub.f32 %v21637_v31, %v21644_v30  ;;  %v15630_v21 = vpack.c.bf16 %v3569_v41, %v3557_v42  ;;  %v21651_v4 = vld [vmem:[#allocation62_spill] sm:$0xff]  ;;  %v3575_v16 = vand.u32 4294901760, %v3574_v5  ;;  %v21655_v12 = vld [vmem:[#allocation75_spill] sm:$0xff] }
 0x1f0   : > { %21645 = vst [vmem:[#allocation199_spill] sm:$0xff] %v15622_v2  ;;  %21646 = vst [vmem:[#allocation200_spill] sm:$0xff] %v15624_v53  ;;  %v15632_v1 = vpack.c.bf16 %v2241_v25, %v2229_v50  ;;  %v3587_v33 = vand.u32 4294901760, %v3586_v35  ;;  %v21653_v30 = vand.u32 4294901760, %v21638_v28  ;;  %v21657_v42 = vld [vmem:[#allocation83_spill] sm:$0xff]  ;;  %v21658_v41 = vld [vmem:[#allocation89_spill] sm:$0xff] }
 0x1f1   : > { %21642 = vst [vmem:[#allocation197_spill] sm:$0xff] %v15615_v49  ;;  %21647 = vst [vmem:[#allocation201_spill] sm:$0xff] %v15626_v27  ;;  %v2235_v32 = vand.u32 4294901760, %v2234_v36  ;;  %v21659_v58 = vld [vmem:[#allocation84_spill] sm:$0xff]  ;;  %v21661_v35 = vld [vmem:[#allocation90_spill] sm:$0xff]  ;;  %v21663_v36 = vand.u32 4294901760, %v21652_v11 }
 0x1f2   : > { %21648 = vst [vmem:[#allocation202_spill] sm:$0xff] %v15628_v15  ;;  %21649 = vst [vmem:[#allocation203_spill] sm:$0xff] %v15630_v21  ;;  %v2246_v34 = vsub.f32 %v21638_v28, %v21653_v30  ;;  %v21664_v52 = vld [vmem:[#allocation92_spill] sm:$0xff]  ;;  %v21665_v28 = vld [vmem:[#allocation93_spill] sm:$0xff]  ;;  %v15655_v21 = vpack.c.bf16 %v3587_v33, %v3575_v16  ;;  %v21667_v31 = vand.u32 4294901760, %v21654_v56  ;;  %v21672_v33 = vand.u32 4294901760, %v21657_v42 }
 0x1f3   : > { %21650 = vst [vmem:[#allocation204_spill] sm:$0xff] %v15632_v1  ;;  %v21662_v1 = vand.u32 4294901760, %v21651_v4  ;;  %v3592_v43 = vsub.f32 %v21652_v11, %v21663_v36  ;;  %v21668_v50 = vld [vmem:[#allocation94_spill] sm:$0xff]  ;;  %v21671_v36 = vand.u32 4294901760, %v21656_v3  ;;  %v21673_v25 = vand.u32 4294901760, %v21658_v41 }
 0x1f4   : > { %21666 = vst [vmem:[#allocation205_spill] sm:$0xff] %v15655_v21  ;;  %v2252_v5 = vsub.f32 %v21654_v56, %v21667_v31  ;;  %v21669_v15 = vld [vmem:[#allocation50_spill] sm:$0xff]  ;;  %v2247_v53 = vand.u32 4294901760, %v2246_v34  ;;  %v3610_v16 = vsub.f32 %v21657_v42, %v21672_v33  ;;  %v21674_v59 = vand.u32 4294901760, %v21659_v58 }
 0x1f5   : > { %v3580_v30 = vsub.f32 %v21651_v4, %v21662_v1  ;;  %v21670_v1 = vand.u32 4294901760, %v21655_v12  ;;  %v3598_v7 = vsub.f32 %v21656_v3, %v21671_v36  ;;  %v2258_v31 = vsub.f32 %v21658_v41, %v21673_v25  ;;  %v21679_v41 = vld [vmem:[#allocation96_spill] sm:$0xff] }
 0x1f6   : > { %v2270_v34 = vsub.f32 %v21659_v58, %v21674_v59  ;;  %v21675_v27 = vand.u32 4294901760, %v21660_v22  ;;  %v21677_v56 = vand.u32 4294901760, %v21664_v52  ;;  %v21678_v42 = vand.u32 4294901760, %v21665_v28 }
 0x1f7   : > { %v2264_v4 = vsub.f32 %v21655_v12, %v21670_v1  ;;  %v21676_v12 = vand.u32 4294901760, %v21661_v35  ;;  %v3581_v3 = vand.u32 4294901760, %v3580_v30  ;;  %v3593_v59 = vand.u32 4294901760, %v3592_v43 }
 0x1f8   : > { %v3604_v1 = vsub.f32 %v21660_v22, %v21675_v27  ;;  %v2276_v33 = vsub.f32 %v21664_v52, %v21677_v56  ;;  %v2288_v25 = vsub.f32 %v21665_v28, %v21678_v42  ;;  %v2253_v58 = vand.u32 4294901760, %v2252_v5  ;;  %v21682_v56 = vld [vmem:[#allocation52_spill] sm:$0xff] }
 0x1f9   : > { %v3616_v36 = vsub.f32 %v21661_v35, %v21676_v12  ;;  %v21680_v21 = vand.u32 4294901760, %v21668_v50  ;;  %v21681_v22 = vand.u32 4294901760, %v21669_v15  ;;  %v2265_v30 = vand.u32 4294901760, %v2264_v4  ;;  %v21685_v4 = vld [vmem:[#allocation53_spill] sm:$0xff] }
 0x1fa   : > { %v3599_v35 = vand.u32 4294901760, %v3598_v7  ;;  %v3611_v2 = vand.u32 4294901760, %v3610_v16  ;;  %v2259_v8 = vand.u32 4294901760, %v2258_v31  ;;  %v2271_v49 = vand.u32 4294901760, %v2270_v34  ;;  %v21686_v16 = vld [vmem:[#allocation97_spill] sm:$0xff]  ;;  %v21690_v34 = vld [vmem:[#allocation99_spill] sm:$0xff] }
 0x1fb   : > { %v3622_v27 = vsub.f32 %v21668_v50, %v21680_v21  ;;  %v3634_v12 = vsub.f32 %v21669_v15, %v21681_v22  ;;  %v3605_v42 = vand.u32 4294901760, %v3604_v1  ;;  %v3617_v28 = vand.u32 4294901760, %v3616_v36 }
 0x1fc   : > { %v15697_v11 = vpack.c.bf16 %v2247_v53, %v2235_v32  ;;  %v2277_v43 = vand.u32 4294901760, %v2276_v33  ;;  %v2289_v5 = vand.u32 4294901760, %v2288_v25  ;;  %v21684_v46 = vand.u32 4294901760, %v21679_v41  ;;  %v21694_v25 = vld [vmem:[#allocation100_spill] sm:$0xff] }
 0x1fd   : > { %v3623_v50 = vand.u32 4294901760, %v3622_v27  ;;  %v3635_v22 = vand.u32 4294901760, %v3634_v12  ;;  %v20375_v7 = vand.u32 4294901760, %v21685_v4  ;;  %v15706_v52 = vpack.c.bf16 %v3593_v59, %v3581_v3  ;;  %v21696_v3 = vld [vmem:[#allocation101_spill] sm:$0xff] }
 0x1fe   : > { %21683 = vst [vmem:[#allocation206_spill] sm:$0xff] %v15697_v11  ;;  %v15702_v21 = vsub.f32 %v21679_v41, %v21684_v46  ;;  %v15708_v31 = vpack.c.bf16 %v2265_v30, %v2253_v58  ;;  %v21689_v53 = vand.u32 4294901760, %v21682_v56  ;;  %v20376_v1 = vand.u32 4294901760, %v21690_v34  ;;  %v21697_v30 = vld [vmem:[#allocation137_spill] sm:$0xff]  ;;  %v21712_v11 = vld [vmem:[#allocation148_spill] sm:$0xff] }
 0x1ff   : > { %21687 = vst [vmem:[#allocation207_spill] sm:$0xff] %v15706_v52  ;;  %v15716_v36 = vpack.c.bf16 %v3611_v2, %v3599_v35  ;;  %v15718_v46 = vpack.c.bf16 %v2271_v49, %v2259_v8  ;;  %v15720_v33 = vpack.c.bf16 %v3617_v28, %v3605_v42  ;;  %v20381_v27 = vand.u32 4294901760, %v21694_v25  ;;  %v21700_v8 = vld [vmem:[#allocation81_spill] sm:$0xff] }
 0x200   : > { %21688 = vst [vmem:[#allocation208_spill] sm:$0xff] %v15708_v31  ;;  %v15713_v32 = vsub.f32 %v21682_v56, %v21689_v53  ;;  %v15723_v12 = vpack.c.bf16 %v2289_v5, %v2277_v43  ;;  %v20379_v15 = vand.u32 4294901760, %v21697_v30  ;;  %v15728_v53 = vpack.c.bf16 %v3635_v22, %v3623_v50  ;;  %v21701_v5 = vld [vmem:[#allocation139_spill] sm:$0xff]  ;;  %v21703_v59 = vld [vmem:[#allocation85_spill] sm:$0xff] }
 0x201   : > { %21691 = vst [vmem:[#allocation209_spill] sm:$0xff] %v15716_v36  ;;  %21692 = vst [vmem:[#allocation210_spill] sm:$0xff] %v15718_v46  ;;  %v15733_v2 = vsub.f32 %v21685_v4, %v20375_v7  ;;  %v21699_v28 = vand.u32 4294901760, %v21686_v16  ;;  %v20384_v35 = vand.u32 4294901760, %v21700_v8  ;;  %v15745_v43 = vsub.f32 %v21690_v34, %v20376_v1  ;;  %v21702_v7 = vld [vmem:[#allocation56_spill] sm:$0xff]  ;;  %v21711_v46 = vld [vmem:[#allocation146_spill] sm:$0xff] }
 0x202   : > { %21693 = vst [vmem:[#allocation211_spill] sm:$0xff] %v15720_v33  ;;  %21695 = vst [vmem:[#allocation212_spill] sm:$0xff] %v15723_v12  ;;  %v3742_v50 = vsub.f32 %v21697_v30, %v20379_v15  ;;  %v20387_v22 = vand.u32 4294901760, %v21701_v5  ;;  %v20388_v1 = vand.u32 4294901760, %v21703_v59  ;;  %v21704_v34 = vand.u32 4294901760, %v21696_v3  ;;  %v21708_v33 = vld [vmem:[#allocation103_spill] sm:$0xff] }
 0x203   : > { %21698 = vst [vmem:[#allocation213_spill] sm:$0xff] %v15728_v53  ;;  %v15738_v49 = vsub.f32 %v21686_v16, %v21699_v28  ;;  %v15754_v28 = vsub.f32 %v21694_v25, %v20381_v27  ;;  %v3754_v42 = vsub.f32 %v21700_v8, %v20384_v35  ;;  %v21705_v27 = vld [vmem:[#allocation35_spill] sm:$0xff]  ;;  %v21706_v35 = vld [vmem:[#allocation141_spill] sm:$0xff]  ;;  %v21707_v53 = vld [vmem:[#allocation144_spill] sm:$0xff] }
 0x204   : > { %v15764_v16 = vsub.f32 %v21696_v3, %v21704_v34  ;;  %v3743_v15 = vand.u32 4294901760, %v3742_v50  ;;  %v2402_v4 = vsub.f32 %v21701_v5, %v20387_v22  ;;  %v20389_v25 = vand.u32 4294901760, %v21705_v27  ;;  %v21709_v3 = vld [vmem:[#allocation145_spill] sm:$0xff]  ;;  %v21803_v8 = vld [vmem:[#allocation152_spill] sm:$0xff] }
 0x205   : > { %v3755_v56 = vand.u32 4294901760, %v3754_v42  ;;  %v2414_v58 = vsub.f32 %v21703_v59, %v20388_v1  ;;  %v20392_v41 = vand.u32 4294901760, %v21706_v35  ;;  %v20393_v12 = vand.u32 4294901760, %v21707_v53  ;;  %v21806_v5 = vld [vmem:[#allocation153_spill] sm:$0xff] }
 0x206   : > { %v2403_v34 = vand.u32 4294901760, %v2402_v4  ;;  %v3748_v50 = vsub.f32 %v21705_v27, %v20389_v25  ;;  %v20394_v22 = vand.u32 4294901760, %v21709_v3  ;;  %v20398_v25 = vand.u32 4294901760, %v21711_v46  ;;  %v21810_v30 = vld [vmem:[#allocation201_spill] sm:$0xff] }
 0x207   : > { %v15780_v36 = vpack.c.bf16 %v3755_v56, %v3743_v15  ;;  %v2415_v42 = vand.u32 4294901760, %v2414_v58  ;;  %v3760_v1 = vsub.f32 %v21706_v35, %v20392_v41  ;;  %v2420_v31 = vsub.f32 %v21707_v53, %v20393_v12 }
 0x208   : > { %v3749_v52 = vand.u32 4294901760, %v3748_v50  ;;  %v2432_v4 = vsub.f32 %v21709_v3, %v20394_v22  ;;  %v20399_v27 = vand.u32 4294901760, %v21712_v11  ;;  %v3766_v12 = vsub.f32 %v21711_v46, %v20398_v25  ;;  %v21715_v22 = vld [vmem:[#allocation152_spill] sm:$0xff] }
 0x209   : > { %21710 = vst [vmem:[#allocation214_spill] sm:$0xff] %v15780_v36  ;;  %v15793_v15 = vpack.c.bf16 %v2415_v42, %v2403_v34  ;;  %v3761_v56 = vand.u32 4294901760, %v3760_v1  ;;  %v2421_v58 = vand.u32 4294901760, %v2420_v31  ;;  %v21714_v36 = vld [vmem:[#allocation150_spill] sm:$0xff]  ;;  %v20404_v3 = vand.u32 4294901760, %v21715_v22  ;;  %v21717_v31 = vld [vmem:[#allocation153_spill] sm:$0xff] }
 0x20a   : > { %v20401_v59 = vand.u32 4294901760, %v21714_v36  ;;  %v2433_v41 = vand.u32 4294901760, %v2432_v4  ;;  %v3778_v50 = vsub.f32 %v21712_v11, %v20399_v27  ;;  %v20405_v34 = vand.u32 4294901760, %v21717_v31  ;;  %v21718_v42 = vld [vmem:[#allocation154_spill] sm:$0xff] }
 0x20b   : > { %21713 = vst [vmem:[#allocation215_spill] sm:$0xff] %v15793_v15  ;;  %v15803_v53 = vpack.c.bf16 %v3761_v56, %v3749_v52  ;;  %v20408_v4 = vand.u32 4294901760, %v21718_v42  ;;  %v3767_v35 = vand.u32 4294901760, %v3766_v12  ;;  %v2438_v27 = vsub.f32 %v21715_v22, %v20404_v3  ;;  %v21722_v12 = vld [vmem:[#allocation158_spill] sm:$0xff] }
 0x20c   : > { %v2426_v1 = vsub.f32 %v21714_v36, %v20401_v59  ;;  %v15810_v15 = vpack.c.bf16 %v2433_v41, %v2421_v58  ;;  %v3779_v25 = vand.u32 4294901760, %v3778_v50  ;;  %v3772_v52 = vsub.f32 %v21717_v31, %v20405_v34  ;;  %v21720_v59 = vld [vmem:[#allocation157_spill] sm:$0xff]  ;;  %v21723_v50 = vld [vmem:[#allocation3_spill] sm:$0xff] }
 0x20d   : > { %21716 = vst [vmem:[#allocation216_spill] sm:$0xff] %v15803_v53  ;;  %v3784_v56 = vsub.f32 %v21718_v42, %v20408_v4  ;;  %v20409_v53 = vand.u32 4294901760, %v21720_v59  ;;  %v2439_v41 = vand.u32 4294901760, %v2438_v27  ;;  %v20410_v58 = vand.u32 4294901760, %v21722_v12  ;;  %v21724_v34 = vld [vmem:[#allocation73_spill] sm:$0xff] }
 0x20e   : > { %21719 = vst [vmem:[#allocation217_spill] sm:$0xff] %v15810_v15  ;;  %v2427_v11 = vand.u32 4294901760, %v2426_v1  ;;  %v15822_v36 = vpack.c.bf16 %v3779_v25, %v3767_v35  ;;  %v20413_v15 = vand.u32 4294901760, %v21723_v50  ;;  %v3773_v46 = vand.u32 4294901760, %v3772_v52  ;;  %v21726_v35 = vld [vmem:[#allocation160_spill] sm:$0xff] }
 0x20f   : > { %v3785_v3 = vand.u32 4294901760, %v3784_v56  ;;  %v2444_v1 = vsub.f32 %v21720_v59, %v20409_v53  ;;  %v20414_v31 = vand.u32 4294901760, %v21724_v34  ;;  %v2456_v25 = vsub.f32 %v21722_v12, %v20410_v58  ;;  %v21729_v12 = vld [vmem:[#allocation86_spill] sm:$0xff] }
 0x210   : > { %21721 = vst [vmem:[#allocation218_spill] sm:$0xff] %v15822_v36  ;;  %v15830_v22 = vpack.c.bf16 %v2439_v41, %v2427_v11  ;;  %v3790_v27 = vsub.f32 %v21723_v50, %v20413_v15  ;;  %v20415_v4 = vand.u32 4294901760, %v21726_v35  ;;  %v21728_v36 = vld [vmem:[#allocation4_spill] sm:$0xff]  ;;  %v20418_v59 = vand.u32 4294901760, %v21729_v12  ;;  %v21816_v50 = vld [vmem:[#allocation202_spill] sm:$0xff] }
 0x211   : > { %v15839_v52 = vpack.c.bf16 %v3785_v3, %v3773_v46  ;;  %v2445_v56 = vand.u32 4294901760, %v2444_v1  ;;  %v3802_v53 = vsub.f32 %v21724_v34, %v20414_v31  ;;  %v20416_v11 = vand.u32 4294901760, %v21728_v36 }
 0x212   : > { %21725 = vst [vmem:[#allocation219_spill] sm:$0xff] %v15830_v22  ;;  %v2457_v41 = vand.u32 4294901760, %v2456_v25  ;;  %v3791_v22 = vand.u32 4294901760, %v3790_v27  ;;  %v2450_v58 = vsub.f32 %v21726_v35, %v20415_v4  ;;  %v20420_v3 = vand.u32 4294901760, %v15109_v57 }
 0x213   : > { %21727 = vst [vmem:[#allocation220_spill] sm:$0xff] %v15839_v52  ;;  %v3803_v15 = vand.u32 4294901760, %v3802_v53  ;;  %v2462_v46 = vsub.f32 %v21728_v36, %v20416_v11  ;;  %v20421_v1 = vand.u32 4294901760, %v15113_v13  ;;  %v3796_v25 = vsub.f32 %v21729_v12, %v20418_v59 }
 0x214   : > { %v15854_v31 = vpack.c.bf16 %v2457_v41, %v2445_v56  ;;  %v2451_v52 = vand.u32 4294901760, %v2450_v58  ;;  %v20422_v27 = vand.u32 4294901760, %v15116_v38  ;;  %v3808_v11 = vsub.f32 %v15109_v57, %v20420_v3  ;;  %v21732_v41 = vld [vmem:[#allocation164_spill] sm:$0xff] }
 0x215   : > { %v15860_v4 = vpack.c.bf16 %v3803_v15, %v3791_v22  ;;  %v2463_v53 = vand.u32 4294901760, %v2462_v46  ;;  %v2468_v36 = vsub.f32 %v15113_v13, %v20421_v1  ;;  %v3797_v56 = vand.u32 4294901760, %v3796_v25 }
 0x216   : > { %21730 = vst [vmem:[#allocation221_spill] sm:$0xff] %v15854_v31  ;;  %v2480_v58 = vsub.f32 %v15116_v38, %v20422_v27  ;;  %v20425_v59 = vand.u32 4294901760, %v21732_v41  ;;  %v21733_v31 = vld [vmem:[#allocation88_spill] sm:$0xff]  ;;  %v3809_v15 = vand.u32 4294901760, %v3808_v11  ;;  %v20429_v27 = vand.u32 4294901760, %v15138_v24  ;;  %v21736_v11 = vld [vmem:[#allocation167_spill] sm:$0xff] }
 0x217   : > { %21731 = vst [vmem:[#allocation222_spill] sm:$0xff] %v15860_v4  ;;  %v20426_v12 = vand.u32 4294901760, %v21733_v31  ;;  %v15873_v22 = vpack.c.bf16 %v2463_v53, %v2451_v52  ;;  %v2469_v46 = vand.u32 4294901760, %v2468_v36  ;;  %v20428_v4 = vand.u32 4294901760, %v15136_v60 }
 0x218   : > { %v2481_v3 = vand.u32 4294901760, %v2480_v58  ;;  %v3814_v1 = vsub.f32 %v21732_v41, %v20425_v59  ;;  %v15883_v38 = vpack.c.bf16 %v3809_v15, %v3797_v56  ;;  %v20430_v36 = vand.u32 4294901760, %v15144_v19 }
 0x219   : > { %21734 = vst [vmem:[#allocation223_spill] sm:$0xff] %v15873_v22  ;;  %v3826_v25 = vsub.f32 %v21733_v31, %v20426_v12  ;;  %v2474_v52 = vsub.f32 %v15136_v60, %v20428_v4  ;;  %v20432_v53 = vand.u32 4294901760, %v21736_v11  ;;  %v2486_v12 = vsub.f32 %v15138_v24, %v20429_v27  ;;  %v21820_v60 = vld [vmem:[#allocation204_spill] sm:$0xff] }
 0x21a   : > { %21735 = vst [vmem:[#allocation224_spill] sm:$0xff] %v15883_v38  ;;  %v15890_v58 = vpack.c.bf16 %v2481_v3, %v2469_v46  ;;  %v3815_v22 = vand.u32 4294901760, %v3814_v1  ;;  %v3820_v56 = vsub.f32 %v15144_v19, %v20430_v36  ;;  %v20431_v4 = vand.u32 4294901760, %v15439_v10 }
 0x21b   : > { %v3827_v59 = vand.u32 4294901760, %v3826_v25  ;;  %v2475_v31 = vand.u32 4294901760, %v2474_v52  ;;  %v3832_v15 = vsub.f32 %v21736_v11, %v20432_v53  ;;  %v2487_v3 = vand.u32 4294901760, %v2486_v12 }
 0x21c   : > { %21737 = vst [vmem:[#allocation225_spill] sm:$0xff] %v15890_v58  ;;  %v20433_v1 = vand.u32 4294901760, %v15441_v0  ;;  %v20434_v46 = vand.u32 4294901760, %v15443_v14  ;;  %v3821_v25 = vand.u32 4294901760, %v3820_v56  ;;  %v2492_v52 = vsub.f32 %v15439_v10, %v20431_v4  ;;  %v21861_v10 = vld [vmem:[#allocation135_spill] sm:$0xff] }
 0x21d   : > { %v15902_v38 = vpack.c.bf16 %v3827_v59, %v3815_v22  ;;  %v3833_v27 = vand.u32 4294901760, %v3832_v15  ;;  %v20435_v36 = vand.u32 4294901760, %v15445_v26  ;;  %v15910_v58 = vpack.c.bf16 %v2487_v3, %v2475_v31 }
 0x21e   : > { %v2504_v59 = vsub.f32 %v15441_v0, %v20433_v1  ;;  %v3838_v12 = vsub.f32 %v15443_v14, %v20434_v46  ;;  %v20436_v22 = vand.u32 4294901760, %v15457_v55  ;;  %v2493_v15 = vand.u32 4294901760, %v2492_v52  ;;  %v21862_v0 = vld [vmem:[#allocation136_spill] sm:$0xff] }
 0x21f   : > { %21738 = vst [vmem:[#allocation226_spill] sm:$0xff] %v15902_v38  ;;  %21739 = vst [vmem:[#allocation227_spill] sm:$0xff] %v15910_v58  ;;  %v15919_v56 = vpack.c.bf16 %v3833_v27, %v3821_v25  ;;  %v3850_v4 = vsub.f32 %v15445_v26, %v20435_v36  ;;  %v20437_v31 = vand.u32 4294901760, %v15459_v40  ;;  %v20438_v58 = vand.u32 4294901760, %v15461_v6 }
 0x220   : > { %v2505_v3 = vand.u32 4294901760, %v2504_v59  ;;  %v3839_v53 = vand.u32 4294901760, %v3838_v12  ;;  %v2498_v1 = vsub.f32 %v15457_v55, %v20436_v22  ;;  %v20439_v25 = vand.u32 4294901760, %v15463_v51  ;;  %v21844_v55 = vld [vmem:[#allocation212_spill] sm:$0xff] }
 0x221   : > { %21740 = vst [vmem:[#allocation228_spill] sm:$0xff] %v15919_v56  ;;  %v3851_v46 = vand.u32 4294901760, %v3850_v4  ;;  %v2510_v27 = vsub.f32 %v15459_v40, %v20437_v31  ;;  %v20440_v52 = vand.u32 4294901760, %v15472_v39  ;;  %v3844_v59 = vsub.f32 %v15461_v6, %v20438_v58  ;;  %v21856_v40 = vld [vmem:[#allocation133_spill] sm:$0xff] }
 0x222   : > { %v15934_v36 = vpack.c.bf16 %v2505_v3, %v2493_v15  ;;  %v2499_v56 = vand.u32 4294901760, %v2498_v1  ;;  %v20441_v12 = vand.u32 4294901760, %v15474_v61  ;;  %v3856_v31 = vsub.f32 %v15463_v51, %v20439_v25  ;;  %v21843_v51 = vld [vmem:[#allocation126_spill] sm:$0xff] }
 0x223   : > { %v15940_v22 = vpack.c.bf16 %v3851_v46, %v3839_v53  ;;  %v2511_v4 = vand.u32 4294901760, %v2510_v27  ;;  %v2516_v38 = vsub.f32 %v15472_v39, %v20440_v52  ;;  %v3845_v15 = vand.u32 4294901760, %v3844_v59 }
 0x224   : > { %21741 = vst [vmem:[#allocation229_spill] sm:$0xff] %v15934_v36  ;;  %v2528_v1 = vsub.f32 %v15474_v61, %v20441_v12  ;;  %v20442_v3 = vand.u32 4294901760, %v15476_v23  ;;  %v20443_v58 = vand.u32 4294901760, %v15478_v63  ;;  %v3857_v46 = vand.u32 4294901760, %v3856_v31  ;;  %v21830_v61 = vld [vmem:[#allocation208_spill] sm:$0xff] }
 0x225   : > { %21742 = vst [vmem:[#allocation230_spill] sm:$0xff] %v15940_v22  ;;  %v15953_v53 = vpack.c.bf16 %v2511_v4, %v2499_v56  ;;  %v2517_v27 = vand.u32 4294901760, %v2516_v38  ;;  %v20444_v22 = vand.u32 4294901760, %v15481_v29  ;;  %v20445_v12 = vand.u32 4294901760, %v15483_v54 }
 0x226   : > { %v2529_v25 = vand.u32 4294901760, %v2528_v1  ;;  %v3862_v52 = vsub.f32 %v15476_v23, %v20442_v3  ;;  %v3874_v59 = vsub.f32 %v15478_v63, %v20443_v58  ;;  %v15963_v36 = vpack.c.bf16 %v3857_v46, %v3845_v15  ;;  %v21838_v63 = vld [vmem:[#allocation121_spill] sm:$0xff]  ;;  %v21847_v23 = vld [vmem:[#allocation76_spill] sm:$0xff] }
 0x227   : > { %21743 = vst [vmem:[#allocation231_spill] sm:$0xff] %v15953_v53  ;;  %v2522_v56 = vsub.f32 %v15481_v29, %v20444_v22  ;;  %v20446_v38 = vand.u32 4294901760, %v15485_v62  ;;  %v20448_v31 = vand.u32 4294901760, %v15487_v17  ;;  %v2534_v58 = vsub.f32 %v15483_v54, %v20445_v12 }
 0x228   : > { %21744 = vst [vmem:[#allocation232_spill] sm:$0xff] %v15963_v36  ;;  %v15970_v4 = vpack.c.bf16 %v2529_v25, %v2517_v27  ;;  %v3863_v1 = vand.u32 4294901760, %v3862_v52  ;;  %v3875_v3 = vand.u32 4294901760, %v3874_v59  ;;  %v20447_v22 = vand.u32 4294901760, %v15494_v37 }
 0x229   : > { %v2523_v53 = vand.u32 4294901760, %v2522_v56  ;;  %v3868_v15 = vsub.f32 %v15485_v62, %v20446_v38  ;;  %v3880_v46 = vsub.f32 %v15487_v17, %v20448_v31  ;;  %v2535_v25 = vand.u32 4294901760, %v2534_v58  ;;  %v21842_v17 = vld [vmem:[#allocation211_spill] sm:$0xff] }
 0x22a   : > { %21745 = vst [vmem:[#allocation233_spill] sm:$0xff] %v15970_v4  ;;  %v15982_v36 = vpack.c.bf16 %v3875_v3, %v3863_v1  ;;  %v20449_v52 = vand.u32 4294901760, %v15496_v45  ;;  %v20450_v27 = vand.u32 4294901760, %v15500_v18  ;;  %v2540_v56 = vsub.f32 %v15494_v37, %v20447_v22  ;;  %v21840_v37 = vld [vmem:[#allocation125_spill] sm:$0xff] }
 0x22b   : > { %v3869_v59 = vand.u32 4294901760, %v3868_v15  ;;  %v3881_v12 = vand.u32 4294901760, %v3880_v46  ;;  %v20451_v38 = vand.u32 4294901760, %v15502_v44  ;;  %v15990_v4 = vpack.c.bf16 %v2535_v25, %v2523_v53 }
 0x22c   : > { %21746 = vst [vmem:[#allocation234_spill] sm:$0xff] %v15982_v36  ;;  %v2552_v3 = vsub.f32 %v15496_v45, %v20449_v52  ;;  %v3886_v58 = vsub.f32 %v15500_v18, %v20450_v27  ;;  %v20452_v1 = vand.u32 4294901760, %v15506_v48  ;;  %v2541_v46 = vand.u32 4294901760, %v2540_v56 }
 0x22d   : > { %21747 = vst [vmem:[#allocation235_spill] sm:$0xff] %v15990_v4  ;;  %v15999_v15 = vpack.c.bf16 %v3881_v12, %v3869_v59  ;;  %v3898_v22 = vsub.f32 %v15502_v44, %v20451_v38  ;;  %v20457_v53 = vand.u32 4294901760, %v15510_v20  ;;  %v20459_v4 = vand.u32 4294901760, %v15512_v47 }
 0x22e   : > { %v2553_v25 = vand.u32 4294901760, %v2552_v3  ;;  %v3887_v31 = vand.u32 4294901760, %v3886_v58  ;;  %v2546_v52 = vsub.f32 %v15506_v48, %v20452_v1  ;;  %v21749_v27 = vand.u32 4294901760, %v21702_v7 }
 0x22f   : > { %21748 = vst [vmem:[#allocation236_spill] sm:$0xff] %v15999_v15  ;;  %v3899_v59 = vand.u32 4294901760, %v3898_v22  ;;  %v2558_v56 = vsub.f32 %v15510_v20, %v20457_v53  ;;  %v20460_v38 = vand.u32 4294901760, %v15521_v9  ;;  %v21750_v15 = vld [vmem:[#allocation59_spill] sm:$0xff]  ;;  %v3892_v1 = vsub.f32 %v15512_v47, %v20459_v4 }
 0x230   : > { %v3658_v12 = vsub.f32 %v21702_v7, %v21749_v27  ;;  %v16017_v58 = vpack.c.bf16 %v2553_v25, %v2541_v46  ;;  %v2547_v36 = vand.u32 4294901760, %v2546_v52  ;;  %v3629_v48 = vand.u32 4294901760, %v15733_v2  ;;  %v21754_v2 = vld [vmem:[#allocation104_spill] sm:$0xff] }
 0x231   : > { %v16023_v44 = vpack.c.bf16 %v3899_v59, %v3887_v31  ;;  %v2559_v22 = vand.u32 4294901760, %v2558_v56  ;;  %v3904_v27 = vsub.f32 %v15521_v9, %v20460_v38  ;;  %v3641_v53 = vand.u32 4294901760, %v15738_v49 }
 0x232   : > { %21751 = vst [vmem:[#allocation237_spill] sm:$0xff] %v16017_v58  ;;  %v2301_v3 = vand.u32 4294901760, %v15745_v43  ;;  %v2313_v46 = vand.u32 4294901760, %v15754_v28  ;;  %v3893_v52 = vand.u32 4294901760, %v3892_v1  ;;  %v21753_v7 = vand.u32 4294901760, %v21708_v33  ;;  %v21758_v1 = vld [vmem:[#allocation197_spill] sm:$0xff] }
 0x233   : > { %21752 = vst [vmem:[#allocation238_spill] sm:$0xff] %v16023_v44  ;;  %v16035_v59 = vpack.c.bf16 %v2559_v22, %v2547_v36  ;;  %v3905_v56 = vand.u32 4294901760, %v3904_v27  ;;  %v21756_v44 = vld [vmem:[#allocation196_spill] sm:$0xff]  ;;  %v3647_v49 = vand.u32 4294901760, %v15764_v16  ;;  %v3659_v9 = vand.u32 4294901760, %v3658_v12  ;;  %v21761_v36 = vld [vmem:[#allocation105_spill] sm:$0xff] }
 0x234   : > { %v2306_v4 = vsub.f32 %v21708_v33, %v21753_v7  ;;  %v21757_v43 = vand.u32 4294901760, %v21750_v15  ;;  %v21759_v20 = vand.u32 4294901760, %v15702_v21  ;;  %v21760_v7 = vand.u32 4294901760, %v15713_v32  ;;  %v21765_v33 = vld [vmem:[#allocation107_spill] sm:$0xff] }
 0x235   : > { %21755 = vst [vmem:[#allocation239_spill] sm:$0xff] %v16035_v59  ;;  %v20472_v22 = vand.u32 4294901760, %v21761_v36  ;;  %v16050_v27 = vpack.c.bf16 %v3905_v56, %v3893_v52  ;;  %v16054_v16 = vpack.c.bf16 %v3641_v53, %v3629_v48  ;;  %v16056_v12 = vpack.c.bf16 %v2313_v46, %v2301_v3  ;;  %v21772_v52 = vld [vmem:[#allocation109_spill] sm:$0xff] }
 0x236   : > { %v2318_v28 = vsub.f32 %v21750_v15, %v21757_v43  ;;  %v16047_v31 = vpack.c.bf16 %v21760_v7, %v21759_v20  ;;  %v2307_v21 = vand.u32 4294901760, %v2306_v4  ;;  %v21767_v32 = vand.u32 4294901760, %v21754_v2  ;;  %v21768_v7 = vld [vmem:[#allocation108_spill] sm:$0xff] }
 0x237   : > { %21762 = vst [vmem:[#allocation196_spill] sm:$0xff] %v16050_v27  ;;  %21764 = vst [vmem:[#allocation240_spill] sm:$0xff] %v16056_v12  ;;  %v16071_v3 = vpack.c.bf16 %v3659_v9, %v3647_v49  ;;  %v21775_v9 = vld [vmem:[#allocation63_spill] sm:$0xff]  ;;  %v21782_v59 = vand.u32 4294901760, %v21765_v33 }
 0x238   : > { %v16064_v20 = vsub.f32 %v21754_v2, %v21767_v32  ;;  %v2319_v46 = vand.u32 4294901760, %v2318_v28  ;;  %v16080_v32 = vsub.f32 %v21761_v36, %v20472_v22  ;;  %v21776_v28 = vld [vmem:[#allocation111_spill] sm:$0xff]  ;;  %v21780_v22 = vld [vmem:[#allocation112_spill] sm:$0xff] }
 0x239   : > { %21770 = vst [vmem:[#allocation243_spill] sm:$0xff] %v16071_v3  ;;  %v16105_v49 = vsub.f32 %v21765_v33, %v21782_v59  ;;  %v21788_v59 = vand.u32 4294901760, %v21772_v52 }
 0x23a   : > { %v16113_v36 = vpack.c.bf16 %v2319_v46, %v2307_v21  ;;  %v21790_v21 = vand.u32 4294901760, %v21776_v28 }
 0x23b   : > { %v16126_v3 = vsub.f32 %v21772_v52, %v21788_v59  ;;  %v21793_v59 = vand.u32 4294901760, %v21780_v22 }
 0x23c   : > { %21785 = vst [vmem:[#allocation251_spill] sm:$0xff] %v16113_v36  ;;  %v16136_v46 = vsub.f32 %v21776_v28, %v21790_v21  ;;  %v21801_v28 = vld [vmem:[#allocation148_spill] sm:$0xff] }
 0x23d   : > { %v16149_v52 = vsub.f32 %v21780_v22, %v21793_v59  ;;  %v21795_v59 = vld [vmem:[#allocation85_spill] sm:$0xff]  ;;  %v21811_v36 = vld [vmem:[#allocation4_spill] sm:$0xff] }
 0x23f   : > { %v3677_v39 = vand.u32 4294901760, %v16149_v52 }
 0x240   : > { %v21858_v26 = vld [vmem:[#allocation243_spill] sm:$0xff] }
 0x278   : > { %v1853_v25 = vpop.f32.mrb[0].mxu0 }
 0x279   : > { %v12792_v58 = vadd.f32 %v1853_v25, %v21756_v44  ;;  %v1855_v38 = vpop.f32.mrb[1].mxu0 }
 0x27a   : > { %v12793_v47 = vadd.f32 %v1855_v38, %v21758_v1 }
 0x27b   : > { %v16052_v25 = vand.u32 4294901760, %v12792_v58 }
 0x27c   : > { %v16059_v15 = vand.u32 4294901760, %v12793_v47  ;;  %v1861_v38 = vpop.f32.mrb[2].mxu0 }
 0x27d   : > { %21763 = vst [vmem:[#allocation197_spill] sm:$0xff] %v16052_v25  ;;  %v16068_v56 = vsub.f32 %v12792_v58, %v16052_v25  ;;  %v12794_v48 = vadd.f32 %v1861_v38, %v21756_v44  ;;  %v1863_v53 = vpop.f32.mrb[3].mxu0  ;;  %v21783_v38 = vld [vmem:[#allocation113_spill] sm:$0xff] }
 0x27e   : > { %21766 = vst [vmem:[#allocation241_spill] sm:$0xff] %v16059_v15  ;;  %v16074_v43 = vsub.f32 %v12793_v47, %v16059_v15  ;;  %v12795_v4 = vadd.f32 %v1863_v53, %v21758_v1  ;;  %v21779_v53 = vld [vmem:[#allocation66_spill] sm:$0xff]  ;;  %v21794_v21 = vand.u32 4294901760, %v21783_v38 }
 0x27f   : > { %21769 = vst [vmem:[#allocation242_spill] sm:$0xff] %v16068_v56  ;;  %v16083_v58 = vand.u32 4294901760, %v12794_v48  ;;  %v16086_v44 = vand.u32 4294901760, %v16068_v56 }
 0x280   : > { %21771 = vst [vmem:[#allocation244_spill] sm:$0xff] %v16074_v43  ;;  %v16090_v47 = vand.u32 4294901760, %v12795_v4  ;;  %v16093_v1 = vand.u32 4294901760, %v16074_v43 }
 0x281   : > { %21773 = vst [vmem:[#allocation245_spill] sm:$0xff] %v16083_v58  ;;  %21774 = vst [vmem:[#allocation246_spill] sm:$0xff] %v16086_v44  ;;  %v16098_v2 = vsub.f32 %v12794_v48, %v16083_v58  ;;  %v2153_v27 = vsub.f32 %v16068_v56, %v16086_v44  ;;  %v21786_v48 = vand.u32 4294901760, %v21768_v7 }
 0x282   : > { %21777 = vst [vmem:[#allocation247_spill] sm:$0xff] %v16090_v47  ;;  %21778 = vst [vmem:[#allocation248_spill] sm:$0xff] %v16093_v1  ;;  %v16109_v12 = vsub.f32 %v12795_v4, %v16090_v47  ;;  %v2147_v25 = vsub.f32 %v16074_v43, %v16093_v1  ;;  %v21789_v4 = vand.u32 4294901760, %v21775_v9  ;;  %v21822_v43 = vld [vmem:[#allocation118_spill] sm:$0xff] }
 0x283   : > { %21781 = vst [vmem:[#allocation249_spill] sm:$0xff] %v16098_v2  ;;  %v16118_v58 = vsub.f32 %v21768_v7, %v21786_v48  ;;  %v16121_v44 = vand.u32 4294901760, %v16098_v2  ;;  %v21792_v7 = vand.u32 4294901760, %v21779_v53  ;;  %v21835_v52 = vand.u32 4294901760, %v21822_v43 }
 0x284   : > { %21784 = vst [vmem:[#allocation250_spill] sm:$0xff] %v16109_v12  ;;  %v16131_v56 = vsub.f32 %v21775_v9, %v21789_v4  ;;  %v2148_v48 = vand.u32 4294901760, %v2147_v25  ;;  %v16139_v1 = vand.u32 4294901760, %v16109_v12  ;;  %v2154_v4 = vand.u32 4294901760, %v2153_v27  ;;  %v21808_v27 = vld [vmem:[#allocation158_spill] sm:$0xff] }
 0x285   : > { %21787 = vst [vmem:[#allocation252_spill] sm:$0xff] %v16121_v44  ;;  %v16144_v33 = vsub.f32 %v21779_v53, %v21792_v7  ;;  %v2169_v9 = vsub.f32 %v16098_v2, %v16121_v44  ;;  %v16156_v25 = vsub.f32 %v21783_v38, %v21794_v21  ;;  %v21797_v53 = vld [vmem:[#allocation141_spill] sm:$0xff]  ;;  %v3653_v44 = vand.u32 4294901760, %v16064_v20  ;;  %v21809_v21 = vld [vmem:[#allocation200_spill] sm:$0xff] }
 0x286   : > { %21791 = vst [vmem:[#allocation253_spill] sm:$0xff] %v16139_v1  ;;  %2149 = vmatprep.mubr.f32.mxu1 %v2148_v48  ;;  %3495 = vmatprep.mubr.f32.mxu0 %v2148_v48  ;;  %v2163_v7 = vsub.f32 %v16109_v12, %v16139_v1  ;;  %v21799_v2 = vld [vmem:[#allocation145_spill] sm:$0xff]  ;;  %v21804_v1 = vld [vmem:[#allocation198_spill] sm:$0xff]  ;;  %v21805_v12 = vld [vmem:[#allocation199_spill] sm:$0xff]  ;;  %v3665_v20 = vand.u32 4294901760, %v16080_v32  ;;  %v2337_v62 = vand.u32 4294901760, %v16118_v58 }
 0x287   : > { %2155 = vmatmul.mubr.f32.vlgmr.msra.gmra.mrb[0].mxu1 %v2154_v4  ;;  %3501 = vmatmul.mubr.f32.vlgmr.msra.gmra.mrb[4].mxu0 %v2154_v4  ;;  %v21807_v4 = vld [vmem:[#allocation157_spill] sm:$0xff]  ;;  %v2170_v47 = vand.u32 4294901760, %v2169_v9  ;;  %v21812_v48 = vld [vmem:[#allocation86_spill] sm:$0xff]  ;;  %v2343_v18 = vand.u32 4294901760, %v16144_v33  ;;  %v3689_v29 = vand.u32 4294901760, %v16156_v25  ;;  %v3706_v25 = vsub.f32 %v21822_v43, %v21835_v52 }
 0x288   : > { %11323 = vmatpush1.bf16.msra.mxu1 %v21804_v1  ;;  %11707 = vmatpush1.bf16.msra.mxu0 %v21805_v12  ;;  %v2164_v22 = vand.u32 4294901760, %v2163_v7  ;;  %v21813_v7 = vld [vmem:[#allocation163_spill] sm:$0xff]  ;;  %v21819_v32 = vld [vmem:[#allocation117_spill] sm:$0xff]  ;;  %v11726_v58 = vpack.c.bf16 %v3665_v20, %v3653_v44  ;;  %v20546_v52 = vand.u32 4294901760, %v21843_v51  ;;  %v21857_v44 = vld [vmem:[#allocation240_spill] sm:$0xff] }
 0x289   : > { %11325 = vmatprep.subr.bf16.mxu1 %v21809_v21  ;;  %11709 = vmatprep.subr.bf16.mxu0 %v21810_v30  ;;  %v21815_v21 = vld [vmem:[#allocation115_spill] sm:$0xff]  ;;  %v21818_v30 = vld [vmem:[#allocation116_spill] sm:$0xff]  ;;  %v21821_v9 = vld [vmem:[#allocation205_spill] sm:$0xff]  ;;  %v11730_v6 = vpack.c.bf16 %v3689_v29, %v3677_v39  ;;  %v3707_v14 = vand.u32 4294901760, %v3706_v25 }
 0x28a   : > { %2165 = vmatprep.mubr.f32.mxu1 %v2164_v22  ;;  %3511 = vmatprep.mubr.f32.mxu0 %v2164_v22  ;;  %v21817_v1 = vld [vmem:[#allocation203_spill] sm:$0xff] }
 0x28b   : > { %2171 = vmatmul.mubr.f32.gmra.mrb[2].mxu1 %v2170_v47  ;;  %3517 = vmatmul.mubr.f32.gmra.mrb[6].mxu0 %v2170_v47  ;;  %v3671_v47 = vand.u32 4294901760, %v16126_v3  ;;  %v21829_v12 = vld [vmem:[#allocation207_spill] sm:$0xff]  ;;  %v21832_v3 = vand.u32 4294901760, %v21815_v21 }
 0x28c   : > { %11327 = vmatpush1.bf16.msra.mxu1 %v21816_v50  ;;  %11711 = vmatpush1.bf16.msra.mxu0 %v21817_v1  ;;  %v2325_v1 = vand.u32 4294901760, %v16105_v49  ;;  %v21831_v49 = vld [vmem:[#allocation209_spill] sm:$0xff]  ;;  %v21846_v22 = vld [vmem:[#allocation127_spill] sm:$0xff] }
 0x28d   : > { %2562 = vmatprep.mubr.f32.mxu1 %v16059_v15  ;;  %3908 = vmatprep.mubr.f32.mxu0 %v16059_v15  ;;  %v2331_v15 = vand.u32 4294901760, %v16136_v46  ;;  %v21834_v46 = vand.u32 4294901760, %v21819_v32  ;;  %v21845_v50 = vld [vmem:[#allocation213_spill] sm:$0xff]  ;;  %v21854_v25 = vld [vmem:[#allocation79_spill] sm:$0xff] }
 0x28e   : > { %11329 = vmatprep.subr.bf16.mxu1 %v21820_v60  ;;  %11713 = vmatprep.subr.bf16.mxu0 %v21821_v9  ;;  %v3683_v60 = vand.u32 4294901760, %v16131_v56  ;;  %v21828_v9 = vld [vmem:[#allocation206_spill] sm:$0xff]  ;;  %v2348_v56 = vsub.f32 %v21815_v21, %v21832_v3  ;;  %v11344_v20 = vpack.c.bf16 %v2337_v62, %v2325_v1 }
 0x28f   : > { %v3694_v33 = vsub.f32 %v21819_v32, %v21834_v46  ;;  %v21839_v3 = vld [vmem:[#allocation122_spill] sm:$0xff]  ;;  %v11346_v54 = vpack.c.bf16 %v2343_v18, %v2331_v15 }
 0x290   : > { %11331 = vmatpush1.bf16.msra.mxu1 %v21828_v9  ;;  %11715 = vmatpush1.bf16.msra.mxu0 %v21829_v12  ;;  %v21833_v9 = vand.u32 4294901760, %v21818_v30  ;;  %v11728_v46 = vpack.c.bf16 %v3683_v60, %v3671_v47  ;;  %v2349_v62 = vand.u32 4294901760, %v2348_v56  ;;  %v21851_v15 = vand.u32 4294901760, %v21839_v3  ;;  %v21853_v56 = vld [vmem:[#allocation131_spill] sm:$0xff] }
 0x291   : > { %11333 = vmatprep.subr.bf16.mxu1 %v21830_v61  ;;  %11717 = vmatprep.subr.bf16.mxu0 %v21831_v49  ;;  %v21836_v61 = vld [vmem:[#allocation120_spill] sm:$0xff]  ;;  %v3695_v45 = vand.u32 4294901760, %v3694_v33  ;;  %v2384_v33 = vsub.f32 %v21843_v51, %v20546_v52 }
 0x292   : > { %v2360_v12 = vsub.f32 %v21818_v30, %v21833_v9  ;;  %v21837_v49 = vld [vmem:[#allocation72_spill] sm:$0xff]  ;;  %v21841_v9 = vld [vmem:[#allocation210_spill] sm:$0xff]  ;;  %v3712_v47 = vsub.f32 %v21839_v3, %v21851_v15 }
 0x293   : > { %v21849_v29 = vand.u32 4294901760, %v21837_v49  ;;  %v2385_v13 = vand.u32 4294901760, %v2384_v33 }
 0x294   : > { %11335 = vmatpush1.bf16.msra.mxu1 %v21841_v9  ;;  %11719 = vmatpush1.bf16.msra.mxu0 %v21842_v17  ;;  %v2361_v1 = vand.u32 4294901760, %v2360_v12  ;;  %v21848_v9 = vand.u32 4294901760, %v21836_v61 }
 0x295   : > { %11337 = vmatprep.subr.bf16.mxu1 %v21844_v55  ;;  %11721 = vmatprep.subr.bf16.mxu0 %v21845_v50  ;;  %v2366_v39 = vsub.f32 %v21837_v49, %v21849_v29  ;;  %v21850_v55 = vand.u32 4294901760, %v21838_v63  ;;  %v21852_v50 = vand.u32 4294901760, %v21840_v37  ;;  %v21855_v29 = vld [vmem:[#allocation132_spill] sm:$0xff] }
 0x296   : > { %v2354_v17 = vsub.f32 %v21836_v61, %v21848_v9  ;;  %v20557_v9 = vand.u32 4294901760, %v21862_v0  ;;  %v11348_v19 = vpack.c.bf16 %v2361_v1, %v2349_v62  ;;  %v21866_v62 = vand.u32 4294901760, %v21855_v29 }
 0x297   : > { %v3700_v18 = vsub.f32 %v21838_v63, %v21850_v55  ;;  %v2372_v60 = vsub.f32 %v21840_v37, %v21852_v50  ;;  %v21859_v50 = vand.u32 4294901760, %v21846_v22  ;;  %v11732_v55 = vpack.c.bf16 %v3707_v14, %v3695_v45 }
 0x298   : > { %11339 = vmatpush1.bf16.msra.mxu1 %v16047_v31  ;;  %11723 = vmatpush1.bf16.msra.mxu0 %v16054_v16  ;;  %v21860_v16 = vand.u32 4294901760, %v21847_v23  ;;  %v2355_v11 = vand.u32 4294901760, %v2354_v17  ;;  %v2367_v15 = vand.u32 4294901760, %v2366_v39  ;;  %v3724_v14 = vsub.f32 %v21855_v29, %v21866_v62 }
 0x299   : > { %11341 = vmatprep.subr.bf16.mxu1 %v21857_v44  ;;  %11725 = vmatprep.subr.bf16.mxu0 %v21858_v26  ;;  %v3718_v31 = vsub.f32 %v21846_v22, %v21859_v50  ;;  %v3701_v24 = vand.u32 4294901760, %v3700_v18  ;;  %v3713_v44 = vand.u32 4294901760, %v3712_v47  ;;  %v2373_v41 = vand.u32 4294901760, %v2372_v60  ;;  %v21864_v50 = vld [vmem:[#allocation251_spill] sm:$0xff] }
 0x29a   : > { %v3730_v12 = vsub.f32 %v21847_v23, %v21860_v16  ;;  %v21863_v26 = vand.u32 4294901760, %v21853_v56  ;;  %v21865_v16 = vand.u32 4294901760, %v21854_v25  ;;  %v21867_v45 = vand.u32 4294901760, %v21856_v40 }
 0x29b   : > { %v3719_v17 = vand.u32 4294901760, %v3718_v31  ;;  %v21868_v18 = vand.u32 4294901760, %v21861_v10  ;;  %v2408_v47 = vsub.f32 %v21862_v0, %v20557_v9  ;;  %v11350_v60 = vpack.c.bf16 %v2367_v15, %v2355_v11  ;;  %v21878_v15 = vld [vmem:[#allocation223_spill] sm:$0xff]  ;;  %v21918_v9 = vld [vmem:[#allocation245_spill] sm:$0xff] }
 0x29c   : > { %v2378_v38 = vsub.f32 %v21853_v56, %v21863_v26  ;;  %11343 = vmatpush1.bf16.msra.mxu1 %v21864_v50  ;;  %11727 = vmatpush1.bf16.msra.mxu0 %v11726_v58  ;;  %v2390_v52 = vsub.f32 %v21854_v25, %v21865_v16  ;;  %v3736_v1 = vsub.f32 %v21856_v40, %v21867_v45  ;;  %v3731_v39 = vand.u32 4294901760, %v3730_v12 }
 0x29d   : > { %11345 = vmatprep.subr.bf16.mxu1 %v11344_v20  ;;  %11729 = vmatprep.subr.bf16.mxu0 %v11728_v46  ;;  %v2396_v58 = vsub.f32 %v21861_v10, %v21868_v18  ;;  %v11734_v33 = vpack.c.bf16 %v3713_v44, %v3701_v24  ;;  %v3725_v16 = vand.u32 4294901760, %v3724_v14  ;;  %v11352_v20 = vpack.c.bf16 %v2385_v13, %v2373_v41  ;;  %v21869_v24 = vld [vmem:[#allocation214_spill] sm:$0xff]  ;;  %v21872_v13 = vld [vmem:[#allocation217_spill] sm:$0xff]  ;;  %v21874_v41 = vld [vmem:[#allocation219_spill] sm:$0xff] }
 0x29e   : > { %v2379_v26 = vand.u32 4294901760, %v2378_v38  ;;  %v2391_v50 = vand.u32 4294901760, %v2390_v52  ;;  %v3737_v62 = vand.u32 4294901760, %v3736_v1  ;;  %v11736_v46 = vpack.c.bf16 %v3731_v39, %v3719_v17  ;;  %v21875_v38 = vld [vmem:[#allocation220_spill] sm:$0xff]  ;;  %v21876_v52 = vld [vmem:[#allocation221_spill] sm:$0xff]  ;;  %v21881_v1 = vld [vmem:[#allocation226_spill] sm:$0xff] }
 0x29f   : > { %v2397_v12 = vand.u32 4294901760, %v2396_v58  ;;  %v2409_v31 = vand.u32 4294901760, %v2408_v47  ;;  %v21879_v44 = vld [vmem:[#allocation224_spill] sm:$0xff]  ;;  %v21880_v14 = vld [vmem:[#allocation225_spill] sm:$0xff]  ;;  %v21882_v17 = vld [vmem:[#allocation227_spill] sm:$0xff] }
 0x2a0   : > { %11347 = vmatpush1.bf16.msra.mxu1 %v11346_v54  ;;  %11731 = vmatpush1.bf16.msra.mxu0 %v11730_v6  ;;  %v11354_v45 = vpack.c.bf16 %v2391_v50, %v2379_v26  ;;  %v11738_v18 = vpack.c.bf16 %v3737_v62, %v3725_v16  ;;  %v21870_v54 = vld [vmem:[#allocation215_spill] sm:$0xff]  ;;  %v21873_v6 = vld [vmem:[#allocation218_spill] sm:$0xff]  ;;  %v21883_v39 = vld [vmem:[#allocation228_spill] sm:$0xff] }
 0x2a1   : > { %11349 = vmatprep.subr.bf16.mxu1 %v11348_v19  ;;  %11733 = vmatprep.subr.bf16.mxu0 %v11732_v55  ;;  %v11356_v11 = vpack.c.bf16 %v2409_v31, %v2397_v12  ;;  %v21871_v19 = vld [vmem:[#allocation216_spill] sm:$0xff]  ;;  %v21877_v55 = vld [vmem:[#allocation222_spill] sm:$0xff]  ;;  %v21884_v58 = vld [vmem:[#allocation229_spill] sm:$0xff] }
 0x2a2   : > { %v21885_v47 = vld [vmem:[#allocation230_spill] sm:$0xff]  ;;  %v21888_v26 = vld [vmem:[#allocation233_spill] sm:$0xff]  ;;  %v21890_v16 = vld [vmem:[#allocation235_spill] sm:$0xff] }
 0x2a3   : > { %v21889_v50 = vld [vmem:[#allocation234_spill] sm:$0xff]  ;;  %v21891_v62 = vld [vmem:[#allocation236_spill] sm:$0xff]  ;;  %v21894_v12 = vld [vmem:[#allocation15_spill] sm:$0xff] }
 0x2a4   : > { %11351 = vmatpush1.bf16.msra.mxu1 %v11350_v60  ;;  %11735 = vmatpush1.bf16.msra.mxu0 %v11734_v33  ;;  %v21886_v60 = vld [vmem:[#allocation231_spill] sm:$0xff]  ;;  %v21887_v33 = vld [vmem:[#allocation232_spill] sm:$0xff] }
 0x2a5   : > { %11353 = vmatprep.subr.bf16.mxu1 %v11352_v20  ;;  %11737 = vmatprep.subr.bf16.mxu0 %v11736_v46  ;;  %v21892_v20 = vld [vmem:[#allocation237_spill] sm:$0xff]  ;;  %v21893_v46 = vld [vmem:[#allocation238_spill] sm:$0xff]  ;;  %v21895_v31 = vld [vmem:[#allocation16_spill] sm:$0xff] }
 0x2a8   : > { %11355 = vmatpush1.bf16.msra.mxu1 %v11354_v45  ;;  %11739 = vmatpush1.bf16.msra.mxu0 %v11738_v18  ;;  %v11384_v45 = vpack.c.bf16 %v21895_v31, %v21894_v12  ;;  %v21896_v18 = vld [vmem:[#allocation17_spill] sm:$0xff] }
 0x2a9   : > { %11357 = vmatprep.subr.bf16.mxu1 %v11356_v11  ;;  %11741 = vmatprep.subr.bf16.mxu0 %v21869_v24  ;;  %v21897_v11 = vld [vmem:[#allocation18_spill] sm:$0xff] }
 0x2aa   : > { %v11768_v24 = vpack.c.bf16 %v21897_v11, %v21896_v18 }
 0x2ac   : > { %11359 = vmatpush1.bf16.msra.mxu1 %v21870_v54  ;;  %11743 = vmatpush1.bf16.msra.mxu0 %v21871_v19  ;;  %v21898_v54 = vld [vmem:[#allocation239_spill] sm:$0xff]  ;;  %v21899_v19 = vld [vmem:[#allocation196_spill] sm:$0xff] }
 0x2ad   : > { %11361 = vmatprep.subr.bf16.mxu1 %v21872_v13  ;;  %11745 = vmatprep.subr.bf16.mxu0 %v21873_v6  ;;  %v21900_v13 = vld [vmem:[#allocation43_spill] sm:$0xff]  ;;  %v21901_v6 = vld [vmem:[#allocation44_spill] sm:$0xff] }
 0x2b0   : > { %11363 = vmatpush1.bf16.msra.mxu1 %v21874_v41  ;;  %11747 = vmatpush1.bf16.msra.mxu0 %v21875_v38  ;;  %v11386_v41 = vpack.c.bf16 %v21901_v6, %v21900_v13  ;;  %v21902_v38 = vld [vmem:[#allocation46_spill] sm:$0xff] }
 0x2b1   : > { %11365 = vmatprep.subr.bf16.mxu1 %v21876_v52  ;;  %11749 = vmatprep.subr.bf16.mxu0 %v21877_v55  ;;  %v21903_v52 = vld [vmem:[#allocation47_spill] sm:$0xff] }
 0x2b2   : > { %v11770_v55 = vpack.c.bf16 %v21903_v52, %v21902_v38 }
 0x2b4   : > { %11367 = vmatpush1.bf16.msra.mxu1 %v21878_v15  ;;  %11751 = vmatpush1.bf16.msra.mxu0 %v21879_v44  ;;  %v21904_v15 = vld [vmem:[#allocation49_spill] sm:$0xff] }
 0x2b5   : > { %11369 = vmatprep.subr.bf16.mxu1 %v21880_v14  ;;  %11753 = vmatprep.subr.bf16.mxu0 %v21881_v1  ;;  %v21905_v44 = vld [vmem:[#allocation21_spill] sm:$0xff]  ;;  %v21906_v1 = vld [vmem:[#allocation23_spill] sm:$0xff] }
 0x2b6   : > { %v11388_v14 = vpack.c.bf16 %v21905_v44, %v21904_v15 }
 0x2b8   : > { %11371 = vmatpush1.bf16.msra.mxu1 %v21882_v17  ;;  %11755 = vmatpush1.bf16.msra.mxu0 %v21883_v39  ;;  %v21907_v17 = vld [vmem:[#allocation22_spill] sm:$0xff] }
 0x2b9   : > { %11373 = vmatprep.subr.bf16.mxu1 %v21884_v58  ;;  %11757 = vmatprep.subr.bf16.mxu0 %v21885_v47  ;;  %v11772_v39 = vpack.c.bf16 %v21907_v17, %v21906_v1  ;;  %v21908_v58 = vld [vmem:[#allocation197_spill] sm:$0xff]  ;;  %v21909_v47 = vld [vmem:[#allocation247_spill] sm:$0xff] }
 0x2ba   : > { %v21933_v17 = vld [vmem:[#allocation93_spill] sm:$0xff] }
 0x2bc   : > { %11375 = vmatpush1.bf16.msra.mxu1 %v21886_v60  ;;  %11759 = vmatpush1.bf16.msra.mxu0 %v21887_v33  ;;  %v21910_v60 = vld [vmem:[#allocation24_spill] sm:$0xff]  ;;  %v21911_v33 = vld [vmem:[#allocation30_spill] sm:$0xff] }
 0x2bd   : > { %11377 = vmatprep.subr.bf16.mxu1 %v21888_v26  ;;  %11761 = vmatprep.subr.bf16.mxu0 %v21889_v50  ;;  %v11390_v26 = vpack.c.bf16 %v21911_v33, %v21910_v60  ;;  %v21912_v50 = vld [vmem:[#allocation29_spill] sm:$0xff]  ;;  %v21929_v33 = vld [vmem:[#allocation84_spill] sm:$0xff] }
 0x2c0   : > { %11379 = vmatpush1.bf16.msra.mxu1 %v21890_v16  ;;  %11763 = vmatpush1.bf16.msra.mxu0 %v21891_v62  ;;  %v21913_v16 = vld [vmem:[#allocation32_spill] sm:$0xff] }
 0x2c1   : > { %11381 = vmatprep.subr.bf16.mxu1 %v21892_v20  ;;  %11765 = vmatprep.subr.bf16.mxu0 %v21893_v46  ;;  %v11774_v62 = vpack.c.bf16 %v21913_v16, %v21912_v50  ;;  %v21914_v20 = vld [vmem:[#allocation34_spill] sm:$0xff] }
 0x2c2   : > { %v21915_v46 = vld [vmem:[#allocation38_spill] sm:$0xff] }
 0x2c4   : > { %11383 = vmatpush1.bf16.msra.mxu1 %v21898_v54  ;;  %11767 = vmatpush1.bf16.msra.mxu0 %v21899_v19  ;;  %v21917_v54 = vld [vmem:[#allocation41_spill] sm:$0xff] }
 0x2c5   : > { %11385 = vmatprep.subr.bf16.mxu1 %v11384_v45  ;;  %11769 = vmatprep.subr.bf16.mxu0 %v11768_v24  ;;  %v11392_v45 = vpack.c.bf16 %v21915_v46, %v21914_v20  ;;  %v21916_v24 = vld [vmem:[#allocation37_spill] sm:$0xff]  ;;  %v21924_v46 = vld [vmem:[#allocation71_spill] sm:$0xff] }
 0x2c6   : > { %v11776_v19 = vpack.c.bf16 %v21917_v54, %v21916_v24  ;;  %v21925_v20 = vld [vmem:[#allocation75_spill] sm:$0xff]  ;;  %v21926_v54 = vld [vmem:[#allocation78_spill] sm:$0xff] }
 0x2c7   : > { %2564 = vmatmul.mubr.f32.vlgmr.msra.gmra.mrb[0].mxu1 %v21908_v58  ;;  %3910 = vmatmul.mubr.f32.vlgmr.msra.gmra.mrb[4].mxu0 %v21908_v58  ;;  %v11396_v50 = vpack.c.bf16 %v21925_v20, %v21924_v46  ;;  %v21927_v24 = vld [vmem:[#allocation83_spill] sm:$0xff]  ;;  %v21935_v20 = vld [vmem:[#allocation50_spill] sm:$0xff]  ;;  %v21937_v46 = vld [vmem:[#allocation52_spill] sm:$0xff] }
 0x2c8   : > { %2570 = vmatprep.mubr.f32.mxu1 %v21909_v47  ;;  %11387 = vmatpush1.bf16.msra.mxu1 %v11386_v41  ;;  %v21919_v41 = vld [vmem:[#allocation244_spill] sm:$0xff] }
 0x2c9   : > { %3916 = vmatprep.mubr.f32.mxu0 %v21909_v47  ;;  %11771 = vmatpush1.bf16.msra.mxu0 %v11770_v55  ;;  %v21920_v47 = vld [vmem:[#allocation40_spill] sm:$0xff]  ;;  %v21921_v55 = vld [vmem:[#allocation58_spill] sm:$0xff] }
 0x2ca   : > { %11389 = vmatprep.subr.bf16.mxu1 %v11388_v14  ;;  %11773 = vmatprep.subr.bf16.mxu0 %v11772_v39  ;;  %v11394_v58 = vpack.c.bf16 %v21921_v55, %v21920_v47  ;;  %v21922_v14 = vld [vmem:[#allocation62_spill] sm:$0xff]  ;;  %v21923_v39 = vld [vmem:[#allocation65_spill] sm:$0xff]  ;;  %v21932_v47 = vld [vmem:[#allocation92_spill] sm:$0xff] }
 0x2cb   : > { %2572 = vmatmul.mubr.f32.gmra.mrb[2].mxu1 %v21918_v9  ;;  %3918 = vmatmul.mubr.f32.gmra.mrb[6].mxu0 %v21918_v9  ;;  %v11778_v16 = vpack.c.bf16 %v21923_v39, %v21922_v14  ;;  %v11780_v9 = vpack.c.bf16 %v21927_v24, %v21926_v54  ;;  %v21931_v55 = vld [vmem:[#allocation90_spill] sm:$0xff]  ;;  %v11400_v39 = vpack.c.bf16 %v21933_v17, %v21932_v47  ;;  %v21945_v47 = vld [vmem:[#allocation59_spill] sm:$0xff] }
 0x2cc   : > { %11391 = vmatpush1.bf16.msra.mxu1 %v11390_v26  ;;  %2772 = vmatprep.mubr.f32.mxu1 %v21919_v41  ;;  %v21928_v26 = vld [vmem:[#allocation89_spill] sm:$0xff]  ;;  %v21934_v14 = vld [vmem:[#allocation94_spill] sm:$0xff] }
 0x2cd   : > { %11775 = vmatpush1.bf16.msra.mxu0 %v11774_v62  ;;  %4118 = vmatprep.mubr.f32.mxu0 %v21919_v41  ;;  %v11398_v60 = vpack.c.bf16 %v21929_v33, %v21928_v26  ;;  %v21930_v62 = vld [vmem:[#allocation61_spill] sm:$0xff]  ;;  %v21941_v26 = vld [vmem:[#allocation100_spill] sm:$0xff] }
 0x2ce   : > { %11393 = vmatprep.subr.bf16.mxu1 %v11392_v45  ;;  %11777 = vmatprep.subr.bf16.mxu0 %v11776_v19  ;;  %v11782_v41 = vpack.c.bf16 %v21931_v55, %v21930_v62  ;;  %v11784_v45 = vpack.c.bf16 %v21935_v20, %v21934_v14  ;;  %v21936_v19 = vld [vmem:[#allocation96_spill] sm:$0xff]  ;;  %v21939_v33 = vld [vmem:[#allocation97_spill] sm:$0xff] }
 0x2cf   : > { %v11402_v24 = vpack.c.bf16 %v21937_v46, %v21936_v19  ;;  %v21942_v55 = vld [vmem:[#allocation101_spill] sm:$0xff]  ;;  %v21943_v62 = vld [vmem:[#allocation56_spill] sm:$0xff] }
 0x2d0   : > { %11395 = vmatpush1.bf16.msra.mxu1 %v11394_v58  ;;  %v21938_v58 = vld [vmem:[#allocation53_spill] sm:$0xff]  ;;  %v11788_v17 = vpack.c.bf16 %v21943_v62, %v21942_v55  ;;  %v21949_v19 = vld [vmem:[#allocation108_spill] sm:$0xff] }
 0x2d1   : > { %11779 = vmatpush1.bf16.msra.mxu0 %v11778_v16  ;;  %11397 = vmatprep.subr.bf16.mxu1 %v11396_v50  ;;  %v11786_v16 = vpack.c.bf16 %v21939_v33, %v21938_v58  ;;  %v21940_v50 = vld [vmem:[#allocation99_spill] sm:$0xff]  ;;  %v21947_v46 = vld [vmem:[#allocation105_spill] sm:$0xff] }
 0x2d2   : > { %11781 = vmatprep.subr.bf16.mxu0 %v11780_v9  ;;  %v11404_v54 = vpack.c.bf16 %v21941_v26, %v21940_v50  ;;  %v21944_v9 = vld [vmem:[#allocation103_spill] sm:$0xff]  ;;  %v21950_v33 = vld [vmem:[#allocation109_spill] sm:$0xff]  ;;  %v21953_v50 = vld [vmem:[#allocation66_spill] sm:$0xff] }
 0x2d3   : > { %v11406_v20 = vpack.c.bf16 %v21945_v47, %v21944_v9  ;;  %v21951_v58 = vld [vmem:[#allocation63_spill] sm:$0xff]  ;;  %v21955_v47 = vld [vmem:[#allocation113_spill] sm:$0xff] }
 0x2d4   : > { %11399 = vmatpush1.bf16.msra.mxu1 %v11398_v60  ;;  %v21946_v60 = vld [vmem:[#allocation104_spill] sm:$0xff]  ;;  %v11792_v26 = vpack.c.bf16 %v21951_v58, %v21950_v33 }
 0x2d5   : > { %11783 = vmatpush1.bf16.msra.mxu0 %v11782_v41  ;;  %11401 = vmatprep.subr.bf16.mxu1 %v11400_v39  ;;  %v11790_v41 = vpack.c.bf16 %v21947_v46, %v21946_v60  ;;  %v21948_v39 = vld [vmem:[#allocation107_spill] sm:$0xff] }
 0x2d6   : > { %11785 = vmatprep.subr.bf16.mxu0 %v11784_v45  ;;  %v11408_v14 = vpack.c.bf16 %v21949_v19, %v21948_v39  ;;  %v21952_v45 = vld [vmem:[#allocation111_spill] sm:$0xff]  ;;  %v11796_v19 = vpack.c.bf16 %v21822_v43, %v21819_v32 }
 0x2d7   : > { %v11410_v62 = vpack.c.bf16 %v21953_v50, %v21952_v45 }
 0x2d8   : > { %11403 = vmatpush1.bf16.msra.mxu1 %v11402_v24  ;;  %v21954_v24 = vld [vmem:[#allocation112_spill] sm:$0xff] }
 0x2d9   : > { %11787 = vmatpush1.bf16.msra.mxu0 %v11786_v16  ;;  %11405 = vmatprep.subr.bf16.mxu1 %v11404_v54  ;;  %v11794_v16 = vpack.c.bf16 %v21955_v47, %v21954_v24  ;;  %v11412_v54 = vpack.c.bf16 %v21818_v30, %v21815_v21 }
 0x2da   : > { %11789 = vmatprep.subr.bf16.mxu0 %v11788_v17  ;;  %v11414_v17 = vpack.c.bf16 %v21837_v49, %v21836_v61 }
 0x2dc   : > { %11407 = vmatpush1.bf16.msra.mxu1 %v11406_v20  ;;  %v11798_v20 = vpack.c.bf16 %v21839_v3, %v21838_v63 }
 0x2dd   : > { %11791 = vmatpush1.bf16.msra.mxu0 %v11790_v41  ;;  %11409 = vmatprep.subr.bf16.mxu1 %v11408_v14  ;;  %v11416_v14 = vpack.c.bf16 %v21843_v51, %v21840_v37  ;;  %v11800_v41 = vpack.c.bf16 %v21847_v23, %v21846_v22 }
 0x2de   : > { %11793 = vmatprep.subr.bf16.mxu0 %v11792_v26  ;;  %v11418_v26 = vpack.c.bf16 %v21854_v25, %v21853_v56 }
 0x2e0   : > { %11411 = vmatpush1.bf16.msra.mxu1 %v11410_v62  ;;  %v11802_v62 = vpack.c.bf16 %v21856_v40, %v21855_v29  ;;  %v21963_v40 = vld [vmem:[#allocation144_spill] sm:$0xff] }
 0x2e1   : > { %11795 = vmatpush1.bf16.msra.mxu0 %v11794_v16  ;;  %11413 = vmatprep.subr.bf16.mxu1 %v11412_v54  ;;  %v11420_v16 = vpack.c.bf16 %v21862_v0, %v21861_v10  ;;  %v21957_v54 = vld [vmem:[#allocation137_spill] sm:$0xff]  ;;  %v21964_v29 = vpack.c.bf16 %v21799_v2, %v21963_v40 }
 0x2e2   : > { %11797 = vmatprep.subr.bf16.mxu0 %v11796_v19  ;;  %v21956_v19 = vld [vmem:[#allocation81_spill] sm:$0xff] }
 0x2e3   : > { %v21958_v51 = vpack.c.bf16 %v21956_v19, %v21957_v54 }
 0x2e4   : > { %11415 = vmatpush1.bf16.msra.mxu1 %v11414_v17  ;;  %v21959_v17 = vld [vmem:[#allocation139_spill] sm:$0xff] }
 0x2e5   : > { %11799 = vmatpush1.bf16.msra.mxu0 %v11798_v20  ;;  %11417 = vmatprep.subr.bf16.mxu1 %v11416_v14  ;;  %v21960_v23 = vpack.c.bf16 %v21795_v59, %v21959_v17  ;;  %v21961_v20 = vld [vmem:[#allocation35_spill] sm:$0xff] }
 0x2e6   : > { %11801 = vmatprep.subr.bf16.mxu0 %v11800_v41  ;;  %v21962_v14 = vpack.c.bf16 %v21797_v53, %v21961_v20  ;;  %v21965_v41 = vld [vmem:[#allocation146_spill] sm:$0xff] }
 0x2e8   : > { %11419 = vmatpush1.bf16.msra.mxu1 %v11418_v26  ;;  %v21966_v26 = vpack.c.bf16 %v21801_v28, %v21965_v41 }
 0x2e9   : > { %11803 = vmatpush1.bf16.msra.mxu0 %v11802_v62  ;;  %11421 = vmatprep.subr.bf16.mxu1 %v11420_v16  ;;  %v21967_v62 = vld [vmem:[#allocation150_spill] sm:$0xff] }
 0x2ea   : > { %11805 = vmatprep.subr.bf16.mxu0 %v21958_v51  ;;  %v21968_v16 = vpack.c.bf16 %v21803_v8, %v21967_v62  ;;  %v21969_v51 = vpack.c.bf16 %v21718_v42, %v21806_v5  ;;  %v21978_v5 = vld [vmem:[#allocation164_spill] sm:$0xff] }
 0x2ec   : > { %11423 = vmatpush1.bf16.msra.mxu1 %v21960_v23  ;;  %v21970_v23 = vpack.c.bf16 %v21808_v27, %v21807_v4  ;;  %v21981_v4 = vld [vmem:[#allocation165_spill] sm:$0xff] }
 0x2ed   : > { %11807 = vmatpush1.bf16.msra.mxu0 %v21962_v14  ;;  %11425 = vmatprep.subr.bf16.mxu1 %v21964_v29  ;;  %v21971_v14 = vld [vmem:[#allocation3_spill] sm:$0xff]  ;;  %v21973_v29 = vpack.c.bf16 %v21811_v36, %v21726_v35 }
 0x2ee   : > { %11809 = vmatprep.subr.bf16.mxu0 %v21966_v26  ;;  %v21972_v2 = vpack.c.bf16 %v21724_v34, %v21971_v14  ;;  %v21974_v26 = vpack.c.bf16 %v15109_v57, %v21812_v48  ;;  %v21984_v14 = vld [vmem:[#allocation7_spill] sm:$0xff]  ;;  %v21990_v48 = vld [vmem:[#allocation168_spill] sm:$0xff] }
 0x2ef   : > { %v21987_v35 = vld [vmem:[#allocation151_spill] sm:$0xff] }
 0x2f0   : > { %11427 = vmatpush1.bf16.msra.mxu1 %v21968_v16  ;;  %v21975_v16 = vld [vmem:[#allocation162_spill] sm:$0xff] }
 0x2f1   : > { %11811 = vmatpush1.bf16.msra.mxu0 %v21969_v51  ;;  %11429 = vmatprep.subr.bf16.mxu1 %v21970_v23  ;;  %v21976_v42 = vpack.c.bf16 %v21813_v7, %v21975_v16  ;;  %v21977_v51 = vld [vmem:[#allocation88_spill] sm:$0xff]  ;;  %v21980_v23 = vld [vmem:[#allocation166_spill] sm:$0xff] }
 0x2f2   : > { %11813 = vmatprep.subr.bf16.mxu0 %v21972_v2  ;;  %v21979_v27 = vpack.c.bf16 %v21977_v51, %v21978_v5  ;;  %v21982_v34 = vpack.c.bf16 %v21980_v23, %v21981_v4  ;;  %v21983_v2 = vld [vmem:[#allocation167_spill] sm:$0xff]  ;;  %v21993_v16 = vld [vmem:[#allocation170_spill] sm:$0xff]  ;;  %v21996_v5 = vld [vmem:[#allocation172_spill] sm:$0xff] }
 0x2f3   : > { %v21985_v36 = vpack.c.bf16 %v21983_v2, %v21984_v14  ;;  %v21999_v4 = vld [vmem:[#allocation175_spill] sm:$0xff]  ;;  %v22002_v14 = vld [vmem:[#allocation177_spill] sm:$0xff] }
 0x2f4   : > { %11431 = vmatpush1.bf16.msra.mxu1 %v21973_v29  ;;  %v21986_v29 = vld [vmem:[#allocation155_spill] sm:$0xff] }
 0x2f5   : > { %11815 = vmatpush1.bf16.msra.mxu0 %v21974_v26  ;;  %11433 = vmatprep.subr.bf16.mxu1 %v21976_v42  ;;  %v21988_v57 = vpack.c.bf16 %v21986_v29, %v21987_v35  ;;  %v21989_v26 = vld [vmem:[#allocation169_spill] sm:$0xff]  ;;  %v21992_v42 = vld [vmem:[#allocation171_spill] sm:$0xff] }
 0x2f6   : > { %11817 = vmatprep.subr.bf16.mxu0 %v21979_v27  ;;  %v21991_v7 = vpack.c.bf16 %v21989_v26, %v21990_v48  ;;  %v21994_v51 = vpack.c.bf16 %v21992_v42, %v21993_v16  ;;  %v21995_v27 = vld [vmem:[#allocation173_spill] sm:$0xff]  ;;  %v22005_v35 = vld [vmem:[#allocation179_spill] sm:$0xff]  ;;  %v22011_v16 = vld [vmem:[#allocation184_spill] sm:$0xff] }
 0x2f7   : > { %v21997_v23 = vpack.c.bf16 %v21995_v27, %v21996_v5  ;;  %v22008_v48 = vld [vmem:[#allocation181_spill] sm:$0xff]  ;;  %v22014_v5 = vld [vmem:[#allocation187_spill] sm:$0xff] }
 0x2f8   : > { %11435 = vmatpush1.bf16.msra.mxu1 %v21982_v34  ;;  %v21998_v34 = vld [vmem:[#allocation176_spill] sm:$0xff] }
 0x2f9   : > { %11819 = vmatpush1.bf16.msra.mxu0 %v21985_v36  ;;  %11437 = vmatprep.subr.bf16.mxu1 %v21988_v57  ;;  %v22000_v2 = vpack.c.bf16 %v21998_v34, %v21999_v4  ;;  %v22001_v36 = vld [vmem:[#allocation178_spill] sm:$0xff]  ;;  %v22004_v57 = vld [vmem:[#allocation180_spill] sm:$0xff] }
 0x2fa   : > { %11821 = vmatprep.subr.bf16.mxu0 %v21991_v7  ;;  %v22003_v29 = vpack.c.bf16 %v22001_v36, %v22002_v14  ;;  %v22006_v26 = vpack.c.bf16 %v22004_v57, %v22005_v35  ;;  %v22007_v7 = vld [vmem:[#allocation182_spill] sm:$0xff]  ;;  %v22020_v14 = vld [vmem:[#allocation192_spill] sm:$0xff] }
 0x2fb   : > { %v22009_v42 = vpack.c.bf16 %v22007_v7, %v22008_v48  ;;  %v22017_v4 = vld [vmem:[#allocation190_spill] sm:$0xff]  ;;  %v22023_v7 = vld [vmem:[#allocation8_spill] sm:$0xff] }
 0x2fc   : > { %11439 = vmatpush1.bf16.msra.mxu1 %v21994_v51  ;;  %v22010_v51 = vld [vmem:[#allocation185_spill] sm:$0xff] }
 0x2fd   : > { %11823 = vmatpush1.bf16.msra.mxu0 %v21997_v23  ;;  %11441 = vmatprep.subr.bf16.mxu1 %v22000_v2  ;;  %v22012_v27 = vpack.c.bf16 %v22010_v51, %v22011_v16  ;;  %v22013_v23 = vld [vmem:[#allocation188_spill] sm:$0xff]  ;;  %v22016_v2 = vld [vmem:[#allocation191_spill] sm:$0xff] }
 0x2fe   : > { %11825 = vmatprep.subr.bf16.mxu0 %v22003_v29  ;;  %v22015_v34 = vpack.c.bf16 %v22013_v23, %v22014_v5  ;;  %v22018_v36 = vpack.c.bf16 %v22016_v2, %v22017_v4  ;;  %v22019_v29 = vld [vmem:[#allocation194_spill] sm:$0xff]  ;;  %v22026_v23 = vld [vmem:[#allocation28_spill] sm:$0xff]  ;;  %v22092_v4 = vld [vmem:[#allocation189_spill] sm:$0xff] }
 0x2ff   : > { %v22021_v57 = vpack.c.bf16 %v22019_v29, %v22020_v14  ;;  %v22029_v29 = vld [vmem:[#allocation249_spill] sm:$0xff]  ;;  %v22041_v2 = vld [vmem:[#allocation20_spill] sm:$0xff] }
 0x300   : > { %11443 = vmatpush1.bf16.msra.mxu1 %v22006_v26  ;;  %v22022_v26 = vld [vmem:[#allocation14_spill] sm:$0xff]  ;;  %v22038_v14 = vld [vmem:[#allocation69_spill] sm:$0xff] }
 0x301   : > { %11827 = vmatpush1.bf16.msra.mxu0 %v22009_v42  ;;  %11445 = vmatprep.subr.bf16.mxu1 %v22012_v27  ;;  %v22024_v42 = vld [vmem:[#allocation242_spill] sm:$0xff] }
 0x302   : > { %11829 = vmatprep.subr.bf16.mxu0 %v22015_v34  ;;  %v22025_v27 = vld [vmem:[#allocation250_spill] sm:$0xff]  ;;  %v22027_v34 = vld [vmem:[#allocation9_spill] sm:$0xff] }
 0x304   : > { %11447 = vmatpush1.bf16.msra.mxu1 %v22018_v36  ;;  %v22028_v36 = vld [vmem:[#allocation67_spill] sm:$0xff] }
 0x305   : > { %11831 = vmatpush1.bf16.msra.mxu0 %v22021_v57  ;;  %11449 = vmatprep.subr.bf16.mxu1 %v22022_v26  ;;  %v22030_v57 = vld [vmem:[#allocation10_spill] sm:$0xff]  ;;  %v22032_v26 = vld [vmem:[#allocation25_spill] sm:$0xff] }
 0x306   : > { %11833 = vmatprep.subr.bf16.mxu0 %v22023_v7  ;;  %v22031_v7 = vld [vmem:[#allocation248_spill] sm:$0xff] }
 0x307   : > { %2775 = vmatmul.mubr.f32.vlgmr.msra.gmra.mrb[0].mxu1 %v22024_v42 }
 0x308   : > { %4121 = vmatmul.mubr.f32.vlgmr.msra.gmra.mrb[4].mxu0 %v22024_v42  ;;  %2782 = vmatprep.mubr.f32.mxu1 %v22025_v27  ;;  %v22033_v42 = vld [vmem:[#allocation11_spill] sm:$0xff] }
 0x309   : > { %11451 = vmatpush1.bf16.msra.mxu1 %v22026_v23  ;;  %4128 = vmatprep.mubr.f32.mxu0 %v22025_v27  ;;  %v22034_v23 = vld [vmem:[#allocation31_spill] sm:$0xff]  ;;  %v22035_v27 = vld [vmem:[#allocation12_spill] sm:$0xff] }
 0x30a   : > { %11835 = vmatpush1.bf16.msra.mxu0 %v22027_v34  ;;  %11453 = vmatprep.subr.bf16.mxu1 %v22028_v36  ;;  %v22036_v34 = vld [vmem:[#allocation55_spill] sm:$0xff]  ;;  %v22037_v36 = vld [vmem:[#allocation13_spill] sm:$0xff] }
 0x30b   : > { %2785 = vmatmul.mubr.f32.gmra.mrb[2].mxu1 %v22029_v29  ;;  %11837 = vmatprep.subr.bf16.mxu0 %v22030_v57  ;;  %v22039_v57 = vld [vmem:[#allocation19_spill] sm:$0xff] }
 0x30c   : > { %4131 = vmatmul.mubr.f32.gmra.mrb[6].mxu0 %v22029_v29  ;;  %2922 = vmatprep.mubr.f32.mxu1 %v22031_v7  ;;  %v22040_v29 = vld [vmem:[#allocation87_spill] sm:$0xff] }
 0x30d   : > { %11455 = vmatpush1.bf16.msra.mxu1 %v22032_v26  ;;  %4268 = vmatprep.mubr.f32.mxu0 %v22031_v7  ;;  %v22042_v26 = vld [vmem:[#allocation91_spill] sm:$0xff]  ;;  %v22043_v7 = vld [vmem:[#allocation26_spill] sm:$0xff] }
 0x30e   : > { %11839 = vmatpush1.bf16.msra.mxu0 %v22033_v42  ;;  %11457 = vmatprep.subr.bf16.mxu1 %v22034_v23  ;;  %v22044_v42 = vld [vmem:[#allocation95_spill] sm:$0xff] }
 0x30f   : > { %11841 = vmatprep.subr.bf16.mxu0 %v22035_v27  ;;  %v22045_v23 = vld [vmem:[#allocation27_spill] sm:$0xff]  ;;  %v22046_v27 = vld [vmem:[#allocation98_spill] sm:$0xff] }
 0x311   : > { %11459 = vmatpush1.bf16.msra.mxu1 %v22036_v34  ;;  %v22047_v34 = vld [vmem:[#allocation33_spill] sm:$0xff] }
 0x312   : > { %11843 = vmatpush1.bf16.msra.mxu0 %v22037_v36  ;;  %11461 = vmatprep.subr.bf16.mxu1 %v22038_v14  ;;  %v22048_v36 = vld [vmem:[#allocation102_spill] sm:$0xff]  ;;  %v22049_v14 = vld [vmem:[#allocation36_spill] sm:$0xff] }
 0x313   : > { %11845 = vmatprep.subr.bf16.mxu0 %v22039_v57  ;;  %v22050_v57 = vld [vmem:[#allocation106_spill] sm:$0xff] }
 0x315   : > { %11463 = vmatpush1.bf16.msra.mxu1 %v22040_v29  ;;  %v22051_v29 = vld [vmem:[#allocation39_spill] sm:$0xff] }
 0x316   : > { %11847 = vmatpush1.bf16.msra.mxu0 %v22041_v2  ;;  %11465 = vmatprep.subr.bf16.mxu1 %v22042_v26  ;;  %v22052_v2 = vld [vmem:[#allocation110_spill] sm:$0xff] }
 0x317   : > { %11849 = vmatprep.subr.bf16.mxu0 %v22043_v7  ;;  %v22053_v26 = vld [vmem:[#allocation42_spill] sm:$0xff] }
 0x318   : > { %v22054_v7 = vld [vmem:[#allocation114_spill] sm:$0xff] }
 0x319   : > { %11467 = vmatpush1.bf16.msra.mxu1 %v22044_v42  ;;  %v22055_v42 = vld [vmem:[#allocation45_spill] sm:$0xff] }
 0x31a   : > { %11851 = vmatpush1.bf16.msra.mxu0 %v22045_v23  ;;  %11469 = vmatprep.subr.bf16.mxu1 %v22046_v27  ;;  %v22056_v23 = vld [vmem:[#allocation119_spill] sm:$0xff]  ;;  %v22057_v27 = vld [vmem:[#allocation48_spill] sm:$0xff] }
 0x31b   : > { %11853 = vmatprep.subr.bf16.mxu0 %v22047_v34  ;;  %v22058_v34 = vld [vmem:[#allocation124_spill] sm:$0xff] }
 0x31d   : > { %11471 = vmatpush1.bf16.msra.mxu1 %v22048_v36  ;;  %v22059_v36 = vld [vmem:[#allocation51_spill] sm:$0xff] }
 0x31e   : > { %11855 = vmatpush1.bf16.msra.mxu0 %v22049_v14  ;;  %11473 = vmatprep.subr.bf16.mxu1 %v22050_v57  ;;  %v22060_v14 = vld [vmem:[#allocation130_spill] sm:$0xff] }
 0x31f   : > { %11857 = vmatprep.subr.bf16.mxu0 %v22051_v29  ;;  %v22061_v57 = vld [vmem:[#allocation54_spill] sm:$0xff] }
 0x320   : > { %v22062_v29 = vld [vmem:[#allocation134_spill] sm:$0xff] }
 0x321   : > { %11475 = vmatpush1.bf16.msra.mxu1 %v22052_v2  ;;  %v22063_v2 = vld [vmem:[#allocation57_spill] sm:$0xff] }
 0x322   : > { %11859 = vmatpush1.bf16.msra.mxu0 %v22053_v26  ;;  %11477 = vmatprep.subr.bf16.mxu1 %v22054_v7  ;;  %v22064_v26 = vld [vmem:[#allocation82_spill] sm:$0xff]  ;;  %v22065_v7 = vld [vmem:[#allocation60_spill] sm:$0xff] }
 0x323   : > { %11861 = vmatprep.subr.bf16.mxu0 %v22055_v42  ;;  %v22066_v42 = vld [vmem:[#allocation143_spill] sm:$0xff] }
 0x325   : > { %11479 = vmatpush1.bf16.msra.mxu1 %v22056_v23  ;;  %v22067_v23 = vld [vmem:[#allocation64_spill] sm:$0xff] }
 0x326   : > { %11863 = vmatpush1.bf16.msra.mxu0 %v22057_v27  ;;  %11481 = vmatprep.subr.bf16.mxu1 %v22058_v34  ;;  %v22068_v27 = vld [vmem:[#allocation149_spill] sm:$0xff]  ;;  %v22069_v34 = vld [vmem:[#allocation68_spill] sm:$0xff] }
 0x327   : > { %11865 = vmatprep.subr.bf16.mxu0 %v22059_v36  ;;  %v22070_v36 = vld [vmem:[#allocation156_spill] sm:$0xff] }
 0x329   : > { %11483 = vmatpush1.bf16.msra.mxu1 %v22060_v14  ;;  %v22071_v14 = vld [vmem:[#allocation70_spill] sm:$0xff] }
 0x32a   : > { %11867 = vmatpush1.bf16.msra.mxu0 %v22061_v57  ;;  %11485 = vmatprep.subr.bf16.mxu1 %v22062_v29  ;;  %v22072_v57 = vld [vmem:[#allocation159_spill] sm:$0xff]  ;;  %v22073_v29 = vld [vmem:[#allocation74_spill] sm:$0xff] }
 0x32b   : > { %11869 = vmatprep.subr.bf16.mxu0 %v22063_v2  ;;  %v22074_v2 = vld [vmem:[#allocation161_spill] sm:$0xff] }
 0x32d   : > { %11487 = vmatpush1.bf16.msra.mxu1 %v22064_v26  ;;  %v22075_v26 = vld [vmem:[#allocation77_spill] sm:$0xff] }
 0x32e   : > { %11871 = vmatpush1.bf16.msra.mxu0 %v22065_v7  ;;  %11489 = vmatprep.subr.bf16.mxu1 %v22066_v42  ;;  %v22076_v7 = vld [vmem:[#allocation6_spill] sm:$0xff]  ;;  %v22077_v42 = vld [vmem:[#allocation80_spill] sm:$0xff] }
 0x32f   : > { %11873 = vmatprep.subr.bf16.mxu0 %v22067_v23  ;;  %v22078_v23 = vld [vmem:[#allocation123_spill] sm:$0xff] }
 0x331   : > { %11491 = vmatpush1.bf16.msra.mxu1 %v22068_v27  ;;  %v22079_v27 = vld [vmem:[#allocation128_spill] sm:$0xff] }
 0x332   : > { %11875 = vmatpush1.bf16.msra.mxu0 %v22069_v34  ;;  %11493 = vmatprep.subr.bf16.mxu1 %v22070_v36  ;;  %v22080_v34 = vld [vmem:[#allocation129_spill] sm:$0xff]  ;;  %v22081_v36 = vld [vmem:[#allocation138_spill] sm:$0xff] }
 0x333   : > { %11877 = vmatprep.subr.bf16.mxu0 %v22071_v14  ;;  %v22082_v14 = vld [vmem:[#allocation140_spill] sm:$0xff] }
 0x335   : > { %11495 = vmatpush1.bf16.msra.mxu1 %v22072_v57  ;;  %v22083_v57 = vld [vmem:[#allocation142_spill] sm:$0xff] }
 0x336   : > { %11879 = vmatpush1.bf16.msra.mxu0 %v22073_v29  ;;  %11497 = vmatprep.subr.bf16.mxu1 %v22074_v2  ;;  %v22084_v29 = vld [vmem:[#allocation147_spill] sm:$0xff]  ;;  %v22085_v2 = vld [vmem:[#allocation174_spill] sm:$0xff] }
 0x337   : > { %11881 = vmatprep.subr.bf16.mxu0 %v22075_v26  ;;  %v22086_v26 = vld [vmem:[#allocation183_spill] sm:$0xff] }
 0x339   : > { %11499 = vmatpush1.bf16.msra.mxu1 %v22076_v7 }
 0x33a   : > { %11883 = vmatpush1.bf16.msra.mxu0 %v22077_v42  ;;  %11501 = vmatprep.subr.bf16.mxu1 %v22078_v23  ;;  %v22087_v42 = vand.u32 4294901760, %v21894_v12  ;;  %v22088_v23 = vand.u32 4294901760, %v21895_v31  ;;  %v22096_v31 = vand.u32 4294901760, %v21902_v38  ;;  %v22105_v38 = vld [vmem:[#allocation24_spill] sm:$0xff] }
 0x33b   : > { %11885 = vmatprep.subr.bf16.mxu0 %v22079_v27  ;;  %v22089_v27 = vld [vmem:[#allocation186_spill] sm:$0xff] }
 0x33c   : > { %v11512_v7 = vpack.c.bf16 %v22088_v23, %v22087_v42  ;;  %v22097_v23 = vand.u32 4294901760, %v21903_v52  ;;  %v22106_v52 = vand.u32 4294901760, %v22105_v38  ;;  %v22120_v38 = vld [vmem:[#allocation41_spill] sm:$0xff] }
 0x33d   : > { %11503 = vmatpush1.bf16.msra.mxu1 %v22080_v34  ;;  %v22090_v34 = vand.u32 4294901760, %v21896_v18  ;;  %v22098_v18 = vand.u32 4294901760, %v21904_v15  ;;  %v22107_v15 = vld [vmem:[#allocation30_spill] sm:$0xff] }
 0x33e   : > { %11887 = vmatpush1.bf16.msra.mxu0 %v22081_v36  ;;  %11505 = vmatprep.subr.bf16.mxu1 %v22082_v14  ;;  %v22091_v36 = vand.u32 4294901760, %v21897_v11  ;;  %v11898_v42 = vpack.c.bf16 %v22097_v23, %v22096_v31  ;;  %v22099_v11 = vand.u32 4294901760, %v21905_v44  ;;  %v22113_v23 = vld [vmem:[#allocation34_spill] sm:$0xff] }
 0x33f   : > { %11889 = vmatprep.subr.bf16.mxu0 %v22083_v57  ;;  %v22093_v57 = vld [vmem:[#allocation193_spill] sm:$0xff] }
 0x340   : > { %v11896_v14 = vpack.c.bf16 %v22091_v36, %v22090_v34  ;;  %v11516_v34 = vpack.c.bf16 %v22099_v11, %v22098_v18  ;;  %v22100_v36 = vld [vmem:[#allocation246_spill] sm:$0xff]  ;;  %v22114_v18 = vand.u32 4294901760, %v22113_v23  ;;  %v22129_v23 = vld [vmem:[#allocation65_spill] sm:$0xff] }
 0x341   : > { %11507 = vmatpush1.bf16.msra.mxu1 %v22084_v29  ;;  %v22115_v11 = vld [vmem:[#allocation38_spill] sm:$0xff] }
 0x342   : > { %11891 = vmatpush1.bf16.msra.mxu0 %v22085_v2  ;;  %11509 = vmatprep.subr.bf16.mxu1 %v22086_v26  ;;  %v22094_v2 = vand.u32 4294901760, %v21900_v13  ;;  %v22095_v26 = vand.u32 4294901760, %v21901_v6  ;;  %v22104_v6 = vld [vmem:[#allocation253_spill] sm:$0xff] }
 0x343   : > { %11893 = vmatprep.subr.bf16.mxu0 %v22089_v27  ;;  %v22137_v27 = vld [vmem:[#allocation83_spill] sm:$0xff] }
 0x344   : > { %v11514_v12 = vpack.c.bf16 %v22095_v26, %v22094_v2  ;;  %v22109_v2 = vld [vmem:[#allocation29_spill] sm:$0xff] }
 0x345   : > { %11511 = vmatpush1.bf16.msra.mxu1 %v22092_v4  ;;  %v22110_v26 = vand.u32 4294901760, %v22109_v2  ;;  %v22125_v2 = vld [vmem:[#allocation58_spill] sm:$0xff] }
 0x346   : > { %11895 = vmatpush1.bf16.msra.mxu0 %v22093_v57  ;;  %11513 = vmatprep.subr.bf16.mxu1 %v11512_v7  ;;  %v22101_v7 = vand.u32 4294901760, %v21906_v1  ;;  %v22102_v57 = vld [vmem:[#allocation22_spill] sm:$0xff]  ;;  %v22111_v1 = vld [vmem:[#allocation32_spill] sm:$0xff] }
 0x347   : > { %11897 = vmatprep.subr.bf16.mxu0 %v11896_v14  ;;  %v22103_v13 = vand.u32 4294901760, %v22102_v57  ;;  %v22108_v14 = vand.u32 4294901760, %v22107_v15  ;;  %v22112_v31 = vand.u32 4294901760, %v22111_v1  ;;  %v22121_v15 = vand.u32 4294901760, %v22120_v38 }
 0x348   : > { %2926 = vmatmul.mubr.f32.vlgmr.msra.gmra.mrb[0].mxu1 %v22100_v36 }
 0x349   : > { %v11900_v4 = vpack.c.bf16 %v22103_v13, %v22101_v7  ;;  %4272 = vmatmul.mubr.f32.vlgmr.msra.gmra.mrb[4].mxu0 %v22100_v36  ;;  %2934 = vmatprep.mubr.f32.mxu1 %v22104_v6  ;;  %v11518_v44 = vpack.c.bf16 %v22108_v14, %v22106_v52  ;;  %v11902_v57 = vpack.c.bf16 %v22112_v31, %v22110_v26  ;;  %v22116_v36 = vand.u32 4294901760, %v22115_v11  ;;  %v22118_v13 = vld [vmem:[#allocation37_spill] sm:$0xff] }
 0x34a   : > { %11515 = vmatpush1.bf16.msra.mxu1 %v11514_v12  ;;  %4280 = vmatprep.mubr.f32.mxu0 %v22104_v6  ;;  %v22117_v12 = vld [vmem:[#allocation252_spill] sm:$0xff]  ;;  %v22119_v6 = vand.u32 4294901760, %v22118_v13  ;;  %v22126_v26 = vand.u32 4294901760, %v22125_v2 }
 0x34b   : > { %11899 = vmatpush1.bf16.msra.mxu0 %v11898_v42  ;;  %11517 = vmatprep.subr.bf16.mxu1 %v11516_v34  ;;  %v11520_v7 = vpack.c.bf16 %v22116_v36, %v22114_v18  ;;  %v22122_v42 = vld [vmem:[#allocation241_spill] sm:$0xff]  ;;  %v22123_v34 = vld [vmem:[#allocation40_spill] sm:$0xff]  ;;  %v22130_v18 = vand.u32 4294901760, %v22129_v23  ;;  %v22131_v36 = vld [vmem:[#allocation71_spill] sm:$0xff] }
 0x34c   : > { %2938 = vmatmul.mubr.f32.gmra.mrb[2].mxu1 %v22117_v12  ;;  %11901 = vmatprep.subr.bf16.mxu0 %v11900_v4  ;;  %v11904_v52 = vpack.c.bf16 %v22121_v15, %v22119_v6  ;;  %v22124_v14 = vand.u32 4294901760, %v22123_v34  ;;  %v22127_v4 = vld [vmem:[#allocation62_spill] sm:$0xff]  ;;  %v22132_v13 = vand.u32 4294901760, %v22131_v36  ;;  %v22138_v34 = vand.u32 4294901760, %v22137_v27 }
 0x34d   : > { %4284 = vmatmul.mubr.f32.gmra.mrb[6].mxu0 %v22117_v12  ;;  %3201 = vmatprep.mubr.f32.mxu1 %v22122_v42  ;;  %v22128_v31 = vand.u32 4294901760, %v22127_v4  ;;  %v22133_v12 = vld [vmem:[#allocation75_spill] sm:$0xff]  ;;  %v22143_v4 = vld [vmem:[#allocation61_spill] sm:$0xff]  ;;  %v22145_v23 = vld [vmem:[#allocation90_spill] sm:$0xff] }
 0x34e   : > { %11519 = vmatpush1.bf16.msra.mxu1 %v11518_v44  ;;  %4547 = vmatprep.mubr.f32.mxu0 %v22122_v42  ;;  %v11522_v1 = vpack.c.bf16 %v22126_v26, %v22124_v14  ;;  %v22134_v6 = vand.u32 4294901760, %v22133_v12  ;;  %v22135_v44 = vld [vmem:[#allocation78_spill] sm:$0xff]  ;;  %v22139_v14 = vld [vmem:[#allocation89_spill] sm:$0xff] }
 0x34f   : > { %11903 = vmatpush1.bf16.msra.mxu0 %v11902_v57  ;;  %11521 = vmatprep.subr.bf16.mxu1 %v11520_v7  ;;  %v11906_v11 = vpack.c.bf16 %v22130_v18, %v22128_v31  ;;  %v22136_v15 = vand.u32 4294901760, %v22135_v44  ;;  %v22140_v57 = vand.u32 4294901760, %v22139_v14  ;;  %v22141_v7 = vld [vmem:[#allocation84_spill] sm:$0xff]  ;;  %v22144_v31 = vand.u32 4294901760, %v22143_v4  ;;  %v22149_v12 = vld [vmem:[#allocation93_spill] sm:$0xff]  ;;  %v22151_v27 = vld [vmem:[#allocation94_spill] sm:$0xff] }
 0x350   : > { %v11524_v38 = vpack.c.bf16 %v22134_v6, %v22132_v13  ;;  %11905 = vmatprep.subr.bf16.mxu0 %v11904_v52  ;;  %v22142_v2 = vand.u32 4294901760, %v22141_v7  ;;  %v22146_v18 = vand.u32 4294901760, %v22145_v23  ;;  %v22147_v13 = vld [vmem:[#allocation92_spill] sm:$0xff]  ;;  %v22150_v6 = vand.u32 4294901760, %v22149_v12  ;;  %v22159_v4 = vld [vmem:[#allocation53_spill] sm:$0xff] }
 0x351   : > { %v11908_v29 = vpack.c.bf16 %v22138_v34, %v22136_v15  ;;  %v22148_v52 = vand.u32 4294901760, %v22147_v13  ;;  %v22153_v15 = vld [vmem:[#allocation50_spill] sm:$0xff]  ;;  %v22161_v23 = vld [vmem:[#allocation97_spill] sm:$0xff]  ;;  %v22165_v12 = vld [vmem:[#allocation100_spill] sm:$0xff] }
 0x352   : > { %11523 = vmatpush1.bf16.msra.mxu1 %v11522_v1  ;;  %v11526_v26 = vpack.c.bf16 %v22142_v2, %v22140_v57  ;;  %v11910_v36 = vpack.c.bf16 %v22146_v18, %v22144_v31  ;;  %v22152_v1 = vand.u32 4294901760, %v22151_v27  ;;  %v22154_v34 = vand.u32 4294901760, %v22153_v15  ;;  %v22155_v57 = vld [vmem:[#allocation96_spill] sm:$0xff] }
 0x353   : > { %11907 = vmatpush1.bf16.msra.mxu0 %v11906_v11  ;;  %11525 = vmatprep.subr.bf16.mxu1 %v11524_v38  ;;  %v11528_v44 = vpack.c.bf16 %v22150_v6, %v22148_v52  ;;  %v22156_v11 = vand.u32 4294901760, %v22155_v57  ;;  %v22157_v38 = vld [vmem:[#allocation52_spill] sm:$0xff]  ;;  %v22160_v31 = vand.u32 4294901760, %v22159_v4  ;;  %v22162_v18 = vand.u32 4294901760, %v22161_v23  ;;  %v22163_v52 = vld [vmem:[#allocation99_spill] sm:$0xff] }
 0x354   : > { %11909 = vmatprep.subr.bf16.mxu0 %v11908_v29  ;;  %v11912_v14 = vpack.c.bf16 %v22154_v34, %v22152_v1  ;;  %v22158_v7 = vand.u32 4294901760, %v22157_v38  ;;  %v22164_v29 = vand.u32 4294901760, %v22163_v52  ;;  %v22166_v6 = vand.u32 4294901760, %v22165_v12  ;;  %v22168_v1 = vld [vmem:[#allocation56_spill] sm:$0xff] }
 0x355   : > { %v11914_v13 = vpack.c.bf16 %v22162_v18, %v22160_v31  ;;  %v22169_v15 = vand.u32 4294901760, %v22168_v1  ;;  %v22173_v38 = vand.u32 4294901760, %v21946_v60  ;;  %v22176_v31 = vld [vmem:[#allocation108_spill] sm:$0xff]  ;;  %v22181_v52 = vand.u32 4294901760, %v21953_v50 }
 0x356   : > { %11527 = vmatpush1.bf16.msra.mxu1 %v11526_v26  ;;  %v11530_v2 = vpack.c.bf16 %v22158_v7, %v22156_v11  ;;  %v11532_v27 = vpack.c.bf16 %v22166_v6, %v22164_v29  ;;  %v22167_v26 = vand.u32 4294901760, %v21942_v55  ;;  %v22174_v7 = vand.u32 4294901760, %v21947_v46 }
 0x357   : > { %11911 = vmatpush1.bf16.msra.mxu0 %v11910_v36  ;;  %11529 = vmatprep.subr.bf16.mxu1 %v11528_v44  ;;  %v22170_v36 = vand.u32 4294901760, %v21944_v9  ;;  %v22171_v44 = vld [vmem:[#allocation59_spill] sm:$0xff]  ;;  %v22177_v55 = vand.u32 4294901760, %v22176_v31  ;;  %v22179_v9 = vand.u32 4294901760, %v21951_v58  ;;  %v22182_v46 = vand.u32 4294901760, %v21954_v24 }
 0x358   : > { %11913 = vmatprep.subr.bf16.mxu0 %v11912_v14  ;;  %v11916_v34 = vpack.c.bf16 %v22169_v15, %v22167_v26  ;;  %v22172_v57 = vand.u32 4294901760, %v22171_v44  ;;  %v11918_v4 = vpack.c.bf16 %v22174_v7, %v22173_v38  ;;  %v22175_v14 = vand.u32 4294901760, %v21948_v39  ;;  %v22193_v15 = vld [vmem:[#allocation126_spill] sm:$0xff] }
 0x359   : > { %v22183_v39 = vand.u32 4294901760, %v21955_v47  ;;  %v22184_v12 = vand.u32 4294901760, %v21815_v21  ;;  %v22186_v58 = vand.u32 4294901760, %v21819_v32  ;;  %v22188_v50 = vand.u32 4294901760, %v21836_v61 }
 0x35a   : > { %11531 = vmatpush1.bf16.msra.mxu1 %v11530_v2  ;;  %v11534_v11 = vpack.c.bf16 %v22172_v57, %v22170_v36  ;;  %v11536_v23 = vpack.c.bf16 %v22177_v55, %v22175_v14  ;;  %v22178_v2 = vand.u32 4294901760, %v21950_v33  ;;  %v22185_v33 = vand.u32 4294901760, %v21818_v30  ;;  %v22196_v36 = vld [vmem:[#allocation76_spill] sm:$0xff] }
 0x35b   : > { %11915 = vmatpush1.bf16.msra.mxu0 %v11914_v13  ;;  %11533 = vmatprep.subr.bf16.mxu1 %v11532_v27  ;;  %v22180_v13 = vand.u32 4294901760, %v21952_v45  ;;  %v11922_v29 = vpack.c.bf16 %v22183_v39, %v22182_v46  ;;  %v22187_v45 = vand.u32 4294901760, %v21822_v43  ;;  %v22189_v26 = vand.u32 4294901760, %v21837_v49 }
 0x35c   : > { %11917 = vmatprep.subr.bf16.mxu0 %v11916_v34  ;;  %v11920_v18 = vpack.c.bf16 %v22179_v9, %v22178_v2  ;;  %v11540_v6 = vpack.c.bf16 %v22185_v33, %v22184_v12  ;;  %v22190_v47 = vand.u32 4294901760, %v21838_v63  ;;  %v22191_v21 = vand.u32 4294901760, %v21839_v3  ;;  %v22200_v3 = vld [vmem:[#allocation132_spill] sm:$0xff]  ;;  %v22223_v33 = vld [vmem:[#allocation157_spill] sm:$0xff] }
 0x35d   : > { %v11538_v60 = vpack.c.bf16 %v22181_v52, %v22180_v13  ;;  %v11924_v27 = vpack.c.bf16 %v22187_v45, %v22186_v58  ;;  %v11542_v24 = vpack.c.bf16 %v22189_v26, %v22188_v50  ;;  %v22192_v1 = vand.u32 4294901760, %v21840_v37  ;;  %v22202_v37 = vld [vmem:[#allocation133_spill] sm:$0xff]  ;;  %v22225_v58 = vld [vmem:[#allocation158_spill] sm:$0xff] }
 0x35e   : > { %11535 = vmatpush1.bf16.msra.mxu1 %v11534_v11  ;;  %v11926_v30 = vpack.c.bf16 %v22191_v21, %v22190_v47  ;;  %v22194_v32 = vand.u32 4294901760, %v22193_v15  ;;  %v22195_v43 = vand.u32 4294901760, %v21846_v22  ;;  %v22197_v61 = vand.u32 4294901760, %v22196_v36  ;;  %v22213_v13 = vld [vmem:[#allocation145_spill] sm:$0xff]  ;;  %v22233_v47 = vld [vmem:[#allocation4_spill] sm:$0xff]  ;;  %v22239_v36 = vld [vmem:[#allocation162_spill] sm:$0xff] }
 0x35f   : > { %11919 = vmatpush1.bf16.msra.mxu0 %v11918_v4  ;;  %11537 = vmatprep.subr.bf16.mxu1 %v11536_v23  ;;  %v22198_v49 = vand.u32 4294901760, %v21853_v56  ;;  %v22199_v57 = vand.u32 4294901760, %v21854_v25  ;;  %v22201_v11 = vand.u32 4294901760, %v22200_v3  ;;  %v22203_v38 = vand.u32 4294901760, %v22202_v37  ;;  %v22229_v50 = vld [vmem:[#allocation73_spill] sm:$0xff] }
 0x360   : > { %11921 = vmatprep.subr.bf16.mxu0 %v11920_v18  ;;  %v11544_v34 = vpack.c.bf16 %v22194_v32, %v22192_v1  ;;  %v11928_v44 = vpack.c.bf16 %v22197_v61, %v22195_v43  ;;  %v22204_v4 = vand.u32 4294901760, %v21861_v10  ;;  %v22205_v22 = vand.u32 4294901760, %v21862_v0  ;;  %v22235_v1 = vld [vmem:[#allocation86_spill] sm:$0xff]  ;;  %v22237_v32 = vld [vmem:[#allocation5_spill] sm:$0xff] }
 0x361   : > { %v11546_v63 = vpack.c.bf16 %v22199_v57, %v22198_v49  ;;  %v11930_v7 = vpack.c.bf16 %v22203_v38, %v22201_v11  ;;  %v22206_v31 = vand.u32 4294901760, %v21957_v54  ;;  %v22207_v56 = vand.u32 4294901760, %v21956_v19  ;;  %v22245_v11 = vld [vmem:[#allocation88_spill] sm:$0xff] }
 0x362   : > { %11539 = vmatpush1.bf16.msra.mxu1 %v11538_v60  ;;  %v11548_v14 = vpack.c.bf16 %v22205_v22, %v22204_v4  ;;  %v22208_v25 = vand.u32 4294901760, %v21959_v17  ;;  %v22209_v23 = vand.u32 4294901760, %v21795_v59  ;;  %v22210_v9 = vand.u32 4294901760, %v21961_v20  ;;  %v22249_v22 = vld [vmem:[#allocation166_spill] sm:$0xff] }
 0x363   : > { %11923 = vmatpush1.bf16.msra.mxu0 %v11922_v29  ;;  %11541 = vmatprep.subr.bf16.mxu1 %v11540_v6  ;;  %v11932_v55 = vpack.c.bf16 %v22207_v56, %v22206_v31  ;;  %v22211_v10 = vand.u32 4294901760, %v21797_v53  ;;  %v22212_v18 = vand.u32 4294901760, %v21963_v40  ;;  %v22214_v54 = vand.u32 4294901760, %v22213_v13  ;;  %v22219_v53 = vld [vmem:[#allocation153_spill] sm:$0xff]  ;;  %v22221_v40 = vld [vmem:[#allocation154_spill] sm:$0xff]  ;;  %v22251_v56 = vld [vmem:[#allocation7_spill] sm:$0xff] }
 0x364   : > { %11925 = vmatprep.subr.bf16.mxu0 %v11924_v27  ;;  %v11550_v2 = vpack.c.bf16 %v22209_v23, %v22208_v25  ;;  %v22215_v19 = vand.u32 4294901760, %v21965_v41  ;;  %v22216_v17 = vand.u32 4294901760, %v21801_v28  ;;  %v22217_v59 = vand.u32 4294901760, %v21967_v62  ;;  %v22227_v28 = vld [vmem:[#allocation3_spill] sm:$0xff] }
 0x365   : > { %v11934_v0 = vpack.c.bf16 %v22211_v10, %v22210_v9  ;;  %v11552_v52 = vpack.c.bf16 %v22214_v54, %v22212_v18  ;;  %v22218_v46 = vand.u32 4294901760, %v21803_v8  ;;  %v22220_v39 = vand.u32 4294901760, %v22219_v53  ;;  %v22231_v8 = vld [vmem:[#allocation160_spill] sm:$0xff]  ;;  %v22253_v25 = vld [vmem:[#allocation167_spill] sm:$0xff] }
 0x366   : > { %11543 = vmatpush1.bf16.msra.mxu1 %v11542_v24  ;;  %v11936_v60 = vpack.c.bf16 %v22216_v17, %v22215_v19  ;;  %v22222_v29 = vand.u32 4294901760, %v22221_v40  ;;  %v22224_v6 = vand.u32 4294901760, %v22223_v33  ;;  %v22226_v41 = vand.u32 4294901760, %v22225_v58  ;;  %v22255_v9 = vld [vmem:[#allocation151_spill] sm:$0xff]  ;;  %v22259_v54 = vld [vmem:[#allocation168_spill] sm:$0xff]  ;;  %v22261_v19 = vld [vmem:[#allocation169_spill] sm:$0xff] }
 0x367   : > { %11927 = vmatpush1.bf16.msra.mxu0 %v11926_v30  ;;  %11545 = vmatprep.subr.bf16.mxu1 %v11544_v34  ;;  %v11554_v20 = vpack.c.bf16 %v22218_v46, %v22217_v59  ;;  %v22228_v27 = vand.u32 4294901760, %v22227_v28  ;;  %v22230_v62 = vand.u32 4294901760, %v22229_v50  ;;  %v22232_v24 = vand.u32 4294901760, %v22231_v8  ;;  %v22263_v59 = vld [vmem:[#allocation170_spill] sm:$0xff]  ;;  %v22267_v40 = vld [vmem:[#allocation172_spill] sm:$0xff]  ;;  %v22271_v58 = vld [vmem:[#allocation175_spill] sm:$0xff] }
 0x368   : > { %11929 = vmatprep.subr.bf16.mxu0 %v11928_v44  ;;  %v11938_v12 = vpack.c.bf16 %v22222_v29, %v22220_v39  ;;  %v11556_v45 = vpack.c.bf16 %v22226_v41, %v22224_v6  ;;  %v22234_v21 = vand.u32 4294901760, %v22233_v47  ;;  %v22236_v15 = vand.u32 4294901760, %v22235_v1  ;;  %v22241_v44 = vld [vmem:[#allocation163_spill] sm:$0xff]  ;;  %v22275_v50 = vld [vmem:[#allocation177_spill] sm:$0xff] }
 0x369   : > { %v11940_v26 = vpack.c.bf16 %v22230_v62, %v22228_v27  ;;  %v22238_v34 = vand.u32 4294901760, %v22237_v32  ;;  %v22240_v61 = vand.u32 4294901760, %v22239_v36  ;;  %v22242_v49 = vand.u32 4294901760, %v22241_v44  ;;  %v22283_v32 = vld [vmem:[#allocation182_spill] sm:$0xff] }
 0x36a   : > { %11547 = vmatpush1.bf16.msra.mxu1 %v11546_v63  ;;  %v11558_v30 = vpack.c.bf16 %v22234_v21, %v22232_v24  ;;  %v22243_v63 = vld [vmem:[#allocation164_spill] sm:$0xff]  ;;  %v22246_v37 = vand.u32 4294901760, %v22245_v11  ;;  %v22254_v23 = vand.u32 4294901760, %v22253_v25  ;;  %v22256_v10 = vand.u32 4294901760, %v22255_v9  ;;  %v22303_v25 = vld [vmem:[#allocation9_spill] sm:$0xff]  ;;  %v22306_v9 = vld [vmem:[#allocation10_spill] sm:$0xff] }
 0x36b   : > { %11931 = vmatpush1.bf16.msra.mxu0 %v11930_v7  ;;  %11549 = vmatprep.subr.bf16.mxu1 %v11548_v14  ;;  %v11942_v43 = vpack.c.bf16 %v22238_v34, %v22236_v15  ;;  %v11560_v57 = vpack.c.bf16 %v22242_v49, %v22240_v61  ;;  %v22244_v3 = vand.u32 4294901760, %v22243_v63  ;;  %v22247_v7 = vld [vmem:[#allocation165_spill] sm:$0xff]  ;;  %v22250_v14 = vand.u32 4294901760, %v22249_v22  ;;  %v22280_v21 = vld [vmem:[#allocation180_spill] sm:$0xff] }
 0x36c   : > { %11933 = vmatprep.subr.bf16.mxu0 %v11932_v55  ;;  %v22248_v4 = vand.u32 4294901760, %v22247_v7  ;;  %v22252_v55 = vand.u32 4294901760, %v22251_v56  ;;  %v22262_v17 = vand.u32 4294901760, %v22261_v19  ;;  %v22264_v46 = vand.u32 4294901760, %v22263_v59  ;;  %v22294_v7 = vld [vmem:[#allocation192_spill] sm:$0xff]  ;;  %v22301_v56 = vld [vmem:[#allocation247_spill] sm:$0xff] }
 0x36d   : > { %v11944_v38 = vpack.c.bf16 %v22246_v37, %v22244_v3  ;;  %v22268_v29 = vand.u32 4294901760, %v22267_v40  ;;  %v22272_v41 = vand.u32 4294901760, %v22271_v58  ;;  %v22276_v62 = vand.u32 4294901760, %v22275_v50  ;;  %v22290_v3 = vld [vmem:[#allocation190_spill] sm:$0xff]  ;;  %v22292_v37 = vld [vmem:[#allocation191_spill] sm:$0xff]  ;;  %v22313_v19 = vld [vmem:[#allocation69_spill] sm:$0xff] }
 0x36e   : > { %11551 = vmatpush1.bf16.msra.mxu1 %v11550_v2  ;;  %v11562_v31 = vpack.c.bf16 %v22250_v14, %v22248_v4  ;;  %v11946_v2 = vpack.c.bf16 %v22254_v23, %v22252_v55  ;;  %v22279_v47 = vand.u32 4294901760, %v22005_v35  ;;  %v22282_v15 = vand.u32 4294901760, %v22008_v48  ;;  %v22299_v14 = vld [vmem:[#allocation8_spill] sm:$0xff]  ;;  %v22304_v23 = vld [vmem:[#allocation67_spill] sm:$0xff]  ;;  %v22322_v40 = vld [vmem:[#allocation33_spill] sm:$0xff] }
 0x36f   : > { %11935 = vmatpush1.bf16.msra.mxu0 %v11934_v0  ;;  %11553 = vmatprep.subr.bf16.mxu1 %v11552_v52  ;;  %v22257_v0 = vld [vmem:[#allocation155_spill] sm:$0xff]  ;;  %v22260_v52 = vand.u32 4294901760, %v22259_v54  ;;  %v22284_v34 = vand.u32 4294901760, %v22283_v32  ;;  %v22285_v36 = vand.u32 4294901760, %v22011_v16  ;;  %v22286_v61 = vand.u32 4294901760, %v22010_v51  ;;  %v22296_v16 = vld [vmem:[#allocation194_spill] sm:$0xff] }
 0x370   : > { %11937 = vmatprep.subr.bf16.mxu0 %v11936_v60  ;;  %v22258_v18 = vand.u32 4294901760, %v22257_v0  ;;  %v22287_v49 = vand.u32 4294901760, %v22014_v5  ;;  %v22291_v11 = vand.u32 4294901760, %v22290_v3  ;;  %v22295_v4 = vand.u32 4294901760, %v22294_v7  ;;  %v22298_v5 = vld [vmem:[#allocation14_spill] sm:$0xff]  ;;  %v22302_v55 = vld [vmem:[#allocation28_spill] sm:$0xff] }
 0x371   : > { %v11948_v60 = vpack.c.bf16 %v22262_v17, %v22260_v52  ;;  %v11572_v44 = vpack.c.bf16 %v22286_v61, %v22285_v36  ;;  %v22297_v22 = vand.u32 4294901760, %v22296_v16  ;;  %v22308_v0 = vld [vmem:[#allocation11_spill] sm:$0xff]  ;;  %v22312_v52 = vld [vmem:[#allocation13_spill] sm:$0xff]  ;;  %v22316_v59 = vld [vmem:[#allocation20_spill] sm:$0xff] }
 0x372   : > { %11555 = vmatpush1.bf16.msra.mxu1 %v11554_v20  ;;  %v11564_v13 = vpack.c.bf16 %v22258_v18, %v22256_v10  ;;  %v22265_v20 = vld [vmem:[#allocation171_spill] sm:$0xff]  ;;  %v22307_v10 = vld [vmem:[#allocation25_spill] sm:$0xff]  ;;  %v22327_v58 = vld [vmem:[#allocation110_spill] sm:$0xff] }
 0x373   : > { %11939 = vmatpush1.bf16.msra.mxu0 %v11938_v12  ;;  %11557 = vmatprep.subr.bf16.mxu1 %v11556_v45  ;;  %v22266_v53 = vand.u32 4294901760, %v22265_v20  ;;  %v22269_v12 = vld [vmem:[#allocation173_spill] sm:$0xff]  ;;  %v22273_v45 = vld [vmem:[#allocation176_spill] sm:$0xff]  ;;  %v11958_v51 = vpack.c.bf16 %v22297_v22, %v22295_v4  ;;  %v22309_v18 = vld [vmem:[#allocation31_spill] sm:$0xff] }
 0x374   : > { %11941 = vmatprep.subr.bf16.mxu0 %v11940_v26  ;;  %v22270_v33 = vand.u32 4294901760, %v22269_v12  ;;  %v22274_v28 = vand.u32 4294901760, %v22273_v45  ;;  %v22277_v26 = vld [vmem:[#allocation178_spill] sm:$0xff]  ;;  %v22311_v54 = vld [vmem:[#allocation55_spill] sm:$0xff]  ;;  %v22324_v12 = vld [vmem:[#allocation36_spill] sm:$0xff] }
 0x375   : > { %v11566_v39 = vpack.c.bf16 %v22266_v53, %v22264_v46  ;;  %v22278_v8 = vand.u32 4294901760, %v22277_v26  ;;  %v22314_v17 = vld [vmem:[#allocation19_spill] sm:$0xff]  ;;  %v22329_v45 = vld [vmem:[#allocation114_spill] sm:$0xff]  ;;  %v22332_v50 = vld [vmem:[#allocation48_spill] sm:$0xff] }
 0x376   : > { %11559 = vmatpush1.bf16.msra.mxu1 %v11558_v30  ;;  %v11950_v6 = vpack.c.bf16 %v22270_v33, %v22268_v29  ;;  %v11568_v27 = vpack.c.bf16 %v22274_v28, %v22272_v41  ;;  %v22281_v30 = vand.u32 4294901760, %v22280_v21  ;;  %v22317_v46 = vld [vmem:[#allocation91_spill] sm:$0xff]  ;;  %v22323_v29 = vld [vmem:[#allocation102_spill] sm:$0xff]  ;;  %v22330_v28 = vld [vmem:[#allocation45_spill] sm:$0xff] }
 0x377   : > { %11943 = vmatpush1.bf16.msra.mxu0 %v11942_v43  ;;  %11561 = vmatprep.subr.bf16.mxu1 %v11560_v57  ;;  %v11952_v24 = vpack.c.bf16 %v22278_v8, %v22276_v62  ;;  %v11954_v43 = vpack.c.bf16 %v22284_v34, %v22282_v15  ;;  %v22288_v57 = vld [vmem:[#allocation188_spill] sm:$0xff]  ;;  %v22319_v20 = vld [vmem:[#allocation95_spill] sm:$0xff]  ;;  %v22325_v33 = vld [vmem:[#allocation106_spill] sm:$0xff] }
 0x378   : > { %11945 = vmatprep.subr.bf16.mxu0 %v11944_v38  ;;  %v11570_v1 = vpack.c.bf16 %v22281_v30, %v22279_v47  ;;  %v22289_v35 = vand.u32 4294901760, %v22288_v57  ;;  %v22293_v38 = vand.u32 4294901760, %v22292_v37  ;;  %v22320_v53 = vld [vmem:[#allocation27_spill] sm:$0xff]  ;;  %v22328_v41 = vld [vmem:[#allocation42_spill] sm:$0xff]  ;;  %v22333_v62 = vld [vmem:[#allocation124_spill] sm:$0xff] }
 0x379   : > { %v22334_v26 = vld [vmem:[#allocation51_spill] sm:$0xff]  ;;  %v22335_v8 = vld [vmem:[#allocation130_spill] sm:$0xff]  ;;  %v22338_v21 = vld [vmem:[#allocation57_spill] sm:$0xff] }
 0x37a   : > { %11563 = vmatpush1.bf16.msra.mxu1 %v11562_v31  ;;  %v11956_v63 = vpack.c.bf16 %v22289_v35, %v22287_v49  ;;  %v11574_v48 = vpack.c.bf16 %v22293_v38, %v22291_v11  ;;  %v22300_v31 = vld [vmem:[#allocation197_spill] sm:$0xff]  ;;  %v22337_v47 = vld [vmem:[#allocation134_spill] sm:$0xff]  ;;  %v22341_v15 = vld [vmem:[#allocation143_spill] sm:$0xff] }
 0x37b   : > { %11947 = vmatpush1.bf16.msra.mxu0 %v11946_v2  ;;  %11565 = vmatprep.subr.bf16.mxu1 %v11564_v13  ;;  %v22305_v2 = vld [vmem:[#allocation245_spill] sm:$0xff]  ;;  %v22310_v13 = vld [vmem:[#allocation12_spill] sm:$0xff]  ;;  %v22339_v30 = vld [vmem:[#allocation82_spill] sm:$0xff] }
 0x37c   : > { %11949 = vmatprep.subr.bf16.mxu0 %v11948_v60  ;;  %v22315_v60 = vld [vmem:[#allocation87_spill] sm:$0xff]  ;;  %v22342_v32 = vld [vmem:[#allocation64_spill] sm:$0xff]  ;;  %v22343_v34 = vld [vmem:[#allocation149_spill] sm:$0xff] }
 0x37d   : > { %v22345_v36 = vld [vmem:[#allocation156_spill] sm:$0xff]  ;;  %v22346_v61 = vld [vmem:[#allocation70_spill] sm:$0xff]  ;;  %v22349_v57 = vld [vmem:[#allocation161_spill] sm:$0xff] }
 0x37e   : > { %11567 = vmatpush1.bf16.msra.mxu1 %v11566_v39  ;;  %v22321_v39 = vld [vmem:[#allocation98_spill] sm:$0xff]  ;;  %v4740_v35 = vld [vmem:[%s16909_s24] sm:$0xff]  ;;  %v22352_v37 = vld [vmem:[#allocation80_spill] sm:$0xff] }
 0x37f   : > { %11951 = vmatpush1.bf16.msra.mxu0 %v11950_v6  ;;  %11569 = vmatprep.subr.bf16.mxu1 %v11568_v27  ;;  %v22326_v6 = vld [vmem:[#allocation39_spill] sm:$0xff]  ;;  %v22348_v49 = vld [vmem:[#allocation74_spill] sm:$0xff]  ;;  %v16917_v11 = vand.u32 4294901760, %v4740_v35  ;;  %v4749_v4 = vld [vmem:[%s19860_s8 + $0x8] sm:$0xff] }
 0x380   : > { %11953 = vmatprep.subr.bf16.mxu0 %v11952_v24  ;;  %v22331_v27 = vld [vmem:[#allocation119_spill] sm:$0xff]  ;;  %v22336_v24 = vld [vmem:[#allocation54_spill] sm:$0xff]  ;;  %v22355_v16 = vld [vmem:[#allocation129_spill] sm:$0xff] }
 0x381   : > { %v22351_v3 = vld [vmem:[#allocation6_spill] sm:$0xff]  ;;  %v22353_v38 = vld [vmem:[#allocation123_spill] sm:$0xff]  ;;  %v16930_v22 = vsub.f32 %v4740_v35, %v16917_v11 }
 0x382   : > { %11571 = vmatpush1.bf16.msra.mxu1 %v11570_v1  ;;  %v22340_v1 = vld [vmem:[#allocation60_spill] sm:$0xff]  ;;  %v4748_v7 = vld [vmem:[%s19860_s8] sm:$0xff] }
 0x383   : > { %11955 = vmatpush1.bf16.msra.mxu0 %v11954_v43  ;;  %11573 = vmatprep.subr.bf16.mxu1 %v11572_v44  ;;  %v22344_v43 = vld [vmem:[#allocation68_spill] sm:$0xff]  ;;  %v22347_v44 = vld [vmem:[#allocation159_spill] sm:$0xff] }
 0x384   : > { %11957 = vmatprep.subr.bf16.mxu0 %v11956_v63  ;;  %v22350_v63 = vld [vmem:[#allocation77_spill] sm:$0xff] }
 0x386   : > { %11575 = vmatpush1.bf16.msra.mxu1 %v11574_v48  ;;  %v22354_v48 = vld [vmem:[#allocation128_spill] sm:$0xff] }
 0x387   : > { %11959 = vmatpush1.bf16.msra.mxu0 %v11958_v51  ;;  %11577 = vmatprep.subr.bf16.mxu1 %v22298_v5  ;;  %v22356_v51 = vld [vmem:[#allocation138_spill] sm:$0xff]  ;;  %v22357_v5 = vld [vmem:[#allocation140_spill] sm:$0xff] }
 0x388   : > { %11961 = vmatprep.subr.bf16.mxu0 %v22299_v14  ;;  %v4765_v14 = vand.u32 4294901760, %v4748_v7 }
 0x389   : > { %3203 = vmatmul.mubr.f32.vlgmr.msra.gmra.mrb[0].mxu1 %v22300_v31 }
 0x38a   : > { %4549 = vmatmul.mubr.f32.vlgmr.msra.gmra.mrb[4].mxu0 %v22300_v31  ;;  %3209 = vmatprep.mubr.f32.mxu1 %v22301_v56 }
 0x38b   : > { %11579 = vmatpush1.bf16.msra.mxu1 %v22302_v55  ;;  %4555 = vmatprep.mubr.f32.mxu0 %v22301_v56  ;;  %v4768_v55 = vand.u32 4294901760, %v4749_v4 }
 0x38c   : > { %11963 = vmatpush1.bf16.msra.mxu0 %v22303_v25  ;;  %11581 = vmatprep.subr.bf16.mxu1 %v22304_v23  ;;  %v22358_v25 = vld [vmem:[#allocation142_spill] sm:$0xff]  ;;  %v16938_v23 = vld [vmem:[%s19860_s8 + $0x10] sm:$0xff] }
 0x38d   : > { %3211 = vmatmul.mubr.f32.gmra.mrb[2].mxu1 %v22305_v2  ;;  %11965 = vmatprep.subr.bf16.mxu0 %v22306_v9  ;;  %v16943_v9 = vld [vmem:[%s19860_s8 + $0x18] sm:$0xff] }
 0x38e   : > { %4557 = vmatmul.mubr.f32.gmra.mrb[6].mxu0 %v22305_v2  ;;  %3346 = vmatprep.mubr.f32.mxu1 %v22122_v42 }
 0x38f   : > { %11583 = vmatpush1.bf16.msra.mxu1 %v22307_v10  ;;  %4692 = vmatprep.mubr.f32.mxu0 %v22122_v42  ;;  %v22318_v42 = vld [vmem:[#allocation26_spill] sm:$0xff]  ;;  %v22359_v10 = vld [vmem:[#allocation147_spill] sm:$0xff] }
 0x390   : > { %11967 = vmatpush1.bf16.msra.mxu0 %v22308_v0  ;;  %11585 = vmatprep.subr.bf16.mxu1 %v22309_v18  ;;  %v20581_v0 = vand.u32 4294901760, %v16930_v22  ;;  %v22360_v18 = vld [vmem:[#allocation174_spill] sm:$0xff] }
 0x391   : > { %11969 = vmatprep.subr.bf16.mxu0 %v22310_v13  ;;  %v22361_v13 = vld [vmem:[#allocation183_spill] sm:$0xff] }
 0x393   : > { %11587 = vmatpush1.bf16.msra.mxu1 %v22311_v54  ;;  %v16949_v54 = vpack.c.bf16 %v4768_v55, %v4765_v14 }
 0x394   : > { %11971 = vmatpush1.bf16.msra.mxu0 %v22312_v52  ;;  %11589 = vmatprep.subr.bf16.mxu1 %v22313_v19  ;;  %v22362_v52 = vld [vmem:[#allocation186_spill] sm:$0xff]  ;;  %v4771_v19 = vand.u32 4294901760, %v16938_v23 }
 0x395   : > { %11973 = vmatprep.subr.bf16.mxu0 %v22314_v17  ;;  %v4774_v17 = vand.u32 4294901760, %v16943_v9 }
 0x397   : > { %11591 = vmatpush1.bf16.msra.mxu1 %v22315_v60  ;;  %v16957_v60 = vld [vmem:[%s19860_s8 + $0x20] sm:$0xff] }
 0x398   : > { %11975 = vmatpush1.bf16.msra.mxu0 %v22316_v59  ;;  %11593 = vmatprep.subr.bf16.mxu1 %v22317_v46  ;;  %v16962_v59 = vld [vmem:[%s19860_s8 + $0x28] sm:$0xff]  ;;  %v22363_v46 = vld [vmem:[#allocation189_spill] sm:$0xff] }
 0x399   : > { %11977 = vmatprep.subr.bf16.mxu0 %v22318_v42  ;;  %v4848_v42 = vsub.f32 %v16930_v22, %v20581_v0 }
 0x39b   : > { %11595 = vmatpush1.bf16.msra.mxu1 %v22319_v20  ;;  %v22364_v20 = vld [vmem:[#allocation193_spill] sm:$0xff] }
 0x39c   : > { %11979 = vmatpush1.bf16.msra.mxu0 %v22320_v53  ;;  %11597 = vmatprep.subr.bf16.mxu1 %v22321_v39  ;;  %v16970_v53 = vpack.c.bf16 %v4774_v17, %v4771_v19  ;;  %v4777_v39 = vand.u32 4294901760, %v16957_v60 }
 0x39d   : > { %11981 = vmatprep.subr.bf16.mxu0 %v22322_v40  ;;  %v4780_v40 = vand.u32 4294901760, %v16962_v59 }
 0x39f   : > { %11599 = vmatpush1.bf16.msra.mxu1 %v22323_v29  ;;  %v16978_v29 = vld [vmem:[%s19860_s8 + $0x30] sm:$0xff] }
 0x3a0   : > { %11983 = vmatpush1.bf16.msra.mxu0 %v22324_v12  ;;  %11601 = vmatprep.subr.bf16.mxu1 %v22325_v33  ;;  %v16983_v12 = vld [vmem:[%s19860_s8 + $0x38] sm:$0xff]  ;;  %v4849_v33 = vand.u32 4294901760, %v4848_v42 }
 0x3a1   : > { %11985 = vmatprep.subr.bf16.mxu0 %v22326_v6  ;;  %v16994_v6 = vpack.c.bf16 %v4780_v40, %v4777_v39 }
 0x3a3   : > { %11603 = vmatpush1.bf16.msra.mxu1 %v22327_v58  ;;  %v4783_v58 = vand.u32 4294901760, %v16978_v29 }
 0x3a4   : > { %11987 = vmatpush1.bf16.msra.mxu0 %v22328_v41  ;;  %11605 = vmatprep.subr.bf16.mxu1 %v22329_v45  ;;  %v17007_v41 = vld [vmem:[%s19860_s8 + $0x48] sm:$0xff] }
 0x3a5   : > { %11989 = vmatprep.subr.bf16.mxu0 %v22330_v28 }
 0x3a7   : > { %11607 = vmatpush1.bf16.msra.mxu1 %v22331_v27  ;;  %v4792_v27 = vand.u32 4294901760, %v17007_v41 }
 0x3a8   : > { %11991 = vmatpush1.bf16.msra.mxu0 %v22332_v50  ;;  %11609 = vmatprep.subr.bf16.mxu1 %v22333_v62  ;;  %v4741_v50 = vld [vmem:[%s16909_s24 + $0x8] sm:$0xff]  ;;  %v17020_v62 = vld [vmem:[%s19860_s8 + $0x50] sm:$0xff] }
 0x3a9   : > { %11993 = vmatprep.subr.bf16.mxu0 %v22334_v26  ;;  %v17027_v26 = vsub.f32 %v4748_v7, %v4765_v14 }
 0x3ab   : > { %11611 = vmatpush1.bf16.msra.mxu1 %v22335_v8  ;;  %v17029_v8 = vsub.f32 %v4749_v4, %v4768_v55 }
 0x3ac   : > { %11995 = vmatpush1.bf16.msra.mxu0 %v22336_v24  ;;  %11613 = vmatprep.subr.bf16.mxu1 %v22337_v47  ;;  %v17032_v24 = vand.u32 4294901760, %v4741_v50 }
 0x3ad   : > { %11997 = vmatprep.subr.bf16.mxu0 %v22338_v21  ;;  %v4795_v21 = vand.u32 4294901760, %v17020_v62 }
 0x3af   : > { %11615 = vmatpush1.bf16.msra.mxu1 %v22339_v30 }
 0x3b0   : > { %11999 = vmatpush1.bf16.msra.mxu0 %v22340_v1  ;;  %11617 = vmatprep.subr.bf16.mxu1 %v22341_v15  ;;  %v17046_v1 = vld [vmem:[%s19860_s8 + $0x60] sm:$0xff]  ;;  %v17051_v15 = vld [vmem:[%s19860_s8 + $0x68] sm:$0xff] }
 0x3b1   : > { %12001 = vmatprep.subr.bf16.mxu0 %v22342_v32  ;;  %v4742_v32 = vld [vmem:[%s16909_s24 + $0x10] sm:$0xff] }
 0x3b2   : > { %v17072_v35 = vand.u32 4294901760, %v4742_v32 }
 0x3b3   : > { %11619 = vmatpush1.bf16.msra.mxu1 %v22343_v34  ;;  %v17057_v34 = vld [vmem:[%s19860_s8 + $0x70] sm:$0xff] }
 0x3b4   : > { %12003 = vmatpush1.bf16.msra.mxu0 %v22344_v43  ;;  %11621 = vmatprep.subr.bf16.mxu1 %v22345_v36  ;;  %v17062_v43 = vld [vmem:[%s19860_s8 + $0x78] sm:$0xff]  ;;  %v20580_v36 = vand.u32 4294901760, %v17027_v26  ;;  %v20589_v7 = vand.u32 4294901760, %v17057_v34 }
 0x3b5   : > { %12005 = vmatprep.subr.bf16.mxu0 %v22346_v61  ;;  %v20579_v61 = vand.u32 4294901760, %v17029_v8  ;;  %v20587_v4 = vand.u32 4294901760, %v17062_v43 }
 0x3b7   : > { %11623 = vmatpush1.bf16.msra.mxu1 %v22347_v44  ;;  %v20591_v44 = vand.u32 4294901760, %v17046_v1 }
 0x3b8   : > { %12007 = vmatpush1.bf16.msra.mxu0 %v22348_v49  ;;  %11625 = vmatprep.subr.bf16.mxu1 %v22349_v57  ;;  %v20590_v49 = vand.u32 4294901760, %v17051_v15  ;;  %v17070_v57 = vsub.f32 %v4741_v50, %v17032_v24 }
 0x3b9   : > { %12009 = vmatprep.subr.bf16.mxu0 %v22350_v63  ;;  %v4743_v63 = vld [vmem:[%s16909_s24 + $0x18] sm:$0xff] }
 0x3ba   : > { %v17104_v14 = vpack.c.bf16 %v20590_v49, %v20591_v44  ;;  %v20576_v55 = vand.u32 4294901760, %v17070_v57 }
 0x3bb   : > { %11627 = vmatpush1.bf16.msra.mxu1 %v22351_v3 }
 0x3bc   : > { %12011 = vmatpush1.bf16.msra.mxu0 %v22352_v37  ;;  %11629 = vmatprep.subr.bf16.mxu1 %v22353_v38  ;;  %v17083_v37 = vsub.f32 %v16938_v23, %v4771_v19  ;;  %v17086_v38 = vsub.f32 %v16943_v9, %v4774_v17  ;;  %v4745_v9 = vld [vmem:[%s16909_s24 + $0x28] sm:$0xff]  ;;  %v4746_v19 = vld [vmem:[%s16909_s24 + $0x30] sm:$0xff]  ;;  %v17131_v17 = vpack.c.bf16 %v20587_v4, %v20589_v7 }
 0x3bd   : > { %12013 = vmatprep.subr.bf16.mxu0 %v22354_v48  ;;  %v4744_v48 = vld [vmem:[%s16909_s24 + $0x20] sm:$0xff] }
 0x3be   : > { %v17110_v23 = vand.u32 4294901760, %v4744_v48 }
 0x3bf   : > { %11631 = vmatpush1.bf16.msra.mxu1 %v22355_v16  ;;  %v4929_v16 = vsub.f32 %v17027_v26, %v20580_v36 }
 0x3c0   : > { %12015 = vmatpush1.bf16.msra.mxu0 %v22356_v51  ;;  %11633 = vmatprep.subr.bf16.mxu1 %v22357_v5  ;;  %v4936_v51 = vsub.f32 %v17029_v8, %v20579_v61  ;;  %v17097_v5 = vand.u32 4294901760, %v4743_v63 }
 0x3c1   : > { %12017 = vmatprep.subr.bf16.mxu0 %v22358_v25  ;;  %v17108_v25 = vsub.f32 %v4742_v32, %v17072_v35 }
 0x3c3   : > { %11635 = vmatpush1.bf16.msra.mxu1 %v22359_v10  ;;  %v20577_v10 = vand.u32 4294901760, %v17083_v37 }
 0x3c4   : > { %12019 = vmatpush1.bf16.msra.mxu0 %v22360_v18  ;;  %11637 = vmatprep.subr.bf16.mxu1 %v22361_v13  ;;  %v20578_v18 = vand.u32 4294901760, %v17086_v38  ;;  %v17119_v13 = vsub.f32 %v16957_v60, %v4777_v39  ;;  %v4930_v60 = vand.u32 4294901760, %v4929_v16  ;;  %v17140_v39 = vsub.f32 %v4743_v63, %v17097_v5 }
 0x3c5   : > { %12021 = vmatprep.subr.bf16.mxu0 %v22362_v52  ;;  %v17124_v52 = vsub.f32 %v16962_v59, %v4780_v40  ;;  %v17142_v59 = vand.u32 4294901760, %v4745_v9  ;;  %v4858_v40 = vsub.f32 %v17070_v57, %v20576_v55  ;;  %v17174_v55 = vsub.f32 %v17007_v41, %v4792_v27 }
 0x3c6   : > { %v4950_v50 = vsub.f32 %v17086_v38, %v20578_v18  ;;  %v20584_v32 = vand.u32 4294901760, %v17119_v13  ;;  %v20588_v18 = vand.u32 4294901760, %v17140_v39 }
 0x3c7   : > { %11639 = vmatpush1.bf16.msra.mxu1 %v22363_v46  ;;  %v17134_v46 = vsub.f32 %v16978_v29, %v4783_v58  ;;  %v17150_v29 = vsub.f32 %v4744_v48, %v17110_v23  ;;  %v20583_v63 = vand.u32 4294901760, %v17124_v52  ;;  %v17178_v61 = vsub.f32 %v4745_v9, %v17142_v59 }
 0x3c8   : > { %12023 = vmatpush1.bf16.msra.mxu0 %v22364_v20  ;;  %12025 = vmatprep.subr.bf16.mxu1 %v16949_v54  ;;  %v4937_v20 = vand.u32 4294901760, %v4936_v51  ;;  %v4859_v0 = vand.u32 4294901760, %v4858_v40  ;;  %v4957_v9 = vsub.f32 %v17119_v13, %v20584_v32 }
 0x3c9   : > { %v20585_v48 = vand.u32 4294901760, %v17134_v46  ;;  %v4897_v32 = vand.u32 4294901760, %v17178_v61 }
 0x3ca   : > { %3348 = vmatmul.mubr.f32.vlgmr.msra.gmra.mrb[0].mxu1 %v22300_v31  ;;  %v4958_v7 = vand.u32 4294901760, %v4957_v9 }
 0x3cb   : > { %4694 = vmatmul.mubr.f32.vlgmr.msra.gmra.mrb[4].mxu0 %v22300_v31  ;;  %3354 = vmatprep.mubr.f32.mxu1 %v22301_v56  ;;  %v4786_v31 = vand.u32 4294901760, %v16983_v12  ;;  %v4971_v40 = vsub.f32 %v17134_v46, %v20585_v48 }
 0x3cc   : > { %4700 = vmatprep.mubr.f32.mxu0 %v22301_v56  ;;  %12027 = vmatpush3.bf16.msra.mxu1 %v16949_v54  ;;  %v17002_v56 = vld [vmem:[%s19860_s8 + $0x40] sm:$0xff] }
 0x3cd   : > { %12029 = vmatprep.subr.bf16.mxu1 %v16970_v53  ;;  %v17012_v45 = vpack.c.bf16 %v4786_v31, %v4783_v58  ;;  %v4789_v28 = vand.u32 4294901760, %v17002_v56  ;;  %v17137_v42 = vsub.f32 %v16983_v12, %v4786_v31  ;;  %v17152_v12 = vand.u32 4294901760, %v4746_v19  ;;  %v4747_v58 = vld [vmem:[%s16909_s24 + $0x38] sm:$0xff] }
 0x3ce   : > { %3356 = vmatmul.mubr.f32.gmra.mrb[2].mxu1 %v22305_v2  ;;  %v4943_v31 = vsub.f32 %v17083_v37, %v20577_v10  ;;  %v12056_v10 = vpack.c.bf16 %v4937_v20, %v4930_v60  ;;  %v17180_v36 = vand.u32 4294901760, %v4747_v58  ;;  %v4951_v60 = vand.u32 4294901760, %v4950_v50 }
 0x3cf   : > { %4702 = vmatmul.mubr.f32.gmra.mrb[6].mxu0 %v22305_v2  ;;  %10376 = vmatprep.mubr.f32.mxu1 %v4849_v33  ;;  %v17025_v2 = vld [vmem:[%s19860_s8 + $0x58] sm:$0xff]  ;;  %v17039_v47 = vpack.c.bf16 %v4792_v27, %v4789_v28  ;;  %v20582_v33 = vand.u32 4294901760, %v17108_v25  ;;  %v20586_v16 = vand.u32 4294901760, %v17137_v42  ;;  %v17169_v51 = vsub.f32 %v17002_v56, %v4789_v28 }
 0x3d0   : > { %12031 = vmatpush3.bf16.msra.mxu1 %v16970_v53  ;;  %v4798_v30 = vand.u32 4294901760, %v17025_v2  ;;  %v20592_v28 = vand.u32 4294901760, %v17150_v29  ;;  %v17188_v41 = vsub.f32 %v4746_v19, %v17152_v12  ;;  %v4944_v27 = vand.u32 4294901760, %v4943_v31 }
 0x3d1   : > { %12033 = vmatprep.subr.bf16.mxu1 %v16994_v6  ;;  %v4868_v56 = vsub.f32 %v17108_v25, %v20582_v33  ;;  %v4964_v20 = vsub.f32 %v17124_v52, %v20583_v63  ;;  %v4978_v19 = vsub.f32 %v17137_v42, %v20586_v16  ;;  %v20594_v33 = vand.u32 4294901760, %v17169_v51 }
 0x3d2   : > { %v17080_v3 = vpack.c.bf16 %v4798_v30, %v4795_v21  ;;  %v20593_v31 = vand.u32 4294901760, %v17174_v55  ;;  %v17208_v50 = vsub.f32 %v17020_v62, %v4795_v21  ;;  %v4878_v63 = vsub.f32 %v17140_v39, %v20588_v18 }
 0x3d3   : > { %v17215_v48 = vsub.f32 %v4747_v58, %v17180_v36  ;;  %v4869_v16 = vand.u32 4294901760, %v4868_v56  ;;  %v17221_v4 = vsub.f32 %v17025_v2, %v4798_v30  ;;  %v4888_v62 = vsub.f32 %v17150_v29, %v20592_v28 }
 0x3d4   : > { %12035 = vmatpush3.bf16.msra.mxu1 %v16994_v6  ;;  %v20595_v21 = vand.u32 4294901760, %v17188_v41  ;;  %v12060_v18 = vpack.c.bf16 %v4951_v60, %v4944_v27  ;;  %v4965_v49 = vand.u32 4294901760, %v4964_v20  ;;  %v4972_v58 = vand.u32 4294901760, %v4971_v40 }
 0x3d5   : > { %12037 = vmatprep.subr.bf16.mxu1 %v17012_v45  ;;  %v4979_v44 = vand.u32 4294901760, %v4978_v19  ;;  %v4985_v56 = vsub.f32 %v17169_v51, %v20594_v33  ;;  %v4992_v2 = vsub.f32 %v17174_v55, %v20593_v31  ;;  %v4879_v30 = vand.u32 4294901760, %v4878_v63 }
 0x3d6   : > { %v4898_v28 = vsub.f32 %v17178_v61, %v4897_v32  ;;  %v4917_v27 = vand.u32 4294901760, %v17215_v48  ;;  %v4998_v60 = vand.u32 4294901760, %v17208_v50  ;;  %v5005_v9 = vand.u32 4294901760, %v17221_v4 }
 0x3d7   : > { %v4889_v20 = vand.u32 4294901760, %v4888_v62  ;;  %v12064_v40 = vpack.c.bf16 %v4965_v49, %v4958_v7  ;;  %v22365_v63 = vand.u32 4294901760, %v17046_v1  ;;  %v22366_v31 = vand.u32 4294901760, %v17051_v15 }
 0x3d8   : > { %12039 = vmatpush3.bf16.msra.mxu1 %v17012_v45  ;;  %v4986_v33 = vand.u32 4294901760, %v4985_v56  ;;  %v4899_v62 = vand.u32 4294901760, %v4898_v28  ;;  %v4993_v49 = vand.u32 4294901760, %v4992_v2  ;;  %v5006_v7 = vsub.f32 %v17221_v4, %v5005_v9 }
 0x3d9   : > { %12041 = vmatprep.subr.bf16.mxu1 %v17039_v47  ;;  %v17245_v19 = vsub.f32 %v17046_v1, %v22365_v63  ;;  %v4999_v1 = vsub.f32 %v17208_v50, %v4998_v60 }
 0x3dc   : > { %12043 = vmatpush3.bf16.msra.mxu1 %v17039_v47 }
 0x3dd   : > { %12045 = vmatprep.subr.bf16.mxu1 %v17080_v3 }
 0x3e0   : > { %12047 = vmatpush3.bf16.msra.mxu1 %v17080_v3 }
 0x3e1   : > { %12049 = vmatprep.subr.bf16.mxu1 %v17104_v14 }
 0x3e4   : > { %12051 = vmatpush3.bf16.msra.mxu1 %v17104_v14 }
 0x3e5   : > { %12053 = vmatprep.subr.bf16.mxu1 %v17131_v17 }
 0x3e8   : > { %12055 = vmatpush3.bf16.msra.mxu1 %v17131_v17 }
 0x3e9   : > { %12057 = vmatprep.subr.bf16.mxu1 %v12056_v10 }
 0x3eb   : > { %10377 = vmatmul.mubr.f32.vlgmr.msra.gmra.mrb[4].mxu1 %v4859_v0  ;;  %v4908_v0 = vsub.f32 %v17188_v41, %v20595_v21  ;;  %v4918_v21 = vsub.f32 %v17215_v48, %v4917_v27 }
 0x3ec   : > { %12059 = vmatpush3.bf16.msra.mxu1 %v12056_v10  ;;  %10379 = vmatprep.mubr.f32.mxu1 %v4869_v16  ;;  %v17250_v10 = vsub.f32 %v17051_v15, %v22366_v31  ;;  %v12068_v16 = vpack.c.bf16 %v4979_v44, %v4972_v58  ;;  %v5012_v44 = vand.u32 4294901760, %v17245_v19  ;;  %v22367_v31 = vand.u32 4294901760, %v17057_v34 }
 0x3ed   : > { %12061 = vmatprep.subr.bf16.mxu1 %v12060_v18  ;;  %v4909_v15 = vand.u32 4294901760, %v4908_v0  ;;  %v22368_v58 = vand.u32 4294901760, %v17062_v43  ;;  %v4919_v2 = vand.u32 4294901760, %v4918_v21  ;;  %v5007_v0 = vand.u32 4294901760, %v5006_v7 }
 0x3ee   : > { %v5019_v28 = vand.u32 4294901760, %v17250_v10  ;;  %v5013_v63 = vsub.f32 %v17245_v19, %v5012_v44 }
 0x3ef   : > { %10380 = vmatmul.mubr.f32.gmra.mrb[6].mxu1 %v4879_v30  ;;  %v17271_v56 = vsub.f32 %v17062_v43, %v22368_v58  ;;  %v12072_v30 = vpack.c.bf16 %v4993_v49, %v4986_v33  ;;  %v12088_v58 = vpack.c.bf16 %v17029_v8, %v17027_v26 }
 0x3f0   : > { %12063 = vmatpush3.bf16.msra.mxu1 %v12060_v18  ;;  %10382 = vmatprep.mubr.f32.mxu1 %v4889_v20  ;;  %v17266_v18 = vsub.f32 %v17057_v34, %v22367_v31  ;;  %v5000_v20 = vand.u32 4294901760, %v4999_v1  ;;  %v5020_v34 = vsub.f32 %v17250_v10, %v5019_v28  ;;  %v5014_v33 = vand.u32 4294901760, %v5013_v63 }
 0x3f1   : > { %12065 = vmatprep.subr.bf16.mxu1 %v12064_v40  ;;  %v5033_v43 = vand.u32 4294901760, %v17271_v56  ;;  %v12108_v63 = vpack.c.bf16 %v17221_v4, %v17208_v50  ;;  %v4730_v50 = vld [vmem:[%s19859_s7 + $0x30] sm:$0xff] }
 0x3f2   : > { %v5026_v31 = vand.u32 4294901760, %v17266_v18  ;;  %v12076_v21 = vpack.c.bf16 %v5007_v0, %v5000_v20  ;;  %v12100_v20 = vpack.c.bf16 %v17137_v42, %v17134_v46  ;;  %v12104_v0 = vpack.c.bf16 %v17174_v55, %v17169_v51 }
 0x3f3   : > { %10383 = vmatmul.mubr.f32.gmra.mrb[8].mxu1 %v4899_v62  ;;  %v5034_v49 = vsub.f32 %v17271_v56, %v5033_v43 }
 0x3f4   : > { %12067 = vmatpush3.bf16.msra.mxu1 %v12064_v40  ;;  %10385 = vmatprep.mubr.f32.mxu1 %v4909_v15  ;;  %v5021_v40 = vand.u32 4294901760, %v5020_v34  ;;  %v5027_v62 = vsub.f32 %v17266_v18, %v5026_v31  ;;  %v12112_v34 = vpack.c.bf16 %v17250_v10, %v17245_v19  ;;  %v4732_v19 = vld [vmem:[%s19859_s7 + $0x40] sm:$0xff]  ;;  %v4733_v10 = vld [vmem:[%s19859_s7 + $0x48] sm:$0xff] }
 0x3f5   : > { %12069 = vmatprep.subr.bf16.mxu1 %v12068_v16  ;;  %v5035_v15 = vand.u32 4294901760, %v5034_v49  ;;  %v22372_v49 = vand.u32 4294901760, %v17083_v37 }
 0x3f6   : > { %v12080_v1 = vpack.c.bf16 %v5021_v40, %v5014_v33  ;;  %v5028_v7 = vand.u32 4294901760, %v5027_v62  ;;  %v22369_v33 = vand.u32 4294901760, %v16930_v22  ;;  %v22370_v40 = vand.u32 4294901760, %v17027_v26 }
 0x3f7   : > { %10386 = vmatmul.mubr.f32.gmra.mrb[10].mxu1 %v4919_v2  ;;  %v12092_v2 = vpack.c.bf16 %v17086_v38, %v17083_v37  ;;  %v22371_v62 = vand.u32 4294901760, %v17029_v8  ;;  %v22376_v26 = vand.u32 4294901760, %v17119_v13  ;;  %v22377_v8 = vand.u32 4294901760, %v17124_v52 }
 0x3f8   : > { %12071 = vmatpush3.bf16.msra.mxu1 %v12068_v16  ;;  %10420 = vmatprep.mubr.f32.mxu1 %v16917_v11  ;;  %v12084_v16 = vpack.c.bf16 %v5035_v15, %v5028_v7  ;;  %v22374_v15 = vand.u32 4294901760, %v17070_v57  ;;  %v22379_v37 = vand.u32 4294901760, %v17150_v29 }
 0x3f9   : > { %12073 = vmatprep.subr.bf16.mxu1 %v12072_v30 }
 0x3fc   : > { %12075 = vmatpush3.bf16.msra.mxu1 %v12072_v30  ;;  %v12096_v30 = vpack.c.bf16 %v17124_v52, %v17119_v13  ;;  %v22382_v13 = vand.u32 4294901760, %v17188_v41  ;;  %v22383_v52 = vand.u32 4294901760, %v17169_v51 }
 0x3fd   : > { %12077 = vmatprep.subr.bf16.mxu1 %v12076_v21 }
 0x400   : > { %12079 = vmatpush3.bf16.msra.mxu1 %v12076_v21  ;;  %v12116_v21 = vpack.c.bf16 %v17271_v56, %v17266_v18 }
 0x401   : > { %12081 = vmatprep.subr.bf16.mxu1 %v12080_v1 }
 0x404   : > { %12083 = vmatpush3.bf16.msra.mxu1 %v12080_v1  ;;  %v22373_v1 = vand.u32 4294901760, %v17086_v38  ;;  %v22381_v38 = vand.u32 4294901760, %v17137_v42 }
 0x405   : > { %12085 = vmatprep.subr.bf16.mxu1 %v12084_v16 }
 0x406   : > { %v12156_v7 = vpack.c.bf16 %v22373_v1, %v22372_v49 }
 0x408   : > { %12087 = vmatpush3.bf16.msra.mxu1 %v12084_v16  ;;  %v22375_v16 = vand.u32 4294901760, %v17108_v25 }
 0x409   : > { %12089 = vmatprep.subr.bf16.mxu1 %v12088_v58 }
 0x40b   : > { %10421 = vmatmul.mubr.f32.vlgmr.msra.gmra.mrb[4].mxu1 %v17032_v24 }
 0x40c   : > { %12091 = vmatpush3.bf16.msra.mxu1 %v12088_v58  ;;  %10423 = vmatprep.mubr.f32.mxu1 %v17072_v35  ;;  %v12160_v58 = vpack.c.bf16 %v22377_v8, %v22376_v26 }
 0x40d   : > { %12093 = vmatprep.subr.bf16.mxu1 %v12092_v2 }
 0x40f   : > { %10424 = vmatmul.mubr.f32.gmra.mrb[6].mxu1 %v17097_v5 }
 0x410   : > { %12095 = vmatpush3.bf16.msra.mxu1 %v12092_v2  ;;  %10426 = vmatprep.mubr.f32.mxu1 %v17110_v23  ;;  %v22378_v2 = vand.u32 4294901760, %v17140_v39 }
 0x411   : > { %12097 = vmatprep.subr.bf16.mxu1 %v12096_v30 }
 0x413   : > { %10427 = vmatmul.mubr.f32.gmra.mrb[8].mxu1 %v17142_v59 }
 0x414   : > { %12099 = vmatpush3.bf16.msra.mxu1 %v12096_v30  ;;  %10429 = vmatprep.mubr.f32.mxu1 %v17152_v12  ;;  %v5734_v30 = vand.u32 4294901760, %v4733_v10 }
 0x415   : > { %12101 = vmatprep.subr.bf16.mxu1 %v12100_v20 }
 0x417   : > { %10430 = vmatmul.mubr.f32.gmra.mrb[10].mxu1 %v17180_v36 }
 0x418   : > { %12103 = vmatpush3.bf16.msra.mxu1 %v12100_v20  ;;  %10464 = vmatprep.mubr.f32.mxu1 %v16930_v22  ;;  %v12152_v22 = vpack.c.bf16 %v22371_v62, %v22370_v40  ;;  %v4734_v20 = vld [vmem:[%s19859_s7 + $0x50] sm:$0xff] }
 0x419   : > { %12105 = vmatprep.subr.bf16.mxu1 %v12104_v0  ;;  %v5737_v1 = vand.u32 4294901760, %v4734_v20 }
 0x41c   : > { %12107 = vmatpush3.bf16.msra.mxu1 %v12104_v0  ;;  %v1994_v0 = vld [vmem:[%s19858_s6] sm:$0xf] }
 0x41d   : > { %12109 = vmatprep.subr.bf16.mxu1 %v12108_v63 }
 0x420   : > { %12111 = vmatpush3.bf16.msra.mxu1 %v12108_v63 }
 0x421   : > { %12113 = vmatprep.subr.bf16.mxu1 %v12112_v34 }
 0x424   : > { %12115 = vmatpush3.bf16.msra.mxu1 %v12112_v34 }
 0x425   : > { %12117 = vmatprep.subr.bf16.mxu1 %v12116_v21 }
 0x428   : > { %12119 = vmatpush3.bf16.msra.mxu1 %v12116_v21 }
 0x429   : > { %12121 = vmatprep.subr.bf16.mxu1 %v16949_v54 }
 0x42b   : > { %10465 = vmatmul.mubr.f32.vlgmr.msra.gmra.mrb[4].mxu1 %v17070_v57  ;;  %v22380_v57 = vand.u32 4294901760, %v17134_v46  ;;  %v12180_v46 = vpack.c.bf16 %v5033_v43, %v5026_v31  ;;  %v5731_v43 = vand.u32 4294901760, %v4732_v19 }
 0x42c   : > { %12123 = vmatpush3.bf16.msra.mxu1 %v16949_v54  ;;  %10467 = vmatprep.mubr.f32.mxu1 %v17108_v25 }
 0x42d   : > { %12125 = vmatprep.subr.bf16.mxu1 %v16970_v53  ;;  %v12164_v25 = vpack.c.bf16 %v22381_v38, %v22380_v57  ;;  %v17498_v26 = vpack.c.bf16 %v5734_v30, %v5731_v43  ;;  %v17521_v57 = vld [vmem:[%s19859_s7 + $0x78] sm:$0xff] }
 0x42f   : > { %10468 = vmatmul.mubr.f32.gmra.mrb[6].mxu1 %v17140_v39  ;;  %v22384_v39 = vand.u32 4294901760, %v17174_v55  ;;  %v12176_v55 = vpack.c.bf16 %v5019_v28, %v5012_v44  ;;  %22399 = vst [vmem:[#allocation117_spill] sm:$0xff] %v17498_v26 }
 0x430   : > { %12127 = vmatpush3.bf16.msra.mxu1 %v16970_v53  ;;  %10470 = vmatprep.mubr.f32.mxu1 %v17150_v29 }
 0x431   : > { %12129 = vmatprep.subr.bf16.mxu1 %v16994_v6  ;;  %v12168_v29 = vpack.c.bf16 %v22384_v39, %v22383_v52 }
 0x433   : > { %10471 = vmatmul.mubr.f32.gmra.mrb[8].mxu1 %v17178_v61  ;;  %v12172_v61 = vpack.c.bf16 %v5005_v9, %v4998_v60  ;;  %v5725_v60 = vand.u32 4294901760, %v4730_v50 }
 0x434   : > { %12131 = vmatpush3.bf16.msra.mxu1 %v16994_v6  ;;  %10473 = vmatprep.mubr.f32.mxu1 %v17188_v41 }
 0x435   : > { %12133 = vmatprep.subr.bf16.mxu1 %v17012_v45  ;;  %v17486_v49 = vsub.f32 %v4730_v50, %v5725_v60 }
 0x437   : > { %10474 = vmatmul.mubr.f32.gmra.mrb[10].mxu1 %v17215_v48  ;;  %v4729_v48 = vld [vmem:[%s19859_s7 + $0x28] sm:$0xff]  ;;  %22396 = vst [vmem:[#allocation203_spill] sm:$0xff] %v17486_v49 }
 0x438   : > { %12135 = vmatpush3.bf16.msra.mxu1 %v17012_v45  ;;  %10508 = vmatprep.mubr.f32.mxu1 %v22369_v33  ;;  %v5722_v41 = vand.u32 4294901760, %v4729_v48  ;;  %v22395_v33 = vld [vmem:[#allocation195_spill] sm:$0xff] }
 0x439   : > { %12137 = vmatprep.subr.bf16.mxu1 %v17039_v47  ;;  %v2006_v40 = vsub.s32 2, %v22395_v33  ;;  %v2010_v8 = vsub.s32 3, %v22395_v33 }
 0x43a   : > { %v17460_v56 = vsub.f32 %v4729_v48, %v5722_v41 }
 0x43b   : > { %v17535_v39 = vrot.slane %v1994_v0, %v2006_v40  ;;  %v17585_v40 = vsub.f32 %v4734_v20, %v5737_v1 }
 0x43c   : > { %12139 = vmatpush3.bf16.msra.mxu1 %v17039_v47  ;;  %22393 = vst [vmem:[#allocation115_spill] sm:$0xff] %v17460_v56 }
 0x43d   : > { %12141 = vmatprep.subr.bf16.mxu1 %v17080_v3  ;;  %22406 = vst [vmem:[#allocation208_spill] sm:$0xff] %v17585_v40 }
 0x440   : > { %12143 = vmatpush3.bf16.msra.mxu1 %v17080_v3 }
 0x441   : > { %12145 = vmatprep.subr.bf16.mxu1 %v17104_v14 }
 0x444   : > { %12147 = vmatpush3.bf16.msra.mxu1 %v17104_v14 }
 0x445   : > { %12149 = vmatprep.subr.bf16.mxu1 %v17131_v17 }
 0x448   : > { %12151 = vmatpush3.bf16.msra.mxu1 %v17131_v17 }
 0x449   : > { %12153 = vmatprep.subr.bf16.mxu1 %v12152_v22 }
 0x44b   : > { %10509 = vmatmul.mubr.f32.vlgmr.msra.gmra.mrb[4].mxu1 %v22374_v15 }
 0x44c   : > { %12155 = vmatpush3.bf16.msra.mxu1 %v12152_v22  ;;  %10511 = vmatprep.mubr.f32.mxu1 %v22375_v16  ;;  %v20600_v22 = vand.u32 4294901760, %v17460_v56  ;;  %v22398_v16 = vsub.s32 0, %v22395_v33 }
 0x44d   : > { %12157 = vmatprep.subr.bf16.mxu1 %v12156_v7 }
 0x44f   : > { %10512 = vmatmul.mubr.f32.gmra.mrb[6].mxu1 %v22378_v2  ;;  %v17506_v2 = vsub.f32 %v4732_v19, %v5731_v43 }
 0x450   : > { %12159 = vmatpush3.bf16.msra.mxu1 %v12156_v7  ;;  %10514 = vmatprep.mubr.f32.mxu1 %v22379_v37  ;;  %v17516_v37 = vld [vmem:[%s19859_s7 + $0x70] sm:$0xff] }
 0x451   : > { %12161 = vmatprep.subr.bf16.mxu1 %v12160_v58  ;;  %22400 = vst [vmem:[#allocation204_spill] sm:$0xff] %v17506_v2 }
 0x453   : > { %10515 = vmatmul.mubr.f32.gmra.mrb[8].mxu1 %v4897_v32  ;;  %v4728_v32 = vld [vmem:[%s19859_s7 + $0x20] sm:$0xff] }
 0x454   : > { %12163 = vmatpush3.bf16.msra.mxu1 %v12160_v58  ;;  %10517 = vmatprep.mubr.f32.mxu1 %v22382_v13  ;;  %v17504_v58 = vld [vmem:[%s19859_s7 + $0x60] sm:$0xff] }
 0x455   : > { %12165 = vmatprep.subr.bf16.mxu1 %v12164_v25 }
 0x457   : > { %10518 = vmatmul.mubr.f32.gmra.mrb[10].mxu1 %v4917_v27  ;;  %v4731_v27 = vld [vmem:[%s19859_s7 + $0x38] sm:$0xff] }
 0x458   : > { %12167 = vmatpush3.bf16.msra.mxu1 %v12164_v25  ;;  %10552 = vmatprep.mubr.f32.mxu1 %v16917_v11  ;;  %v5728_v9 = vand.u32 4294901760, %v4731_v27 }
 0x459   : > { %12169 = vmatprep.subr.bf16.mxu1 %v12168_v29 }
 0x45a   : > { %v17465_v31 = vpack.c.bf16 %v5728_v9, %v5725_v60  ;;  %v17491_v15 = vsub.f32 %v4731_v27, %v5728_v9  ;;  %v2011_v9 = vrot.slane %v1994_v0, %v2010_v8 }
 0x45c   : > { %12171 = vmatpush3.bf16.msra.mxu1 %v12168_v29  ;;  %22394 = vst [vmem:[#allocation202_spill] sm:$0xff] %v17465_v31  ;;  %22397 = vst [vmem:[#allocation116_spill] sm:$0xff] %v17491_v15 }
 0x45d   : > { %12173 = vmatprep.subr.bf16.mxu1 %v12172_v61 }
 0x460   : > { %12175 = vmatpush3.bf16.msra.mxu1 %v12172_v61  ;;  %v5906_v61 = vsub.f32 %v17460_v56, %v20600_v22 }
 0x461   : > { %12177 = vmatprep.subr.bf16.mxu1 %v12176_v55 }
 0x462   : > { %v5907_v27 = vand.u32 4294901760, %v5906_v61 }
 0x464   : > { %12179 = vmatpush3.bf16.msra.mxu1 %v12176_v55  ;;  %v20599_v55 = vand.u32 4294901760, %v17486_v49 }
 0x465   : > { %12181 = vmatprep.subr.bf16.mxu1 %v12180_v46 }
 0x466   : > { %v17562_v60 = vsub.f32 %v17486_v49, %v20599_v55 }
 0x468   : > { %12183 = vmatpush3.bf16.msra.mxu1 %v12180_v46 }
 0x469   : > { %12185 = vmatprep.subr.bf16.mxu1 %v16949_v54 }
 0x46b   : > { %10553 = vmatmul.mubr.f32.vlgmr.msra.gmra.mrb[4].mxu1 %v17032_v24 }
 0x46c   : > { %12187 = vmatpush3.bf16.msra.mxu1 %v16949_v54  ;;  %10555 = vmatprep.mubr.f32.mxu1 %v17072_v35  ;;  %v4724_v54 = vld [vmem:[%s19859_s7] sm:$0xff] }
 0x46d   : > { %12189 = vmatprep.subr.bf16.mxu1 %v16970_v53 }
 0x46f   : > { %10556 = vmatmul.mubr.f32.gmra.mrb[6].mxu1 %v17097_v5 }
 0x470   : > { %12191 = vmatpush3.bf16.msra.mxu1 %v16970_v53  ;;  %10558 = vmatprep.mubr.f32.mxu1 %v17110_v23  ;;  %v4725_v53 = vld [vmem:[%s19859_s7 + $0x8] sm:$0xff] }
 0x471   : > { %12193 = vmatprep.subr.bf16.mxu1 %v16994_v6 }
 0x473   : > { %10559 = vmatmul.mubr.f32.gmra.mrb[8].mxu1 %v17142_v59 }
 0x474   : > { %12195 = vmatpush3.bf16.msra.mxu1 %v16994_v6  ;;  %10561 = vmatprep.mubr.f32.mxu1 %v17152_v12  ;;  %v5707_v6 = vand.u32 4294901760, %v4724_v54 }
 0x475   : > { %12197 = vmatprep.subr.bf16.mxu1 %v17012_v45 }
 0x476   : > { %v17449_v44 = vsub.f32 %v4724_v54, %v5707_v6  ;;  %v5743_v54 = vand.u32 4294901760, %v17504_v58 }
 0x477   : > { %10562 = vmatmul.mubr.f32.gmra.mrb[10].mxu1 %v17180_v36 }
 0x478   : > { %12199 = vmatpush3.bf16.msra.mxu1 %v17012_v45  ;;  %10596 = vmatprep.mubr.f32.mxu1 %v16917_v11  ;;  %v5710_v11 = vand.u32 4294901760, %v4725_v53  ;;  %v4726_v45 = vld [vmem:[%s19859_s7 + $0x10] sm:$0xff]  ;;  %22388 = vst [vmem:[#allocation152_spill] sm:$0xff] %v17449_v44 }
 0x479   : > { %12201 = vmatprep.subr.bf16.mxu1 %v17039_v47  ;;  %v5713_v42 = vand.u32 4294901760, %v4726_v45 }
 0x47a   : > { %v17419_v4 = vpack.c.bf16 %v5710_v11, %v5707_v6  ;;  %v17550_v6 = vsub.f32 %v4733_v10, %v5734_v30 }
 0x47b   : > { %v17453_v28 = vsub.f32 %v4726_v45, %v5713_v42  ;;  %v5752_v45 = vand.u32 4294901760, %v17521_v57 }
 0x47c   : > { %12203 = vmatpush3.bf16.msra.mxu1 %v17039_v47  ;;  %v4727_v47 = vld [vmem:[%s19859_s7 + $0x18] sm:$0xff]  ;;  %22385 = vst [vmem:[#allocation85_spill] sm:$0xff] %v17419_v4  ;;  %22402 = vst [vmem:[#allocation118_spill] sm:$0xff] %v17550_v6  ;;  %v20597_v10 = vand.u32 4294901760, %v17550_v6 }
 0x47d   : > { %12205 = vmatprep.subr.bf16.mxu1 %v17080_v3  ;;  %22390 = vst [vmem:[#allocation199_spill] sm:$0xff] %v17453_v28  ;;  %v20603_v34 = vand.u32 4294901760, %v17453_v28 }
 0x47f   : > { %v5885_v13 = vsub.f32 %v17453_v28, %v20603_v34 }
 0x480   : > { %12207 = vmatpush3.bf16.msra.mxu1 %v17080_v3  ;;  %v5716_v3 = vand.u32 4294901760, %v4727_v47 }
 0x481   : > { %12209 = vmatprep.subr.bf16.mxu1 %v17104_v14 }
 0x482   : > { %v17429_v51 = vpack.c.bf16 %v5716_v3, %v5713_v42 }
 0x484   : > { %12211 = vmatpush3.bf16.msra.mxu1 %v17104_v14  ;;  %22386 = vst [vmem:[#allocation141_spill] sm:$0xff] %v17429_v51  ;;  %v5719_v14 = vand.u32 4294901760, %v4728_v32 }
 0x485   : > { %12213 = vmatprep.subr.bf16.mxu1 %v17131_v17 }
 0x486   : > { %v17458_v18 = vsub.f32 %v4728_v32, %v5719_v14  ;;  %v5886_v32 = vand.u32 4294901760, %v5885_v13 }
 0x488   : > { %12215 = vmatpush3.bf16.msra.mxu1 %v17131_v17  ;;  %v17441_v17 = vpack.c.bf16 %v5722_v41, %v5719_v14  ;;  %22392 = vst [vmem:[#allocation201_spill] sm:$0xff] %v17458_v18  ;;  %v20601_v62 = vand.u32 4294901760, %v17458_v18  ;;  %v22403_v14 = vsub.s32 1, %v22395_v33 }
 0x489   : > { %12217 = vmatprep.subr.bf16.mxu1 %v17419_v4 }
 0x48a   : > { %22387 = vst [vmem:[#allocation148_spill] sm:$0xff] %v17441_v17  ;;  %v5899_v29 = vsub.f32 %v17458_v18, %v20601_v62  ;;  %v2003_v41 = vrot.slane %v1994_v0, %v22403_v14 }
 0x48b   : > { %10597 = vmatmul.mubr.f32.vlgmr.msra.gmra.mrb[4].mxu1 %v17032_v24  ;;  %v17451_v24 = vsub.f32 %v4725_v53, %v5710_v11  ;;  %v20596_v53 = vand.u32 4294901760, %v17491_v15  ;;  %v5749_v11 = vand.u32 4294901760, %v17516_v37 }
 0x48c   : > { %12219 = vmatpush3.bf16.msra.mxu1 %v17419_v4  ;;  %10599 = vmatprep.mubr.f32.mxu1 %v17072_v35  ;;  %v17455_v35 = vsub.f32 %v4727_v47, %v5716_v3  ;;  %v20598_v47 = vand.u32 4294901760, %v17506_v2  ;;  %v5900_v50 = vand.u32 4294901760, %v5899_v29 }
 0x48d   : > { %12221 = vmatprep.subr.bf16.mxu1 %v17429_v51  ;;  %22389 = vst [vmem:[#allocation198_spill] sm:$0xff] %v17451_v24  ;;  %v20604_v63 = vand.u32 4294901760, %v17451_v24  ;;  %v17568_v19 = vsub.f32 %v17491_v15, %v20596_v53  ;;  %v17578_v33 = vpack.c.bf16 %v5752_v45, %v5749_v11 }
 0x48e   : > { %22391 = vst [vmem:[#allocation200_spill] sm:$0xff] %v17455_v35  ;;  %v20602_v21 = vand.u32 4294901760, %v17455_v35  ;;  %v17596_v53 = vpack.c.bf16 %v5907_v27, %v5900_v50  ;;  %v20605_v50 = vand.u32 4294901760, %v17585_v40 }
 0x48f   : > { %10600 = vmatmul.mubr.f32.gmra.mrb[6].mxu1 %v17097_v5  ;;  %v17473_v5 = vld [vmem:[%s19859_s7 + $0x58] sm:$0xff]  ;;  %v5878_v25 = vsub.f32 %v17451_v24, %v20604_v63  ;;  %22405 = vst [vmem:[#allocation207_spill] sm:$0xff] %v17578_v33 }
 0x490   : > { %12223 = vmatpush3.bf16.msra.mxu1 %v17429_v51  ;;  %10602 = vmatprep.mubr.f32.mxu1 %v17110_v23  ;;  %v20606_v23 = vand.u32 4294901760, %v17449_v44  ;;  %v5740_v7 = vand.u32 4294901760, %v17473_v5  ;;  %v5892_v52 = vsub.f32 %v17455_v35, %v20602_v21 }
 0x491   : > { %12225 = vmatprep.subr.bf16.mxu1 %v17441_v17  ;;  %v5879_v3 = vand.u32 4294901760, %v5878_v25 }
 0x492   : > { %v5871_v38 = vsub.f32 %v17449_v44, %v20606_v23  ;;  %v17546_v46 = vpack.c.bf16 %v5740_v7, %v5737_v1  ;;  %v5893_v48 = vand.u32 4294901760, %v5892_v52  ;;  %v17593_v52 = vsub.f32 %v17473_v5, %v5740_v7 }
 0x493   : > { %10603 = vmatmul.mubr.f32.gmra.mrb[8].mxu1 %v17142_v59  ;;  %v17496_v59 = vrot.slane %v1994_v0, %v22398_v16  ;;  %v17583_v0 = vsub.f32 %v17506_v2, %v20598_v47  ;;  %v17606_v5 = vsub.f32 %v17550_v6, %v20597_v10  ;;  %v17621_v47 = vsub.f32 %v17504_v58, %v5743_v54 }
 0x494   : > { %12227 = vmatpush3.bf16.msra.mxu1 %v17441_v17  ;;  %10605 = vmatprep.mubr.f32.mxu1 %v17152_v12  ;;  %v17511_v12 = vld [vmem:[%s19859_s7 + $0x68] sm:$0xff]  ;;  %22401 = vst [vmem:[#allocation205_spill] sm:$0xff] %v17546_v46  ;;  %v5872_v42 = vand.u32 4294901760, %v5871_v38  ;;  %v17590_v13 = vpack.c.bf16 %v5893_v48, %v5886_v32  ;;  %22407 = vst [vmem:[#allocation209_spill] sm:$0xff] %v17593_v52  ;;  %v20609_v10 = vand.u32 4294901760, %v17593_v52 }
 0x495   : > { %12229 = vmatprep.subr.bf16.mxu1 %v17465_v31  ;;  %22411 = vst [vmem:[#allocation122_spill] sm:$0xff] %v17621_v47 }
 0x496   : > { %v17588_v25 = vpack.c.bf16 %v5879_v3, %v5872_v42 }
 0x497   : > { %10606 = vmatmul.mubr.f32.gmra.mrb[10].mxu1 %v17180_v36  ;;  %v5746_v36 = vand.u32 4294901760, %v17511_v12 }
 0x498   : > { %12231 = vmatpush3.bf16.msra.mxu1 %v17465_v31 }
 0x499   : > { %12233 = vmatprep.subr.bf16.mxu1 %v17498_v26  ;;  %v17572_v30 = vpack.c.bf16 %v5746_v36, %v5743_v54 }
 0x49b   : > { %22404 = vst [vmem:[#allocation206_spill] sm:$0xff] %v17572_v30 }
 0x49c   : > { %12235 = vmatpush3.bf16.msra.mxu1 %v17498_v26 }
 0x49d   : > { %v3349_v43 = vpop.f32.mrb[0].mxu1  ;;  %12237 = vmatprep.subr.bf16.mxu1 %v17546_v46 }
 0x49e   : > { %v12796_v16 = vadd.f32 %v3349_v43, %v17496_v59  ;;  %v4695_v8 = vpop.f32.mrb[4].mxu0  ;;  %v3351_v38 = vpop.f32.mrb[1].mxu1 }
 0x49f   : > { %v12800_v29 = vadd.f32 %v4695_v8, %v17535_v39  ;;  %v12797_v61 = vadd.f32 %v3351_v38, %v2003_v41  ;;  %v4697_v14 = vpop.f32.mrb[5].mxu0 }
 0x4a0   : > { %v17599_v1 = vand.u32 4294901760, %v12796_v16  ;;  %v12801_v43 = vadd.f32 %v4697_v14, %v2011_v9  ;;  %12239 = vmatpush3.bf16.msra.mxu1 %v17546_v46 }
 0x4a1   : > { %v17608_v7 = vand.u32 4294901760, %v12800_v29  ;;  %v17610_v3 = vand.u32 4294901760, %v12797_v61  ;;  %v3357_v32 = vpop.f32.mrb[2].mxu1  ;;  %12241 = vmatprep.subr.bf16.mxu1 %v17572_v30 }
 0x4a2   : > { %22408 = vst [vmem:[#allocation120_spill] sm:$0xff] %v17599_v1  ;;  %v17616_v27 = vsub.f32 %v12796_v16, %v17599_v1  ;;  %v12798_v8 = vadd.f32 %v3357_v32, %v17496_v59  ;;  %v4703_v38 = vpop.f32.mrb[6].mxu0  ;;  %v3359_v14 = vpop.f32.mrb[3].mxu1  ;;  %v17626_v22 = vand.u32 4294901760, %v12801_v43  ;;  %v17634_v32 = vsub.f32 %v17511_v12, %v5746_v36 }
 0x4a3   : > { %22409 = vst [vmem:[#allocation72_spill] sm:$0xff] %v17608_v7  ;;  %22410 = vst [vmem:[#allocation121_spill] sm:$0xff] %v17610_v3  ;;  %v17624_v55 = vsub.f32 %v12797_v61, %v17610_v3  ;;  %v12802_v62 = vadd.f32 %v4703_v38, %v17535_v39  ;;  %v12799_v21 = vadd.f32 %v3359_v14, %v2003_v41  ;;  %v4705_v34 = vpop.f32.mrb[7].mxu0 }
 0x4a4   : > { %22413 = vst [vmem:[#allocation210_spill] sm:$0xff] %v17626_v22  ;;  %v17629_v16 = vand.u32 4294901760, %v12798_v8  ;;  %v12803_v63 = vadd.f32 %v4705_v34, %v2011_v9  ;;  %12243 = vmatpush3.bf16.msra.mxu1 %v17572_v30  ;;  %v20608_v59 = vand.u32 4294901760, %v17616_v27  ;;  %22415 = vst [vmem:[#allocation212_spill] sm:$0xff] %v17634_v32  ;;  %v17637_v58 = vsub.f32 %v12800_v29, %v17608_v7 }
 0x4a5   : > { %22412 = vst [vmem:[#allocation125_spill] sm:$0xff] %v17624_v55  ;;  %v17639_v54 = vand.u32 4294901760, %v12802_v62  ;;  %v17641_v61 = vand.u32 4294901760, %v12799_v21  ;;  %12245 = vmatprep.subr.bf16.mxu1 %v17578_v33  ;;  %v20607_v39 = vand.u32 4294901760, %v17624_v55  ;;  %v17654_v12 = vsub.f32 %v17516_v37, %v5749_v11  ;;  %v17721_v11 = vld [vmem:[%s19861_s9] sm:$0xff] }
 0x4a6   : > { %22414 = vst [vmem:[#allocation211_spill] sm:$0xff] %v17629_v16  ;;  %22416 = vst [vmem:[#allocation213_spill] sm:$0xff] %v17637_v58  ;;  %v17646_v34 = vsub.f32 %v12798_v8, %v17629_v16  ;;  %v5790_v41 = vsub.f32 %v17616_v27, %v20608_v59  ;;  %v17659_v36 = vsub.f32 %v17521_v57, %v5752_v45  ;;  %v17670_v38 = vand.u32 4294901760, %v12803_v63 }
 0x4a7   : > { %22417 = vst [vmem:[#allocation127_spill] sm:$0xff] %v17639_v54  ;;  %22418 = vst [vmem:[#allocation131_spill] sm:$0xff] %v17641_v61  ;;  %v17662_v9 = vsub.f32 %v12801_v43, %v17626_v22  ;;  %v17665_v29 = vsub.f32 %v12802_v62, %v17639_v54  ;;  %v17668_v8 = vsub.f32 %v12799_v21, %v17641_v61  ;;  %v20618_v45 = vand.u32 4294901760, %v17637_v58 }
 0x4a8   : > { %22419 = vst [vmem:[#allocation79_spill] sm:$0xff] %v17646_v34  ;;  %22420 = vst [vmem:[#allocation240_spill] sm:$0xff] %v17654_v12  ;;  %v20610_v14 = vand.u32 4294901760, %v17646_v34  ;;  %12247 = vmatpush3.bf16.msra.mxu1 %v17578_v33  ;;  %v5791_v37 = vand.u32 4294901760, %v5790_v41  ;;  %v17678_v57 = vsub.f32 %v17585_v40, %v20605_v50  ;;  %v5810_v21 = vsub.f32 %v17624_v55, %v20607_v39 }
 0x4a9   : > { %22421 = vst [vmem:[#allocation243_spill] sm:$0xff] %v17659_v36  ;;  %22422 = vst [vmem:[#allocation135_spill] sm:$0xff] %v17662_v9  ;;  %12249 = vmatprep.subr.bf16.mxu1 %v17588_v25  ;;  %v20611_v62 = vand.u32 4294901760, %v17668_v8  ;;  %v17689_v43 = vsub.f32 %v17593_v52, %v20609_v10  ;;  %v20619_v50 = vand.u32 4294901760, %v17621_v47  ;;  %v17698_v59 = vsub.f32 %v12803_v63, %v17670_v38  ;;  %v17726_v10 = vld [vmem:[%s19861_s9 + $0x8] sm:$0xff] }
 0x4aa   : > { %22423 = vst [vmem:[#allocation136_spill] sm:$0xff] %v17665_v29  ;;  %22424 = vst [vmem:[#allocation251_spill] sm:$0xff] %v17668_v8  ;;  %v5800_v41 = vsub.f32 %v17646_v34, %v20610_v14  ;;  %10640 = vmatprep.mubr.f32.mxu1 %v5791_v37  ;;  %v17706_v14 = vld [vmem:[%s19861_s9 + $0x80] sm:$0xff]  ;;  %v17711_v37 = vld [vmem:[%s19861_s9 + $0x88] sm:$0xff]  ;;  %v5811_v39 = vand.u32 4294901760, %v5810_v21  ;;  %v5942_v48 = vand.u32 4294901760, %v17678_v57 }
 0x4ab   : > { %22425 = vst [vmem:[#allocation214_spill] sm:$0xff] %v17670_v38  ;;  %22426 = vst [vmem:[#allocation215_spill] sm:$0xff] %v17698_v59  ;;  %v5820_v63 = vsub.f32 %v17668_v8, %v20611_v62  ;;  %v5955_v23 = vsub.f32 %v17621_v47, %v20619_v50  ;;  %v22427_v33 = vand.u32 4294901760, %v17634_v32  ;;  %v22428_v21 = vand.u32 4294901760, %v17706_v14 }
 0x4ac   : > { %v5801_v42 = vand.u32 4294901760, %v5800_v41  ;;  %v5830_v41 = vsub.f32 %v17637_v58, %v20618_v45  ;;  %v22429_v46 = vand.u32 4294901760, %v17711_v37  ;;  %v22431_v57 = vand.u32 4294901760, %v17654_v12 }
 0x4ad   : > { %v5962_v30 = vsub.f32 %v17634_v32, %v22427_v33  ;;  %v22432_v50 = vand.u32 4294901760, %v17659_v36  ;;  %v22433_v33 = vand.u32 4294901760, %v17721_v11  ;;  %v22434_v26 = vand.u32 4294901760, %v17726_v10 }
 0x4ae   : > { %10641 = vmatmul.mubr.f32.vlgmr.msra.gmra.mrb[4].mxu1 %v5801_v42  ;;  %v17744_v45 = vpack.c.bf16 %v22429_v46, %v22428_v21  ;;  %v5969_v20 = vsub.f32 %v17654_v12, %v22431_v57  ;;  %v17763_v46 = vld [vmem:[%s19861_s9 + $0x90] sm:$0xff]  ;;  %v17785_v42 = vld [vmem:[%s19861_s9 + $0x18] sm:$0xff]  ;;  %v22437_v17 = vand.u32 4294901760, %v17662_v9 }
 0x4af   : > { %12251 = vmatpush3.bf16.msra.mxu1 %v17588_v25  ;;  %10643 = vmatprep.mubr.f32.mxu1 %v5811_v39  ;;  %v5976_v62 = vsub.f32 %v17659_v36, %v22432_v50  ;;  %v17758_v31 = vpack.c.bf16 %v22434_v26, %v22433_v33  ;;  %v17768_v25 = vld [vmem:[%s19861_s9 + $0x98] sm:$0xff]  ;;  %v5821_v39 = vand.u32 4294901760, %v5820_v63  ;;  %v22436_v50 = vand.u32 4294901760, %v17665_v29  ;;  %v17780_v33 = vld [vmem:[%s19861_s9 + $0x10] sm:$0xff] }
 0x4b0   : > { %22430 = vst [vmem:[#allocation216_spill] sm:$0xff] %v17744_v45  ;;  %12253 = vmatprep.subr.bf16.mxu1 %v17590_v13  ;;  %12409 = vmatprep.subr.bf16.mxu0 %v17744_v45  ;;  %v5831_v63 = vand.u32 4294901760, %v5830_v41  ;;  %v5949_v45 = vand.u32 4294901760, %v17689_v43  ;;  %v5963_v58 = vand.u32 4294901760, %v5962_v30  ;;  %v22438_v8 = vand.u32 4294901760, %v17763_v46 }
 0x4b1   : > { %22435 = vst [vmem:[#allocation217_spill] sm:$0xff] %v17758_v31  ;;  %v5840_v21 = vsub.f32 %v17665_v29, %v22436_v50  ;;  %v5850_v50 = vsub.f32 %v17662_v9, %v22437_v17  ;;  %12411 = vmatpush3.bf16.msra.mxu0 %v17758_v31  ;;  %v5956_v29 = vand.u32 4294901760, %v5955_v23  ;;  %v22439_v51 = vand.u32 4294901760, %v17768_v25 }
 0x4b2   : > { %10644 = vmatmul.mubr.f32.gmra.mrb[6].mxu1 %v5821_v39  ;;  %v22441_v17 = vand.u32 4294901760, %v17562_v60  ;;  %v22442_v26 = vand.u32 4294901760, %v17568_v19  ;;  %v5970_v57 = vand.u32 4294901760, %v5969_v20  ;;  %v5977_v39 = vand.u32 4294901760, %v5976_v62  ;;  %v17819_v60 = vld [vmem:[%s19861_s9 + $0xa8] sm:$0xff] }
 0x4b3   : > { %v17798_v41 = vpack.c.bf16 %v22439_v51, %v22438_v8  ;;  %12255 = vmatpush3.bf16.msra.mxu1 %v17590_v13  ;;  %10646 = vmatprep.mubr.f32.mxu1 %v5831_v63  ;;  %v22443_v43 = vand.u32 4294901760, %v17780_v33  ;;  %v22444_v23 = vand.u32 4294901760, %v17785_v42  ;;  %v17814_v51 = vld [vmem:[%s19861_s9 + $0xa0] sm:$0xff]  ;;  %v5841_v19 = vand.u32 4294901760, %v5840_v21  ;;  %v17836_v63 = vld [vmem:[%s19861_s9 + $0x28] sm:$0xff] }
 0x4b4   : > { %v12260_v31 = vpack.c.bf16 %v22442_v26, %v22441_v17  ;;  %12257 = vmatprep.subr.bf16.mxu1 %v17596_v53  ;;  %v22446_v13 = vand.u32 4294901760, %v17698_v59  ;;  %v17831_v26 = vld [vmem:[%s19861_s9 + $0x20] sm:$0xff]  ;;  %v5851_v21 = vand.u32 4294901760, %v5850_v50  ;;  %v17845_v8 = vpack.c.bf16 %v5949_v45, %v5942_v48 }
 0x4b5   : > { %22440 = vst [vmem:[#allocation218_spill] sm:$0xff] %v17798_v41  ;;  %v17809_v30 = vpack.c.bf16 %v22444_v23, %v22443_v43  ;;  %12413 = vmatprep.subr.bf16.mxu0 %v17798_v41  ;;  %v6757_v17 = vand.u32 4294901760, %v17831_v26  ;;  %v22447_v23 = vand.u32 4294901760, %v17583_v0  ;;  %v17847_v41 = vpack.c.bf16 %v5963_v58, %v5956_v29  ;;  %v6702_v58 = vld [vmem:[%s19861_s9 + $0xb0] sm:$0xff] }
 0x4b6   : > { %v5860_v20 = vsub.f32 %v17698_v59, %v22446_v13  ;;  %10647 = vmatmul.mubr.f32.gmra.mrb[8].mxu1 %v5841_v19  ;;  %v22448_v13 = vand.u32 4294901760, %v17606_v5  ;;  %v22449_v59 = vand.u32 4294901760, %v17814_v51  ;;  %v22450_v50 = vand.u32 4294901760, %v17819_v60  ;;  %v6687_v19 = vld [vmem:[%s19861_s9 + $0x38] sm:$0xff] }
 0x4b7   : > { %22445 = vst [vmem:[#allocation219_spill] sm:$0xff] %v17809_v30  ;;  %12415 = vmatpush3.bf16.msra.mxu0 %v17809_v30  ;;  %12259 = vmatpush3.bf16.msra.mxu1 %v17596_v53  ;;  %v17856_v43 = vpack.c.bf16 %v5977_v39, %v5970_v57  ;;  %v17860_v0 = vpack.c.bf16 %v17451_v24, %v17449_v44  ;;  %v22452_v5 = vand.u32 4294901760, %v17836_v63  ;;  %v6811_v45 = vand.u32 4294901760, %v6702_v58  ;;  %v6686_v39 = vld [vmem:[%s19861_s9 + $0x30] sm:$0xff] }
 0x4b8   : > { %v12264_v62 = vpack.c.bf16 %v22448_v13, %v22447_v23  ;;  %v17853_v9 = vpack.c.bf16 %v22450_v50, %v22449_v59  ;;  %10649 = vmatprep.mubr.f32.mxu1 %v5851_v21  ;;  %v6703_v59 = vld [vmem:[%s19861_s9 + $0xb8] sm:$0xff]  ;;  %12261 = vmatprep.subr.bf16.mxu1 %v12260_v31  ;;  %v5861_v53 = vand.u32 4294901760, %v5860_v20  ;;  %v17874_v29 = vpack.c.bf16 %v17455_v35, %v17453_v28 }
 0x4b9   : > { %v17864_v48 = vpack.c.bf16 %v22452_v5, %v6757_v17  ;;  %v6814_v57 = vand.u32 4294901760, %v6703_v59  ;;  %v17885_v21 = vpack.c.bf16 %v17460_v56, %v17458_v18  ;;  %v17889_v20 = vpack.c.bf16 %v17491_v15, %v17486_v49 }
 0x4ba   : > { %22451 = vst [vmem:[#allocation220_spill] sm:$0xff] %v17853_v9  ;;  %12417 = vmatprep.subr.bf16.mxu0 %v17853_v9  ;;  %v6763_v23 = vand.u32 4294901760, %v6686_v39  ;;  %v6766_v13 = vand.u32 4294901760, %v6687_v19  ;;  %10650 = vmatmul.mubr.f32.gmra.mrb[10].mxu1 %v5861_v53  ;;  %v17894_v50 = vpack.c.bf16 %v17550_v6, %v17506_v2  ;;  %v17898_v5 = vpack.c.bf16 %v17593_v52, %v17585_v40  ;;  %v6688_v40 = vld [vmem:[%s19861_s9 + $0x40] sm:$0xff]  ;;  %v6689_v2 = vld [vmem:[%s19861_s9 + $0x48] sm:$0xff] }
 0x4bb   : > { %22453 = vst [vmem:[#allocation221_spill] sm:$0xff] %v17864_v48  ;;  %12419 = vmatpush3.bf16.msra.mxu0 %v17864_v48  ;;  %v17902_v9 = vpack.c.bf16 %v17634_v32, %v17621_v47  ;;  %v17904_v30 = vpack.c.bf16 %v6814_v57, %v6811_v45  ;;  %12263 = vmatpush3.bf16.msra.mxu1 %v12260_v31  ;;  %v22455_v48 = vand.u32 4294901760, %v17706_v14  ;;  %v6704_v32 = vld [vmem:[%s19861_s9 + $0xc0] sm:$0xff]  ;;  %v6705_v31 = vld [vmem:[%s19861_s9 + $0xc8] sm:$0xff]  ;;  %v6772_v15 = vand.u32 4294901760, %v6689_v2 }
 0x4bc   : > { %10684 = vmatprep.mubr.f32.mxu1 %v17599_v1  ;;  %v17909_v53 = vpack.c.bf16 %v17659_v36, %v17654_v12  ;;  %v17916_v52 = vpack.c.bf16 %v6766_v13, %v6763_v23  ;;  %12265 = vmatprep.subr.bf16.mxu1 %v12264_v62  ;;  %v22457_v1 = vand.u32 4294901760, %v17711_v37  ;;  %v6817_v12 = vand.u32 4294901760, %v6704_v32 }
 0x4bd   : > { %22454 = vst [vmem:[#allocation222_spill] sm:$0xff] %v17904_v30  ;;  %v17914_v6 = vsub.f32 %v17706_v14, %v22455_v48  ;;  %v22458_v14 = vand.u32 4294901760, %v17721_v11  ;;  %12421 = vmatprep.subr.bf16.mxu0 %v17904_v30  ;;  %v6820_v47 = vand.u32 4294901760, %v6705_v31  ;;  %v6769_v30 = vand.u32 4294901760, %v6688_v40 }
 0x4be   : > { %22456 = vst [vmem:[#allocation223_spill] sm:$0xff] %v17916_v52  ;;  %v17927_v36 = vsub.f32 %v17711_v37, %v22457_v1  ;;  %v22459_v1 = vand.u32 4294901760, %v17726_v10  ;;  %v22461_v49 = vand.u32 4294901760, %v17768_v25  ;;  %v22462_v18 = vand.u32 4294901760, %v17780_v33 }
 0x4bf   : > { %v17932_v48 = vsub.f32 %v17721_v11, %v22458_v14  ;;  %v22460_v11 = vand.u32 4294901760, %v17763_v46  ;;  %12423 = vmatpush3.bf16.msra.mxu0 %v17916_v52  ;;  %12267 = vmatpush3.bf16.msra.mxu1 %v12264_v62  ;;  %v22465_v52 = vand.u32 4294901760, %v17814_v51  ;;  %v6707_v62 = vld [vmem:[%s19861_s9 + $0xd8] sm:$0xff]  ;;  %v18018_v28 = vsub.f32 %v6704_v32, %v6817_v12  ;;  %v6708_v32 = vld [vmem:[%s19861_s9 + $0xe0] sm:$0xff] }
 0x4c0   : > { %v17944_v37 = vsub.f32 %v17726_v10, %v22459_v1  ;;  %v17956_v56 = vsub.f32 %v17768_v25, %v22461_v49  ;;  %v17961_v10 = vsub.f32 %v17780_v33, %v22462_v18  ;;  %v22463_v1 = vand.u32 4294901760, %v17785_v42  ;;  %12269 = vmatprep.subr.bf16.mxu1 %v17845_v8 }
 0x4c1   : > { %v17949_v14 = vsub.f32 %v17763_v46, %v22460_v11  ;;  %v17968_v11 = vpack.c.bf16 %v6820_v47, %v6817_v12  ;;  %v17973_v35 = vsub.f32 %v17814_v51, %v22465_v52  ;;  %v22466_v49 = vand.u32 4294901760, %v17819_v60 }
 0x4c2   : > { %v17966_v46 = vsub.f32 %v17785_v42, %v22463_v1  ;;  %v17981_v18 = vsub.f32 %v17831_v26, %v6757_v17  ;;  %v17983_v33 = vpack.c.bf16 %v6772_v15, %v6769_v30  ;;  %v6706_v42 = vld [vmem:[%s19861_s9 + $0xd0] sm:$0xff]  ;;  %v22468_v52 = vand.u32 4294901760, %v17836_v63 }
 0x4c3   : > { %22464 = vst [vmem:[#allocation224_spill] sm:$0xff] %v17968_v11  ;;  %v17978_v25 = vsub.f32 %v17819_v60, %v22466_v49  ;;  %v17997_v60 = vsub.f32 %v6702_v58, %v6811_v45  ;;  %12425 = vmatprep.subr.bf16.mxu0 %v17968_v11  ;;  %v6823_v26 = vand.u32 4294901760, %v6706_v42  ;;  %v6826_v17 = vand.u32 4294901760, %v6707_v62  ;;  %v6690_v1 = vld [vmem:[%s19861_s9 + $0x50] sm:$0xff]  ;;  %v6691_v49 = vld [vmem:[%s19861_s9 + $0x58] sm:$0xff]  ;;  %12271 = vmatpush3.bf16.msra.mxu1 %v17845_v8  ;;  %v6693_v8 = vld [vmem:[%s19861_s9 + $0x68] sm:$0xff] }
 0x4c4   : > { %22467 = vst [vmem:[#allocation225_spill] sm:$0xff] %v17983_v33  ;;  %v17995_v51 = vsub.f32 %v17836_v63, %v22468_v52  ;;  %v18011_v63 = vsub.f32 %v6703_v59, %v6814_v57  ;;  %v18013_v58 = vsub.f32 %v6686_v39, %v6763_v23  ;;  %12427 = vmatpush3.bf16.msra.mxu0 %v17983_v33  ;;  %v6775_v45 = vand.u32 4294901760, %v6690_v1  ;;  %v6710_v33 = vld [vmem:[%s19861_s9 + $0xf0] sm:$0xff] }
 0x4c5   : > { %v6778_v52 = vand.u32 4294901760, %v6691_v49  ;;  %v18016_v11 = vsub.f32 %v6687_v19, %v6766_v13  ;;  %v18020_v24 = vsub.f32 %v6705_v31, %v6820_v47  ;;  %v18022_v44 = vpack.c.bf16 %v6826_v17, %v6823_v26  ;;  %v6709_v47 = vld [vmem:[%s19861_s9 + $0xe8] sm:$0xff]  ;;  %12273 = vmatprep.subr.bf16.mxu1 %v17847_v41 }
 0x4c6   : > { %v18025_v55 = vsub.f32 %v6688_v40, %v6769_v30  ;;  %v18027_v59 = vsub.f32 %v6689_v2, %v6772_v15  ;;  %v18029_v57 = vsub.f32 %v6706_v42, %v6823_v26  ;;  %v18041_v40 = vsub.f32 %v6707_v62, %v6826_v17  ;;  %v6692_v30 = vld [vmem:[%s19861_s9 + $0x60] sm:$0xff]  ;;  %v6649_v19 = vld [vmem:[%s18009_s13 + $0x8] sm:$0xff] }
 0x4c7   : > { %22469 = vst [vmem:[#allocation226_spill] sm:$0xff] %v18022_v44  ;;  %v18031_v39 = vpack.c.bf16 %v6778_v52, %v6775_v45  ;;  %12429 = vmatprep.subr.bf16.mxu0 %v18022_v44  ;;  %v18043_v15 = vsub.f32 %v6690_v1, %v6775_v45  ;;  %v6829_v2 = vand.u32 4294901760, %v6708_v32  ;;  %v6832_v12 = vand.u32 4294901760, %v6709_v47  ;;  %v6648_v62 = vld [vmem:[%s18009_s13] sm:$0xff]  ;;  %12275 = vmatpush3.bf16.msra.mxu1 %v17847_v41  ;;  %v6711_v1 = vld [vmem:[%s19861_s9 + $0xf8] sm:$0xff] }
 0x4c8   : > { %v18053_v23 = vsub.f32 %v6691_v49, %v6778_v52  ;;  %v6781_v13 = vand.u32 4294901760, %v6692_v30  ;;  %v6784_v31 = vand.u32 4294901760, %v6693_v8  ;;  %v18055_v42 = vand.u32 4294901760, %v6649_v19  ;;  %12277 = vmatprep.subr.bf16.mxu1 %v17856_v43 }
 0x4c9   : > { %22470 = vst [vmem:[#allocation227_spill] sm:$0xff] %v18031_v39  ;;  %12431 = vmatpush3.bf16.msra.mxu0 %v18031_v39  ;;  %v18058_v26 = vpack.c.bf16 %v6832_v12, %v6829_v2  ;;  %v20690_v17 = vand.u32 4294901760, %v17914_v6  ;;  %v18062_v45 = vand.u32 4294901760, %v6648_v62  ;;  %v18065_v44 = vsub.f32 %v6708_v32, %v6829_v2  ;;  %v6694_v2 = vld [vmem:[%s19861_s9 + $0x70] sm:$0xff] }
 0x4ca   : > { %22471 = vst [vmem:[#allocation228_spill] sm:$0xff] %v18053_v23  ;;  %22472 = vst [vmem:[#allocation229_spill] sm:$0xff] %v18055_v42  ;;  %v18067_v39 = vsub.f32 %v6709_v47, %v6832_v12  ;;  %v18069_v49 = vpack.c.bf16 %v6784_v31, %v6781_v13  ;;  %v18071_v52 = vsub.f32 %v6692_v30, %v6781_v13  ;;  %v6835_v32 = vand.u32 4294901760, %v6710_v33  ;;  %v6695_v12 = vld [vmem:[%s19861_s9 + $0x78] sm:$0xff] }
 0x4cb   : > { %22473 = vst [vmem:[#allocation230_spill] sm:$0xff] %v18058_v26  ;;  %22474 = vst [vmem:[#allocation231_spill] sm:$0xff] %v18062_v45  ;;  %12433 = vmatprep.subr.bf16.mxu0 %v18058_v26  ;;  %v18081_v41 = vsub.f32 %v6693_v8, %v6784_v31  ;;  %v6838_v47 = vand.u32 4294901760, %v6711_v1  ;;  %v7077_v30 = vsub.f32 %v17914_v6, %v20690_v17  ;;  %v6787_v13 = vand.u32 4294901760, %v6694_v2 }
 0x4cc   : > { %22475 = vst [vmem:[#allocation232_spill] sm:$0xff] %v18065_v44  ;;  %22476 = vst [vmem:[#allocation233_spill] sm:$0xff] %v18067_v39  ;;  %v6790_v26 = vand.u32 4294901760, %v6695_v12  ;;  %v22480_v8 = vand.u32 4294901760, %v17927_v36  ;;  %v20695_v44 = vand.u32 4294901760, %v17932_v48  ;;  %12279 = vmatpush3.bf16.msra.mxu1 %v17856_v43  ;;  %v18104_v17 = vsub.f32 %v6710_v33, %v6835_v32 }
 0x4cd   : > { %22477 = vst [vmem:[#allocation234_spill] sm:$0xff] %v18069_v49  ;;  %22478 = vst [vmem:[#allocation235_spill] sm:$0xff] %v18071_v52  ;;  %12435 = vmatpush3.bf16.msra.mxu0 %v18069_v49  ;;  %v18099_v52 = vpack.c.bf16 %v6838_v47, %v6835_v32  ;;  %v7078_v39 = vand.u32 4294901760, %v7077_v30  ;;  %v18106_v49 = vsub.f32 %v6711_v1, %v6838_v47  ;;  %12281 = vmatprep.subr.bf16.mxu1 %v17860_v0 }
 0x4ce   : > { %22479 = vst [vmem:[#allocation236_spill] sm:$0xff] %v18081_v41  ;;  %v7084_v31 = vsub.f32 %v17927_v36, %v22480_v8  ;;  %v18097_v41 = vsub.f32 %v6649_v19, %v18055_v42  ;;  %v18108_v4 = vpack.c.bf16 %v6790_v26, %v6787_v13  ;;  %v18110_v8 = vsub.f32 %v6694_v2, %v6787_v13  ;;  %v6653_v2 = vld [vmem:[%s18009_s13 + $0x28] sm:$0xff] }
 0x4cf   : > { %22482 = vst [vmem:[#allocation238_spill] sm:$0xff] %v18099_v52  ;;  %12437 = vmatprep.subr.bf16.mxu0 %v18099_v52  ;;  %v18114_v19 = vsub.f32 %v6695_v12, %v6790_v26  ;;  %v6965_v43 = vsub.f32 %v17932_v48, %v20695_v44  ;;  %v22484_v33 = vand.u32 4294901760, %v17944_v37  ;;  %v18125_v32 = vsub.f32 %v6648_v62, %v18062_v45 }
 0x4d0   : > { %22481 = vst [vmem:[#allocation237_spill] sm:$0xff] %v18097_v41  ;;  %22483 = vst [vmem:[#allocation15_spill] sm:$0xff] %v18108_v4  ;;  %v7085_v30 = vand.u32 4294901760, %v7084_v31  ;;  %v20696_v34 = vand.u32 4294901760, %v18097_v41  ;;  %v20701_v26 = vand.u32 4294901760, %v17949_v14  ;;  %10685 = vmatmul.mubr.f32.vlgmr.msra.gmra.mrb[4].mxu1 %v17629_v16  ;;  %v12474_v47 = vpack.c.bf16 %v17944_v37, %v17932_v48 }
 0x4d1   : > { %12439 = vmatpush3.bf16.msra.mxu0 %v18108_v4  ;;  %v6972_v1 = vsub.f32 %v17944_v37, %v22484_v33  ;;  %22485 = vst [vmem:[#allocation16_spill] sm:$0xff] %v18125_v32  ;;  %v6966_v31 = vand.u32 4294901760, %v6965_v43  ;;  %v12472_v33 = vpack.c.bf16 %v17927_v36, %v17914_v6  ;;  %10687 = vmatprep.mubr.f32.mxu1 %v17610_v3  ;;  %v20704_v44 = vand.u32 4294901760, %v17961_v10 }
 0x4d2   : > { %v18131_v12 = vpack.c.bf16 %v7085_v30, %v7078_v39  ;;  %v6843_v13 = vsub.f32 %v18097_v41, %v20696_v34  ;;  %12283 = vmatpush3.bf16.msra.mxu1 %v17860_v0  ;;  %v7091_v39 = vsub.f32 %v17949_v14, %v20701_v26  ;;  %v6652_v30 = vld [vmem:[%s18009_s13 + $0x20] sm:$0xff]  ;;  %v22487_v34 = vand.u32 4294901760, %v17956_v56 }
 0x4d3   : > { %v6973_v62 = vand.u32 4294901760, %v6972_v1  ;;  %12285 = vmatprep.subr.bf16.mxu1 %v17874_v29  ;;  %12473 = vmatprep.subr.bf16.mxu0 %v12472_v33  ;;  %v18151_v1 = vand.u32 4294901760, %v6653_v2  ;;  %v22490_v52 = vand.u32 4294901760, %v18125_v32  ;;  %v20707_v3 = vand.u32 4294901760, %v17966_v46 }
 0x4d4   : > { %22486 = vst [vmem:[#allocation17_spill] sm:$0xff] %v18131_v12  ;;  %v6844_v43 = vand.u32 4294901760, %v6843_v13  ;;  %v7098_v0 = vsub.f32 %v17956_v56, %v22487_v34  ;;  %v7092_v12 = vand.u32 4294901760, %v7091_v39  ;;  %10688 = vmatmul.mubr.f32.gmra.mrb[6].mxu1 %v17641_v61  ;;  %v18167_v33 = vand.u32 4294901760, %v6652_v30 }
 0x4d5   : > { %22488 = vst [vmem:[#allocation18_spill] sm:$0xff] %v18151_v1  ;;  %v18154_v4 = vpack.c.bf16 %v6973_v62, %v6966_v31  ;;  %v6849_v26 = vsub.f32 %v18125_v32, %v22490_v52  ;;  %v18162_v34 = vsub.f32 %v6653_v2, %v18151_v1  ;;  %v6979_v31 = vsub.f32 %v17961_v10, %v20704_v44  ;;  %v6657_v62 = vld [vmem:[%s18009_s13 + $0x48] sm:$0xff]  ;;  %v6672_v1 = vld [vmem:[%s18009_s13 + $0xc0] sm:$0xff] }
 0x4d6   : > { %6845 = vmatprep.mubr.f32.mxu0 %v6844_v43  ;;  %v7099_v13 = vand.u32 4294901760, %v7098_v0  ;;  %22492 = vst [vmem:[#allocation43_spill] sm:$0xff] %v18167_v33  ;;  %10690 = vmatprep.mubr.f32.mxu1 %v17608_v7  ;;  %v6986_v39 = vsub.f32 %v17966_v46, %v20707_v3  ;;  %v12476_v2 = vpack.c.bf16 %v17956_v56, %v17949_v14  ;;  %v20713_v3 = vand.u32 4294901760, %v17973_v35 }
 0x4d7   : > { %22489 = vst [vmem:[#allocation239_spill] sm:$0xff] %v18154_v4  ;;  %22491 = vst [vmem:[#allocation196_spill] sm:$0xff] %v18162_v34  ;;  %12287 = vmatpush3.bf16.msra.mxu1 %v17874_v29  ;;  %v6850_v52 = vand.u32 4294901760, %v6849_v26  ;;  %v12478_v43 = vpack.c.bf16 %v17966_v46, %v17961_v10  ;;  %v20712_v44 = vand.u32 4294901760, %v18162_v34  ;;  %v6980_v4 = vand.u32 4294901760, %v6979_v31  ;;  %v6656_v26 = vld [vmem:[%s18009_s13 + $0x40] sm:$0xff] }
 0x4d8   : > { %12289 = vmatprep.subr.bf16.mxu1 %v17885_v21  ;;  %v18180_v0 = vpack.c.bf16 %v7099_v13, %v7092_v12  ;;  %v18184_v29 = vsub.f32 %v6652_v30, %v18167_v33  ;;  %v6987_v7 = vand.u32 4294901760, %v6986_v39  ;;  %v20714_v61 = vand.u32 4294901760, %v17978_v25  ;;  %10691 = vmatmul.mubr.f32.gmra.mrb[8].mxu1 %v17639_v54 }
 0x4d9   : > { %6851 = vmatmul.mubr.f32.vlgmr.msra.gmra.mrb[8].mxu0 %v6850_v52  ;;  %v18189_v16 = vand.u32 4294901760, %v6657_v62  ;;  %v6858_v12 = vsub.f32 %v18162_v34, %v20712_v44  ;;  %10693 = vmatprep.mubr.f32.mxu1 %v17626_v22  ;;  %v18208_v44 = vand.u32 4294901760, %v6656_v26  ;;  %v6661_v22 = vld [vmem:[%s18009_s13 + $0x68] sm:$0xff] }
 0x4da   : > { %22493 = vst [vmem:[#allocation44_spill] sm:$0xff] %v18180_v0  ;;  %22494 = vst [vmem:[#allocation46_spill] sm:$0xff] %v18184_v29  ;;  %12475 = vmatpush3.bf16.msra.mxu0 %v12474_v47  ;;  %v20717_v13 = vand.u32 4294901760, %v18184_v29  ;;  %v18200_v52 = vpack.c.bf16 %v6987_v7, %v6980_v4  ;;  %v7105_v47 = vsub.f32 %v17973_v35, %v20713_v3  ;;  %v22499_v7 = vand.u32 4294901760, %v17981_v18 }
 0x4db   : > { %22495 = vst [vmem:[#allocation47_spill] sm:$0xff] %v18189_v16  ;;  %12291 = vmatpush3.bf16.msra.mxu1 %v17885_v21  ;;  %v7112_v39 = vsub.f32 %v17978_v25, %v20714_v61  ;;  %22497 = vst [vmem:[#allocation21_spill] sm:$0xff] %v18208_v44  ;;  %v6859_v31 = vand.u32 4294901760, %v6858_v12  ;;  %12477 = vmatprep.subr.bf16.mxu0 %v12476_v2  ;;  %v18215_v4 = vsub.f32 %v6657_v62, %v18189_v16  ;;  %v22527_v16 = vld [vmem:[#allocation232_spill] sm:$0xff] }
 0x4dc   : > { %22496 = vst [vmem:[#allocation49_spill] sm:$0xff] %v18200_v52  ;;  %12293 = vmatprep.subr.bf16.mxu1 %v17889_v20  ;;  %v6864_v30 = vsub.f32 %v18184_v29, %v20717_v13  ;;  %v6993_v21 = vsub.f32 %v17981_v18, %v22499_v7  ;;  %v7106_v3 = vand.u32 4294901760, %v7105_v47  ;;  %v22500_v61 = vand.u32 4294901760, %v17995_v51  ;;  %10694 = vmatmul.mubr.f32.gmra.mrb[10].mxu1 %v17670_v38 }
 0x4dd   : > { %22498 = vst [vmem:[#allocation23_spill] sm:$0xff] %v18215_v4  ;;  %v7113_v52 = vand.u32 4294901760, %v7112_v39  ;;  %v18224_v12 = vsub.f32 %v6656_v26, %v18208_v44  ;;  %6860 = vmatprep.mubr.f32.mxu0 %v6859_v31  ;;  %v20720_v62 = vand.u32 4294901760, %v18215_v4  ;;  %v12480_v47 = vpack.c.bf16 %v17978_v25, %v17973_v35  ;;  %10728 = vmatprep.mubr.f32.mxu1 %v17616_v27 }
 0x4de   : > { %v7000_v0 = vsub.f32 %v17995_v51, %v22500_v61  ;;  %v6865_v2 = vand.u32 4294901760, %v6864_v30  ;;  %v6994_v13 = vand.u32 4294901760, %v6993_v21  ;;  %v12482_v31 = vpack.c.bf16 %v17995_v51, %v17981_v18  ;;  %12479 = vmatpush3.bf16.msra.mxu0 %v12478_v43 }
 0x4df   : > { %22501 = vst [vmem:[#allocation244_spill] sm:$0xff] %v18224_v12  ;;  %12295 = vmatpush3.bf16.msra.mxu1 %v17889_v20  ;;  %v18233_v61 = vpack.c.bf16 %v7113_v52, %v7106_v3  ;;  %v20721_v39 = vand.u32 4294901760, %v18224_v12  ;;  %v6873_v30 = vsub.f32 %v18215_v4, %v20720_v62  ;;  %v20723_v7 = vand.u32 4294901760, %v17997_v60  ;;  %v6660_v3 = vld [vmem:[%s18009_s13 + $0x60] sm:$0xff]  ;;  %12481 = vmatprep.subr.bf16.mxu0 %v12480_v47 }
 0x4e0   : > { %v7001_v26 = vand.u32 4294901760, %v7000_v0  ;;  %12297 = vmatprep.subr.bf16.mxu1 %v17894_v50  ;;  %6866 = vmatmul.mubr.f32.gmra.mrb[10].mxu0 %v6865_v2  ;;  %v20722_v20 = vand.u32 4294901760, %v18011_v63  ;;  %v18244_v21 = vand.u32 4294901760, %v6661_v22  ;;  %v20724_v2 = vand.u32 4294901760, %v18013_v58 }
 0x4e1   : > { %22502 = vst [vmem:[#allocation101_spill] sm:$0xff] %v18233_v61  ;;  %v6879_v52 = vsub.f32 %v18224_v12, %v20721_v39  ;;  %v20727_v61 = vand.u32 4294901760, %v18016_v11  ;;  %v6874_v38 = vand.u32 4294901760, %v6873_v30  ;;  %v7119_v62 = vsub.f32 %v17997_v60, %v20723_v7 }
 0x4e2   : > { %22503 = vst [vmem:[#allocation103_spill] sm:$0xff] %v18244_v21  ;;  %v18247_v0 = vpack.c.bf16 %v7001_v26, %v6994_v13  ;;  %v7126_v43 = vsub.f32 %v18011_v63, %v20722_v20  ;;  %v18261_v13 = vsub.f32 %v6661_v22, %v18244_v21  ;;  %v7007_v30 = vsub.f32 %v18013_v58, %v20724_v2 }
 0x4e3   : > { %12299 = vmatpush3.bf16.msra.mxu1 %v17894_v50  ;;  %v6880_v26 = vand.u32 4294901760, %v6879_v52  ;;  %v7014_v47 = vsub.f32 %v18016_v11, %v20727_v61  ;;  %v18270_v39 = vand.u32 4294901760, %v6660_v3  ;;  %6875 = vmatprep.mubr.f32.mxu0 %v6874_v38  ;;  %v7120_v20 = vand.u32 4294901760, %v7119_v62  ;;  %v6665_v52 = vld [vmem:[%s18009_s13 + $0x88] sm:$0xff] }
 0x4e4   : > { %22504 = vst [vmem:[#allocation104_spill] sm:$0xff] %v18247_v0  ;;  %22505 = vst [vmem:[#allocation105_spill] sm:$0xff] %v18261_v13  ;;  %12301 = vmatprep.subr.bf16.mxu1 %v17898_v5  ;;  %v7127_v22 = vand.u32 4294901760, %v7126_v43  ;;  %v20730_v7 = vand.u32 4294901760, %v18261_v13  ;;  %v12484_v50 = vpack.c.bf16 %v18011_v63, %v17997_v60  ;;  %v7008_v2 = vand.u32 4294901760, %v7007_v30  ;;  %12483 = vmatpush3.bf16.msra.mxu0 %v12482_v31 }
 0x4e5   : > { %22506 = vst [vmem:[#allocation107_spill] sm:$0xff] %v18270_v39  ;;  %6881 = vmatmul.mubr.f32.gmra.mrb[12].mxu0 %v6880_v26  ;;  %v7015_v0 = vand.u32 4294901760, %v7014_v47  ;;  %v18278_v54 = vsub.f32 %v6660_v3, %v18270_v39  ;;  %v12486_v61 = vpack.c.bf16 %v18016_v11, %v18013_v58  ;;  %v20731_v43 = vand.u32 4294901760, %v18018_v28  ;;  %v6664_v26 = vld [vmem:[%s18009_s13 + $0x80] sm:$0xff] }
 0x4e6   : > { %v18282_v38 = vpack.c.bf16 %v7127_v22, %v7120_v20  ;;  %v6888_v62 = vsub.f32 %v18261_v13, %v20730_v7  ;;  %v20732_v21 = vand.u32 4294901760, %v18020_v24  ;;  %12485 = vmatprep.subr.bf16.mxu0 %v12484_v50  ;;  %v18294_v47 = vand.u32 4294901760, %v6665_v52 }
 0x4e7   : > { %22507 = vst [vmem:[#allocation109_spill] sm:$0xff] %v18278_v54  ;;  %12303 = vmatpush3.bf16.msra.mxu1 %v17898_v5  ;;  %v18291_v30 = vpack.c.bf16 %v7015_v0, %v7008_v2  ;;  %v20733_v3 = vand.u32 4294901760, %v18278_v54  ;;  %v20734_v31 = vand.u32 4294901760, %v18025_v55  ;;  %v7133_v22 = vsub.f32 %v18018_v28, %v20731_v43 }
 0x4e8   : > { %22508 = vst [vmem:[#allocation63_spill] sm:$0xff] %v18282_v38  ;;  %22510 = vst [vmem:[#allocation66_spill] sm:$0xff] %v18294_v47  ;;  %12305 = vmatprep.subr.bf16.mxu1 %v17902_v9  ;;  %v6889_v20 = vand.u32 4294901760, %v6888_v62  ;;  %v7140_v5 = vsub.f32 %v18020_v24, %v20732_v21  ;;  %v20737_v0 = vand.u32 4294901760, %v18027_v59  ;;  %v18309_v50 = vsub.f32 %v6665_v52, %v18294_v47  ;;  %v6669_v38 = vld [vmem:[%s18009_s13 + $0xa8] sm:$0xff] }
 0x4e9   : > { %22509 = vst [vmem:[#allocation111_spill] sm:$0xff] %v18291_v30  ;;  %v6894_v2 = vsub.f32 %v18278_v54, %v20733_v3  ;;  %v7021_v62 = vsub.f32 %v18025_v55, %v20734_v31  ;;  %v18314_v7 = vand.u32 4294901760, %v6664_v26  ;;  %12487 = vmatpush3.bf16.msra.mxu0 %v12486_v61  ;;  %v7134_v43 = vand.u32 4294901760, %v7133_v22 }
 0x4ea   : > { %22511 = vst [vmem:[#allocation112_spill] sm:$0xff] %v18309_v50  ;;  %6890 = vmatprep.mubr.f32.mxu0 %v6889_v20  ;;  %v7141_v30 = vand.u32 4294901760, %v7140_v5  ;;  %v7028_v21 = vsub.f32 %v18027_v59, %v20737_v0  ;;  %v12488_v3 = vpack.c.bf16 %v18020_v24, %v18018_v28  ;;  %v20738_v31 = vand.u32 4294901760, %v18309_v50 }
 0x4eb   : > { %22512 = vst [vmem:[#allocation113_spill] sm:$0xff] %v18314_v7  ;;  %12307 = vmatpush3.bf16.msra.mxu1 %v17902_v9  ;;  %v6895_v52 = vand.u32 4294901760, %v6894_v2  ;;  %v7022_v47 = vand.u32 4294901760, %v7021_v62  ;;  %v18325_v20 = vsub.f32 %v6664_v26, %v18314_v7  ;;  %v12490_v5 = vpack.c.bf16 %v18027_v59, %v18025_v55  ;;  %v22523_v7 = vld [vmem:[#allocation79_spill] sm:$0xff] }
 0x4ec   : > { %12309 = vmatprep.subr.bf16.mxu1 %v17909_v53  ;;  %v18328_v61 = vpack.c.bf16 %v7141_v30, %v7134_v43  ;;  %v7029_v22 = vand.u32 4294901760, %v7028_v21  ;;  %12489 = vmatprep.subr.bf16.mxu0 %v12488_v3  ;;  %v20739_v0 = vand.u32 4294901760, %v18029_v57  ;;  %v6903_v9 = vsub.f32 %v18309_v50, %v20738_v31  ;;  %v6668_v43 = vld [vmem:[%s18009_s13 + $0xa0] sm:$0xff] }
 0x4ed   : > { %22513 = vst [vmem:[#allocation81_spill] sm:$0xff] %v18325_v20  ;;  %6896 = vmatmul.mubr.f32.gmra.mrb[14].mxu0 %v6895_v52  ;;  %v20740_v2 = vand.u32 4294901760, %v18325_v20  ;;  %v18338_v62 = vand.u32 4294901760, %v6669_v38  ;;  %v22520_v52 = vand.u32 4294901760, %v18043_v15  ;;  %v20763_v33 = vand.u32 4294901760, %v22527_v16 }
 0x4ee   : > { %22514 = vst [vmem:[#allocation137_spill] sm:$0xff] %v18328_v61  ;;  %v18341_v30 = vpack.c.bf16 %v7029_v22, %v7022_v47  ;;  %12491 = vmatpush3.bf16.msra.mxu0 %v12490_v5  ;;  %v7147_v21 = vsub.f32 %v18029_v57, %v20739_v0  ;;  %v6904_v31 = vand.u32 4294901760, %v6903_v9  ;;  %v22517_v47 = vand.u32 4294901760, %v18041_v40  ;;  %v22519_v0 = vld [vmem:[#allocation85_spill] sm:$0xff] }
 0x4ef   : > { %22515 = vst [vmem:[#allocation139_spill] sm:$0xff] %v18338_v62  ;;  %12311 = vmatpush3.bf16.msra.mxu1 %v17909_v53  ;;  %v6909_v26 = vsub.f32 %v18325_v20, %v20740_v2  ;;  %v18356_v5 = vsub.f32 %v6669_v38, %v18338_v62  ;;  %v22521_v53 = vand.u32 4294901760, %v18053_v23  ;;  %v18365_v61 = vand.u32 4294901760, %v6668_v43 }
 0x4f0   : > { %22516 = vst [vmem:[#allocation35_spill] sm:$0xff] %v18341_v30  ;;  %v7154_v22 = vsub.f32 %v18041_v40, %v22517_v47  ;;  %12313 = vmatprep.subr.bf16.mxu1 %v22519_v0  ;;  %v7148_v3 = vand.u32 4294901760, %v7147_v21  ;;  %v7035_v30 = vsub.f32 %v18043_v15, %v22520_v52  ;;  %6905 = vmatprep.mubr.f32.mxu0 %v6904_v31  ;;  %v6673_v21 = vld [vmem:[%s18009_s13 + $0xc8] sm:$0xff]  ;;  %v22525_v31 = vld [vmem:[#allocation125_spill] sm:$0xff] }
 0x4f1   : > { %22518 = vst [vmem:[#allocation144_spill] sm:$0xff] %v18356_v5  ;;  %v7042_v9 = vsub.f32 %v18053_v23, %v22521_v53  ;;  %22522 = vst [vmem:[#allocation146_spill] sm:$0xff] %v18365_v61  ;;  %v6910_v2 = vand.u32 4294901760, %v6909_v26  ;;  %v20761_v38 = vand.u32 4294901760, %v18356_v5  ;;  %v12492_v62 = vpack.c.bf16 %v18041_v40, %v18029_v57 }
 0x4f2   : > { %v7155_v47 = vand.u32 4294901760, %v7154_v22  ;;  %10729 = vmatmul.mubr.f32.vlgmr.msra.gmra.mrb[4].mxu1 %v22523_v7  ;;  %v7036_v39 = vand.u32 4294901760, %v7035_v30  ;;  %v18373_v44 = vsub.f32 %v6668_v43, %v18365_v61  ;;  %v12494_v53 = vpack.c.bf16 %v18053_v23, %v18043_v15  ;;  %v22528_v30 = vld [vmem:[#allocation233_spill] sm:$0xff] }
 0x4f3   : > { %v7043_v52 = vand.u32 4294901760, %v7042_v9  ;;  %10731 = vmatprep.mubr.f32.mxu1 %v22525_v31  ;;  %12315 = vmatpush3.bf16.msra.mxu1 %v22519_v0  ;;  %v6918_v22 = vsub.f32 %v18356_v5, %v20761_v38  ;;  %v20766_v9 = vand.u32 4294901760, %v22528_v30  ;;  %v22529_v43 = vld [vmem:[#allocation141_spill] sm:$0xff]  ;;  %v18391_v42 = vand.u32 4294901760, %v6673_v21 }
 0x4f4   : > { %22524 = vst [vmem:[#allocation150_spill] sm:$0xff] %v18373_v44  ;;  %v18379_v26 = vpack.c.bf16 %v7155_v47, %v7148_v3  ;;  %12317 = vmatprep.subr.bf16.mxu1 %v22529_v43  ;;  %6911 = vmatmul.mubr.f32.gmra.mrb[16].mxu0 %v6910_v2  ;;  %v20769_v45 = vand.u32 4294901760, %v18373_v44  ;;  %v22532_v3 = vld [vmem:[#allocation235_spill] sm:$0xff]  ;;  %v7161_v38 = vsub.f32 %v22527_v16, %v20763_v33  ;;  %v22533_v2 = vld [vmem:[#allocation236_spill] sm:$0xff]  ;;  %v18411_v33 = vand.u32 4294901760, %v6672_v1  ;;  %v22537_v5 = vld [vmem:[#allocation213_spill] sm:$0xff] }
 0x4f5   : > { %v18388_v61 = vpack.c.bf16 %v7043_v52, %v7036_v39  ;;  %22531 = vst [vmem:[#allocation185_spill] sm:$0xff] %v18391_v42  ;;  %v20772_v47 = vand.u32 4294901760, %v22532_v3  ;;  %12493 = vmatprep.subr.bf16.mxu0 %v12492_v62  ;;  %v7168_v0 = vsub.f32 %v22528_v30, %v20766_v9  ;;  %v22534_v52 = vld [vmem:[#allocation251_spill] sm:$0xff]  ;;  %v18406_v62 = vsub.f32 %v6673_v21, %v18391_v42  ;;  %v22539_v42 = vld [vmem:[#allocation148_spill] sm:$0xff] }
 0x4f6   : > { %22526 = vst [vmem:[#allocation179_spill] sm:$0xff] %v18379_v26  ;;  %v6919_v26 = vand.u32 4294901760, %v6918_v22  ;;  %10732 = vmatmul.mubr.f32.gmra.mrb[6].mxu1 %v22534_v52  ;;  %12495 = vmatpush3.bf16.msra.mxu0 %v12494_v53  ;;  %22536 = vst [vmem:[#allocation187_spill] sm:$0xff] %v18411_v33  ;;  %v7162_v9 = vand.u32 4294901760, %v7161_v38  ;;  %v22538_v20 = vand.u32 4294901760, %v22533_v2  ;;  %v12496_v21 = vpack.c.bf16 %v22528_v30, %v22527_v16  ;;  %v6677_v53 = vld [vmem:[%s18009_s13 + $0xe8] sm:$0xff] }
 0x4f7   : > { %22530 = vst [vmem:[#allocation181_spill] sm:$0xff] %v18388_v61  ;;  %v6924_v61 = vsub.f32 %v18373_v44, %v20769_v45  ;;  %22535 = vst [vmem:[#allocation184_spill] sm:$0xff] %v18406_v62  ;;  %v7049_v22 = vsub.f32 %v22532_v3, %v20772_v47  ;;  %10734 = vmatprep.mubr.f32.mxu1 %v22537_v5  ;;  %12319 = vmatpush3.bf16.msra.mxu1 %v22529_v43  ;;  %v7169_v39 = vand.u32 4294901760, %v7168_v0  ;;  %v22542_v16 = vld [vmem:[#allocation136_spill] sm:$0xff] }
 0x4f8   : > { %v7056_v45 = vsub.f32 %v22533_v2, %v22538_v20  ;;  %12321 = vmatprep.subr.bf16.mxu1 %v22539_v42  ;;  %6920 = vmatprep.mubr.f32.mxu0 %v6919_v26  ;;  %v20779_v44 = vand.u32 4294901760, %v18406_v62  ;;  %v18424_v43 = vsub.f32 %v6672_v1, %v18411_v33  ;;  %v12498_v20 = vpack.c.bf16 %v22533_v2, %v22532_v3  ;;  %v22546_v26 = vld [vmem:[#allocation202_spill] sm:$0xff] }
 0x4f9   : > { %v6925_v47 = vand.u32 4294901760, %v6924_v61  ;;  %v7050_v23 = vand.u32 4294901760, %v7049_v22  ;;  %v18426_v0 = vpack.c.bf16 %v7169_v39, %v7162_v9  ;;  %12497 = vmatprep.subr.bf16.mxu0 %v12496_v21  ;;  %v20783_v30 = vand.u32 4294901760, %v18104_v17  ;;  %v22544_v39 = vld [vmem:[#allocation135_spill] sm:$0xff] }
 0x4fa   : > { %22540 = vst [vmem:[#allocation242_spill] sm:$0xff] %v18424_v43  ;;  %v7057_v38 = vand.u32 4294901760, %v7056_v45  ;;  %10735 = vmatmul.mubr.f32.gmra.mrb[8].mxu1 %v22542_v16  ;;  %v6933_v61 = vsub.f32 %v18406_v62, %v20779_v44  ;;  %v18437_v9 = vand.u32 4294901760, %v6677_v53  ;;  %v6676_v45 = vld [vmem:[%s18009_s13 + $0xe0] sm:$0xff]  ;;  %v20788_v21 = vand.u32 4294901760, %v18110_v8  ;;  %12499 = vmatpush3.bf16.msra.mxu0 %v12498_v20 }
 0x4fb   : > { %22541 = vst [vmem:[#allocation250_spill] sm:$0xff] %v18426_v0  ;;  %6926 = vmatmul.mubr.f32.gmra.mrb[18].mxu0 %v6925_v47  ;;  %10737 = vmatprep.mubr.f32.mxu1 %v22544_v39  ;;  %v7175_v47 = vsub.f32 %v18104_v17, %v20783_v30  ;;  %v22547_v0 = vand.u32 4294901760, %v18424_v43  ;;  %v18465_v62 = vand.u32 4294901760, %v6676_v45 }
 0x4fc   : > { %22543 = vst [vmem:[#allocation249_spill] sm:$0xff] %v18437_v9  ;;  %12323 = vmatpush3.bf16.msra.mxu1 %v22539_v42  ;;  %v18442_v22 = vpack.c.bf16 %v7057_v38, %v7050_v23  ;;  %v6934_v1 = vand.u32 4294901760, %v6933_v61  ;;  %v22548_v42 = vand.u32 4294901760, %v18106_v49  ;;  %v18457_v38 = vsub.f32 %v6677_v53, %v18437_v9 }
 0x4fd   : > { %12325 = vmatprep.subr.bf16.mxu1 %v22546_v26  ;;  %v6939_v33 = vsub.f32 %v18424_v43, %v22547_v0  ;;  %v7176_v30 = vand.u32 4294901760, %v7175_v47  ;;  %v7063_v44 = vsub.f32 %v18110_v8, %v20788_v21  ;;  %22551 = vst [vmem:[#allocation22_spill] sm:$0xff] %v18465_v62  ;;  %v22552_v0 = vld [vmem:[#allocation215_spill] sm:$0xff]  ;;  %v12500_v53 = vpack.c.bf16 %v18106_v49, %v18104_v17 }
 0x4fe   : > { %22545 = vst [vmem:[#allocation248_spill] sm:$0xff] %v18442_v22  ;;  %v7182_v23 = vsub.f32 %v18106_v49, %v22548_v42  ;;  %22549 = vst [vmem:[#allocation246_spill] sm:$0xff] %v18457_v38  ;;  %v22550_v22 = vand.u32 4294901760, %v18114_v19  ;;  %10738 = vmatmul.mubr.f32.gmra.mrb[10].mxu1 %v22552_v0  ;;  %6935 = vmatprep.mubr.f32.mxu0 %v6934_v1  ;;  %v20795_v42 = vand.u32 4294901760, %v18457_v38  ;;  %v22553_v47 = vand.u32 4294901760, %v17616_v27 }
 0x4ff   : > { %v6940_v20 = vand.u32 4294901760, %v6939_v33  ;;  %v7064_v21 = vand.u32 4294901760, %v7063_v44  ;;  %v12502_v1 = vpack.c.bf16 %v18114_v19, %v18110_v8  ;;  %v22555_v33 = vld [vmem:[#allocation117_spill] sm:$0xff]  ;;  %v22557_v27 = vand.u32 4294901760, %v17914_v6  ;;  %12501 = vmatprep.subr.bf16.mxu0 %v12500_v53 }
 0x500   : > { %v7070_v61 = vsub.f32 %v18114_v19, %v22550_v22  ;;  %v7183_v43 = vand.u32 4294901760, %v7182_v23  ;;  %12327 = vmatpush3.bf16.msra.mxu1 %v22546_v26  ;;  %10772 = vmatprep.mubr.f32.mxu1 %v22553_v47  ;;  %v18475_v22 = vsub.f32 %v6676_v45, %v18465_v62  ;;  %v6948_v26 = vsub.f32 %v18457_v38, %v20795_v42  ;;  %v6720_v42 = vld [vmem:[%s19861_s9 + $0x140] sm:$0xff] }
 0x501   : > { %12329 = vmatprep.subr.bf16.mxu1 %v22555_v33  ;;  %6941 = vmatmul.mubr.f32.gmra.mrb[20].mxu0 %v6940_v20  ;;  %v22558_v44 = vand.u32 4294901760, %v17927_v36  ;;  %v22561_v36 = vld [vmem:[#allocation206_spill] sm:$0xff]  ;;  %v22564_v20 = vand.u32 4294901760, %v17949_v14  ;;  %v22565_v53 = vand.u32 4294901760, %v17956_v56  ;;  %v22573_v56 = vand.u32 4294901760, %v17973_v35 }
 0x502   : > { %v7071_v9 = vand.u32 4294901760, %v7070_v61  ;;  %22554 = vst [vmem:[#allocation253_spill] sm:$0xff] %v18475_v22  ;;  %v18480_v23 = vpack.c.bf16 %v7183_v43, %v7176_v30  ;;  %v20794_v45 = vand.u32 4294901760, %v18475_v22  ;;  %v6949_v62 = vand.u32 4294901760, %v6948_v26  ;;  %12503 = vmatpush3.bf16.msra.mxu0 %v12502_v1  ;;  %v22560_v43 = vld [vmem:[#allocation205_spill] sm:$0xff] }
 0x503   : > { %v12536_v61 = vpack.c.bf16 %v22558_v44, %v22557_v27  ;;  %v22562_v26 = vand.u32 4294901760, %v17932_v48  ;;  %v12540_v1 = vpack.c.bf16 %v22565_v53, %v22564_v20  ;;  %v22567_v27 = vld [vmem:[#allocation152_spill] sm:$0xff]  ;;  %v22571_v48 = vand.u32 4294901760, %v17961_v10  ;;  %v22575_v20 = vld [vmem:[#allocation199_spill] sm:$0xff] }
 0x504   : > { %22556 = vst [vmem:[#allocation24_spill] sm:$0xff] %v18480_v23  ;;  %v18489_v47 = vpack.c.bf16 %v7071_v9, %v7064_v21  ;;  %12331 = vmatpush3.bf16.msra.mxu1 %v22555_v33  ;;  %v6954_v30 = vsub.f32 %v18475_v22, %v20794_v45  ;;  %6950 = vmatprep.mubr.f32.mxu0 %v6949_v62  ;;  %v22563_v9 = vand.u32 4294901760, %v17944_v37  ;;  %v22566_v62 = vld [vmem:[#allocation207_spill] sm:$0xff]  ;;  %v22568_v44 = vand.u32 4294901760, %v22567_v27  ;;  %v22577_v53 = vld [vmem:[#allocation200_spill] sm:$0xff] }
 0x505   : > { %12537 = vmatprep.subr.bf16.mxu0 %v12536_v61  ;;  %12333 = vmatprep.subr.bf16.mxu1 %v22560_v43  ;;  %v22569_v61 = vld [vmem:[#allocation198_spill] sm:$0xff]  ;;  %v22572_v37 = vand.u32 4294901760, %v17966_v46  ;;  %v22578_v10 = vand.u32 4294901760, %v22577_v53  ;;  %v22579_v46 = vand.u32 4294901760, %v17981_v18  ;;  %v22580_v35 = vand.u32 4294901760, %v17995_v51  ;;  %v6728_v51 = vld [vmem:[%s19861_s9 + $0x180] sm:$0xff] }
 0x506   : > { %22559 = vst [vmem:[#allocation30_spill] sm:$0xff] %v18489_v47  ;;  %v6955_v6 = vand.u32 4294901760, %v6954_v30  ;;  %v12538_v21 = vpack.c.bf16 %v22563_v9, %v22562_v26  ;;  %v22570_v30 = vand.u32 4294901760, %v22569_v61  ;;  %v22574_v26 = vand.u32 4294901760, %v17978_v25 }
 0x507   : > { %v12542_v14 = vpack.c.bf16 %v22572_v37, %v22571_v48  ;;  %v12546_v25 = vpack.c.bf16 %v22580_v35, %v22579_v46  ;;  %v22583_v61 = vand.u32 4294901760, %v18011_v63  ;;  %v22584_v48 = vand.u32 4294901760, %v22525_v31  ;;  %v22585_v37 = vld [vmem:[#allocation201_spill] sm:$0xff]  ;;  %v22596_v46 = vld [vmem:[#allocation204_spill] sm:$0xff] }
 0x508   : > { %12335 = vmatpush3.bf16.msra.mxu1 %v22560_v43  ;;  %6956 = vmatmul.mubr.f32.gmra.mrb[22].mxu0 %v6955_v6  ;;  %v12344_v6 = vpack.c.bf16 %v22570_v30, %v22568_v44  ;;  %v12544_v9 = vpack.c.bf16 %v22574_v26, %v22573_v56  ;;  %v22582_v44 = vand.u32 4294901760, %v17997_v60  ;;  %v22587_v56 = vld [vmem:[#allocation115_spill] sm:$0xff]  ;;  %v6729_v60 = vld [vmem:[%s19861_s9 + $0x188] sm:$0xff]  ;;  %v22589_v63 = vand.u32 4294901760, %v18013_v58 }
 0x509   : > { %12337 = vmatprep.subr.bf16.mxu1 %v22561_v36  ;;  %7372 = vmatprep.mubr.f32.mxu0 %v18097_v41  ;;  %v22588_v18 = vand.u32 4294901760, %v22587_v56  ;;  %v22597_v35 = vand.u32 4294901760, %v22596_v46  ;;  %v22600_v58 = vand.u32 4294901760, %v18018_v28  ;;  %v22665_v41 = vld [vmem:[#allocation18_spill] sm:$0xff] }
 0x50a   : > { %v12548_v30 = vpack.c.bf16 %v22583_v61, %v22582_v44 }
 0x50c   : > { %12339 = vmatpush3.bf16.msra.mxu1 %v22561_v36  ;;  %7375 = vmatmul.mubr.f32.vlgmr.msra.gmra.mrb[24].mxu0 %v18125_v32 }
 0x50d   : > { %12341 = vmatprep.subr.bf16.mxu1 %v22566_v62  ;;  %12539 = vmatpush3.bf16.msra.mxu0 %v12538_v21  ;;  %v22576_v21 = vand.u32 4294901760, %v22575_v20 }
 0x50e   : > { %7381 = vmatprep.mubr.f32.mxu0 %v18162_v34  ;;  %12541 = vmatprep.subr.bf16.mxu0 %v12540_v1  ;;  %v22581_v1 = vand.u32 4294901760, %v22523_v7  ;;  %v22590_v7 = vand.u32 4294901760, %v18016_v11  ;;  %v22601_v11 = vand.u32 4294901760, %v18020_v24  ;;  %v22607_v24 = vld [vmem:[#allocation122_spill] sm:$0xff] }
 0x50f   : > { %v12348_v27 = vpack.c.bf16 %v22578_v10, %v22576_v21  ;;  %v22594_v21 = vld [vmem:[#allocation116_spill] sm:$0xff] }
 0x510   : > { %12343 = vmatpush3.bf16.msra.mxu1 %v22566_v62  ;;  %7384 = vmatmul.mubr.f32.gmra.mrb[26].mxu0 %v18184_v29  ;;  %v12550_v31 = vpack.c.bf16 %v22590_v7, %v22589_v63  ;;  %v22595_v53 = vand.u32 4294901760, %v22594_v21  ;;  %v12552_v61 = vpack.c.bf16 %v22601_v11, %v22600_v58  ;;  %v22608_v63 = vand.u32 4294901760, %v22607_v24  ;;  %v22609_v7 = vld [vmem:[#allocation212_spill] sm:$0xff]  ;;  %v6715_v24 = vld [vmem:[%s19861_s9 + $0x118] sm:$0xff] }
 0x511   : > { %12345 = vmatprep.subr.bf16.mxu1 %v12344_v6  ;;  %12543 = vmatpush3.bf16.msra.mxu0 %v12542_v14  ;;  %v22586_v14 = vand.u32 4294901760, %v22585_v37  ;;  %v22602_v37 = vand.u32 4294901760, %v22537_v5  ;;  %v8050_v21 = vand.u32 4294901760, %v6729_v60  ;;  %v6730_v5 = vld [vmem:[%s19861_s9 + $0x190] sm:$0xff]  ;;  %v22615_v58 = vand.u32 4294901760, %v18025_v55 }
 0x512   : > { %7390 = vmatprep.mubr.f32.mxu0 %v18215_v4  ;;  %12545 = vmatprep.subr.bf16.mxu0 %v12544_v9  ;;  %v22592_v9 = vld [vmem:[#allocation203_spill] sm:$0xff]  ;;  %v22616_v11 = vand.u32 4294901760, %v18027_v59  ;;  %v22619_v55 = vand.u32 4294901760, %v18043_v15  ;;  %v22620_v59 = vld [vmem:[#allocation228_spill] sm:$0xff]  ;;  %v22626_v15 = vand.u32 4294901760, %v22542_v16  ;;  %v22632_v16 = vand.u32 4294901760, %v18110_v8 }
 0x513   : > { %10773 = vmatmul.mubr.f32.vlgmr.msra.gmra.mrb[4].mxu1 %v22581_v1  ;;  %v12352_v26 = vpack.c.bf16 %v22588_v18, %v22586_v14  ;;  %v22593_v20 = vand.u32 4294901760, %v22592_v9  ;;  %v22598_v1 = vld [vmem:[#allocation118_spill] sm:$0xff]  ;;  %v22603_v14 = vld [vmem:[#allocation208_spill] sm:$0xff] }
 0x514   : > { %10775 = vmatprep.mubr.f32.mxu1 %v22584_v48  ;;  %12347 = vmatpush3.bf16.msra.mxu1 %v12344_v6  ;;  %v22591_v6 = vand.u32 4294901760, %v22534_v52  ;;  %v6712_v52 = vld [vmem:[%s19861_s9 + $0x100] sm:$0xff]  ;;  %v6713_v48 = vld [vmem:[%s19861_s9 + $0x108] sm:$0xff]  ;;  %v22604_v56 = vand.u32 4294901760, %v22603_v14  ;;  %v22617_v14 = vand.u32 4294901760, %v18029_v57 }
 0x515   : > { %12349 = vmatprep.subr.bf16.mxu1 %v12348_v27  ;;  %7393 = vmatmul.mubr.f32.gmra.mrb[28].mxu0 %v18224_v12  ;;  %v18565_v10 = vpack.c.bf16 %v22595_v53, %v22593_v20  ;;  %v8047_v20 = vand.u32 4294901760, %v6728_v51  ;;  %v22611_v53 = vld [vmem:[#allocation240_spill] sm:$0xff] }
 0x516   : > { %12547 = vmatpush3.bf16.msra.mxu0 %v12546_v25  ;;  %7399 = vmatprep.mubr.f32.mxu0 %v18261_v13  ;;  %v22599_v25 = vand.u32 4294901760, %v22598_v1  ;;  %v22612_v46 = vand.u32 4294901760, %v22611_v53  ;;  %v22622_v57 = vld [vmem:[#allocation232_spill] sm:$0xff] }
 0x517   : > { %10776 = vmatmul.mubr.f32.gmra.mrb[6].mxu1 %v22591_v6  ;;  %12549 = vmatprep.subr.bf16.mxu0 %v12548_v30  ;;  %v22605_v30 = vld [vmem:[#allocation209_spill] sm:$0xff]  ;;  %v22610_v6 = vand.u32 4294901760, %v22609_v7  ;;  %v18671_v8 = vsub.f32 %v6728_v51, %v8047_v20 }
 0x518   : > { %v18571_v44 = vpack.c.bf16 %v22599_v25, %v22597_v35  ;;  %10778 = vmatprep.mubr.f32.mxu1 %v22602_v37  ;;  %12351 = vmatpush3.bf16.msra.mxu1 %v12348_v27  ;;  %v22606_v18 = vand.u32 4294901760, %v22605_v30  ;;  %v6731_v27 = vld [vmem:[%s19861_s9 + $0x198] sm:$0xff]  ;;  %v22613_v35 = vld [vmem:[#allocation243_spill] sm:$0xff]  ;;  %v12554_v37 = vpack.c.bf16 %v22616_v11, %v22615_v58  ;;  %v22627_v11 = vand.u32 4294901760, %v22532_v3 }
 0x519   : > { %v18595_v9 = vpack.c.bf16 %v22610_v6, %v22608_v63  ;;  %12353 = vmatprep.subr.bf16.mxu1 %v12352_v26  ;;  %v22614_v1 = vand.u32 4294901760, %v22613_v35  ;;  %7402 = vmatmul.mubr.f32.gmra.mrb[30].mxu0 %v18278_v54  ;;  %v22621_v63 = vand.u32 4294901760, %v22620_v59  ;;  %v22623_v6 = vand.u32 4294901760, %v22622_v57  ;;  %v6732_v58 = vld [vmem:[%s19861_s9 + $0x1a0] sm:$0xff] }
 0x51a   : > { %v18589_v28 = vpack.c.bf16 %v22606_v18, %v22604_v56  ;;  %v22618_v56 = vand.u32 4294901760, %v18041_v40  ;;  %v6714_v18 = vld [vmem:[%s19861_s9 + $0x110] sm:$0xff]  ;;  %12551 = vmatpush3.bf16.msra.mxu0 %v12550_v31  ;;  %7408 = vmatprep.mubr.f32.mxu0 %v18309_v50  ;;  %v7999_v35 = vand.u32 4294901760, %v6712_v52  ;;  %v6733_v31 = vld [vmem:[%s19861_s9 + $0x1a8] sm:$0xff]  ;;  %v22630_v59 = vand.u32 4294901760, %v18106_v49  ;;  %v6716_v49 = vld [vmem:[%s19861_s9 + $0x120] sm:$0xff] }
 0x51b   : > { %v18607_v25 = vpack.c.bf16 %v22614_v1, %v22612_v46  ;;  %v12558_v7 = vpack.c.bf16 %v22621_v63, %v22619_v55  ;;  %v22624_v40 = vld [vmem:[#allocation233_spill] sm:$0xff]  ;;  %v8002_v1 = vand.u32 4294901760, %v6713_v48  ;;  %10779 = vmatmul.mubr.f32.gmra.mrb[8].mxu1 %v22626_v15  ;;  %12553 = vmatprep.subr.bf16.mxu0 %v12552_v61  ;;  %v22629_v55 = vand.u32 4294901760, %v18104_v17 }
 0x51c   : > { %v12556_v30 = vpack.c.bf16 %v22618_v56, %v22617_v14  ;;  %v22625_v53 = vand.u32 4294901760, %v22624_v40  ;;  %v22628_v14 = vand.u32 4294901760, %v22533_v2  ;;  %v8053_v57 = vand.u32 4294901760, %v6730_v5  ;;  %12355 = vmatpush3.bf16.msra.mxu1 %v12352_v26  ;;  %v22635_v26 = vld [vmem:[#allocation81_spill] sm:$0xff] }
 0x51d   : > { %v18651_v63 = vpack.c.bf16 %v22630_v59, %v22629_v55  ;;  %v22631_v40 = vand.u32 4294901760, %v22544_v39  ;;  %v22633_v3 = vand.u32 4294901760, %v18114_v19  ;;  %v18661_v2 = vpack.c.bf16 %v8050_v21, %v8047_v20  ;;  %v6717_v39 = vld [vmem:[%s19861_s9 + $0x128] sm:$0xff]  ;;  %12357 = vmatprep.subr.bf16.mxu1 %v18565_v10  ;;  %7411 = vmatmul.mubr.f32.gmra.mrb[32].mxu0 %v22635_v26  ;;  %v6735_v55 = vld [vmem:[%s19861_s9 + $0x1b8] sm:$0xff] }
 0x51e   : > { %v12560_v46 = vpack.c.bf16 %v22625_v53, %v22623_v6  ;;  %v18645_v56 = vpack.c.bf16 %v22628_v14, %v22627_v11  ;;  %v8056_v6 = vand.u32 4294901760, %v6731_v27  ;;  %v8005_v53 = vand.u32 4294901760, %v6714_v18  ;;  %v6734_v14 = vld [vmem:[%s19861_s9 + $0x1b0] sm:$0xff]  ;;  %12555 = vmatpush3.bf16.msra.mxu0 %v12554_v37  ;;  %v22636_v59 = vld [vmem:[#allocation144_spill] sm:$0xff] }
 0x51f   : > { %10781 = vmatprep.mubr.f32.mxu1 %v22631_v40  ;;  %v18659_v61 = vpack.c.bf16 %v22633_v3, %v22632_v16  ;;  %22634 = vst [vmem:[#allocation29_spill] sm:$0xff] %v18661_v2  ;;  %v8008_v17 = vand.u32 4294901760, %v6715_v24  ;;  %v18673_v19 = vsub.f32 %v6729_v60, %v8050_v21  ;;  %v8059_v15 = vand.u32 4294901760, %v6732_v58  ;;  %7417 = vmatprep.mubr.f32.mxu0 %v22636_v59  ;;  %v6718_v37 = vld [vmem:[%s19861_s9 + $0x130] sm:$0xff]  ;;  %v6721_v59 = vld [vmem:[%s19861_s9 + $0x148] sm:$0xff] }
 0x520   : > { %v8062_v11 = vand.u32 4294901760, %v6733_v31  ;;  %v18682_v40 = vpack.c.bf16 %v8002_v1, %v7999_v35  ;;  %v18684_v16 = vsub.f32 %v6712_v52, %v7999_v35  ;;  %v18686_v51 = vsub.f32 %v6713_v48, %v8002_v1  ;;  %12557 = vmatprep.subr.bf16.mxu0 %v12556_v30  ;;  %v6719_v52 = vld [vmem:[%s19861_s9 + $0x138] sm:$0xff]  ;;  %12359 = vmatpush3.bf16.msra.mxu1 %v18565_v10  ;;  %v22640_v48 = vld [vmem:[#allocation120_spill] sm:$0xff]  ;;  %v6736_v1 = vld [vmem:[%s19861_s9 + $0x1c0] sm:$0xff] }
 0x521   : > { %v22638_v60 = vand.u32 4294901760, %v22552_v0  ;;  %v18690_v20 = vpack.c.bf16 %v8056_v6, %v8053_v57  ;;  %v18692_v21 = vsub.f32 %v6730_v5, %v8053_v57  ;;  %v8011_v3 = vand.u32 4294901760, %v6716_v49  ;;  %v6737_v57 = vld [vmem:[%s19861_s9 + $0x1c8] sm:$0xff]  ;;  %12361 = vmatprep.subr.bf16.mxu1 %v18571_v44 }
 0x522   : > { %22637 = vst [vmem:[#allocation32_spill] sm:$0xff] %v18682_v40  ;;  %v8014_v45 = vand.u32 4294901760, %v6717_v39  ;;  %v18702_v0 = vsub.f32 %v6731_v27, %v8056_v6  ;;  %v18704_v30 = vpack.c.bf16 %v8008_v17, %v8005_v53  ;;  %v8065_v5 = vand.u32 4294901760, %v6734_v14  ;;  %12559 = vmatpush3.bf16.msra.mxu0 %v12558_v7  ;;  %v22644_v26 = vld [vmem:[#allocation184_spill] sm:$0xff] }
 0x523   : > { %10782 = vmatmul.mubr.f32.gmra.mrb[10].mxu1 %v22638_v60  ;;  %22639 = vst [vmem:[#allocation34_spill] sm:$0xff] %v18690_v20  ;;  %v8068_v35 = vand.u32 4294901760, %v6735_v55  ;;  %v22642_v60 = vld [vmem:[#allocation150_spill] sm:$0xff]  ;;  %v18714_v10 = vsub.f32 %v6714_v18, %v8005_v53  ;;  %v18716_v27 = vsub.f32 %v6715_v24, %v8008_v17  ;;  %v18718_v6 = vpack.c.bf16 %v8062_v11, %v8059_v15 }
 0x524   : > { %10816 = vmatprep.mubr.f32.mxu1 %v22640_v48  ;;  %22641 = vst [vmem:[#allocation38_spill] sm:$0xff] %v18704_v30  ;;  %7420 = vmatmul.mubr.f32.gmra.mrb[34].mxu0 %v22642_v60  ;;  %v18727_v50 = vsub.f32 %v6732_v58, %v8059_v15  ;;  %v18729_v60 = vsub.f32 %v6733_v31, %v8062_v11  ;;  %v8017_v18 = vand.u32 4294901760, %v6718_v37  ;;  %v8020_v24 = vand.u32 4294901760, %v6719_v52  ;;  %v6738_v31 = vld [vmem:[%s19861_s9 + $0x1d0] sm:$0xff] }
 0x525   : > { %22643 = vst [vmem:[#allocation252_spill] sm:$0xff] %v18718_v6  ;;  %7426 = vmatprep.mubr.f32.mxu0 %v22644_v26  ;;  %12561 = vmatprep.subr.bf16.mxu0 %v12560_v46  ;;  %v18731_v53 = vpack.c.bf16 %v8014_v45, %v8011_v3  ;;  %v18733_v17 = vsub.f32 %v6716_v49, %v8011_v3  ;;  %v8071_v54 = vand.u32 4294901760, %v6736_v1  ;;  %v8074_v13 = vand.u32 4294901760, %v6737_v57  ;;  %v6739_v46 = vld [vmem:[%s19861_s9 + $0x1d8] sm:$0xff]  ;;  %v6722_v11 = vld [vmem:[%s19861_s9 + $0x150] sm:$0xff] }
 0x526   : > { %12363 = vmatpush3.bf16.msra.mxu1 %v18571_v44  ;;  %v18736_v12 = vsub.f32 %v6717_v39, %v8014_v45  ;;  %v18738_v7 = vpack.c.bf16 %v8068_v35, %v8065_v5  ;;  %v8023_v26 = vand.u32 4294901760, %v6720_v42  ;;  %v8026_v58 = vand.u32 4294901760, %v6721_v59  ;;  %v22647_v49 = vld [vmem:[#allocation242_spill] sm:$0xff]  ;;  %12563 = vmatpush3.bf16.msra.mxu0 %v18645_v56 }
 0x527   : > { %22645 = vst [vmem:[#allocation37_spill] sm:$0xff] %v18731_v53  ;;  %12365 = vmatprep.subr.bf16.mxu1 %v18589_v28  ;;  %v18748_v15 = vsub.f32 %v6734_v14, %v8065_v5  ;;  %v18750_v45 = vsub.f32 %v6735_v55, %v8068_v35  ;;  %v8077_v44 = vand.u32 4294901760, %v6738_v31  ;;  %v8080_v39 = vand.u32 4294901760, %v6739_v46  ;;  %v6723_v3 = vld [vmem:[%s19861_s9 + $0x158] sm:$0xff]  ;;  %12565 = vmatprep.subr.bf16.mxu0 %v18651_v63  ;;  %v6740_v63 = vld [vmem:[%s19861_s9 + $0x1e0] sm:$0xff] }
 0x528   : > { %22646 = vst [vmem:[#allocation41_spill] sm:$0xff] %v18738_v7  ;;  %7429 = vmatmul.mubr.f32.gmra.mrb[36].mxu0 %v22647_v49  ;;  %v18760_v4 = vpack.c.bf16 %v8020_v24, %v8017_v18  ;;  %v18762_v14 = vsub.f32 %v6718_v37, %v8017_v18  ;;  %v8029_v55 = vand.u32 4294901760, %v6722_v11  ;;  %v8032_v5 = vand.u32 4294901760, %v6723_v3 }
 0x529   : > { %7435 = vmatprep.mubr.f32.mxu0 %v18457_v38  ;;  %v18765_v35 = vsub.f32 %v6719_v52, %v8020_v24  ;;  %v18767_v49 = vpack.c.bf16 %v8074_v13, %v8071_v54  ;;  %v18769_v29 = vsub.f32 %v6736_v1, %v8071_v54  ;;  %v18771_v34 = vsub.f32 %v6737_v57, %v8074_v13  ;;  %v6741_v54 = vld [vmem:[%s19861_s9 + $0x1e8] sm:$0xff]  ;;  %v6651_v1 = vld [vmem:[%s18009_s13 + $0x18] sm:$0xff]  ;;  %v22654_v57 = vld [vmem:[#allocation229_spill] sm:$0xff] }
 0x52a   : > { %22648 = vst [vmem:[#allocation241_spill] sm:$0xff] %v18760_v4  ;;  %12367 = vmatpush3.bf16.msra.mxu1 %v18589_v28  ;;  %v18774_v56 = vpack.c.bf16 %v8026_v58, %v8023_v26  ;;  %v18776_v38 = vsub.f32 %v6720_v42, %v8023_v26  ;;  %v18778_v37 = vsub.f32 %v6721_v59, %v8026_v58  ;;  %v8083_v28 = vand.u32 4294901760, %v6740_v63  ;;  %v6724_v59 = vld [vmem:[%s19861_s9 + $0x160] sm:$0xff]  ;;  %v6725_v52 = vld [vmem:[%s19861_s9 + $0x168] sm:$0xff] }
 0x52b   : > { %22649 = vst [vmem:[#allocation40_spill] sm:$0xff] %v18767_v49  ;;  %v18780_v18 = vpack.c.bf16 %v8080_v39, %v8077_v44  ;;  %12369 = vmatprep.subr.bf16.mxu1 %v18595_v9  ;;  %v18790_v13 = vsub.f32 %v6738_v31, %v8077_v44  ;;  %v18792_v42 = vsub.f32 %v6739_v46, %v8080_v39  ;;  %v8086_v26 = vand.u32 4294901760, %v6741_v54  ;;  %v6650_v44 = vld [vmem:[%s18009_s13 + $0x10] sm:$0xff] }
 0x52c   : > { %22650 = vst [vmem:[#allocation58_spill] sm:$0xff] %v18774_v56  ;;  %7438 = vmatmul.mubr.f32.gmra.mrb[38].mxu0 %v18475_v22  ;;  %v18803_v24 = vpack.c.bf16 %v8032_v5, %v8029_v55  ;;  %v8035_v58 = vand.u32 4294901760, %v6724_v59  ;;  %v8038_v31 = vand.u32 4294901760, %v6725_v52  ;;  %v18805_v46 = vand.u32 4294901760, %v6651_v1 }
 0x52d   : > { %22651 = vst [vmem:[#allocation62_spill] sm:$0xff] %v18780_v18  ;;  %22652 = vst [vmem:[#allocation65_spill] sm:$0xff] %v18790_v13  ;;  %12567 = vmatpush3.bf16.msra.mxu0 %v18659_v61  ;;  %7789 = vmatprep.mubr.f32.mxu0 %v22654_v57  ;;  %v18809_v39 = vsub.f32 %v6722_v11, %v8029_v55  ;;  %v18811_v22 = vsub.f32 %v6723_v3, %v8032_v5  ;;  %v20814_v32 = vand.u32 4294901760, %v18671_v8  ;;  %v6743_v11 = vld [vmem:[%s19861_s9 + $0x1f8] sm:$0xff]  ;;  %v22663_v55 = vld [vmem:[#allocation231_spill] sm:$0xff] }
 0x52e   : > { %22653 = vst [vmem:[#allocation71_spill] sm:$0xff] %v18792_v42  ;;  %22655 = vst [vmem:[#allocation75_spill] sm:$0xff] %v18803_v24  ;;  %12601 = vmatprep.subr.bf16.mxu0 %v18661_v2  ;;  %12371 = vmatpush3.bf16.msra.mxu1 %v18595_v9  ;;  %v18816_v61 = vpack.c.bf16 %v8086_v26, %v8083_v28  ;;  %v18818_v47 = vsub.f32 %v6740_v63, %v8083_v28  ;;  %v6742_v2 = vld [vmem:[%s19861_s9 + $0x1f0] sm:$0xff]  ;;  %v18828_v3 = vand.u32 4294901760, %v6650_v44  ;;  %v6727_v28 = vld [vmem:[%s19861_s9 + $0x178] sm:$0xff] }
 0x52f   : > { %22656 = vst [vmem:[#allocation78_spill] sm:$0xff] %v18805_v46  ;;  %22657 = vst [vmem:[#allocation83_spill] sm:$0xff] %v18809_v39  ;;  %v18820_v23 = vsub.f32 %v6741_v54, %v8086_v26  ;;  %12373 = vmatprep.subr.bf16.mxu1 %v18607_v25  ;;  %v18832_v9 = vpack.c.bf16 %v8038_v31, %v8035_v58  ;;  %v8089_v5 = vand.u32 4294901760, %v6742_v2  ;;  %v8092_v63 = vand.u32 4294901760, %v6743_v11  ;;  %v6726_v54 = vld [vmem:[%s19861_s9 + $0x170] sm:$0xff] }
 0x530   : > { %22658 = vst [vmem:[#allocation89_spill] sm:$0xff] %v18811_v22  ;;  %22659 = vst [vmem:[#allocation84_spill] sm:$0xff] %v18816_v61  ;;  %7791 = vmatmul.mubr.f32.vlgmr.msra.gmra.mrb[40].mxu0 %v22663_v55  ;;  %v8331_v26 = vsub.f32 %v18671_v8, %v20814_v32  ;;  %v8041_v55 = vand.u32 4294901760, %v6726_v54  ;;  %v8044_v57 = vand.u32 4294901760, %v6727_v28  ;;  %v18849_v22 = vsub.f32 %v6651_v1, %v18805_v46  ;;  %v22669_v46 = vld [vmem:[#allocation85_spill] sm:$0xff] }
 0x531   : > { %22660 = vst [vmem:[#allocation61_spill] sm:$0xff] %v18818_v47  ;;  %22661 = vst [vmem:[#allocation90_spill] sm:$0xff] %v18820_v23  ;;  %12603 = vmatpush3.bf16.msra.mxu0 %v18682_v40  ;;  %7796 = vmatprep.mubr.f32.mxu0 %v22665_v41  ;;  %v22666_v23 = vand.u32 4294901760, %v18673_v19  ;;  %v18852_v39 = vsub.f32 %v6724_v59, %v8035_v58  ;;  %v20820_v32 = vand.u32 4294901760, %v18684_v16  ;;  %v22670_v59 = vld [vmem:[#allocation43_spill] sm:$0xff] }
 0x532   : > { %22662 = vst [vmem:[#allocation92_spill] sm:$0xff] %v18828_v3  ;;  %22664 = vst [vmem:[#allocation93_spill] sm:$0xff] %v18832_v9  ;;  %12605 = vmatprep.subr.bf16.mxu0 %v18690_v20  ;;  %v8332_v42 = vand.u32 4294901760, %v8331_v26  ;;  %12375 = vmatpush3.bf16.msra.mxu1 %v18607_v25  ;;  %v18857_v41 = vsub.f32 %v6725_v52, %v8038_v31  ;;  %v18859_v13 = vpack.c.bf16 %v8092_v63, %v8089_v5  ;;  %v22672_v52 = vld [vmem:[#allocation47_spill] sm:$0xff] }
 0x533   : > { %v8338_v47 = vsub.f32 %v18673_v19, %v22666_v23  ;;  %22667 = vst [vmem:[#allocation94_spill] sm:$0xff] %v18849_v22  ;;  %v18861_v23 = vsub.f32 %v6742_v2, %v8089_v5  ;;  %v18863_v1 = vsub.f32 %v6743_v11, %v8092_v63  ;;  %12377 = vmatprep.subr.bf16.mxu1 %v22669_v46  ;;  %v22673_v2 = vand.u32 4294901760, %v18686_v51  ;;  %v6655_v63 = vld [vmem:[%s18009_s13 + $0x38] sm:$0xff]  ;;  %v22675_v40 = vld [vmem:[#allocation211_spill] sm:$0xff] }
 0x534   : > { %22668 = vst [vmem:[#allocation50_spill] sm:$0xff] %v18859_v13  ;;  %7798 = vmatmul.mubr.f32.gmra.mrb[42].mxu0 %v22670_v59  ;;  %v18867_v58 = vpack.c.bf16 %v8044_v57, %v8041_v55  ;;  %v8219_v25 = vsub.f32 %v18684_v16, %v20820_v32  ;;  %v18879_v11 = vsub.f32 %v6650_v44, %v18828_v3  ;;  %v22680_v44 = vand.u32 4294901760, %v18849_v22 }
 0x535   : > { %v8339_v26 = vand.u32 4294901760, %v8338_v47  ;;  %12607 = vmatpush3.bf16.msra.mxu0 %v18704_v30  ;;  %7803 = vmatprep.mubr.f32.mxu0 %v22672_v52  ;;  %v8226_v31 = vsub.f32 %v18686_v51, %v22673_v2  ;;  %v18886_v32 = vsub.f32 %v6726_v54, %v8041_v55  ;;  %v18888_v30 = vsub.f32 %v6727_v28, %v8044_v57  ;;  %v22679_v52 = vld [vmem:[#allocation121_spill] sm:$0xff] }
 0x536   : > { %22671 = vst [vmem:[#allocation96_spill] sm:$0xff] %v18867_v58  ;;  %22674 = vst [vmem:[#allocation52_spill] sm:$0xff] %v18879_v11  ;;  %10817 = vmatmul.mubr.f32.vlgmr.msra.gmra.mrb[4].mxu1 %v22675_v40  ;;  %12609 = vmatprep.subr.bf16.mxu0 %v18718_v6  ;;  %v8220_v2 = vand.u32 4294901760, %v8219_v25  ;;  %v18897_v5 = vsub.f32 %v18849_v22, %v22680_v44  ;;  %v22681_v55 = vand.u32 4294901760, %v18692_v21  ;;  %v6654_v54 = vld [vmem:[%s18009_s13 + $0x30] sm:$0xff]  ;;  %v20833_v44 = vand.u32 4294901760, %v18714_v10 }
 0x537   : > { %22676 = vst [vmem:[#allocation53_spill] sm:$0xff] %v18886_v32  ;;  %22677 = vst [vmem:[#allocation97_spill] sm:$0xff] %v18888_v30  ;;  %v18890_v20 = vpack.c.bf16 %v8339_v26, %v8332_v42  ;;  %10819 = vmatprep.mubr.f32.mxu1 %v22679_v52  ;;  %12379 = vmatpush3.bf16.msra.mxu1 %v22669_v46  ;;  %v8227_v47 = vand.u32 4294901760, %v8226_v31  ;;  %v22682_v42 = vld [vmem:[#allocation141_spill] sm:$0xff]  ;;  %v22684_v26 = vand.u32 4294901760, %v18702_v0  ;;  %v18911_v31 = vand.u32 4294901760, %v6655_v63 }
 0x538   : > { %v8345_v57 = vsub.f32 %v18692_v21, %v22681_v55  ;;  %12381 = vmatprep.subr.bf16.mxu1 %v22682_v42  ;;  %v22683_v28 = vld [vmem:[#allocation21_spill] sm:$0xff]  ;;  %v22686_v55 = vld [vmem:[#allocation103_spill] sm:$0xff]  ;;  %v22690_v6 = vld [vmem:[#allocation72_spill] sm:$0xff]  ;;  %v22691_v46 = vand.u32 4294901760, %v18879_v11 }
 0x539   : > { %22678 = vst [vmem:[#allocation99_spill] sm:$0xff] %v18890_v20  ;;  %7805 = vmatmul.mubr.f32.gmra.mrb[44].mxu0 %v22683_v28  ;;  %v8352_v25 = vsub.f32 %v18702_v0, %v22684_v26  ;;  %22685 = vst [vmem:[#allocation100_spill] sm:$0xff] %v18911_v31  ;;  %v18916_v3 = vpack.c.bf16 %v8227_v47, %v8220_v2  ;;  %v22688_v28 = vld [vmem:[#allocation131_spill] sm:$0xff]  ;;  %v18924_v59 = vsub.f32 %v6655_v63, %v18911_v31 }
 0x53a   : > { %12611 = vmatpush3.bf16.msra.mxu0 %v18731_v53  ;;  %7810 = vmatprep.mubr.f32.mxu0 %v22686_v55  ;;  %v8346_v20 = vand.u32 4294901760, %v8345_v57  ;;  %v8233_v47 = vsub.f32 %v18714_v10, %v20833_v44  ;;  %v18929_v2 = vand.u32 4294901760, %v6654_v54  ;;  %v6659_v53 = vld [vmem:[%s18009_s13 + $0x58] sm:$0xff]  ;;  %v22692_v63 = vand.u32 4294901760, %v18716_v27  ;;  %v22694_v31 = vld [vmem:[#allocation107_spill] sm:$0xff] }
 0x53b   : > { %22687 = vst [vmem:[#allocation56_spill] sm:$0xff] %v18916_v3  ;;  %10820 = vmatmul.mubr.f32.gmra.mrb[6].mxu1 %v22688_v28  ;;  %12613 = vmatprep.subr.bf16.mxu0 %v18738_v7  ;;  %v8353_v26 = vand.u32 4294901760, %v8352_v25  ;;  %v18938_v25 = vsub.f32 %v18879_v11, %v22691_v46  ;;  %v22693_v3 = vld [vmem:[#allocation148_spill] sm:$0xff]  ;;  %v6658_v46 = vld [vmem:[%s18009_s13 + $0x50] sm:$0xff]  ;;  %v22697_v11 = vld [vmem:[#allocation66_spill] sm:$0xff]  ;;  %v18958_v32 = vand.u32 4294901760, %v6659_v53 }
 0x53c   : > { %22689 = vst [vmem:[#allocation59_spill] sm:$0xff] %v18929_v2  ;;  %10822 = vmatprep.mubr.f32.mxu1 %v22690_v6  ;;  %12383 = vmatpush3.bf16.msra.mxu1 %v22682_v42  ;;  %v8240_v7 = vsub.f32 %v18716_v27, %v22692_v63  ;;  %v20846_v42 = vand.u32 4294901760, %v18924_v59  ;;  %v8234_v57 = vand.u32 4294901760, %v8233_v47  ;;  %v18951_v22 = vsub.f32 %v6654_v54, %v18929_v2  ;;  %v22700_v44 = vld [vmem:[#allocation210_spill] sm:$0xff] }
 0x53d   : > { %12385 = vmatprep.subr.bf16.mxu1 %v22693_v3  ;;  %7812 = vmatmul.mubr.f32.gmra.mrb[46].mxu0 %v22694_v31  ;;  %v18947_v55 = vpack.c.bf16 %v8353_v26, %v8346_v20  ;;  %22698 = vst [vmem:[#allocation76_spill] sm:$0xff] %v18958_v32  ;;  %v22699_v20 = vld [vmem:[#allocation127_spill] sm:$0xff]  ;;  %v18980_v26 = vand.u32 4294901760, %v6658_v46  ;;  %v22705_v47 = vld [vmem:[#allocation202_spill] sm:$0xff]  ;;  %v22710_v2 = vand.u32 4294901760, %v18736_v12 }
 0x53e   : > { %22696 = vst [vmem:[#allocation126_spill] sm:$0xff] %v18951_v22  ;;  %12615 = vmatpush3.bf16.msra.mxu0 %v18760_v4  ;;  %7817 = vmatprep.mubr.f32.mxu0 %v22697_v11  ;;  %v8241_v63 = vand.u32 4294901760, %v8240_v7  ;;  %v18965_v54 = vsub.f32 %v18924_v59, %v20846_v42  ;;  %v22702_v4 = vand.u32 4294901760, %v18727_v50  ;;  %v22703_v42 = vand.u32 4294901760, %v18729_v60  ;;  %v22706_v7 = vld [vmem:[#allocation113_spill] sm:$0xff] }
 0x53f   : > { %22695 = vst [vmem:[#allocation108_spill] sm:$0xff] %v18947_v55  ;;  %10823 = vmatmul.mubr.f32.gmra.mrb[8].mxu1 %v22699_v20  ;;  %12617 = vmatprep.subr.bf16.mxu0 %v18767_v49  ;;  %22704 = vst [vmem:[#allocation133_spill] sm:$0xff] %v18980_v26  ;;  %v8254_v31 = vsub.f32 %v18736_v12, %v22710_v2 }
 0x540   : > { %10825 = vmatprep.mubr.f32.mxu1 %v22700_v44  ;;  %12387 = vmatpush3.bf16.msra.mxu1 %v22693_v3  ;;  %v18972_v30 = vpack.c.bf16 %v8241_v63, %v8234_v57  ;;  %v8359_v49 = vsub.f32 %v18727_v50, %v22702_v4  ;;  %v8366_v55 = vsub.f32 %v18729_v60, %v22703_v42  ;;  %v22707_v3 = vand.u32 4294901760, %v18951_v22 }
 0x541   : > { %12389 = vmatprep.subr.bf16.mxu1 %v22705_v47  ;;  %7819 = vmatmul.mubr.f32.gmra.mrb[48].mxu0 %v22706_v7  ;;  %v18991_v63 = vsub.f32 %v6659_v53, %v18958_v32  ;;  %v22708_v4 = vand.u32 4294901760, %v18733_v17  ;;  %v22711_v53 = vld [vmem:[#allocation214_spill] sm:$0xff] }
 0x542   : > { %22701 = vst [vmem:[#allocation132_spill] sm:$0xff] %v18972_v30  ;;  %v18988_v57 = vsub.f32 %v18951_v22, %v22707_v3  ;;  %12619 = vmatpush3.bf16.msra.mxu0 %v18774_v56  ;;  %v22709_v30 = vld [vmem:[#allocation139_spill] sm:$0xff]  ;;  %v8360_v11 = vand.u32 4294901760, %v8359_v49  ;;  %v8367_v7 = vand.u32 4294901760, %v8366_v55  ;;  %v19002_v3 = vsub.f32 %v6658_v46, %v18980_v26  ;;  %v6663_v22 = vld [vmem:[%s18009_s13 + $0x78] sm:$0xff] }
 0x543   : > { %v8247_v42 = vsub.f32 %v18733_v17, %v22708_v4  ;;  %7824 = vmatprep.mubr.f32.mxu0 %v22709_v30  ;;  %10826 = vmatmul.mubr.f32.gmra.mrb[10].mxu1 %v22711_v53  ;;  %v20857_v49 = vand.u32 4294901760, %v18991_v63  ;;  %v8255_v26 = vand.u32 4294901760, %v8254_v31  ;;  %v22713_v4 = vld [vmem:[#allocation146_spill] sm:$0xff]  ;;  %v22715_v31 = vld [vmem:[#allocation185_spill] sm:$0xff] }
 0x544   : > { %12621 = vmatprep.subr.bf16.mxu0 %v18780_v18  ;;  %12391 = vmatpush3.bf16.msra.mxu1 %v22705_v47  ;;  %v19014_v46 = vpack.c.bf16 %v8367_v7, %v8360_v11  ;;  %v20860_v18 = vand.u32 4294901760, %v19002_v3  ;;  %v6662_v11 = vld [vmem:[%s18009_s13 + $0x70] sm:$0xff]  ;;  %v6667_v32 = vld [vmem:[%s18009_s13 + $0x98] sm:$0xff] }
 0x545   : > { %v8248_v55 = vand.u32 4294901760, %v8247_v42  ;;  %10860 = vmatprep.mubr.f32.mxu1 %v22640_v48  ;;  %12393 = vmatprep.subr.bf16.mxu1 %v22555_v33  ;;  %v19022_v56 = vsub.f32 %v18991_v63, %v20857_v49  ;;  %v19026_v42 = vand.u32 4294901760, %v6663_v22  ;;  %v20867_v49 = vand.u32 4294901760, %v18762_v14 }
 0x546   : > { %22712 = vst [vmem:[#allocation145_spill] sm:$0xff] %v19014_v46  ;;  %7826 = vmatmul.mubr.f32.gmra.mrb[50].mxu0 %v22713_v4  ;;  %v19036_v2 = vsub.f32 %v19002_v3, %v20860_v18  ;;  %v19061_v46 = vand.u32 4294901760, %v6662_v11 }
 0x547   : > { %22714 = vst [vmem:[#allocation153_spill] sm:$0xff] %v19026_v42  ;;  %12623 = vmatpush3.bf16.msra.mxu0 %v18803_v24  ;;  %7831 = vmatprep.mubr.f32.mxu0 %v22715_v31  ;;  %v19031_v7 = vpack.c.bf16 %v8255_v26, %v8248_v55  ;;  %v22717_v24 = vand.u32 4294901760, %v18748_v15  ;;  %v22718_v55 = vand.u32 4294901760, %v18750_v45  ;;  %v19050_v18 = vsub.f32 %v6663_v22, %v19026_v42 }
 0x548   : > { %12625 = vmatprep.subr.bf16.mxu0 %v18816_v61  ;;  %12395 = vmatpush3.bf16.msra.mxu1 %v22555_v33  ;;  %v8261_v48 = vsub.f32 %v18762_v14, %v20867_v49  ;;  %v22719_v61 = vand.u32 4294901760, %v18765_v35  ;;  %22720 = vst [vmem:[#allocation157_spill] sm:$0xff] %v19061_v46  ;;  %v22722_v49 = vld [vmem:[#allocation249_spill] sm:$0xff]  ;;  %v19072_v30 = vsub.f32 %v6662_v11, %v19061_v46  ;;  %v22749_v46 = vand.u32 4294901760, %v18988_v57 }
 0x549   : > { %22716 = vst [vmem:[#allocation154_spill] sm:$0xff] %v19031_v7  ;;  %v8373_v26 = vsub.f32 %v18748_v15, %v22717_v24  ;;  %v8380_v7 = vsub.f32 %v18750_v45, %v22718_v55  ;;  %12397 = vmatprep.subr.bf16.mxu1 %v22560_v43  ;;  %v22721_v55 = vld [vmem:[#allocation187_spill] sm:$0xff]  ;;  %v20870_v47 = vand.u32 4294901760, %v19050_v18 }
 0x54a   : > { %v8268_v24 = vsub.f32 %v18765_v35, %v22719_v61  ;;  %7833 = vmatmul.mubr.f32.gmra.mrb[52].mxu0 %v22721_v55  ;;  %v8262_v31 = vand.u32 4294901760, %v8261_v48  ;;  %v22727_v61 = vand.u32 4294901760, %v18897_v5 }
 0x54b   : > { %v8374_v33 = vand.u32 4294901760, %v8373_v26  ;;  %v8381_v42 = vand.u32 4294901760, %v8380_v7  ;;  %12627 = vmatpush3.bf16.msra.mxu0 %v18832_v9  ;;  %7838 = vmatprep.mubr.f32.mxu0 %v22722_v49  ;;  %v19080_v7 = vsub.f32 %v19050_v18, %v20870_v47  ;;  %v20871_v26 = vand.u32 4294901760, %v18769_v29  ;;  %v6666_v49 = vld [vmem:[%s18009_s13 + $0x90] sm:$0xff] }
 0x54c   : > { %v8269_v4 = vand.u32 4294901760, %v8268_v24  ;;  %12629 = vmatprep.subr.bf16.mxu0 %v18859_v13  ;;  %v20874_v9 = vand.u32 4294901760, %v18771_v34  ;;  %12399 = vmatpush3.bf16.msra.mxu1 %v22560_v43  ;;  %v19089_v24 = vand.u32 4294901760, %v6667_v32  ;;  %v19114_v13 = vand.u32 4294901760, %v6666_v49 }
 0x54d   : > { %v19075_v22 = vpack.c.bf16 %v8381_v42, %v8374_v33  ;;  %v20877_v42 = vand.u32 4294901760, %v18776_v38  ;;  %12401 = vmatprep.subr.bf16.mxu1 %v22561_v36  ;;  %v22726_v33 = vld [vmem:[#allocation22_spill] sm:$0xff]  ;;  %v8387_v43 = vsub.f32 %v18769_v29, %v20871_v26 }
 0x54e   : > { %v19086_v48 = vpack.c.bf16 %v8269_v4, %v8262_v31  ;;  %22725 = vst [vmem:[#allocation73_spill] sm:$0xff] %v19089_v24  ;;  %7840 = vmatmul.mubr.f32.gmra.mrb[54].mxu0 %v22726_v33  ;;  %v8394_v4 = vsub.f32 %v18771_v34, %v20874_v9  ;;  %v19109_v47 = vsub.f32 %v6667_v32, %v19089_v24  ;;  %22729 = vst [vmem:[#allocation4_spill] sm:$0xff] %v19114_v13  ;;  %v6671_v32 = vld [vmem:[%s18009_s13 + $0xb8] sm:$0xff] }
 0x54f   : > { %22723 = vst [vmem:[#allocation158_spill] sm:$0xff] %v19075_v22  ;;  %12631 = vmatpush3.bf16.msra.mxu0 %v18867_v58  ;;  %8099 = vmatprep.mubr.f32.mxu0 %v22727_v61  ;;  %v8275_v26 = vsub.f32 %v18776_v38, %v20877_v42  ;;  %v22730_v9 = vpack.c.bf16 %v18673_v19, %v18671_v8  ;;  %v8388_v5 = vand.u32 4294901760, %v8387_v43  ;;  %v22731_v58 = vand.u32 4294901760, %v18778_v37 }
 0x550   : > { %22724 = vst [vmem:[#allocation3_spill] sm:$0xff] %v19086_v48  ;;  %22728 = vst [vmem:[#allocation160_spill] sm:$0xff] %v19109_v47  ;;  %v8395_v61 = vand.u32 4294901760, %v8394_v4  ;;  %12403 = vmatpush3.bf16.msra.mxu1 %v22561_v36  ;;  %v22732_v48 = vand.u32 4294901760, %v19072_v30  ;;  %v19132_v31 = vsub.f32 %v6666_v49, %v19114_v13  ;;  %v22734_v43 = vand.u32 4294901760, %v18938_v25  ;;  %v6670_v4 = vld [vmem:[%s18009_s13 + $0xb0] sm:$0xff] }
 0x551   : > { %12665 = vmatprep.subr.bf16.mxu0 %v22730_v9  ;;  %v8282_v11 = vsub.f32 %v18778_v37, %v22731_v58  ;;  %v8276_v9 = vand.u32 4294901760, %v8275_v26  ;;  %12405 = vmatprep.subr.bf16.mxu1 %v22566_v62  ;;  %v22737_v22 = vpack.c.bf16 %v18686_v51, %v18684_v16  ;;  %v22738_v49 = vand.u32 4294901760, %v18965_v54  ;;  %v22746_v13 = vld [vmem:[#allocation89_spill] sm:$0xff] }
 0x552   : > { %v19128_v42 = vsub.f32 %v19072_v30, %v22732_v48  ;;  %22733 = vst [vmem:[#allocation86_spill] sm:$0xff] %v19132_v31  ;;  %8105 = vmatmul.mubr.f32.vlgmr.msra.gmra.mrb[56].mxu0 %v22734_v43  ;;  %v19137_v58 = vpack.c.bf16 %v8395_v61, %v8388_v5  ;;  %v22736_v48 = vld [vmem:[#allocation65_spill] sm:$0xff]  ;;  %v22739_v26 = vand.u32 4294901760, %v19109_v47  ;;  %v20884_v5 = vand.u32 4294901760, %v19132_v31 }
 0x553   : > { %v8283_v36 = vand.u32 4294901760, %v8282_v11  ;;  %12667 = vmatpush3.bf16.msra.mxu0 %v22737_v22  ;;  %8114 = vmatprep.mubr.f32.mxu0 %v22738_v49  ;;  %v22740_v11 = vld [vmem:[#allocation71_spill] sm:$0xff]  ;;  %v19154_v43 = vand.u32 4294901760, %v6671_v32  ;;  %v22742_v24 = vpack.c.bf16 %v18702_v0, %v18692_v21  ;;  %v22744_v54 = vand.u32 4294901760, %v22736_v48 }
 0x554   : > { %22735 = vst [vmem:[#allocation5_spill] sm:$0xff] %v19137_v58  ;;  %v19150_v25 = vsub.f32 %v19109_v47, %v22739_v26  ;;  %v22745_v58 = vld [vmem:[#allocation83_spill] sm:$0xff]  ;;  %12407 = vmatpush3.bf16.msra.mxu1 %v22566_v62  ;;  %v8149_v61 = vand.u32 4294901760, %v19128_v42  ;;  %v19172_v33 = vsub.f32 %v19132_v31, %v20884_v5  ;;  %v22750_v5 = vand.u32 4294901760, %v22746_v13 }
 0x555   : > { %22741 = vst [vmem:[#allocation162_spill] sm:$0xff] %v19154_v43  ;;  %12669 = vmatprep.subr.bf16.mxu0 %v22742_v24  ;;  %v19160_v22 = vpack.c.bf16 %v8283_v36, %v8276_v9  ;;  %v8401_v49 = vsub.f32 %v22736_v48, %v22744_v54  ;;  %v20885_v26 = vand.u32 4294901760, %v22745_v58  ;;  %v22747_v24 = vand.u32 4294901760, %v22740_v11  ;;  %v22748_v54 = vld [vmem:[#allocation17_spill] sm:$0xff] }
 0x556   : > { %v19178_v36 = vsub.f32 %v6671_v32, %v19154_v43  ;;  %12441 = vmatprep.subr.bf16.mxu1 %v22748_v54  ;;  %8120 = vmatmul.mubr.f32.gmra.mrb[58].mxu0 %v22749_v46  ;;  %v19189_v55 = vand.u32 4294901760, %v6670_v4  ;;  %v22752_v32 = vpack.c.bf16 %v18716_v27, %v18714_v10  ;;  %v8158_v57 = vand.u32 4294901760, %v19150_v25  ;;  %v22755_v46 = vld [vmem:[#allocation239_spill] sm:$0xff]  ;;  %v22757_v43 = vld [vmem:[#allocation61_spill] sm:$0xff] }
 0x557   : > { %22743 = vst [vmem:[#allocation163_spill] sm:$0xff] %v19160_v22  ;;  %v8408_v9 = vsub.f32 %v22740_v11, %v22747_v24  ;;  %v8402_v62 = vand.u32 4294901760, %v8401_v49  ;;  %v8289_v42 = vsub.f32 %v22745_v58, %v20885_v26  ;;  %v8296_v22 = vsub.f32 %v22746_v13, %v22750_v5  ;;  %v6675_v26 = vld [vmem:[%s18009_s13 + $0xd8] sm:$0xff]  ;;  %10861 = vmatmul.mubr.f32.vlgmr.msra.gmra.mrb[4].mxu1 %v22675_v40 }
 0x558   : > { %22751 = vst [vmem:[#allocation164_spill] sm:$0xff] %v19189_v55  ;;  %12671 = vmatpush3.bf16.msra.mxu0 %v22752_v32  ;;  %v22753_v24 = vand.u32 4294901760, %v19022_v56  ;;  %v20892_v54 = vand.u32 4294901760, %v19178_v36  ;;  %v22754_v5 = vpack.c.bf16 %v18729_v60, %v18727_v50  ;;  %v8164_v32 = vand.u32 4294901760, %v19172_v33  ;;  %10863 = vmatprep.mubr.f32.mxu1 %v22679_v52  ;;  %v6674_v33 = vld [vmem:[%s18009_s13 + $0xd0] sm:$0xff] }
 0x559   : > { %v8409_v49 = vand.u32 4294901760, %v8408_v9  ;;  %v8290_v56 = vand.u32 4294901760, %v8289_v42  ;;  %v19207_v25 = vsub.f32 %v6670_v4, %v19189_v55  ;;  %12443 = vmatpush3.bf16.msra.mxu1 %v22755_v46  ;;  %v20894_v31 = vand.u32 4294901760, %v22757_v43  ;;  %v22759_v42 = vld [vmem:[#allocation44_spill] sm:$0xff] }
 0x55a   : > { %8129 = vmatprep.mubr.f32.mxu0 %v22753_v24  ;;  %12673 = vmatprep.subr.bf16.mxu0 %v22754_v5  ;;  %v8297_v24 = vand.u32 4294901760, %v8296_v22  ;;  %v8172_v40 = vsub.f32 %v19178_v36, %v20892_v54  ;;  %v22758_v5 = vld [vmem:[#allocation90_spill] sm:$0xff]  ;;  %v22760_v4 = vand.u32 4294901760, %v19036_v2  ;;  %v20896_v46 = vand.u32 4294901760, %v18852_v39 }
 0x55b   : > { %v19211_v9 = vpack.c.bf16 %v8409_v49, %v8402_v62  ;;  %v20893_v47 = vand.u32 4294901760, %v22758_v5  ;;  %12445 = vmatprep.subr.bf16.mxu1 %v22759_v42  ;;  %v20895_v52 = vand.u32 4294901760, %v19207_v25  ;;  %v19225_v62 = vand.u32 4294901760, %v6675_v26  ;;  %10864 = vmatmul.mubr.f32.gmra.mrb[6].mxu1 %v22688_v28  ;;  %v22766_v28 = vld [vmem:[#allocation49_spill] sm:$0xff] }
 0x55c   : > { %8135 = vmatmul.mubr.f32.gmra.mrb[60].mxu0 %v22760_v4  ;;  %v19222_v22 = vpack.c.bf16 %v8297_v24, %v8290_v56  ;;  %v22763_v49 = vpack.c.bf16 %v18736_v12, %v18733_v17  ;;  %v22764_v54 = vand.u32 4294901760, %v19080_v7  ;;  %v12684_v42 = vpack.c.bf16 %v22740_v11, %v22736_v48  ;;  %10866 = vmatprep.mubr.f32.mxu1 %v22690_v6 }
 0x55d   : > { %22756 = vst [vmem:[#allocation88_spill] sm:$0xff] %v19211_v9  ;;  %22762 = vst [vmem:[#allocation166_spill] sm:$0xff] %v19225_v62  ;;  %v8415_v2 = vsub.f32 %v22757_v43, %v20894_v31  ;;  %v8422_v56 = vsub.f32 %v22758_v5, %v20893_v47  ;;  %v22765_v7 = vpack.c.bf16 %v18750_v45, %v18748_v15  ;;  %v19255_v47 = vand.u32 4294901760, %v6674_v33  ;;  %v22768_v9 = vld [vmem:[#allocation101_spill] sm:$0xff] }
 0x55e   : > { %22761 = vst [vmem:[#allocation165_spill] sm:$0xff] %v19222_v22  ;;  %12675 = vmatpush3.bf16.msra.mxu0 %v22763_v49  ;;  %8144 = vmatprep.mubr.f32.mxu0 %v22764_v54  ;;  %v8178_v54 = vsub.f32 %v19207_v25, %v20895_v52  ;;  %v19250_v4 = vsub.f32 %v6675_v26, %v19225_v62  ;;  %v22767_v52 = vand.u32 4294901760, %v18857_v41  ;;  %v6679_v22 = vld [vmem:[%s18009_s13 + $0xf8] sm:$0xff] }
 0x55f   : > { %12677 = vmatprep.subr.bf16.mxu0 %v22765_v7  ;;  %v8303_v49 = vsub.f32 %v18852_v39, %v20896_v46  ;;  %12447 = vmatpush3.bf16.msra.mxu1 %v22766_v28  ;;  %v12686_v7 = vpack.c.bf16 %v22746_v13, %v22745_v58  ;;  %v8416_v31 = vand.u32 4294901760, %v8415_v2  ;;  %v8423_v24 = vand.u32 4294901760, %v8422_v56 }
 0x560   : > { %v8310_v26 = vsub.f32 %v18857_v41, %v22767_v52  ;;  %12449 = vmatprep.subr.bf16.mxu1 %v22768_v9  ;;  %8150 = vmatmul.mubr.f32.gmra.mrb[62].mxu0 %v8149_v61  ;;  %v8173_v46 = vand.u32 4294901760, %v8172_v40  ;;  %v20901_v62 = vand.u32 4294901760, %v19250_v4  ;;  %v19268_v28 = vsub.f32 %v6674_v33, %v19255_v47  ;;  %v22777_v33 = vld [vmem:[#allocation63_spill] sm:$0xff] }
 0x561   : > { %v8304_v6 = vand.u32 4294901760, %v8303_v49  ;;  %v22769_v2 = vpack.c.bf16 %v18765_v35, %v18762_v14  ;;  %8159 = vmatprep.mubr.f32.mxu0 %v8158_v57  ;;  %v8179_v56 = vand.u32 4294901760, %v8178_v54  ;;  %v19273_v55 = vpack.c.bf16 %v8423_v24, %v8416_v31  ;;  %10867 = vmatmul.mubr.f32.gmra.mrb[8].mxu1 %v22699_v20  ;;  %v6678_v31 = vld [vmem:[%s18009_s13 + $0xf0] sm:$0xff]  ;;  %v22773_v24 = vld [vmem:[#allocation104_spill] sm:$0xff] }
 0x562   : > { %v8311_v52 = vand.u32 4294901760, %v8310_v26  ;;  %v20902_v9 = vand.u32 4294901760, %v18861_v23  ;;  %v22771_v61 = vpack.c.bf16 %v18771_v34, %v18769_v29  ;;  %v8187_v40 = vsub.f32 %v19250_v4, %v20901_v62  ;;  %10869 = vmatprep.mubr.f32.mxu1 %v22700_v44  ;;  %v22775_v26 = vld [vmem:[#allocation53_spill] sm:$0xff] }
 0x563   : > { %12679 = vmatpush3.bf16.msra.mxu0 %v22769_v2  ;;  %22770 = vst [vmem:[#allocation7_spill] sm:$0xff] %v19273_v55  ;;  %v19285_v54 = vand.u32 4294901760, %v6679_v22  ;;  %12451 = vmatpush3.bf16.msra.mxu1 %v22773_v24  ;;  %v20903_v2 = vand.u32 4294901760, %v22775_v26  ;;  %v22778_v55 = vand.u32 4294901760, %v19268_v28  ;;  %v22779_v24 = vand.u32 4294901760, %v18863_v1 }
 0x564   : > { %12681 = vmatprep.subr.bf16.mxu0 %v22771_v61  ;;  %v19290_v20 = vpack.c.bf16 %v8311_v52, %v8304_v6  ;;  %v8429_v49 = vsub.f32 %v18861_v23, %v20902_v9  ;;  %v22776_v61 = vld [vmem:[#allocation97_spill] sm:$0xff]  ;;  %12453 = vmatprep.subr.bf16.mxu1 %v22777_v33  ;;  %v8188_v57 = vand.u32 4294901760, %v8187_v40  ;;  %v22781_v9 = vpack.c.bf16 %v18778_v37, %v18776_v38 }
 0x565   : > { %22772 = vst [vmem:[#allocation167_spill] sm:$0xff] %v19285_v54  ;;  %8165 = vmatmul.mubr.f32.gmra.mrb[64].mxu0 %v8164_v32  ;;  %v8193_v44 = vsub.f32 %v19268_v28, %v22778_v55  ;;  %v8436_v6 = vsub.f32 %v18863_v1, %v22779_v24  ;;  %v19305_v52 = vsub.f32 %v6679_v22, %v19285_v54  ;;  %v22782_v40 = vand.u32 4294901760, %v22776_v61 }
 0x566   : > { %22774 = vst [vmem:[#allocation151_spill] sm:$0xff] %v19290_v20  ;;  %8174 = vmatprep.mubr.f32.mxu0 %v8173_v46  ;;  %v8430_v62 = vand.u32 4294901760, %v8429_v49  ;;  %v8317_v32 = vsub.f32 %v22775_v26, %v20903_v2  ;;  %v19316_v33 = vand.u32 4294901760, %v6678_v31  ;;  %10870 = vmatmul.mubr.f32.gmra.mrb[10].mxu1 %v22711_v53  ;;  %v12688_v22 = vpack.c.bf16 %v22758_v5, %v22757_v43  ;;  %v22784_v49 = vld [vmem:[#allocation229_spill] sm:$0xff] }
 0x567   : > { %22780 = vst [vmem:[#allocation155_spill] sm:$0xff] %v19305_v52  ;;  %12683 = vmatpush3.bf16.msra.mxu0 %v22781_v9  ;;  %v8324_v55 = vsub.f32 %v22776_v61, %v22782_v40  ;;  %v8437_v24 = vand.u32 4294901760, %v8436_v6  ;;  %v20907_v46 = vand.u32 4294901760, %v19305_v52  ;;  %v22783_v9 = vld [vmem:[#allocation111_spill] sm:$0xff]  ;;  %7186 = vmatprep.mubr.f32.mxu1 %v22784_v49  ;;  %v22786_v40 = vld [vmem:[#allocation137_spill] sm:$0xff]  ;;  %v8194_v53 = vand.u32 4294901760, %v8193_v44 }
 0x568   : > { %12685 = vmatprep.subr.bf16.mxu0 %v12684_v42  ;;  %12455 = vmatpush3.bf16.msra.mxu1 %v22783_v9  ;;  %v8318_v2 = vand.u32 4294901760, %v8317_v32  ;;  %v19325_v54 = vsub.f32 %v6678_v31, %v19316_v33  ;;  %v12690_v9 = vpack.c.bf16 %v18857_v41, %v18852_v39 }
 0x569   : > { %v8325_v20 = vand.u32 4294901760, %v8324_v55  ;;  %12457 = vmatprep.subr.bf16.mxu1 %v22786_v40  ;;  %8180 = vmatmul.mubr.f32.gmra.mrb[66].mxu0 %v8179_v56  ;;  %v19328_v42 = vpack.c.bf16 %v8437_v24, %v8430_v62  ;;  %v8202_v6 = vsub.f32 %v19305_v52, %v20907_v46  ;;  %v12692_v56 = vpack.c.bf16 %v18863_v1, %v18861_v23  ;;  %v22787_v62 = vld [vmem:[#allocation35_spill] sm:$0xff]  ;;  %v22791_v40 = vld [vmem:[#allocation181_spill] sm:$0xff] }
 0x56a   : > { %22785 = vst [vmem:[#allocation168_spill] sm:$0xff] %v19325_v54  ;;  %8189 = vmatprep.mubr.f32.mxu0 %v8188_v57  ;;  %v20906_v31 = vand.u32 4294901760, %v19325_v54  ;;  %v22873_v46 = vld [vmem:[#allocation133_spill] sm:$0xff] }
 0x56b   : > { %12687 = vmatpush3.bf16.msra.mxu0 %v12686_v7  ;;  %v19335_v32 = vpack.c.bf16 %v8325_v20, %v8318_v2  ;;  %v8203_v55 = vand.u32 4294901760, %v8202_v6  ;;  %v22788_v7 = vld [vmem:[#allocation179_spill] sm:$0xff]  ;;  %v12694_v20 = vpack.c.bf16 %v22776_v61, %v22775_v26  ;;  %v22789_v2 = vand.u32 4294901760, %v18671_v8  ;;  %v22792_v6 = vld [vmem:[#allocation250_spill] sm:$0xff] }
 0x56c   : > { %12689 = vmatprep.subr.bf16.mxu0 %v12688_v22  ;;  %12459 = vmatpush3.bf16.msra.mxu1 %v22787_v62  ;;  %v8208_v44 = vsub.f32 %v19325_v54, %v20906_v31  ;;  %v22790_v22 = vand.u32 4294901760, %v18673_v19  ;;  %v22793_v62 = vld [vmem:[#allocation94_spill] sm:$0xff]  ;;  %v22797_v8 = vand.u32 4294901760, %v18702_v0  ;;  %v22804_v0 = vand.u32 4294901760, %v18729_v60 }
 0x56d   : > { %12461 = vmatprep.subr.bf16.mxu1 %v22788_v7  ;;  %8195 = vmatmul.mubr.f32.gmra.mrb[68].mxu0 %v8194_v53  ;;  %v22794_v53 = vand.u32 4294901760, %v18684_v16  ;;  %v22799_v7 = vld [vmem:[#allocation24_spill] sm:$0xff]  ;;  %v22801_v16 = vand.u32 4294901760, %v18714_v10  ;;  %v22808_v10 = vand.u32 4294901760, %v18733_v17  ;;  %v22812_v60 = vand.u32 4294901760, %v18750_v45 }
 0x56e   : > { %8204 = vmatprep.mubr.f32.mxu0 %v8203_v55  ;;  %v8209_v57 = vand.u32 4294901760, %v8208_v44  ;;  %v12728_v24 = vpack.c.bf16 %v22790_v22, %v22789_v2  ;;  %v22798_v44 = vld [vmem:[#allocation248_spill] sm:$0xff]  ;;  %v22805_v22 = vld [vmem:[#allocation30_spill] sm:$0xff]  ;;  %v22817_v17 = vand.u32 4294901760, %v18765_v35  ;;  %v22819_v45 = vand.u32 4294901760, %v18769_v29  ;;  %v22827_v29 = vld [vmem:[#allocation21_spill] sm:$0xff] }
 0x56f   : > { %12691 = vmatpush3.bf16.msra.mxu0 %v12690_v9  ;;  %v22795_v9 = vand.u32 4294901760, %v18686_v51  ;;  %v22800_v2 = vld [vmem:[#allocation52_spill] sm:$0xff]  ;;  %v22802_v51 = vand.u32 4294901760, %v18716_v27  ;;  %v22809_v27 = vand.u32 4294901760, %v18736_v12  ;;  %v22816_v12 = vand.u32 4294901760, %v18762_v14 }
 0x570   : > { %12693 = vmatprep.subr.bf16.mxu0 %v12692_v56  ;;  %12463 = vmatpush3.bf16.msra.mxu1 %v22791_v40  ;;  %v22796_v56 = vand.u32 4294901760, %v18692_v21  ;;  %v22803_v21 = vand.u32 4294901760, %v18727_v50  ;;  %v22807_v40 = vld [vmem:[#allocation126_spill] sm:$0xff]  ;;  %v22811_v50 = vand.u32 4294901760, %v18748_v15  ;;  %v22818_v15 = vld [vmem:[#allocation43_spill] sm:$0xff]  ;;  %v22824_v14 = vld [vmem:[#allocation160_spill] sm:$0xff] }
 0x571   : > { %12465 = vmatprep.subr.bf16.mxu1 %v22792_v6  ;;  %8210 = vmatmul.mubr.f32.gmra.mrb[70].mxu0 %v8209_v57  ;;  %v12730_v55 = vpack.c.bf16 %v22795_v9, %v22794_v53  ;;  %v12734_v57 = vpack.c.bf16 %v22802_v51, %v22801_v16  ;;  %v12738_v6 = vpack.c.bf16 %v22809_v27, %v22808_v10  ;;  %v22810_v53 = vld [vmem:[#allocation231_spill] sm:$0xff]  ;;  %v22825_v35 = vand.u32 4294901760, %v18776_v38  ;;  %v22830_v10 = vld [vmem:[#allocation221_spill] sm:$0xff] }
 0x572   : > { %8626 = vmatprep.mubr.f32.mxu0 %v22793_v62  ;;  %v12732_v19 = vpack.c.bf16 %v22797_v8, %v22796_v56  ;;  %v12740_v9 = vpack.c.bf16 %v22812_v60, %v22811_v50  ;;  %v22814_v56 = vld [vmem:[#allocation18_spill] sm:$0xff]  ;;  %v22821_v16 = vld [vmem:[#allocation219_spill] sm:$0xff]  ;;  %v22834_v38 = vand.u32 4294901760, %v22745_v58  ;;  %v22843_v58 = vand.u32 4294901760, %v18857_v41 }
 0x573   : > { %12695 = vmatpush3.bf16.msra.mxu0 %v12694_v20  ;;  %v12736_v20 = vpack.c.bf16 %v22804_v0, %v22803_v21  ;;  %v22815_v8 = vld [vmem:[#allocation218_spill] sm:$0xff]  ;;  %v22822_v51 = vld [vmem:[#allocation47_spill] sm:$0xff]  ;;  %v22826_v21 = vand.u32 4294901760, %v18778_v37  ;;  %v22835_v37 = vand.u32 4294901760, %v22746_v13  ;;  %v22842_v13 = vand.u32 4294901760, %v18852_v39 }
 0x574   : > { %12729 = vmatprep.subr.bf16.mxu0 %v12728_v24  ;;  %12467 = vmatpush3.bf16.msra.mxu1 %v22798_v44  ;;  %v22806_v24 = vld [vmem:[#allocation216_spill] sm:$0xff]  ;;  %v22820_v44 = vand.u32 4294901760, %v18771_v34  ;;  %v22828_v34 = vand.u32 4294901760, %v22736_v48  ;;  %v22831_v27 = vld [vmem:[#allocation103_spill] sm:$0xff]  ;;  %v22833_v50 = vld [vmem:[#allocation86_spill] sm:$0xff]  ;;  %v22850_v41 = vand.u32 4294901760, %v22775_v26 }
 0x575   : > { %12469 = vmatprep.subr.bf16.mxu1 %v22799_v7  ;;  %v12746_v0 = vpack.c.bf16 %v22826_v21, %v22825_v35  ;;  %v12750_v60 = vpack.c.bf16 %v22835_v37, %v22834_v38  ;;  %v22836_v48 = vld [vmem:[#allocation107_spill] sm:$0xff]  ;;  %v22847_v21 = vld [vmem:[#allocation225_spill] sm:$0xff]  ;;  %v22851_v39 = vand.u32 4294901760, %v22776_v61  ;;  %v22855_v38 = vld [vmem:[#allocation230_spill] sm:$0xff] }
 0x576   : > { %8629 = vmatmul.mubr.f32.vlgmr.msra.gmra.mrb[72].mxu0 %v22800_v2  ;;  %v12744_v7 = vpack.c.bf16 %v22820_v44, %v22819_v45  ;;  %v22841_v45 = vld [vmem:[#allocation224_spill] sm:$0xff]  ;;  %v12754_v44 = vpack.c.bf16 %v22843_v58, %v22842_v13  ;;  %v22856_v37 = vld [vmem:[#allocation78_spill] sm:$0xff]  ;;  %v22859_v61 = vld [vmem:[#allocation249_spill] sm:$0xff] }
 0x577   : > { %12731 = vmatpush3.bf16.msra.mxu0 %v12730_v55  ;;  %8635 = vmatprep.mubr.f32.mxu0 %v18924_v59  ;;  %v22813_v55 = vld [vmem:[#allocation217_spill] sm:$0xff]  ;;  %v22858_v26 = vld [vmem:[#allocation234_spill] sm:$0xff]  ;;  %v22864_v58 = vld [vmem:[#allocation15_spill] sm:$0xff] }
 0x578   : > { %12733 = vmatprep.subr.bf16.mxu0 %v12732_v19  ;;  %12471 = vmatpush3.bf16.msra.mxu1 %v22805_v22  ;;  %v12742_v19 = vpack.c.bf16 %v22817_v17, %v22816_v12  ;;  %v22839_v17 = vld [vmem:[#allocation223_spill] sm:$0xff]  ;;  %v22863_v13 = vld [vmem:[#allocation22_spill] sm:$0xff] }
 0x579   : > { %12505 = vmatprep.subr.bf16.mxu1 %v22806_v24 }
 0x57a   : > { %8638 = vmatmul.mubr.f32.gmra.mrb[74].mxu0 %v22807_v40 }
 0x57b   : > { %12735 = vmatpush3.bf16.msra.mxu0 %v12734_v57  ;;  %8644 = vmatprep.mubr.f32.mxu0 %v18991_v63  ;;  %v22823_v57 = vld [vmem:[#allocation220_spill] sm:$0xff] }
 0x57c   : > { %7188 = vmatmul.mubr.f32.vlgmr.msra.gmra.mrb[12].mxu1 %v22810_v53  ;;  %12737 = vmatprep.subr.bf16.mxu0 %v12736_v20  ;;  %v22829_v20 = vand.u32 4294901760, %v22740_v11  ;;  %v22837_v11 = vand.u32 4294901760, %v22757_v43  ;;  %v22844_v43 = vld [vmem:[#allocation113_spill] sm:$0xff] }
 0x57d   : > { %12507 = vmatpush3.bf16.msra.mxu1 %v22813_v55  ;;  %7193 = vmatprep.mubr.f32.mxu1 %v22814_v56 }
 0x57e   : > { %12509 = vmatprep.subr.bf16.mxu1 %v22815_v8  ;;  %8647 = vmatmul.mubr.f32.gmra.mrb[76].mxu0 %v19002_v3  ;;  %v12748_v22 = vpack.c.bf16 %v22829_v20, %v22828_v34  ;;  %v22849_v34 = vld [vmem:[#allocation226_spill] sm:$0xff]  ;;  %v12758_v20 = vpack.c.bf16 %v22851_v39, %v22850_v41  ;;  %v22869_v41 = vld [vmem:[#allocation16_spill] sm:$0xff] }
 0x57f   : > { %12739 = vmatpush3.bf16.msra.mxu0 %v12738_v6  ;;  %8653 = vmatprep.mubr.f32.mxu0 %v19050_v18  ;;  %v22832_v6 = vld [vmem:[#allocation222_spill] sm:$0xff]  ;;  %v22870_v39 = vand.u32 4294901760, %v22869_v41  ;;  %v22880_v41 = vld [vmem:[#allocation73_spill] sm:$0xff] }
 0x580   : > { %7195 = vmatmul.mubr.f32.gmra.mrb[14].mxu1 %v22818_v15  ;;  %12741 = vmatprep.subr.bf16.mxu0 %v12740_v9  ;;  %v22838_v9 = vand.u32 4294901760, %v22758_v5  ;;  %v22845_v5 = vand.u32 4294901760, %v18861_v23  ;;  %v22852_v23 = vld [vmem:[#allocation146_spill] sm:$0xff] }
 0x581   : > { %12511 = vmatpush3.bf16.msra.mxu1 %v22821_v16  ;;  %7200 = vmatprep.mubr.f32.mxu1 %v22822_v51 }
 0x582   : > { %12513 = vmatprep.subr.bf16.mxu1 %v22823_v57  ;;  %8656 = vmatmul.mubr.f32.gmra.mrb[78].mxu0 %v19072_v30  ;;  %v12752_v12 = vpack.c.bf16 %v22838_v9, %v22837_v11  ;;  %v22860_v11 = vld [vmem:[#allocation238_spill] sm:$0xff]  ;;  %v22861_v9 = vld [vmem:[#allocation92_spill] sm:$0xff] }
 0x583   : > { %12743 = vmatpush3.bf16.msra.mxu0 %v12742_v19  ;;  %8662 = vmatprep.mubr.f32.mxu0 %v22824_v14  ;;  %v22840_v19 = vld [vmem:[#allocation66_spill] sm:$0xff] }
 0x584   : > { %7202 = vmatmul.mubr.f32.gmra.mrb[16].mxu1 %v22827_v29  ;;  %12745 = vmatprep.subr.bf16.mxu0 %v12744_v7  ;;  %v22846_v7 = vand.u32 4294901760, %v18863_v1  ;;  %v22853_v1 = vld [vmem:[#allocation227_spill] sm:$0xff] }
 0x585   : > { %12515 = vmatpush3.bf16.msra.mxu1 %v22830_v10  ;;  %7207 = vmatprep.mubr.f32.mxu1 %v22831_v27 }
 0x586   : > { %12517 = vmatprep.subr.bf16.mxu1 %v22832_v6  ;;  %8665 = vmatmul.mubr.f32.gmra.mrb[80].mxu0 %v22833_v50  ;;  %v12756_v35 = vpack.c.bf16 %v22846_v7, %v22845_v5  ;;  %v22867_v7 = vld [vmem:[#allocation59_spill] sm:$0xff] }
 0x587   : > { %12747 = vmatpush3.bf16.msra.mxu0 %v12746_v0  ;;  %8671 = vmatprep.mubr.f32.mxu0 %v19178_v36  ;;  %v22848_v0 = vld [vmem:[#allocation139_spill] sm:$0xff] }
 0x588   : > { %7209 = vmatmul.mubr.f32.gmra.mrb[18].mxu1 %v22836_v48  ;;  %12749 = vmatprep.subr.bf16.mxu0 %v12748_v22  ;;  %v22854_v22 = vld [vmem:[#allocation185_spill] sm:$0xff] }
 0x589   : > { %12519 = vmatpush3.bf16.msra.mxu1 %v22839_v17  ;;  %7214 = vmatprep.mubr.f32.mxu1 %v22840_v19 }
 0x58a   : > { %12521 = vmatprep.subr.bf16.mxu1 %v22841_v45  ;;  %8674 = vmatmul.mubr.f32.gmra.mrb[82].mxu0 %v19207_v25 }
 0x58b   : > { %12751 = vmatpush3.bf16.msra.mxu0 %v12750_v60  ;;  %8680 = vmatprep.mubr.f32.mxu0 %v19250_v4  ;;  %v22857_v60 = vld [vmem:[#allocation187_spill] sm:$0xff] }
 0x58c   : > { %7216 = vmatmul.mubr.f32.gmra.mrb[20].mxu1 %v22844_v43  ;;  %12753 = vmatprep.subr.bf16.mxu0 %v12752_v12  ;;  %v22862_v12 = vld [vmem:[#allocation100_spill] sm:$0xff] }
 0x58d   : > { %12523 = vmatpush3.bf16.msra.mxu1 %v22847_v21  ;;  %7221 = vmatprep.mubr.f32.mxu1 %v22848_v0 }
 0x58e   : > { %12525 = vmatprep.subr.bf16.mxu1 %v22849_v34  ;;  %8683 = vmatmul.mubr.f32.gmra.mrb[84].mxu0 %v19268_v28 }
 0x58f   : > { %12755 = vmatpush3.bf16.msra.mxu0 %v12754_v44  ;;  %8689 = vmatprep.mubr.f32.mxu0 %v19305_v52  ;;  %v22865_v44 = vld [vmem:[#allocation237_spill] sm:$0xff] }
 0x590   : > { %7223 = vmatmul.mubr.f32.gmra.mrb[22].mxu1 %v22852_v23  ;;  %12757 = vmatprep.subr.bf16.mxu0 %v12756_v35  ;;  %v22866_v5 = vand.u32 4294901760, %v22865_v44  ;;  %v22868_v35 = vld [vmem:[#allocation76_spill] sm:$0xff]  ;;  %v22874_v44 = vld [vmem:[#allocation153_spill] sm:$0xff] }
 0x591   : > { %12527 = vmatpush3.bf16.msra.mxu1 %v22853_v1  ;;  %7228 = vmatprep.mubr.f32.mxu1 %v22854_v22 }
 0x592   : > { %12529 = vmatprep.subr.bf16.mxu1 %v22855_v38  ;;  %8692 = vmatmul.mubr.f32.gmra.mrb[86].mxu0 %v19325_v54  ;;  %v22877_v54 = vld [vmem:[#allocation23_spill] sm:$0xff] }
 0x593   : > { %12759 = vmatpush3.bf16.msra.mxu0 %v12758_v20  ;;  %9043 = vmatprep.mubr.f32.mxu0 %v22856_v37  ;;  %v22871_v20 = vld [vmem:[#allocation196_spill] sm:$0xff]  ;;  %v22878_v52 = vand.u32 4294901760, %v22877_v54  ;;  %v22886_v54 = vld [vmem:[#allocation162_spill] sm:$0xff] }
 0x594   : > { %7230 = vmatmul.mubr.f32.gmra.mrb[24].mxu1 %v22857_v60  ;;  %v22872_v31 = vand.u32 4294901760, %v22871_v20 }
 0x595   : > { %12531 = vmatpush3.bf16.msra.mxu1 %v22858_v26  ;;  %7235 = vmatprep.mubr.f32.mxu1 %v22859_v61 }
 0x596   : > { %12533 = vmatprep.subr.bf16.mxu1 %v22860_v11  ;;  %9045 = vmatmul.mubr.f32.vlgmr.msra.gmra.mrb[88].mxu0 %v22861_v9 }
 0x597   : > { %9050 = vmatprep.mubr.f32.mxu0 %v22862_v12 }
 0x598   : > { %7237 = vmatmul.mubr.f32.gmra.mrb[26].mxu1 %v22863_v13 }
 0x599   : > { %12535 = vmatpush3.bf16.msra.mxu1 %v22864_v58  ;;  %7542 = vmatprep.mubr.f32.mxu1 %v22866_v5  ;;  %v22875_v5 = vld [vmem:[#allocation46_spill] sm:$0xff] }
 0x59a   : > { %12569 = vmatprep.subr.bf16.mxu1 %v22806_v24  ;;  %9052 = vmatmul.mubr.f32.gmra.mrb[90].mxu0 %v22867_v7  ;;  %v22876_v24 = vand.u32 4294901760, %v22875_v5  ;;  %v22889_v5 = vld [vmem:[#allocation112_spill] sm:$0xff] }
 0x59b   : > { %9057 = vmatprep.mubr.f32.mxu0 %v22868_v35 }
 0x59c   : > { %7546 = vmatmul.mubr.f32.vlgmr.msra.gmra.mrb[28].mxu1 %v22870_v39  ;;  %v22883_v39 = vld [vmem:[#allocation105_spill] sm:$0xff] }
 0x59d   : > { %12571 = vmatpush3.bf16.msra.mxu1 %v22813_v55  ;;  %7553 = vmatprep.mubr.f32.mxu1 %v22872_v31  ;;  %v22879_v55 = vld [vmem:[#allocation157_spill] sm:$0xff]  ;;  %v22881_v31 = vld [vmem:[#allocation244_spill] sm:$0xff]  ;;  %v22884_v20 = vand.u32 4294901760, %v22883_v39 }
 0x59e   : > { %12573 = vmatprep.subr.bf16.mxu1 %v22815_v8  ;;  %9059 = vmatmul.mubr.f32.gmra.mrb[92].mxu0 %v22873_v46  ;;  %v22882_v8 = vand.u32 4294901760, %v22881_v31  ;;  %v22892_v31 = vld [vmem:[#allocation166_spill] sm:$0xff]  ;;  %v22895_v39 = vld [vmem:[#allocation144_spill] sm:$0xff] }
 0x59f   : > { %9064 = vmatprep.mubr.f32.mxu0 %v22874_v44 }
 0x5a0   : > { %7557 = vmatmul.mubr.f32.gmra.mrb[30].mxu1 %v22876_v24  ;;  %v22890_v24 = vand.u32 4294901760, %v22889_v5 }
 0x5a1   : > { %12575 = vmatpush3.bf16.msra.mxu1 %v22821_v16  ;;  %7564 = vmatprep.mubr.f32.mxu1 %v22878_v52  ;;  %v22885_v16 = vld [vmem:[#allocation4_spill] sm:$0xff]  ;;  %v22887_v52 = vld [vmem:[#allocation109_spill] sm:$0xff] }
 0x5a2   : > { %12577 = vmatprep.subr.bf16.mxu1 %v22823_v57  ;;  %9066 = vmatmul.mubr.f32.gmra.mrb[94].mxu0 %v22879_v55  ;;  %v22888_v57 = vand.u32 4294901760, %v22887_v52  ;;  %v22898_v52 = vld [vmem:[#allocation150_spill] sm:$0xff] }
 0x5a3   : > { %9071 = vmatprep.mubr.f32.mxu0 %v22880_v41 }
 0x5a4   : > { %7568 = vmatmul.mubr.f32.gmra.mrb[32].mxu1 %v22882_v8  ;;  %v22893_v8 = vld [vmem:[#allocation81_spill] sm:$0xff] }
 0x5a5   : > { %12579 = vmatpush3.bf16.msra.mxu1 %v22830_v10  ;;  %7575 = vmatprep.mubr.f32.mxu1 %v22884_v20  ;;  %v22891_v10 = vld [vmem:[#allocation164_spill] sm:$0xff]  ;;  %v22896_v20 = vand.u32 4294901760, %v22895_v39 }
 0x5a6   : > { %12581 = vmatprep.subr.bf16.mxu1 %v22832_v6  ;;  %9073 = vmatmul.mubr.f32.gmra.mrb[96].mxu0 %v22885_v16  ;;  %v22894_v6 = vand.u32 4294901760, %v22893_v8 }
 0x5a7   : > { %9078 = vmatprep.mubr.f32.mxu0 %v22886_v54 }
 0x5a8   : > { %7579 = vmatmul.mubr.f32.gmra.mrb[34].mxu1 %v22888_v57  ;;  %v22900_v57 = vld [vmem:[#allocation184_spill] sm:$0xff] }
 0x5a9   : > { %12583 = vmatpush3.bf16.msra.mxu1 %v22839_v17  ;;  %7586 = vmatprep.mubr.f32.mxu1 %v22890_v24  ;;  %v22897_v17 = vld [vmem:[#allocation167_spill] sm:$0xff]  ;;  %v22901_v5 = vand.u32 4294901760, %v22900_v57 }
 0x5aa   : > { %12585 = vmatprep.subr.bf16.mxu1 %v22841_v45  ;;  %9080 = vmatmul.mubr.f32.gmra.mrb[98].mxu0 %v22891_v10  ;;  %v22899_v45 = vand.u32 4294901760, %v22898_v52  ;;  %v22910_v52 = vld [vmem:[#allocation108_spill] sm:$0xff] }
 0x5ab   : > { %9085 = vmatprep.mubr.f32.mxu0 %v22892_v31 }
 0x5ac   : > { %7590 = vmatmul.mubr.f32.gmra.mrb[36].mxu1 %v22894_v6  ;;  %v22906_v6 = vld [vmem:[#allocation253_spill] sm:$0xff] }
 0x5ad   : > { %12587 = vmatpush3.bf16.msra.mxu1 %v22847_v21  ;;  %7597 = vmatprep.mubr.f32.mxu1 %v22896_v20  ;;  %v22902_v21 = vld [vmem:[#allocation242_spill] sm:$0xff]  ;;  %v22907_v39 = vand.u32 4294901760, %v22906_v6  ;;  %v22909_v20 = vld [vmem:[#allocation56_spill] sm:$0xff] }
 0x5ae   : > { %12589 = vmatprep.subr.bf16.mxu1 %v22849_v34  ;;  %9087 = vmatmul.mubr.f32.gmra.mrb[100].mxu0 %v19255_v47  ;;  %v22903_v24 = vand.u32 4294901760, %v22902_v21  ;;  %v22904_v34 = vld [vmem:[#allocation246_spill] sm:$0xff] }
 0x5af   : > { %9092 = vmatprep.mubr.f32.mxu0 %v22897_v17  ;;  %v22905_v8 = vand.u32 4294901760, %v22904_v34  ;;  %v22914_v34 = vld [vmem:[#allocation158_spill] sm:$0xff] }
 0x5b0   : > { %7601 = vmatmul.mubr.f32.gmra.mrb[38].mxu1 %v22899_v45 }
 0x5b1   : > { %12591 = vmatpush3.bf16.msra.mxu1 %v22853_v1  ;;  %7608 = vmatprep.mubr.f32.mxu1 %v22901_v5  ;;  %v22908_v1 = vld [vmem:[#allocation99_spill] sm:$0xff] }
 0x5b2   : > { %12593 = vmatprep.subr.bf16.mxu1 %v22855_v38  ;;  %9094 = vmatmul.mubr.f32.gmra.mrb[102].mxu0 %v19316_v33  ;;  %v9704_v38 = vpop.f32.mrb[8].mxu0 }
 0x5b4   : > { %7612 = vmatmul.mubr.f32.gmra.mrb[40].mxu1 %v22903_v24  ;;  %v22913_v24 = vld [vmem:[#allocation154_spill] sm:$0xff] }
 0x5b5   : > { %12595 = vmatpush3.bf16.msra.mxu1 %v22858_v26  ;;  %7619 = vmatprep.mubr.f32.mxu1 %v22905_v8  ;;  %v9705_v26 = vpop.f32.mrb[9].mxu0 }
 0x5b6   : > { %12597 = vmatprep.subr.bf16.mxu1 %v22860_v11  ;;  %v19533_v11 = vadd.f32 %v9705_v26, %v9704_v38  ;;  %v9707_v45 = vpop.f32.mrb[10].mxu0  ;;  %v22922_v26 = vld [vmem:[#allocation29_spill] sm:$0xff] }
 0x5b7   : > { %v9708_v57 = vpop.f32.mrb[11].mxu0 }
 0x5b8   : > { %7623 = vmatmul.mubr.f32.gmra.mrb[42].mxu1 %v22907_v39  ;;  %v9710_v5 = vpop.f32.mrb[12].mxu0  ;;  %v22917_v39 = vld [vmem:[#allocation163_spill] sm:$0xff] }
 0x5b9   : > { %12599 = vmatpush3.bf16.msra.mxu1 %v22864_v58  ;;  %7942 = vmatprep.mubr.f32.mxu1 %v22784_v49  ;;  %v19536_v58 = vadd.f32 %v9708_v57, %v9707_v45  ;;  %v22911_v49 = vld [vmem:[#allocation132_spill] sm:$0xff]  ;;  %v9711_v21 = vpop.f32.mrb[13].mxu0 }
 0x5ba   : > { %12633 = vmatprep.subr.bf16.mxu1 %v22908_v1  ;;  %v22920_v1 = vld [vmem:[#allocation7_spill] sm:$0xff]  ;;  %v22927_v45 = vld [vmem:[#allocation252_spill] sm:$0xff] }
 0x5bc   : > { %7944 = vmatmul.mubr.f32.vlgmr.msra.gmra.mrb[44].mxu1 %v22810_v53  ;;  %v22912_v53 = vld [vmem:[#allocation145_spill] sm:$0xff] }
 0x5bd   : > { %12635 = vmatpush3.bf16.msra.mxu1 %v22909_v20  ;;  %7949 = vmatprep.mubr.f32.mxu1 %v22814_v56  ;;  %v19542_v56 = vadd.f32 %v9711_v21, %v9710_v5  ;;  %v22929_v5 = vld [vmem:[#allocation41_spill] sm:$0xff] }
 0x5be   : > { %12637 = vmatprep.subr.bf16.mxu1 %v22910_v52 }
 0x5c0   : > { %7951 = vmatmul.mubr.f32.gmra.mrb[46].mxu1 %v22818_v15  ;;  %v22915_v15 = vld [vmem:[#allocation3_spill] sm:$0xff]  ;;  %v9713_v8 = vpop.f32.mrb[14].mxu0 }
 0x5c1   : > { %12639 = vmatpush3.bf16.msra.mxu1 %v22911_v49  ;;  %7956 = vmatprep.mubr.f32.mxu1 %v22822_v51  ;;  %v22916_v51 = vld [vmem:[#allocation5_spill] sm:$0xff]  ;;  %v9714_v6 = vpop.f32.mrb[15].mxu0 }
 0x5c2   : > { %12641 = vmatprep.subr.bf16.mxu1 %v22912_v53  ;;  %v22928_v49 = vld [vmem:[#allocation37_spill] sm:$0xff] }
 0x5c4   : > { %7958 = vmatmul.mubr.f32.gmra.mrb[48].mxu1 %v22827_v29  ;;  %v19552_v29 = vadd.f32 %v9714_v6, %v9713_v8 }
 0x5c5   : > { %12643 = vmatpush3.bf16.msra.mxu1 %v22913_v24  ;;  %7963 = vmatprep.mubr.f32.mxu1 %v22831_v27  ;;  %v22918_v27 = vld [vmem:[#allocation88_spill] sm:$0xff] }
 0x5c6   : > { %12645 = vmatprep.subr.bf16.mxu1 %v22914_v34  ;;  %v22931_v34 = vld [vmem:[#allocation241_spill] sm:$0xff] }
 0x5c8   : > { %7965 = vmatmul.mubr.f32.gmra.mrb[50].mxu1 %v22836_v48  ;;  %v22919_v48 = vld [vmem:[#allocation165_spill] sm:$0xff] }
 0x5c9   : > { %12647 = vmatpush3.bf16.msra.mxu1 %v22915_v15  ;;  %7970 = vmatprep.mubr.f32.mxu1 %v22840_v19  ;;  %v9716_v19 = vpop.f32.mrb[16].mxu0 }
 0x5ca   : > { %12649 = vmatprep.subr.bf16.mxu1 %v22916_v51  ;;  %v9717_v38 = vpop.f32.mrb[17].mxu0  ;;  %v22932_v51 = vld [vmem:[#allocation40_spill] sm:$0xff] }
 0x5cb   : > { %v19561_v20 = vadd.f32 %v9717_v38, %v9716_v19 }
 0x5cc   : > { %7972 = vmatmul.mubr.f32.gmra.mrb[52].mxu1 %v22844_v43  ;;  %v22921_v43 = vld [vmem:[#allocation151_spill] sm:$0xff] }
 0x5cd   : > { %12651 = vmatpush3.bf16.msra.mxu1 %v22917_v39  ;;  %7977 = vmatprep.mubr.f32.mxu1 %v22848_v0  ;;  %v22933_v39 = vld [vmem:[#allocation58_spill] sm:$0xff] }
 0x5ce   : > { %12653 = vmatprep.subr.bf16.mxu1 %v22918_v27  ;;  %v9719_v0 = vpop.f32.mrb[18].mxu0 }
 0x5d0   : > { %7979 = vmatmul.mubr.f32.gmra.mrb[54].mxu1 %v22852_v23  ;;  %v9720_v23 = vpop.f32.mrb[19].mxu0 }
 0x5d1   : > { %12655 = vmatpush3.bf16.msra.mxu1 %v22919_v48  ;;  %7984 = vmatprep.mubr.f32.mxu1 %v22854_v22  ;;  %v19570_v22 = vadd.f32 %v9720_v23, %v9719_v0  ;;  %v22934_v48 = vld [vmem:[#allocation62_spill] sm:$0xff] }
 0x5d2   : > { %12657 = vmatprep.subr.bf16.mxu1 %v22920_v1  ;;  %v22935_v1 = vld [vmem:[#allocation75_spill] sm:$0xff] }
 0x5d4   : > { %7986 = vmatmul.mubr.f32.gmra.mrb[56].mxu1 %v22857_v60  ;;  %v22923_v60 = vld [vmem:[#allocation32_spill] sm:$0xff] }
 0x5d5   : > { %12659 = vmatpush3.bf16.msra.mxu1 %v22921_v43  ;;  %7991 = vmatprep.mubr.f32.mxu1 %v22859_v61  ;;  %v9722_v61 = vpop.f32.mrb[20].mxu0  ;;  %v22936_v43 = vld [vmem:[#allocation84_spill] sm:$0xff] }
 0x5d6   : > { %12661 = vmatprep.subr.bf16.mxu1 %v19328_v42  ;;  %v22924_v42 = vld [vmem:[#allocation34_spill] sm:$0xff]  ;;  %v9723_v52 = vpop.f32.mrb[21].mxu0 }
 0x5d8   : > { %7993 = vmatmul.mubr.f32.gmra.mrb[58].mxu1 %v22863_v13  ;;  %v19577_v13 = vadd.f32 %v9723_v52, %v9722_v61  ;;  %v22937_v61 = vld [vmem:[#allocation93_spill] sm:$0xff] }
 0x5d9   : > { %12663 = vmatpush3.bf16.msra.mxu1 %v19335_v32  ;;  %8440 = vmatprep.mubr.f32.mxu1 %v22856_v37  ;;  %v22926_v32 = vld [vmem:[#allocation38_spill] sm:$0xff] }
 0x5da   : > { %12697 = vmatprep.subr.bf16.mxu1 %v22922_v26  ;;  %22925 = vst [vmem:[#allocation169_spill] sm:$0xff] %v19577_v13 }
 0x5db   : > { %v9725_v57 = vpop.f32.mrb[22].mxu0 }
 0x5dc   : > { %8442 = vmatmul.mubr.f32.vlgmr.msra.gmra.mrb[60].mxu1 %v22861_v9  ;;  %v9726_v53 = vpop.f32.mrb[23].mxu0 }
 0x5dd   : > { %12699 = vmatpush3.bf16.msra.mxu1 %v22923_v60  ;;  %8447 = vmatprep.mubr.f32.mxu1 %v22862_v12  ;;  %v19587_v21 = vadd.f32 %v9726_v53, %v9725_v57  ;;  %v22938_v57 = vld [vmem:[#allocation50_spill] sm:$0xff] }
 0x5de   : > { %12701 = vmatprep.subr.bf16.mxu1 %v22924_v42 }
 0x5df   : > { %22930 = vst [vmem:[#allocation170_spill] sm:$0xff] %v19587_v21  ;;  %v9816_v24 = vpop.f32.mrb[24].mxu0  ;;  %v22941_v21 = vand.u32 4294901760, %v22800_v2 }
 0x5e0   : > { %8449 = vmatmul.mubr.f32.gmra.mrb[62].mxu1 %v22867_v7  ;;  %v9817_v15 = vpop.f32.mrb[25].mxu0 }
 0x5e1   : > { %12703 = vmatpush3.bf16.msra.mxu1 %v22926_v32  ;;  %8454 = vmatprep.mubr.f32.mxu1 %v22868_v35  ;;  %v19593_v8 = vadd.f32 %v9817_v15, %v9816_v24  ;;  %v22939_v15 = vld [vmem:[#allocation96_spill] sm:$0xff] }
 0x5e2   : > { %12705 = vmatprep.subr.bf16.mxu1 %v22927_v45 }
 0x5e3   : > { %v9819_v6 = vpop.f32.mrb[26].mxu0 }
 0x5e4   : > { %8456 = vmatmul.mubr.f32.gmra.mrb[64].mxu1 %v22873_v46  ;;  %v9820_v27 = vpop.f32.mrb[27].mxu0 }
 0x5e5   : > { %12707 = vmatpush3.bf16.msra.mxu1 %v22928_v49  ;;  %8461 = vmatprep.mubr.f32.mxu1 %v22874_v44  ;;  %v19599_v19 = vadd.f32 %v9820_v27, %v9819_v6  ;;  %v22940_v6 = vand.u32 4294901760, %v22793_v62 }
 0x5e6   : > { %12709 = vmatprep.subr.bf16.mxu1 %v22929_v5 }
 0x5e8   : > { %8463 = vmatmul.mubr.f32.gmra.mrb[66].mxu1 %v22879_v55  ;;  %v9822_v38 = vpop.f32.mrb[28].mxu0 }
 0x5e9   : > { %12711 = vmatpush3.bf16.msra.mxu1 %v22931_v34  ;;  %8468 = vmatprep.mubr.f32.mxu1 %v22880_v41  ;;  %v9823_v0 = vpop.f32.mrb[29].mxu0 }
 0x5ea   : > { %12713 = vmatprep.subr.bf16.mxu1 %v22932_v51  ;;  %v19605_v23 = vadd.f32 %v9823_v0, %v9822_v38 }
 0x5ec   : > { %8470 = vmatmul.mubr.f32.gmra.mrb[68].mxu1 %v22885_v16  ;;  %v9825_v52 = vpop.f32.mrb[30].mxu0 }
 0x5ed   : > { %12715 = vmatpush3.bf16.msra.mxu1 %v22933_v39  ;;  %8475 = vmatprep.mubr.f32.mxu1 %v22886_v54  ;;  %v9826_v53 = vpop.f32.mrb[31].mxu0 }
 0x5ee   : > { %12717 = vmatprep.subr.bf16.mxu1 %v22934_v48  ;;  %v19611_v24 = vadd.f32 %v9826_v53, %v9825_v52  ;;  %v22942_v52 = vand.u32 4294901760, %v18924_v59 }
 0x5f0   : > { %8477 = vmatmul.mubr.f32.gmra.mrb[70].mxu1 %v22891_v10  ;;  %v9828_v27 = vpop.f32.mrb[32].mxu0 }
 0x5f1   : > { %12719 = vmatpush3.bf16.msra.mxu1 %v22935_v1  ;;  %8482 = vmatprep.mubr.f32.mxu1 %v22892_v31  ;;  %v9829_v38 = vpop.f32.mrb[33].mxu0 }
 0x5f2   : > { %12721 = vmatprep.subr.bf16.mxu1 %v22936_v43  ;;  %v19618_v0 = vadd.f32 %v9829_v38, %v9828_v27  ;;  %v22949_v27 = vand.u32 4294901760, %v22833_v50  ;;  %v22951_v38 = vand.u32 4294901760, %v19207_v25 }
 0x5f4   : > { %8484 = vmatmul.mubr.f32.gmra.mrb[72].mxu1 %v19255_v47 }
 0x5f5   : > { %12723 = vmatpush3.bf16.msra.mxu1 %v22937_v61  ;;  %8489 = vmatprep.mubr.f32.mxu1 %v22897_v17 }
 0x5f6   : > { %12725 = vmatprep.subr.bf16.mxu1 %v22938_v57 }
 0x5f7   : > { %v9831_v53 = vpop.f32.mrb[34].mxu0 }
 0x5f8   : > { %8491 = vmatmul.mubr.f32.gmra.mrb[74].mxu1 %v19316_v33  ;;  %v9832_v13 = vpop.f32.mrb[35].mxu0 }
 0x5f9   : > { %12727 = vmatpush3.bf16.msra.mxu1 %v22939_v15  ;;  %8796 = vmatprep.mubr.f32.mxu1 %v22940_v6  ;;  %v19626_v62 = vadd.f32 %v9832_v13, %v9831_v53  ;;  %v22943_v6 = vand.u32 4294901760, %v22807_v40 }
 0x5fa   : > { %12761 = vmatprep.subr.bf16.mxu1 %v22922_v26  ;;  %v22944_v26 = vand.u32 4294901760, %v18991_v63 }
 0x5fb   : > { %v9834_v2 = vpop.f32.mrb[36].mxu0 }
 0x5fc   : > { %8800 = vmatmul.mubr.f32.vlgmr.msra.gmra.mrb[76].mxu1 %v22941_v21  ;;  %v22945_v21 = vand.u32 4294901760, %v19002_v3 }
 0x5fd   : > { %12763 = vmatpush3.bf16.msra.mxu1 %v22923_v60  ;;  %8807 = vmatprep.mubr.f32.mxu1 %v22942_v52  ;;  %v9835_v60 = vpop.f32.mrb[37].mxu0  ;;  %v22953_v52 = vand.u32 4294901760, %v19268_v28 }
 0x5fe   : > { %12765 = vmatprep.subr.bf16.mxu1 %v22924_v42  ;;  %v19634_v59 = vadd.f32 %v9835_v60, %v9834_v2  ;;  %v22946_v42 = vand.u32 4294901760, %v19050_v18 }
 0x5ff   : > { %v9837_v40 = vpop.f32.mrb[38].mxu0 }
 0x600   : > { %8811 = vmatmul.mubr.f32.gmra.mrb[78].mxu1 %v22943_v6  ;;  %v9838_v13 = vpop.f32.mrb[39].mxu0  ;;  %v22956_v6 = vld [vmem:[#allocation168_spill] sm:$0xff] }
 0x601   : > { %12767 = vmatpush3.bf16.msra.mxu1 %v22926_v32  ;;  %8818 = vmatprep.mubr.f32.mxu1 %v22944_v26  ;;  %v19642_v63 = vadd.f32 %v9838_v13, %v9837_v40  ;;  %v22947_v32 = vand.u32 4294901760, %v19072_v30  ;;  %v22957_v26 = vand.u32 4294901760, %v22956_v6 }
 0x602   : > { %12769 = vmatprep.subr.bf16.mxu1 %v22927_v45  ;;  %v22948_v45 = vand.u32 4294901760, %v22824_v14 }
 0x603   : > { %v9928_v3 = vpop.f32.mrb[40].mxu0 }
 0x604   : > { %8822 = vmatmul.mubr.f32.gmra.mrb[80].mxu1 %v22945_v21 }
 0x605   : > { %12771 = vmatpush3.bf16.msra.mxu1 %v22928_v49  ;;  %8829 = vmatprep.mubr.f32.mxu1 %v22946_v42  ;;  %v9929_v49 = vpop.f32.mrb[41].mxu0 }
 0x606   : > { %12773 = vmatprep.subr.bf16.mxu1 %v22929_v5  ;;  %v19650_v18 = vadd.f32 %v9929_v49, %v9928_v3  ;;  %v22950_v5 = vand.u32 4294901760, %v19178_v36 }
 0x607   : > { %v9931_v30 = vpop.f32.mrb[42].mxu0 }
 0x608   : > { %8833 = vmatmul.mubr.f32.gmra.mrb[82].mxu1 %v22947_v32 }
 0x609   : > { %12775 = vmatpush3.bf16.msra.mxu1 %v22931_v34  ;;  %8840 = vmatprep.mubr.f32.mxu1 %v22948_v45  ;;  %v9932_v34 = vpop.f32.mrb[43].mxu0 }
 0x60a   : > { %12777 = vmatprep.subr.bf16.mxu1 %v22932_v51  ;;  %v19658_v14 = vadd.f32 %v9932_v34, %v9931_v30  ;;  %v22952_v51 = vand.u32 4294901760, %v19250_v4 }
 0x60c   : > { %8844 = vmatmul.mubr.f32.gmra.mrb[84].mxu1 %v22949_v27  ;;  %v9934_v50 = vpop.f32.mrb[44].mxu0 }
 0x60d   : > { %12779 = vmatpush3.bf16.msra.mxu1 %v22933_v39  ;;  %8851 = vmatprep.mubr.f32.mxu1 %v22950_v5  ;;  %v9935_v39 = vpop.f32.mrb[45].mxu0 }
 0x60e   : > { %12781 = vmatprep.subr.bf16.mxu1 %v22934_v48  ;;  %v19666_v36 = vadd.f32 %v9935_v39, %v9934_v50  ;;  %v22954_v48 = vld [vmem:[#allocation155_spill] sm:$0xff] }
 0x60f   : > { %v22955_v53 = vand.u32 4294901760, %v22954_v48 }
 0x610   : > { %8855 = vmatmul.mubr.f32.gmra.mrb[86].mxu1 %v22951_v38  ;;  %v9937_v25 = vpop.f32.mrb[46].mxu0 }
 0x611   : > { %12783 = vmatpush3.bf16.msra.mxu1 %v22935_v1  ;;  %8862 = vmatprep.mubr.f32.mxu1 %v22952_v51  ;;  %v9938_v1 = vpop.f32.mrb[47].mxu0 }
 0x612   : > { %12785 = vmatprep.subr.bf16.mxu1 %v22936_v43  ;;  %v19674_v4 = vadd.f32 %v9938_v1, %v9937_v25 }
 0x614   : > { %8866 = vmatmul.mubr.f32.gmra.mrb[88].mxu1 %v22953_v52  ;;  %v9940_v28 = vpop.f32.mrb[48].mxu0 }
 0x615   : > { %12787 = vmatpush3.bf16.msra.mxu1 %v22937_v61  ;;  %8873 = vmatprep.mubr.f32.mxu1 %v22955_v53  ;;  %v9941_v43 = vpop.f32.mrb[49].mxu0 }
 0x616   : > { %12789 = vmatprep.subr.bf16.mxu1 %v22938_v57  ;;  %v19680_v2 = vadd.f32 %v9941_v43, %v9940_v28 }
 0x618   : > { %8877 = vmatmul.mubr.f32.gmra.mrb[90].mxu1 %v22957_v26 }
 0x619   : > { %12791 = vmatpush3.bf16.msra.mxu1 %v22939_v15  ;;  %9196 = vmatprep.mubr.f32.mxu1 %v22856_v37  ;;  %v9943_v61 = vpop.f32.mrb[50].mxu0 }
 0x61a   : > { %v9944_v57 = vpop.f32.mrb[51].mxu0 }
 0x61b   : > { %v19684_v60 = vadd.f32 %v9944_v57, %v9943_v61 }
 0x61c   : > { %9198 = vmatmul.mubr.f32.vlgmr.msra.gmra.mrb[92].mxu1 %v22861_v9 }
 0x61d   : > { %9203 = vmatprep.mubr.f32.mxu1 %v22862_v12  ;;  %v9946_v21 = vpop.f32.mrb[52].mxu0 }
 0x61e   : > { %v9947_v15 = vpop.f32.mrb[53].mxu0 }
 0x61f   : > { %v19688_v42 = vadd.f32 %v9947_v15, %v9946_v21 }
 0x620   : > { %9205 = vmatmul.mubr.f32.gmra.mrb[94].mxu1 %v22867_v7 }
 0x621   : > { %9210 = vmatprep.mubr.f32.mxu1 %v22868_v35  ;;  %v9949_v37 = vpop.f32.mrb[54].mxu0 }
 0x622   : > { %v9950_v9 = vpop.f32.mrb[55].mxu0 }
 0x623   : > { %v19692_v40 = vadd.f32 %v9950_v9, %v9949_v37 }
 0x624   : > { %9212 = vmatmul.mubr.f32.gmra.mrb[96].mxu1 %v22873_v46 }
 0x625   : > { %9217 = vmatprep.mubr.f32.mxu1 %v22874_v44  ;;  %v10040_v12 = vpop.f32.mrb[56].mxu0 }
 0x626   : > { %v10041_v7 = vpop.f32.mrb[57].mxu0 }
 0x627   : > { %v19696_v13 = vadd.f32 %v10041_v7, %v10040_v12 }
 0x628   : > { %9219 = vmatmul.mubr.f32.gmra.mrb[98].mxu1 %v22879_v55 }
 0x629   : > { %9224 = vmatprep.mubr.f32.mxu1 %v22880_v41  ;;  %v10043_v35 = vpop.f32.mrb[58].mxu0 }
 0x62a   : > { %v10044_v46 = vpop.f32.mrb[59].mxu0  ;;  %v19700_v32 = vpop.f32.mrb[4].mxu1 }
 0x62b   : > { %v19702_v44 = vadd.f32 %v10044_v46, %v10043_v35  ;;  %v19704_v45 = vpop.f32.mrb[5].mxu1 }
 0x62c   : > { %9226 = vmatmul.mubr.f32.gmra.mrb[100].mxu1 %v22885_v16 }
 0x62d   : > { %9231 = vmatprep.mubr.f32.mxu1 %v22886_v54 }
 0x62e   : > { %v19708_v3 = vpop.f32.mrb[6].mxu1 }
 0x62f   : > { %v10046_v55 = vpop.f32.mrb[60].mxu0  ;;  %v19712_v16 = vpop.f32.mrb[7].mxu1 }
 0x630   : > { %9233 = vmatmul.mubr.f32.gmra.mrb[102].mxu1 %v22891_v10  ;;  %v10047_v41 = vpop.f32.mrb[61].mxu0 }
 0x631   : > { %9238 = vmatprep.mubr.f32.mxu1 %v22892_v31  ;;  %v19710_v49 = vadd.f32 %v10047_v41, %v10046_v55 }
 0x633   : > { %v10049_v54 = vpop.f32.mrb[62].mxu0 }
 0x634   : > { %9240 = vmatmul.mubr.f32.gmra.mrb[104].mxu1 %v19255_v47  ;;  %v10050_v27 = vpop.f32.mrb[63].mxu0  ;;  %v19716_v5 = vpop.f32.mrb[8].mxu1 }
 0x635   : > { %9245 = vmatprep.mubr.f32.mxu1 %v22897_v17  ;;  %v19718_v30 = vadd.f32 %v10050_v27, %v10049_v54  ;;  %v19720_v10 = vpop.f32.mrb[9].mxu1 }
 0x638   : > { %9247 = vmatmul.mubr.f32.gmra.mrb[106].mxu1 %v19316_v33  ;;  %v10052_v31 = vpop.f32.mrb[64].mxu0 }
 0x639   : > { %v10053_v34 = vpop.f32.mrb[65].mxu0  ;;  %v19723_v38 = vpop.f32.mrb[10].mxu1 }
 0x63a   : > { %v19725_v51 = vadd.f32 %v10053_v34, %v10052_v31  ;;  %v19727_v50 = vpop.f32.mrb[11].mxu1 }
 0x63c   : > { %v10055_v47 = vpop.f32.mrb[66].mxu0 }
 0x63d   : > { %v10056_v17 = vpop.f32.mrb[67].mxu0 }
 0x63e   : > { %v19729_v39 = vadd.f32 %v10056_v17, %v10055_v47 }
 0x640   : > { %v10058_v52 = vpop.f32.mrb[68].mxu0 }
 0x641   : > { %v10059_v48 = vpop.f32.mrb[69].mxu0 }
 0x642   : > { %v19731_v53 = vadd.f32 %v10059_v48, %v10058_v52 }
 0x644   : > { %v10061_v25 = vpop.f32.mrb[70].mxu0 }
 0x645   : > { %v10062_v1 = vpop.f32.mrb[71].mxu0 }
 0x646   : > { %v19733_v6 = vadd.f32 %v10062_v1, %v10061_v25 }
 0x649   : > { %v10152_v33 = vpop.f32.mrb[72].mxu0 }
 0x64a   : > { %v10153_v26 = vpop.f32.mrb[73].mxu0 }
 0x64b   : > { %v19735_v28 = vadd.f32 %v10153_v26, %v10152_v33 }
 0x64d   : > { %v10155_v43 = vpop.f32.mrb[74].mxu0 }
 0x64e   : > { %v10156_v61 = vpop.f32.mrb[75].mxu0 }
 0x64f   : > { %v9760_v57 = vpop.f32.mrb[12].mxu1  ;;  %v19737_v21 = vadd.f32 %v10156_v61, %v10155_v43 }
 0x650   : > { %v9761_v15 = vpop.f32.mrb[13].mxu1 }
 0x651   : > { %v9762_v37 = vadd.f32 %v9761_v15, %v9760_v57  ;;  %v10158_v9 = vpop.f32.mrb[76].mxu0 }
 0x652   : > { %v10159_v12 = vpop.f32.mrb[77].mxu0 }
 0x653   : > { %v7190_v7 = vadd.f32 %v9762_v37, %v19533_v11  ;;  %v9763_v35 = vpop.f32.mrb[14].mxu1  ;;  %v19740_v46 = vadd.f32 %v10159_v12, %v10158_v9 }
 0x654   : > { %v9764_v55 = vpop.f32.mrb[15].mxu1 }
 0x655   : > { %v7377_v41 = vadd.f32 %v19593_v8, %v7190_v7  ;;  %v9765_v54 = vadd.f32 %v9764_v55, %v9763_v35  ;;  %v10161_v27 = vpop.f32.mrb[78].mxu0 }
 0x656   : > { %v10162_v31 = vpop.f32.mrb[79].mxu0 }
 0x657   : > { %v7197_v34 = vadd.f32 %v9765_v54, %v19536_v58  ;;  %v9766_v47 = vpop.f32.mrb[16].mxu1  ;;  %v19744_v17 = vadd.f32 %v10162_v31, %v10161_v27 }
 0x658   : > { %v9767_v52 = vpop.f32.mrb[17].mxu1 }
 0x659   : > { %v7386_v48 = vadd.f32 %v19599_v19, %v7197_v34  ;;  %v9768_v25 = vadd.f32 %v9767_v52, %v9766_v47  ;;  %v10164_v1 = vpop.f32.mrb[80].mxu0 }
 0x65a   : > { %v10165_v11 = vpop.f32.mrb[81].mxu0 }
 0x65b   : > { %v7204_v33 = vadd.f32 %v9768_v25, %v19542_v56  ;;  %v9769_v26 = vpop.f32.mrb[18].mxu1  ;;  %v19748_v43 = vadd.f32 %v10165_v11, %v10164_v1 }
 0x65c   : > { %v9770_v8 = vpop.f32.mrb[19].mxu1 }
 0x65d   : > { %v7395_v61 = vadd.f32 %v19605_v23, %v7204_v33  ;;  %v9771_v57 = vadd.f32 %v9770_v8, %v9769_v26  ;;  %v10167_v15 = vpop.f32.mrb[82].mxu0 }
 0x65e   : > { %v10168_v58 = vpop.f32.mrb[83].mxu0 }
 0x65f   : > { %v7211_v37 = vadd.f32 %v9771_v57, %v19552_v29  ;;  %v9772_v9 = vpop.f32.mrb[20].mxu1  ;;  %v19752_v12 = vadd.f32 %v10168_v58, %v10167_v15  ;;  %v22958_v57 = vld [vmem:[#allocation169_spill] sm:$0xff] }
 0x660   : > { %v9773_v19 = vpop.f32.mrb[21].mxu1 }
 0x661   : > { %v7404_v7 = vadd.f32 %v19611_v24, %v7211_v37  ;;  %v9774_v35 = vadd.f32 %v9773_v19, %v9772_v9  ;;  %v10170_v55 = vpop.f32.mrb[84].mxu0 }
 0x662   : > { %v10171_v56 = vpop.f32.mrb[85].mxu0 }
 0x663   : > { %v7218_v54 = vadd.f32 %v9774_v35, %v19561_v20  ;;  %v9775_v27 = vpop.f32.mrb[22].mxu1  ;;  %v19756_v31 = vadd.f32 %v10171_v56, %v10170_v55  ;;  %v22959_v55 = vld [vmem:[#allocation170_spill] sm:$0xff] }
 0x664   : > { %v9776_v23 = vpop.f32.mrb[23].mxu1 }
 0x665   : > { %v7413_v34 = vadd.f32 %v19618_v0, %v7218_v54  ;;  %v9777_v47 = vadd.f32 %v9776_v23, %v9775_v27  ;;  %v10173_v52 = vpop.f32.mrb[86].mxu0 }
 0x666   : > { %v10174_v29 = vpop.f32.mrb[87].mxu0 }
 0x667   : > { %v7225_v25 = vadd.f32 %v9777_v47, %v19570_v22  ;;  %v9778_v1 = vpop.f32.mrb[24].mxu1  ;;  %v19760_v11 = vadd.f32 %v10174_v29, %v10173_v52 }
 0x668   : > { %v9779_v24 = vpop.f32.mrb[25].mxu1 }
 0x669   : > { %v7422_v33 = vadd.f32 %v19626_v62, %v7225_v25  ;;  %v9780_v26 = vadd.f32 %v9779_v24, %v9778_v1  ;;  %v10264_v8 = vpop.f32.mrb[88].mxu0 }
 0x66a   : > { %v10265_v20 = vpop.f32.mrb[89].mxu0 }
 0x66b   : > { %v7232_v15 = vadd.f32 %v9780_v26, %v22958_v57  ;;  %v9781_v58 = vpop.f32.mrb[26].mxu1  ;;  %v19764_v37 = vadd.f32 %v10265_v20, %v10264_v8 }
 0x66c   : > { %v9782_v0 = vpop.f32.mrb[27].mxu1 }
 0x66d   : > { %v7431_v9 = vadd.f32 %v19634_v59, %v7232_v15  ;;  %v9783_v19 = vadd.f32 %v9782_v0, %v9781_v58  ;;  %v10267_v35 = vpop.f32.mrb[90].mxu0 }
 0x66e   : > { %v10268_v22 = vpop.f32.mrb[91].mxu0 }
 0x66f   : > { %v7239_v56 = vadd.f32 %v9783_v19, %v22959_v55  ;;  %v9872_v54 = vpop.f32.mrb[28].mxu1  ;;  %v19768_v27 = vadd.f32 %v10268_v22, %v10267_v35 }
 0x670   : > { %v9873_v62 = vpop.f32.mrb[29].mxu1 }
 0x671   : > { %v7440_v23 = vadd.f32 %v19642_v63, %v7239_v56  ;;  %v9874_v47 = vadd.f32 %v9873_v62, %v9872_v54  ;;  %v10270_v52 = vpop.f32.mrb[92].mxu0 }
 0x672   : > { %v10271_v29 = vpop.f32.mrb[93].mxu0 }
 0x673   : > { %v7548_v25 = vadd.f32 %v9874_v47, %v7377_v41  ;;  %v9875_v1 = vpop.f32.mrb[30].mxu1  ;;  %v19771_v24 = vadd.f32 %v10271_v29, %v10270_v52 }
 0x674   : > { %v9876_v26 = vpop.f32.mrb[31].mxu1 }
 0x675   : > { %v7793_v59 = vadd.f32 %v19650_v18, %v7548_v25  ;;  %v9877_v8 = vadd.f32 %v9876_v26, %v9875_v1  ;;  %v10273_v20 = vpop.f32.mrb[94].mxu0 }
 0x676   : > { %v10274_v57 = vpop.f32.mrb[95].mxu0 }
 0x677   : > { %v7559_v15 = vadd.f32 %v9877_v8, %v7386_v48  ;;  %v9878_v58 = vpop.f32.mrb[32].mxu1  ;;  %v19774_v0 = vadd.f32 %v10274_v57, %v10273_v20 }
 0x678   : > { %v9879_v19 = vpop.f32.mrb[33].mxu1 }
 0x679   : > { %v7800_v63 = vadd.f32 %v19658_v14, %v7559_v15  ;;  %v9880_v35 = vadd.f32 %v9879_v19, %v9878_v58  ;;  %v10276_v22 = vpop.f32.mrb[96].mxu0 }
 0x67a   : > { %v10277_v55 = vpop.f32.mrb[97].mxu0 }
 0x67b   : > { %v7570_v41 = vadd.f32 %v9880_v35, %v7395_v61  ;;  %v9881_v56 = vpop.f32.mrb[34].mxu1  ;;  %v19777_v54 = vadd.f32 %v10277_v55, %v10276_v22 }
 0x67c   : > { %v9882_v62 = vpop.f32.mrb[35].mxu1 }
 0x67d   : > { %v7807_v18 = vadd.f32 %v19666_v36, %v7570_v41  ;;  %v9883_v47 = vadd.f32 %v9882_v62, %v9881_v56  ;;  %v10279_v52 = vpop.f32.mrb[98].mxu0 }
 0x67e   : > { %v10280_v29 = vpop.f32.mrb[99].mxu0 }
 0x67f   : > { %v7581_v48 = vadd.f32 %v9883_v47, %v7404_v7  ;;  %v9884_v25 = vpop.f32.mrb[36].mxu1  ;;  %v19780_v1 = vadd.f32 %v10280_v29, %v10279_v52 }
 0x680   : > { %v9885_v26 = vpop.f32.mrb[37].mxu1 }
 0x681   : > { %v7814_v14 = vadd.f32 %v19674_v4, %v7581_v48  ;;  %v9886_v8 = vadd.f32 %v9885_v26, %v9884_v25  ;;  %v10282_v20 = vpop.f32.mrb[100].mxu0 }
 0x682   : > { %v10283_v57 = vpop.f32.mrb[101].mxu0 }
 0x683   : > { %v7592_v61 = vadd.f32 %v9886_v8, %v7413_v34  ;;  %v9887_v15 = vpop.f32.mrb[38].mxu1  ;;  %v19783_v58 = vadd.f32 %v10283_v57, %v10282_v20 }
 0x684   : > { %v9888_v19 = vpop.f32.mrb[39].mxu1 }
 0x685   : > { %v7821_v36 = vadd.f32 %v19680_v2, %v7592_v61  ;;  %v9889_v35 = vadd.f32 %v9888_v19, %v9887_v15  ;;  %v10285_v22 = vpop.f32.mrb[102].mxu0 }
 0x686   : > { %v10286_v55 = vpop.f32.mrb[103].mxu0 }
 0x687   : > { %v7603_v7 = vadd.f32 %v9889_v35, %v7422_v33  ;;  %v9890_v41 = vpop.f32.mrb[40].mxu1  ;;  %v19786_v56 = vadd.f32 %v10286_v55, %v10285_v22 }
 0x688   : > { %v9891_v62 = vpop.f32.mrb[41].mxu1 }
 0x689   : > { %v7828_v4 = vadd.f32 %v19684_v60, %v7603_v7  ;;  %v9892_v47 = vadd.f32 %v9891_v62, %v9890_v41 }
 0x68b   : > { %v7614_v52 = vadd.f32 %v9892_v47, %v7431_v9  ;;  %v9893_v29 = vpop.f32.mrb[42].mxu1 }
 0x68c   : > { %v9894_v34 = vpop.f32.mrb[43].mxu1 }
 0x68d   : > { %v7835_v48 = vadd.f32 %v19688_v42, %v7614_v52  ;;  %v9895_v25 = vadd.f32 %v9894_v34, %v9893_v29 }
 0x68f   : > { %v7625_v26 = vadd.f32 %v9895_v25, %v7440_v23  ;;  %v9984_v8 = vpop.f32.mrb[44].mxu1 }
 0x690   : > { %v9985_v2 = vpop.f32.mrb[45].mxu1 }
 0x691   : > { %v7842_v20 = vadd.f32 %v19692_v40, %v7625_v26  ;;  %v9986_v57 = vadd.f32 %v9985_v2, %v9984_v8 }
 0x693   : > { %v7946_v33 = vadd.f32 %v9986_v57, %v7793_v59  ;;  %v9987_v61 = vpop.f32.mrb[46].mxu1 }
 0x694   : > { %v9988_v15 = vpop.f32.mrb[47].mxu1 }
 0x695   : > { %v8107_v19 = vadd.f32 %v19696_v13, %v7946_v33  ;;  %v9989_v35 = vadd.f32 %v9988_v15, %v9987_v61 }
 0x697   : > { %v7953_v60 = vadd.f32 %v9989_v35, %v7800_v63  ;;  %v9990_v22 = vpop.f32.mrb[48].mxu1 }
 0x698   : > { %v9991_v9 = vpop.f32.mrb[49].mxu1 }
 0x699   : > { %v8122_v55 = vadd.f32 %v19702_v44, %v7953_v60  ;;  %v9992_v7 = vadd.f32 %v9991_v9, %v9990_v22 }
 0x69b   : > { %v7960_v42 = vadd.f32 %v9992_v7, %v7807_v18  ;;  %v9993_v41 = vpop.f32.mrb[50].mxu1 }
 0x69c   : > { %v9994_v23 = vpop.f32.mrb[51].mxu1 }
 0x69d   : > { %v8137_v62 = vadd.f32 %v19710_v49, %v7960_v42  ;;  %v9995_v47 = vadd.f32 %v9994_v23, %v9993_v41 }
 0x69f   : > { %v7967_v40 = vadd.f32 %v9995_v47, %v7814_v14  ;;  %v9996_v52 = vpop.f32.mrb[52].mxu1 }
 0x6a0   : > { %v9997_v59 = vpop.f32.mrb[53].mxu1 }
 0x6a1   : > { %v8152_v29 = vadd.f32 %v19718_v30, %v7967_v40  ;;  %v9998_v34 = vadd.f32 %v9997_v59, %v9996_v52 }
 0x6a3   : > { %v7974_v13 = vadd.f32 %v9998_v34, %v7821_v36  ;;  %v9999_v25 = vpop.f32.mrb[54].mxu1 }
 0x6a4   : > { %v10000_v63 = vpop.f32.mrb[55].mxu1 }
 0x6a5   : > { %v8167_v26 = vadd.f32 %v19725_v51, %v7974_v13  ;;  %v10001_v8 = vadd.f32 %v10000_v63, %v9999_v25 }
 0x6a7   : > { %v7981_v44 = vadd.f32 %v10001_v8, %v7828_v4  ;;  %v10002_v2 = vpop.f32.mrb[56].mxu1 }
 0x6a8   : > { %v10003_v18 = vpop.f32.mrb[57].mxu1 }
 0x6a9   : > { %v8182_v57 = vadd.f32 %v19729_v39, %v7981_v44  ;;  %v10004_v33 = vadd.f32 %v10003_v18, %v10002_v2 }
 0x6ab   : > { %v7988_v49 = vadd.f32 %v10004_v33, %v7835_v48  ;;  %v10005_v61 = vpop.f32.mrb[58].mxu1 }
 0x6ac   : > { %v10006_v14 = vpop.f32.mrb[59].mxu1 }
 0x6ad   : > { %v8197_v15 = vadd.f32 %v19731_v53, %v7988_v49  ;;  %v10007_v35 = vadd.f32 %v10006_v14, %v10005_v61 }
 0x6af   : > { %v7995_v30 = vadd.f32 %v10007_v35, %v7842_v20  ;;  %v10096_v60 = vpop.f32.mrb[60].mxu1 }
 0x6b0   : > { %v10097_v36 = vpop.f32.mrb[61].mxu1 }
 0x6b1   : > { %v8212_v22 = vadd.f32 %v19733_v6, %v7995_v30  ;;  %v10098_v9 = vadd.f32 %v10097_v36, %v10096_v60 }
 0x6b3   : > { %v8444_v51 = vadd.f32 %v10098_v9, %v8107_v19  ;;  %v10099_v7 = vpop.f32.mrb[62].mxu1 }
 0x6b4   : > { %v10100_v4 = vpop.f32.mrb[63].mxu1 }
 0x6b5   : > { %v8631_v42 = vadd.f32 %v19735_v28, %v8444_v51  ;;  %v10101_v41 = vadd.f32 %v10100_v4, %v10099_v7 }
 0x6b7   : > { %v8451_v39 = vadd.f32 %v10101_v41, %v8122_v55  ;;  %v10102_v23 = vpop.f32.mrb[64].mxu1 }
 0x6b8   : > { %v10103_v48 = vpop.f32.mrb[65].mxu1 }
 0x6b9   : > { %v8640_v47 = vadd.f32 %v19737_v21, %v8451_v39  ;;  %v10104_v40 = vadd.f32 %v10103_v48, %v10102_v23 }
 0x6bb   : > { %v8458_v53 = vadd.f32 %v10104_v40, %v8137_v62  ;;  %v10105_v52 = vpop.f32.mrb[66].mxu1 }
 0x6bc   : > { %v10106_v20 = vpop.f32.mrb[67].mxu1 }
 0x6bd   : > { %v8649_v59 = vadd.f32 %v19740_v46, %v8458_v53  ;;  %v10107_v34 = vadd.f32 %v10106_v20, %v10105_v52 }
 0x6bf   : > { %v8465_v6 = vadd.f32 %v10107_v34, %v8152_v29  ;;  %v10108_v13 = vpop.f32.mrb[68].mxu1 }
 0x6c0   : > { %v10109_v19 = vpop.f32.mrb[69].mxu1 }
 0x6c1   : > { %v8658_v25 = vadd.f32 %v19744_v17, %v8465_v6  ;;  %v10110_v63 = vadd.f32 %v10109_v19, %v10108_v13 }
 0x6c3   : > { %v8472_v28 = vadd.f32 %v10110_v63, %v8167_v26  ;;  %v10111_v8 = vpop.f32.mrb[70].mxu1 }
 0x6c4   : > { %v10112_v55 = vpop.f32.mrb[71].mxu1 }
 0x6c5   : > { %v8667_v44 = vadd.f32 %v19748_v43, %v8472_v28  ;;  %v10113_v2 = vadd.f32 %v10112_v55, %v10111_v8 }
 0x6c7   : > { %v8479_v21 = vadd.f32 %v10113_v2, %v8182_v57  ;;  %v10114_v18 = vpop.f32.mrb[72].mxu1 }
 0x6c8   : > { %v10115_v62 = vpop.f32.mrb[73].mxu1 }
 0x6c9   : > { %v8676_v33 = vadd.f32 %v19752_v12, %v8479_v21  ;;  %v10116_v49 = vadd.f32 %v10115_v62, %v10114_v18 }
 0x6cb   : > { %v8486_v46 = vadd.f32 %v10116_v49, %v8197_v15  ;;  %v10117_v61 = vpop.f32.mrb[74].mxu1 }
 0x6cc   : > { %v10118_v29 = vpop.f32.mrb[75].mxu1 }
 0x6cd   : > { %v8685_v14 = vadd.f32 %v19756_v31, %v8486_v46  ;;  %v10119_v35 = vadd.f32 %v10118_v29, %v10117_v61 }
 0x6cf   : > { %v8493_v17 = vadd.f32 %v10119_v35, %v8212_v22  ;;  %v10208_v30 = vpop.f32.mrb[76].mxu1 }
 0x6d0   : > { %v10209_v26 = vpop.f32.mrb[77].mxu1 }
 0x6d1   : > { %v8694_v60 = vadd.f32 %v19760_v11, %v8493_v17  ;;  %v10210_v36 = vadd.f32 %v10209_v26, %v10208_v30 }
 0x6d3   : > { %v8802_v43 = vadd.f32 %v10210_v36, %v8631_v42  ;;  %v10211_v9 = vpop.f32.mrb[78].mxu1 }
 0x6d4   : > { %v10212_v57 = vpop.f32.mrb[79].mxu1 }
 0x6d5   : > { %v9047_v51 = vadd.f32 %v19764_v37, %v8802_v43  ;;  %v10213_v7 = vadd.f32 %v10212_v57, %v10211_v9 }
 0x6d7   : > { %v8813_v12 = vadd.f32 %v10213_v7, %v8640_v47  ;;  %v10214_v4 = vpop.f32.mrb[80].mxu1 }
 0x6d8   : > { %v10215_v15 = vpop.f32.mrb[81].mxu1 }
 0x6d9   : > { %v9054_v41 = vadd.f32 %v19768_v27, %v8813_v12  ;;  %v10216_v39 = vadd.f32 %v10215_v15, %v10214_v4 }
 0x6db   : > { %v8824_v31 = vadd.f32 %v10216_v39, %v8649_v59  ;;  %v10217_v23 = vpop.f32.mrb[82].mxu1 }
 0x6dc   : > { %v10218_v22 = vpop.f32.mrb[83].mxu1 }
 0x6dd   : > { %v9061_v48 = vadd.f32 %v19771_v24, %v8824_v31  ;;  %v10219_v40 = vadd.f32 %v10218_v22, %v10217_v23 }
 0x6df   : > { %v8835_v11 = vadd.f32 %v10219_v40, %v8658_v25  ;;  %v10220_v53 = vpop.f32.mrb[84].mxu1 }
 0x6e0   : > { %v10221_v42 = vpop.f32.mrb[85].mxu1 }
 0x6e1   : > { %v9068_v52 = vadd.f32 %v19774_v0, %v8835_v11  ;;  %v10222_v20 = vadd.f32 %v10221_v42, %v10220_v53 }
 0x6e3   : > { %v8846_v37 = vadd.f32 %v10222_v20, %v8667_v44  ;;  %v10223_v34 = vpop.f32.mrb[86].mxu1 }
 0x6e4   : > { %v10224_v47 = vpop.f32.mrb[87].mxu1 }
 0x6e5   : > { %v9075_v6 = vadd.f32 %v19777_v54, %v8846_v37  ;;  %v10225_v13 = vadd.f32 %v10224_v47, %v10223_v34 }
 0x6e7   : > { %v8857_v27 = vadd.f32 %v10225_v13, %v8676_v33  ;;  %v10226_v19 = vpop.f32.mrb[88].mxu1 }
 0x6e8   : > { %v10227_v59 = vpop.f32.mrb[89].mxu1 }
 0x6e9   : > { %v9082_v63 = vadd.f32 %v19780_v1, %v8857_v27  ;;  %v10228_v28 = vadd.f32 %v10227_v59, %v10226_v19  ;;  %v9379_v1 = vld [vmem:[%s19862_s10] ss:$0 sm:$0xff] }
 0x6eb   : > { %v8868_v24 = vadd.f32 %v10228_v28, %v8685_v14  ;;  %v10229_v25 = vpop.f32.mrb[90].mxu1 }
 0x6ec   : > { %v10230_v8 = vpop.f32.mrb[91].mxu1 }
 0x6ed   : > { %v9089_v55 = vadd.f32 %v19783_v58, %v8868_v24  ;;  %v10231_v0 = vadd.f32 %v10230_v8, %v10229_v25 }
 0x6ef   : > { %v8879_v2 = vadd.f32 %v10231_v0, %v8694_v60  ;;  %v10320_v44 = vpop.f32.mrb[92].mxu1 }
 0x6f0   : > { %v10321_v21 = vpop.f32.mrb[93].mxu1 }
 0x6f1   : > { %v9096_v18 = vadd.f32 %v19786_v56, %v8879_v2  ;;  %v10322_v54 = vadd.f32 %v10321_v21, %v10320_v44 }
 0x6f3   : > { %v9200_v62 = vadd.f32 %v10322_v54, %v9047_v51  ;;  %v10323_v33 = vpop.f32.mrb[94].mxu1 }
 0x6f4   : > { %v10324_v49 = vpop.f32.mrb[95].mxu1 }
 0x6f5   : > { %v9252_v46 = vadd.f32 %v9200_v62, %v19704_v45  ;;  %v10325_v61 = vadd.f32 %v10324_v49, %v10323_v33 }
 0x6f7   : > { %v9267_v58 = vadd.f32 %v9379_v1, %v9252_v46  ;;  %v9207_v56 = vadd.f32 %v10325_v61, %v9054_v41  ;;  %v10326_v29 = vpop.f32.mrb[96].mxu1 }
 0x6f8   : > { %v10327_v14 = vpop.f32.mrb[97].mxu1 }
 0x6f9   : > { %9276 = vst.msk [vmem:[%s19824_s25] sm:$0xff] %vm9275_vm0, %v9267_v58  ;;  %v9253_v35 = vadd.f32 %v19700_v32, %v9207_v56  ;;  %v10328_v45 = vadd.f32 %v10327_v14, %v10326_v29 }
 0x6fb   : > { %v9268_v17 = vadd.f32 %v9379_v1, %v9253_v35  ;;  %v9214_v30 = vadd.f32 %v10328_v45, %v9061_v48  ;;  %v10329_v26 = vpop.f32.mrb[98].mxu1 }
 0x6fc   : > { %v10330_v60 = vpop.f32.mrb[99].mxu1 }
 0x6fd   : > { %9277 = vst.msk [vmem:[%s19824_s25 + $0x8] sm:$0xff] %vm9275_vm0, %v9268_v17  ;;  %v9254_v36 = vadd.f32 %v9214_v30, %v19712_v16  ;;  %v10331_v43 = vadd.f32 %v10330_v60, %v10329_v26 }
 0x6ff   : > { %v9269_v9 = vadd.f32 %v9379_v1, %v9254_v36  ;;  %v9221_v57 = vadd.f32 %v10331_v43, %v9068_v52  ;;  %v10332_v51 = vpop.f32.mrb[100].mxu1 }
 0x700   : > { %v10333_v7 = vpop.f32.mrb[101].mxu1 }
 0x701   : > { %9278 = vst.msk [vmem:[%s19824_s25 + $0x10] sm:$0xff] %vm9275_vm0, %v9269_v9  ;;  %v9255_v32 = vadd.f32 %v19708_v3, %v9221_v57  ;;  %v10334_v12 = vadd.f32 %v10333_v7, %v10332_v51 }
 0x703   : > { %v9270_v4 = vadd.f32 %v9379_v1, %v9255_v32  ;;  %v9228_v15 = vadd.f32 %v10334_v12, %v9075_v6  ;;  %v10335_v41 = vpop.f32.mrb[102].mxu1 }
 0x704   : > { %v10336_v39 = vpop.f32.mrb[103].mxu1 }
 0x705   : > { %9279 = vst.msk [vmem:[%s19824_s25 + $0x18] sm:$0xff] %vm9275_vm0, %v9270_v4  ;;  %v9256_v16 = vadd.f32 %v9228_v15, %v19720_v10  ;;  %v10337_v31 = vadd.f32 %v10336_v39, %v10335_v41 }
 0x707   : > { %v9271_v23 = vadd.f32 %v9379_v1, %v9256_v16  ;;  %v9235_v22 = vadd.f32 %v10337_v31, %v9082_v63  ;;  %v10338_v48 = vpop.f32.mrb[104].mxu1 }
 0x708   : > { %v10339_v40 = vpop.f32.mrb[105].mxu1 }
 0x709   : > { %9280 = vst.msk [vmem:[%s19824_s25 + $0x20] sm:$0xff] %vm9275_vm0, %v9271_v23  ;;  %v9257_v3 = vadd.f32 %v19716_v5, %v9235_v22  ;;  %v10340_v11 = vadd.f32 %v10339_v40, %v10338_v48 }
 0x70b   : > { %v9272_v53 = vadd.f32 %v9379_v1, %v9257_v3  ;;  %v9242_v42 = vadd.f32 %v10340_v11, %v9089_v55  ;;  %v10341_v52 = vpop.f32.mrb[106].mxu1 }
 0x70c   : > { %v10342_v20 = vpop.f32.mrb[107].mxu1 }
 0x70d   : > { %9281 = vst.msk [vmem:[%s19824_s25 + $0x28] sm:$0xff] %vm9275_vm0, %v9272_v53  ;;  %v9258_v10 = vadd.f32 %v9242_v42, %v19727_v50  ;;  %v10343_v37 = vadd.f32 %v10342_v20, %v10341_v52 }
 0x70f   : > { %v9273_v34 = vadd.f32 %v9379_v1, %v9258_v10  ;;  %v9249_v47 = vadd.f32 %v10343_v37, %v9096_v18 }
 0x711   : > { %9282 = vst.msk [vmem:[%s19824_s25 + $0x30] sm:$0xff] %vm9275_vm0, %v9273_v34  ;;  %v9259_v6 = vadd.f32 %v19723_v38, %v9249_v47 }
 0x713   : > { %v9274_v13 = vadd.f32 %v9379_v1, %v9259_v6 }
 0x715   : > { %9283 = vst.msk [vmem:[%s19824_s25 + $0x38] sm:$0xff] %vm9275_vm0, %v9274_v13 }
 0x716 PF: > { %s21_s17 = sadd.s32 1, %s12966_s17  }
 0x717   : > { %p18_p5 = scmp.ge.s32.totalorder %s21_s17, 4  }
 0x719   :  { %20 = sbr.rel (!%p18_p5) target bundleno = 1 (0x1), region = 100 }

</bundles_post_ra>
